<compile_context>
chip_gen: v6e
topology: v6e:2x2x1
jax: 0.10.0
libtpu: 0.0.40
codegen_flags: <defaults>
</compile_context>

<pallas_src>
import jax
import jax.numpy as jnp
import numpy as np
from jax.experimental import pallas as pl
from jax.experimental.pallas import tpu as pltpu


# maxpool follows convs 1, 2, 4, 6, 8 (1-indexed) in the torch Sequential
_POOLS = (True, True, False, True, False, True, False, True)


# ---------------------------------------------------------------------------
# Compile-time constant 0/1 selectors (numpy -> folded into the XLA graph)
# ---------------------------------------------------------------------------
def _band_selector(w_out):
    """sel[dx, x+dx, x] = 1; lowers one 3x3-conv kernel row into a banded matmul."""
    wp = w_out + 2
    sel = np.zeros((3, wp, w_out), np.float32)
    for dx in range(3):
        sel[dx, np.arange(w_out) + dx, np.arange(w_out)] = 1.0
    return sel


def _pool_row_selectors(h):
    ho = h // 2
    re = np.zeros((ho, h), np.float32)
    ro = np.zeros((ho, h), np.float32)
    re[np.arange(ho), 2 * np.arange(ho)] = 1.0
    ro[np.arange(ho), 2 * np.arange(ho) + 1] = 1.0
    return re, ro


def _pool_col_selectors(w, c):
    wo = w // 2
    ce = np.zeros((w * c, wo * c), np.float32)
    co = np.zeros((w * c, wo * c), np.float32)
    eye = np.eye(c, dtype=np.float32)
    for k in range(wo):
        ce[(2 * k) * c:(2 * k + 1) * c, k * c:(k + 1) * c] = eye
        co[(2 * k + 1) * c:(2 * k + 2) * c, k * c:(k + 1) * c] = eye
    return ce, co


# ---------------------------------------------------------------------------
# Fused conv stack: 8x (conv3x3 + ReLU) + 5x maxpool2x2 in ONE pallas_call
# ---------------------------------------------------------------------------
def conv_stack(x_nhwc, conv_params, pools=_POOLS):
    """x_nhwc: (N, H, W, C0) f32.  Returns (N, Hf, Wf*Cl) f32."""
    n, h0, w0, c0 = x_nhwc.shape
    num_layers = len(conv_params)
    chans = [c0] + [cw.shape[-1] for (cw, _) in conv_params]

    # static per-layer input spatial sizes (== conv output sizes, padding=1)
    dims = []
    h, w = h0, w0
    for i in range(num_layers):
        dims.append((h, w))
        if pools[i]:
            h, w = h // 2, w // 2
    hf, wf, cl = h, w, chans[-1]

    # Kernel operands: banded bf16 conv weights, f32 bias rows, pool selectors.
    # (Tiny weight-layout transforms; for inference they can be hoisted & cached.)
    param_arrays = []
    for i, (wgt, bias) in enumerate(conv_params):
        hi, wi = dims[i]
        cin, cout = chans[i], chans[i + 1]
        sel = _band_selector(wi)                              # constant
        wb = jnp.einsum('xpq,txio->tpiqo', sel, wgt.astype(jnp.float32))
        wb = wb.reshape(3, (wi + 2) * cin, wi * cout).astype(jnp.bfloat16)
        brow = jnp.tile(bias.astype(jnp.float32), wi).reshape(1, wi * cout)
        param_arrays += [wb, brow]
        if pools[i]:
            if hi > 2:
                param_arrays += [jnp.asarray(a) for a in _pool_row_selectors(hi)]
            if wi > 2:
                param_arrays += [jnp.asarray(a) for a in _pool_col_selectors(wi, cout)]
    n_params = len(param_arrays)

    # VMEM scratch: zero-padded input + zero-padded output of every layer but last
    scratch = [pltpu.VMEM((h0 + 2, (w0 + 2) * c0), jnp.float32)]
    for i in range(num_layers - 1):
        hi, wi = dims[i]
        cout = chans[i + 1]
        ho, wo = (hi // 2, wi // 2) if pools[i] else (hi, wi)
        scratch.append(pltpu.VMEM((ho + 2, (wo + 2) * cout), jnp.float32))

    def kernel(*refs):
        x_ref = refs[0]
        prefs = refs[1:1 + n_params]
        o_ref = refs[1 + n_params]
        bufs = refs[2 + n_params:]

        # in-kernel zero-padding of the raw input (no external jnp.pad round trip)
        xbuf = bufs[0]
        xbuf[...] = jnp.zeros_like(xbuf)
        xbuf[1:1 + h0, c0:c0 + w0 * c0] = x_ref[0]
        cur = xbuf                                  # padded input of current layer

        pi = 0
        for i in range(num_layers):
            hi, wi = dims[i]
            cout = chans[i + 1]
            wb_ref, brow_ref = prefs[pi], prefs[pi + 1]
            pi += 2

            taps = [cur[d:d + hi, :] for d in range(3)]

            # 3 banded matmuls (one per kernel row), bf16 in -> f32 accumulate
            acc = jnp.dot(taps[0].astype(jnp.bfloat16), wb_ref[0],
                          preferred_element_type=jnp.float32)
            acc = acc + jnp.dot(taps[1].astype(jnp.bfloat16), wb_ref[1],
                                preferred_element_type=jnp.float32)
            acc = acc + jnp.dot(taps[2].astype(jnp.bfloat16), wb_ref[2],
                                preferred_element_type=jnp.float32)
            acc = jnp.maximum(acc + brow_ref[...], 0.0)       # bias + ReLU (f32)

            if pools[i]:
                # fused 2x2 max-pool: row-pair max then column-group-pair max,
                # compacted with exact 0/1 selection matmuls (f32).
                if hi > 2:
                    re_ref, ro_ref = prefs[pi], prefs[pi + 1]
                    pi += 2
                    rows = jnp.maximum(
                        jnp.dot(re_ref[...], acc, preferred_element_type=jnp.float32),
                        jnp.dot(ro_ref[...], acc, preferred_element_type=jnp.float32))
                else:
                    rows = jnp.maximum(acc[0:1, :], acc[1:2, :])
                if wi > 2:
                    ce_ref, co_ref = prefs[pi], prefs[pi + 1]
                    pi += 2
                    out_i = jnp.maximum(
                        jnp.dot(rows, ce_ref[...], preferred_element_type=jnp.float32),
                        jnp.dot(rows, co_ref[...], preferred_element_type=jnp.float32))
                else:
                    out_i = jnp.maximum(rows[:, 0:cout], rows[:, cout:2 * cout])
                ho, wo = hi // 2, wi // 2
            else:
                out_i, ho, wo = acc, hi, wi

            if i == num_layers - 1:
                o_ref[0] = out_i                              # (hf, wf*cl)
            else:
                nbuf = bufs[i + 1]
                nbuf[...] = jnp.zeros_like(nbuf)              # zero padding ring
                nbuf[1:1 + ho, cout:cout + wo * cout] = out_i
                cur = nbuf

    x2d = x_nhwc.reshape(n, h0, w0 * c0)                      # free reshape

    def _const_spec(a):
        nd = a.ndim
        return pl.BlockSpec(a.shape, lambda b, _nd=nd: (0,) * _nd)

    in_specs = [pl.BlockSpec((1, h0, w0 * c0), lambda b: (b, 0, 0))]
    in_specs += [_const_spec(a) for a in param_arrays]

    return pl.pallas_call(
        kernel,
        out_shape=jax.ShapeDtypeStruct((n, hf, wf * cl), jnp.float32),
        grid=(n,),
        in_specs=in_specs,
        out_specs=pl.BlockSpec((1, hf, wf * cl), lambda b: (b, 0, 0)),
        scratch_shapes=scratch,
        compiler_params=pltpu.CompilerParams(
            dimension_semantics=("parallel",),
            vmem_limit_bytes=32 * 1024 * 1024),
    )(x2d, *param_arrays)


# ---------------------------------------------------------------------------
# Classifier: fused 3-layer MLP (Linear+ReLU, Linear+ReLU, Linear)
# ---------------------------------------------------------------------------
def _mlp_kernel(x_ref, w1_ref, b1_ref, w2_ref, b2_ref, w3_ref, b3_ref, o_ref):
    x = x_ref[...].astype(jnp.bfloat16)
    h = jnp.dot(x, w1_ref[...], preferred_element_type=jnp.float32) + b1_ref[...]
    h = jnp.maximum(h, 0.0)
    # TODO(synk): nn.Dropout is identity in eval mode; train-mode random dropout not implemented.
    h = jnp.dot(h.astype(jnp.bfloat16), w2_ref[...],
                preferred_element_type=jnp.float32) + b2_ref[...]
    h = jnp.maximum(h, 0.0)
    o_ref[...] = jnp.dot(h.astype(jnp.bfloat16), w3_ref[...],
                         preferred_element_type=jnp.float32) + b3_ref[...]


def classifier(x, fc_params):
    """x: (N, Din) f32; one fused kernel.

    Batch is padded to a multiple of 8 sublanes and the class dim to 128 lanes
    so the final store is an unmasked, lane-dense vst; padding is sliced away.
    """
    w1, b1, w2, b2, w3, b3 = fc_params
    n = x.shape[0]
    npad = ((n + 7) // 8) * 8
    n_classes = w3.shape[1]
    ncls_pad = ((n_classes + 127) // 128) * 128
    xp = jnp.pad(x, ((0, npad - n), (0, 0)))
    w3p = jnp.pad(w3, ((0, 0), (0, ncls_pad - n_classes)))
    b3p = jnp.pad(b3, ((0, 0), (0, ncls_pad - n_classes)))

    args = (xp,
            w1.astype(jnp.bfloat16), b1.astype(jnp.float32),
            w2.astype(jnp.bfloat16), b2.astype(jnp.float32),
            w3p.astype(jnp.bfloat16), b3p.astype(jnp.float32))

    def _spec(a):
        nd = a.ndim
        return pl.BlockSpec(a.shape, lambda i, _nd=nd: (0,) * _nd)

    out = pl.pallas_call(
        _mlp_kernel,
        out_shape=jax.ShapeDtypeStruct((npad, ncls_pad), jnp.float32),
        grid=(1,),
        in_specs=[_spec(a) for a in args],
        out_specs=pl.BlockSpec((npad, ncls_pad), lambda i: (0, 0)),
        compiler_params=pltpu.CompilerParams(
            dimension_semantics=("arbitrary",)),
    )(*args)
    return out[:n, :n_classes]


# ---------------------------------------------------------------------------
# AdaptiveAvgPool2d((7,7)) general fallback (only used if feature map != 1x1)
# ---------------------------------------------------------------------------
def adaptive_avg_pool_nhwc(x, out_hw=7):
    def pool_axis(t, axis, size):
        parts = []
        for i in range(out_hw):
            s = (i * size) // out_hw
            e = -((-(i + 1) * size) // out_hw)
            seg = jax.lax.slice_in_dim(t, s, e, axis=axis)
            parts.append(jnp.mean(seg, axis=axis, keepdims=True))
        return jnp.concatenate(parts, axis=axis)

    nb, h, w, c = x.shape
    x = pool_axis(x, 1, h)
    x = pool_axis(x, 2, w)
    return x


# ---------------------------------------------------------------------------
# Parameters (deterministic, matching the nn.Module init distributions)
# ---------------------------------------------------------------------------
def init_params(key, nfl=8, n_classes=10):
    chans = [3, nfl, 2 * nfl, 4 * nfl, 4 * nfl, 8 * nfl, 8 * nfl, 8 * nfl, 8 * nfl]
    n_convs = len(chans) - 1
    keys = jax.random.split(key, n_convs + 3)
    conv_params = []
    for i in range(n_convs):
        cin, cout = chans[i], chans[i + 1]
        std = (2.0 / (cout * 3 * 3)) ** 0.5          # kaiming_normal_, fan_out, relu
        w = std * jax.random.normal(keys[i], (3, 3, cin, cout), jnp.float32)
        b = jnp.zeros((cout,), jnp.float32)
        conv_params.append((w, b))
    din = 7 * 7 * 8 * nfl
    dh = 16 * nfl
    k1, k2, k3 = keys[-3], keys[-2], keys[-1]
    fc_params = (
        0.01 * jax.random.normal(k1, (din, dh), jnp.float32),
        jnp.zeros((1, dh), jnp.float32),
        0.01 * jax.random.normal(k2, (dh, dh), jnp.float32),
        jnp.zeros((1, dh), jnp.float32),
        0.01 * jax.random.normal(k3, (dh, n_classes), jnp.float32),
        jnp.zeros((1, n_classes), jnp.float32),
    )
    return conv_params, fc_params


# ---------------------------------------------------------------------------
# Full forward pass
# ---------------------------------------------------------------------------
def slimnet_forward(x_nchw, params):
    conv_params, fc_params = params
    x = jnp.transpose(x_nchw, (0, 2, 3, 1))               # NCHW -> NHWC

    feats = conv_stack(x, conv_params, _POOLS)            # (N, Hf, Wf*Cl) f32
    n = feats.shape[0]
    cl = conv_params[-1][0].shape[-1]
    hf = feats.shape[1]
    wf = feats.shape[2] // cl

    w1, b1, w2, b2, w3, b3 = fc_params
    if hf == 1 and wf == 1:
        # AdaptiveAvgPool2d((7,7)) on a 1x1 map is a pure broadcast; fold the
        # 7*7 replication + NCHW flatten(1) exactly into the first FC weight.
        dh = w1.shape[1]
        w1_eff = w1.reshape(cl, 49, dh).sum(axis=1)
        x_cls = feats.reshape(n, cl)
    else:
        x_nhwc = feats.reshape(n, hf, wf, cl)
        pooled = adaptive_avg_pool_nhwc(x_nhwc, 7)        # (N, 7, 7, Cl)
        # torch flatten(1) acts on NCHW -> (C, H, W) ordering
        x_cls = jnp.transpose(pooled, (0, 3, 1, 2)).reshape(n, -1)
        w1_eff = w1

    return classifier(x_cls, (w1_eff, b1, w2, b2, w3, b3))


if __name__ == "__main__":
    key = jax.random.PRNGKey(0)
    pkey, xkey = jax.random.split(key)

    nfl_units, n_classes = 8, 10
    params = init_params(pkey, nfl=nfl_units, n_classes=n_classes)

    # small input, NCHW like the PyTorch module (32x32 -> 1x1 after 5 pools)
    x = jax.random.normal(xkey, (2, 3, 32, 32), jnp.float32)

    out = jax.jit(slimnet_forward)(x, params)
    out = jax.block_until_ready(out)
    assert out.shape == (2, n_classes)
    assert bool(jnp.all(jnp.isfinite(out)))
    print("KERNEL_OK")
</pallas_src>

<mosaic_0001>
module attributes {stable_mosaic.version = 11 : i64} {
  func.func @kernel(%arg0: i32, %arg1: memref<1x32x96xf32, #tpu.memory_space<vmem>>, %arg2: memref<3x102x256xbf16, #tpu.memory_space<vmem>>, %arg3: memref<1x256xf32, #tpu.memory_space<vmem>>, %arg4: memref<16x32xf32, #tpu.memory_space<vmem>>, %arg5: memref<16x32xf32, #tpu.memory_space<vmem>>, %arg6: memref<256x128xf32, #tpu.memory_space<vmem>>, %arg7: memref<256x128xf32, #tpu.memory_space<vmem>>, %arg8: memref<3x144x256xbf16, #tpu.memory_space<vmem>>, %arg9: memref<1x256xf32, #tpu.memory_space<vmem>>, %arg10: memref<8x16xf32, #tpu.memory_space<vmem>>, %arg11: memref<8x16xf32, #tpu.memory_space<vmem>>, %arg12: memref<256x128xf32, #tpu.memory_space<vmem>>, %arg13: memref<256x128xf32, #tpu.memory_space<vmem>>, %arg14: memref<3x160x256xbf16, #tpu.memory_space<vmem>>, %arg15: memref<1x256xf32, #tpu.memory_space<vmem>>, %arg16: memref<3x320x256xbf16, #tpu.memory_space<vmem>>, %arg17: memref<1x256xf32, #tpu.memory_space<vmem>>, %arg18: memref<4x8xf32, #tpu.memory_space<vmem>>, %arg19: memref<4x8xf32, #tpu.memory_space<vmem>>, %arg20: memref<256x128xf32, #tpu.memory_space<vmem>>, %arg21: memref<256x128xf32, #tpu.memory_space<vmem>>, %arg22: memref<3x192x256xbf16, #tpu.memory_space<vmem>>, %arg23: memref<1x256xf32, #tpu.memory_space<vmem>>, %arg24: memref<3x384x256xbf16, #tpu.memory_space<vmem>>, %arg25: memref<1x256xf32, #tpu.memory_space<vmem>>, %arg26: memref<2x4xf32, #tpu.memory_space<vmem>>, %arg27: memref<2x4xf32, #tpu.memory_space<vmem>>, %arg28: memref<256x128xf32, #tpu.memory_space<vmem>>, %arg29: memref<256x128xf32, #tpu.memory_space<vmem>>, %arg30: memref<3x256x128xbf16, #tpu.memory_space<vmem>>, %arg31: memref<1x128xf32, #tpu.memory_space<vmem>>, %arg32: memref<3x256x128xbf16, #tpu.memory_space<vmem>>, %arg33: memref<1x128xf32, #tpu.memory_space<vmem>>, %arg34: memref<1x1x64xf32, #tpu.memory_space<vmem>>, %arg35: memref<34x102xf32, #tpu.memory_space<vmem>>, %arg36: memref<18x144xf32, #tpu.memory_space<vmem>>, %arg37: memref<10x160xf32, #tpu.memory_space<vmem>>, %arg38: memref<10x320xf32, #tpu.memory_space<vmem>>, %arg39: memref<6x192xf32, #tpu.memory_space<vmem>>, %arg40: memref<6x384xf32, #tpu.memory_space<vmem>>, %arg41: memref<4x256xf32, #tpu.memory_space<vmem>>, %arg42: memref<4x256xf32, #tpu.memory_space<vmem>>) attributes {dimension_semantics = [#tpu.dimension_semantics<parallel>], iteration_bounds = array<i64: 2>, scalar_prefetch = 0 : i64, scratch_operands = 8 : i64, tpu.core_type = #tpu.core_type<tc>, window_params = [{transform_indices = @transform_0, window_bounds = array<i64: 1, 32, 96>}, {pipeline_mode = #tpu.pipeline_mode<synchronous>, transform_indices = @transform_1, window_bounds = array<i64: 3, 102, 256>}, {pipeline_mode = #tpu.pipeline_mode<synchronous>, transform_indices = @transform_2, window_bounds = array<i64: 1, 256>}, {pipeline_mode = #tpu.pipeline_mode<synchronous>, transform_indices = @transform_3, window_bounds = array<i64: 16, 32>}, {pipeline_mode = #tpu.pipeline_mode<synchronous>, transform_indices = @transform_4, window_bounds = array<i64: 16, 32>}, {pipeline_mode = #tpu.pipeline_mode<synchronous>, transform_indices = @transform_5, window_bounds = array<i64: 256, 128>}, {pipeline_mode = #tpu.pipeline_mode<synchronous>, transform_indices = @transform_6, window_bounds = array<i64: 256, 128>}, {pipeline_mode = #tpu.pipeline_mode<synchronous>, transform_indices = @transform_7, window_bounds = array<i64: 3, 144, 256>}, {pipeline_mode = #tpu.pipeline_mode<synchronous>, transform_indices = @transform_8, window_bounds = array<i64: 1, 256>}, {pipeline_mode = #tpu.pipeline_mode<synchronous>, transform_indices = @transform_9, window_bounds = array<i64: 8, 16>}, {pipeline_mode = #tpu.pipeline_mode<synchronous>, transform_indices = @transform_10, window_bounds = array<i64: 8, 16>}, {pipeline_mode = #tpu.pipeline_mode<synchronous>, transform_indices = @transform_11, window_bounds = array<i64: 256, 128>}, {pipeline_mode = #tpu.pipeline_mode<synchronous>, transform_indices = @transform_12, window_bounds = array<i64: 256, 128>}, {pipeline_mode = #tpu.pipeline_mode<synchronous>, transform_indices = @transform_13, window_bounds = array<i64: 3, 160, 256>}, {pipeline_mode = #tpu.pipeline_mode<synchronous>, transform_indices = @transform_14, window_bounds = array<i64: 1, 256>}, {pipeline_mode = #tpu.pipeline_mode<synchronous>, transform_indices = @transform_15, window_bounds = array<i64: 3, 320, 256>}, {pipeline_mode = #tpu.pipeline_mode<synchronous>, transform_indices = @transform_16, window_bounds = array<i64: 1, 256>}, {pipeline_mode = #tpu.pipeline_mode<synchronous>, transform_indices = @transform_17, window_bounds = array<i64: 4, 8>}, {pipeline_mode = #tpu.pipeline_mode<synchronous>, transform_indices = @transform_18, window_bounds = array<i64: 4, 8>}, {pipeline_mode = #tpu.pipeline_mode<synchronous>, transform_indices = @transform_19, window_bounds = array<i64: 256, 128>}, {pipeline_mode = #tpu.pipeline_mode<synchronous>, transform_indices = @transform_20, window_bounds = array<i64: 256, 128>}, {pipeline_mode = #tpu.pipeline_mode<synchronous>, transform_indices = @transform_21, window_bounds = array<i64: 3, 192, 256>}, {pipeline_mode = #tpu.pipeline_mode<synchronous>, transform_indices = @transform_22, window_bounds = array<i64: 1, 256>}, {pipeline_mode = #tpu.pipeline_mode<synchronous>, transform_indices = @transform_23, window_bounds = array<i64: 3, 384, 256>}, {pipeline_mode = #tpu.pipeline_mode<synchronous>, transform_indices = @transform_24, window_bounds = array<i64: 1, 256>}, {pipeline_mode = #tpu.pipeline_mode<synchronous>, transform_indices = @transform_25, window_bounds = array<i64: 2, 4>}, {pipeline_mode = #tpu.pipeline_mode<synchronous>, transform_indices = @transform_26, window_bounds = array<i64: 2, 4>}, {pipeline_mode = #tpu.pipeline_mode<synchronous>, transform_indices = @transform_27, window_bounds = array<i64: 256, 128>}, {pipeline_mode = #tpu.pipeline_mode<synchronous>, transform_indices = @transform_28, window_bounds = array<i64: 256, 128>}, {pipeline_mode = #tpu.pipeline_mode<synchronous>, transform_indices = @transform_29, window_bounds = array<i64: 3, 256, 128>}, {pipeline_mode = #tpu.pipeline_mode<synchronous>, transform_indices = @transform_30, window_bounds = array<i64: 1, 128>}, {pipeline_mode = #tpu.pipeline_mode<synchronous>, transform_indices = @transform_31, window_bounds = array<i64: 3, 256, 128>}, {pipeline_mode = #tpu.pipeline_mode<synchronous>, transform_indices = @transform_32, window_bounds = array<i64: 1, 128>}, {transform_indices = @transform_33, window_bounds = array<i64: 1, 1, 64>}]} {
    %cst = arith.constant 0.000000e+00 : f32
    %0 = vector.broadcast %cst : f32 to vector<34x102xf32>
    %c0 = arith.constant 0 : index
    %c0_0 = arith.constant 0 : index
    %1 = vector.load %arg35[%c0, %c0_0] : memref<34x102xf32, #tpu.memory_space<vmem>>, vector<34x102xf32>
    tpu.vector_store %arg35[%c0, %c0_0], %0 {strides = array<i32>} : memref<34x102xf32, #tpu.memory_space<vmem>>, vector<34x102xf32>,
    %c0_1 = arith.constant 0 : index
    %c0_2 = arith.constant 0 : index
    %c0_3 = arith.constant 0 : index
    %2 = vector.load %arg1[%c0_1, %c0_2, %c0_3] : memref<1x32x96xf32, #tpu.memory_space<vmem>>, vector<1x32x96xf32>
    %3 = vector.shape_cast %2 : vector<1x32x96xf32> to vector<32x96xf32>
    %c1 = arith.constant 1 : index
    %c3 = arith.constant 3 : index
    %4 = vector.load %arg35[%c1, %c3] : memref<34x102xf32, #tpu.memory_space<vmem>>, vector<32x96xf32>
    tpu.vector_store %arg35[%c1, %c3], %3 {strides = array<i32>} : memref<34x102xf32, #tpu.memory_space<vmem>>, vector<32x96xf32>,
    %c0_4 = arith.constant 0 : index
    %c0_5 = arith.constant 0 : index
    %5 = vector.load %arg35[%c0_4, %c0_5] : memref<34x102xf32, #tpu.memory_space<vmem>>, vector<32x102xf32>
    %c1_6 = arith.constant 1 : index
    %c0_7 = arith.constant 0 : index
    %6 = vector.load %arg35[%c1_6, %c0_7] : memref<34x102xf32, #tpu.memory_space<vmem>>, vector<32x102xf32>
    %c2 = arith.constant 2 : index
    %c0_8 = arith.constant 0 : index
    %7 = vector.load %arg35[%c2, %c0_8] : memref<34x102xf32, #tpu.memory_space<vmem>>, vector<32x102xf32>
    %8 = arith.truncf %5 : vector<32x102xf32> to vector<32x102xbf16>
    %c0_9 = arith.constant 0 : index
    %c0_10 = arith.constant 0 : index
    %c0_11 = arith.constant 0 : index
    %9 = vector.load %arg2[%c0_9, %c0_10, %c0_11] : memref<3x102x256xbf16, #tpu.memory_space<vmem>>, vector<1x102x256xbf16>
    %10 = vector.shape_cast %9 : vector<1x102x256xbf16> to vector<102x256xbf16>
    %cst_12 = arith.constant dense<0.000000e+00> : vector<32x256xf32>
    %11 = tpu.matmul %8, %10, %cst_12 {dimension_numbers = #tpu.dot_dimension_numbers<[1], [0], [0], [1], [0, 0, 1, 1], [], []>} : vector<32x102xbf16>, vector<102x256xbf16>, vector<32x256xf32> -> vector<32x256xf32>
    %12 = arith.truncf %6 : vector<32x102xf32> to vector<32x102xbf16>
    %c1_13 = arith.constant 1 : index
    %c0_14 = arith.constant 0 : index
    %c0_15 = arith.constant 0 : index
    %13 = vector.load %arg2[%c1_13, %c0_14, %c0_15] : memref<3x102x256xbf16, #tpu.memory_space<vmem>>, vector<1x102x256xbf16>
    %14 = vector.shape_cast %13 : vector<1x102x256xbf16> to vector<102x256xbf16>
    %cst_16 = arith.constant dense<0.000000e+00> : vector<32x256xf32>
    %15 = tpu.matmul %12, %14, %cst_16 {dimension_numbers = #tpu.dot_dimension_numbers<[1], [0], [0], [1], [0, 0, 1, 1], [], []>} : vector<32x102xbf16>, vector<102x256xbf16>, vector<32x256xf32> -> vector<32x256xf32>
    %16 = arith.addf %11, %15 : vector<32x256xf32>
    %17 = arith.truncf %7 : vector<32x102xf32> to vector<32x102xbf16>
    %c2_17 = arith.constant 2 : index
    %c0_18 = arith.constant 0 : index
    %c0_19 = arith.constant 0 : index
    %18 = vector.load %arg2[%c2_17, %c0_18, %c0_19] : memref<3x102x256xbf16, #tpu.memory_space<vmem>>, vector<1x102x256xbf16>
    %19 = vector.shape_cast %18 : vector<1x102x256xbf16> to vector<102x256xbf16>
    %cst_20 = arith.constant dense<0.000000e+00> : vector<32x256xf32>
    %20 = tpu.matmul %17, %19, %cst_20 {dimension_numbers = #tpu.dot_dimension_numbers<[1], [0], [0], [1], [0, 0, 1, 1], [], []>} : vector<32x102xbf16>, vector<102x256xbf16>, vector<32x256xf32> -> vector<32x256xf32>
    %21 = arith.addf %16, %20 : vector<32x256xf32>
    %c0_21 = arith.constant 0 : index
    %c0_22 = arith.constant 0 : index
    %22 = vector.load %arg3[%c0_21, %c0_22] : memref<1x256xf32, #tpu.memory_space<vmem>>, vector<1x256xf32>
    %23 = vector.broadcast %22 : vector<1x256xf32> to vector<32x256xf32>
    %24 = arith.addf %21, %23 : vector<32x256xf32>
    %cst_23 = arith.constant 0.000000e+00 : f32
    %25 = vector.broadcast %cst_23 : f32 to vector<32x256xf32>
    %26 = arith.maximumf %24, %25 : vector<32x256xf32>
    %c0_24 = arith.constant 0 : index
    %c0_25 = arith.constant 0 : index
    %27 = vector.load %arg4[%c0_24, %c0_25] : memref<16x32xf32, #tpu.memory_space<vmem>>, vector<16x32xf32>
    %cst_26 = arith.constant dense<0.000000e+00> : vector<16x256xf32>
    %28 = tpu.matmul %27, %26, %cst_26 {dimension_numbers = #tpu.dot_dimension_numbers<[1], [0], [0], [1], [0, 0, 1, 1], [], []>} : vector<16x32xf32>, vector<32x256xf32>, vector<16x256xf32> -> vector<16x256xf32>
    %c0_27 = arith.constant 0 : index
    %c0_28 = arith.constant 0 : index
    %29 = vector.load %arg5[%c0_27, %c0_28] : memref<16x32xf32, #tpu.memory_space<vmem>>, vector<16x32xf32>
    %cst_29 = arith.constant dense<0.000000e+00> : vector<16x256xf32>
    %30 = tpu.matmul %29, %26, %cst_29 {dimension_numbers = #tpu.dot_dimension_numbers<[1], [0], [0], [1], [0, 0, 1, 1], [], []>} : vector<16x32xf32>, vector<32x256xf32>, vector<16x256xf32> -> vector<16x256xf32>
    %31 = arith.maximumf %28, %30 : vector<16x256xf32>
    %c0_30 = arith.constant 0 : index
    %c0_31 = arith.constant 0 : index
    %32 = vector.load %arg6[%c0_30, %c0_31] : memref<256x128xf32, #tpu.memory_space<vmem>>, vector<256x128xf32>
    %cst_32 = arith.constant dense<0.000000e+00> : vector<16x128xf32>
    %33 = tpu.matmul %31, %32, %cst_32 {dimension_numbers = #tpu.dot_dimension_numbers<[1], [0], [0], [1], [0, 0, 1, 1], [], []>} : vector<16x256xf32>, vector<256x128xf32>, vector<16x128xf32> -> vector<16x128xf32>
    %c0_33 = arith.constant 0 : index
    %c0_34 = arith.constant 0 : index
    %34 = vector.load %arg7[%c0_33, %c0_34] : memref<256x128xf32, #tpu.memory_space<vmem>>, vector<256x128xf32>
    %cst_35 = arith.constant dense<0.000000e+00> : vector<16x128xf32>
    %35 = tpu.matmul %31, %34, %cst_35 {dimension_numbers = #tpu.dot_dimension_numbers<[1], [0], [0], [1], [0, 0, 1, 1], [], []>} : vector<16x256xf32>, vector<256x128xf32>, vector<16x128xf32> -> vector<16x128xf32>
    %36 = arith.maximumf %33, %35 : vector<16x128xf32>
    %cst_36 = arith.constant 0.000000e+00 : f32
    %37 = vector.broadcast %cst_36 : f32 to vector<18x144xf32>
    %c0_37 = arith.constant 0 : index
    %c0_38 = arith.constant 0 : index
    %38 = vector.load %arg36[%c0_37, %c0_38] : memref<18x144xf32, #tpu.memory_space<vmem>>, vector<18x144xf32>
    tpu.vector_store %arg36[%c0_37, %c0_38], %37 {strides = array<i32>} : memref<18x144xf32, #tpu.memory_space<vmem>>, vector<18x144xf32>,
    %c1_39 = arith.constant 1 : index
    %c8 = arith.constant 8 : index
    %39 = vector.load %arg36[%c1_39, %c8] : memref<18x144xf32, #tpu.memory_space<vmem>>, vector<16x128xf32>
    tpu.vector_store %arg36[%c1_39, %c8], %36 {strides = array<i32>} : memref<18x144xf32, #tpu.memory_space<vmem>>, vector<16x128xf32>,
    %c0_40 = arith.constant 0 : index
    %c0_41 = arith.constant 0 : index
    %40 = vector.load %arg36[%c0_40, %c0_41] : memref<18x144xf32, #tpu.memory_space<vmem>>, vector<16x144xf32>
    %c1_42 = arith.constant 1 : index
    %c0_43 = arith.constant 0 : index
    %41 = vector.load %arg36[%c1_42, %c0_43] : memref<18x144xf32, #tpu.memory_space<vmem>>, vector<16x144xf32>
    %c2_44 = arith.constant 2 : index
    %c0_45 = arith.constant 0 : index
    %42 = vector.load %arg36[%c2_44, %c0_45] : memref<18x144xf32, #tpu.memory_space<vmem>>, vector<16x144xf32>
    %43 = arith.truncf %40 : vector<16x144xf32> to vector<16x144xbf16>
    %c0_46 = arith.constant 0 : index
    %c0_47 = arith.constant 0 : index
    %c0_48 = arith.constant 0 : index
    %44 = vector.load %arg8[%c0_46, %c0_47, %c0_48] : memref<3x144x256xbf16, #tpu.memory_space<vmem>>, vector<1x144x256xbf16>
    %45 = vector.shape_cast %44 : vector<1x144x256xbf16> to vector<144x256xbf16>
    %cst_49 = arith.constant dense<0.000000e+00> : vector<16x256xf32>
    %46 = tpu.matmul %43, %45, %cst_49 {dimension_numbers = #tpu.dot_dimension_numbers<[1], [0], [0], [1], [0, 0, 1, 1], [], []>} : vector<16x144xbf16>, vector<144x256xbf16>, vector<16x256xf32> -> vector<16x256xf32>
    %47 = arith.truncf %41 : vector<16x144xf32> to vector<16x144xbf16>
    %c1_50 = arith.constant 1 : index
    %c0_51 = arith.constant 0 : index
    %c0_52 = arith.constant 0 : index
    %48 = vector.load %arg8[%c1_50, %c0_51, %c0_52] : memref<3x144x256xbf16, #tpu.memory_space<vmem>>, vector<1x144x256xbf16>
    %49 = vector.shape_cast %48 : vector<1x144x256xbf16> to vector<144x256xbf16>
    %cst_53 = arith.constant dense<0.000000e+00> : vector<16x256xf32>
    %50 = tpu.matmul %47, %49, %cst_53 {dimension_numbers = #tpu.dot_dimension_numbers<[1], [0], [0], [1], [0, 0, 1, 1], [], []>} : vector<16x144xbf16>, vector<144x256xbf16>, vector<16x256xf32> -> vector<16x256xf32>
    %51 = arith.addf %46, %50 : vector<16x256xf32>
    %52 = arith.truncf %42 : vector<16x144xf32> to vector<16x144xbf16>
    %c2_54 = arith.constant 2 : index
    %c0_55 = arith.constant 0 : index
    %c0_56 = arith.constant 0 : index
    %53 = vector.load %arg8[%c2_54, %c0_55, %c0_56] : memref<3x144x256xbf16, #tpu.memory_space<vmem>>, vector<1x144x256xbf16>
    %54 = vector.shape_cast %53 : vector<1x144x256xbf16> to vector<144x256xbf16>
    %cst_57 = arith.constant dense<0.000000e+00> : vector<16x256xf32>
    %55 = tpu.matmul %52, %54, %cst_57 {dimension_numbers = #tpu.dot_dimension_numbers<[1], [0], [0], [1], [0, 0, 1, 1], [], []>} : vector<16x144xbf16>, vector<144x256xbf16>, vector<16x256xf32> -> vector<16x256xf32>
    %56 = arith.addf %51, %55 : vector<16x256xf32>
    %c0_58 = arith.constant 0 : index
    %c0_59 = arith.constant 0 : index
    %57 = vector.load %arg9[%c0_58, %c0_59] : memref<1x256xf32, #tpu.memory_space<vmem>>, vector<1x256xf32>
    %58 = vector.broadcast %57 : vector<1x256xf32> to vector<16x256xf32>
    %59 = arith.addf %56, %58 : vector<16x256xf32>
    %cst_60 = arith.constant 0.000000e+00 : f32
    %60 = vector.broadcast %cst_60 : f32 to vector<16x256xf32>
    %61 = arith.maximumf %59, %60 : vector<16x256xf32>
    %c0_61 = arith.constant 0 : index
    %c0_62 = arith.constant 0 : index
    %62 = vector.load %arg10[%c0_61, %c0_62] : memref<8x16xf32, #tpu.memory_space<vmem>>, vector<8x16xf32>
    %cst_63 = arith.constant dense<0.000000e+00> : vector<8x256xf32>
    %63 = tpu.matmul %62, %61, %cst_63 {dimension_numbers = #tpu.dot_dimension_numbers<[1], [0], [0], [1], [0, 0, 1, 1], [], []>} : vector<8x16xf32>, vector<16x256xf32>, vector<8x256xf32> -> vector<8x256xf32>
    %c0_64 = arith.constant 0 : index
    %c0_65 = arith.constant 0 : index
    %64 = vector.load %arg11[%c0_64, %c0_65] : memref<8x16xf32, #tpu.memory_space<vmem>>, vector<8x16xf32>
    %cst_66 = arith.constant dense<0.000000e+00> : vector<8x256xf32>
    %65 = tpu.matmul %64, %61, %cst_66 {dimension_numbers = #tpu.dot_dimension_numbers<[1], [0], [0], [1], [0, 0, 1, 1], [], []>} : vector<8x16xf32>, vector<16x256xf32>, vector<8x256xf32> -> vector<8x256xf32>
    %66 = arith.maximumf %63, %65 : vector<8x256xf32>
    %c0_67 = arith.constant 0 : index
    %c0_68 = arith.constant 0 : index
    %67 = vector.load %arg12[%c0_67, %c0_68] : memref<256x128xf32, #tpu.memory_space<vmem>>, vector<256x128xf32>
    %cst_69 = arith.constant dense<0.000000e+00> : vector<8x128xf32>
    %68 = tpu.matmul %66, %67, %cst_69 {dimension_numbers = #tpu.dot_dimension_numbers<[1], [0], [0], [1], [0, 0, 1, 1], [], []>} : vector<8x256xf32>, vector<256x128xf32>, vector<8x128xf32> -> vector<8x128xf32>
    %c0_70 = arith.constant 0 : index
    %c0_71 = arith.constant 0 : index
    %69 = vector.load %arg13[%c0_70, %c0_71] : memref<256x128xf32, #tpu.memory_space<vmem>>, vector<256x128xf32>
    %cst_72 = arith.constant dense<0.000000e+00> : vector<8x128xf32>
    %70 = tpu.matmul %66, %69, %cst_72 {dimension_numbers = #tpu.dot_dimension_numbers<[1], [0], [0], [1], [0, 0, 1, 1], [], []>} : vector<8x256xf32>, vector<256x128xf32>, vector<8x128xf32> -> vector<8x128xf32>
    %71 = arith.maximumf %68, %70 : vector<8x128xf32>
    %cst_73 = arith.constant 0.000000e+00 : f32
    %72 = vector.broadcast %cst_73 : f32 to vector<10x160xf32>
    %c0_74 = arith.constant 0 : index
    %c0_75 = arith.constant 0 : index
    %73 = vector.load %arg37[%c0_74, %c0_75] : memref<10x160xf32, #tpu.memory_space<vmem>>, vector<10x160xf32>
    tpu.vector_store %arg37[%c0_74, %c0_75], %72 {strides = array<i32>} : memref<10x160xf32, #tpu.memory_space<vmem>>, vector<10x160xf32>,
    %c1_76 = arith.constant 1 : index
    %c16 = arith.constant 16 : index
    %74 = vector.load %arg37[%c1_76, %c16] : memref<10x160xf32, #tpu.memory_space<vmem>>, vector<8x128xf32>
    tpu.vector_store %arg37[%c1_76, %c16], %71 {strides = array<i32>} : memref<10x160xf32, #tpu.memory_space<vmem>>, vector<8x128xf32>,
    %c0_77 = arith.constant 0 : index
    %c0_78 = arith.constant 0 : index
    %75 = vector.load %arg37[%c0_77, %c0_78] : memref<10x160xf32, #tpu.memory_space<vmem>>, vector<8x160xf32>
    %c1_79 = arith.constant 1 : index
    %c0_80 = arith.constant 0 : index
    %76 = vector.load %arg37[%c1_79, %c0_80] : memref<10x160xf32, #tpu.memory_space<vmem>>, vector<8x160xf32>
    %c2_81 = arith.constant 2 : index
    %c0_82 = arith.constant 0 : index
    %77 = vector.load %arg37[%c2_81, %c0_82] : memref<10x160xf32, #tpu.memory_space<vmem>>, vector<8x160xf32>
    %78 = arith.truncf %75 : vector<8x160xf32> to vector<8x160xbf16>
    %c0_83 = arith.constant 0 : index
    %c0_84 = arith.constant 0 : index
    %c0_85 = arith.constant 0 : index
    %79 = vector.load %arg14[%c0_83, %c0_84, %c0_85] : memref<3x160x256xbf16, #tpu.memory_space<vmem>>, vector<1x160x256xbf16>
    %80 = vector.shape_cast %79 : vector<1x160x256xbf16> to vector<160x256xbf16>
    %cst_86 = arith.constant dense<0.000000e+00> : vector<8x256xf32>
    %81 = tpu.matmul %78, %80, %cst_86 {dimension_numbers = #tpu.dot_dimension_numbers<[1], [0], [0], [1], [0, 0, 1, 1], [], []>} : vector<8x160xbf16>, vector<160x256xbf16>, vector<8x256xf32> -> vector<8x256xf32>
    %82 = arith.truncf %76 : vector<8x160xf32> to vector<8x160xbf16>
    %c1_87 = arith.constant 1 : index
    %c0_88 = arith.constant 0 : index
    %c0_89 = arith.constant 0 : index
    %83 = vector.load %arg14[%c1_87, %c0_88, %c0_89] : memref<3x160x256xbf16, #tpu.memory_space<vmem>>, vector<1x160x256xbf16>
    %84 = vector.shape_cast %83 : vector<1x160x256xbf16> to vector<160x256xbf16>
    %cst_90 = arith.constant dense<0.000000e+00> : vector<8x256xf32>
    %85 = tpu.matmul %82, %84, %cst_90 {dimension_numbers = #tpu.dot_dimension_numbers<[1], [0], [0], [1], [0, 0, 1, 1], [], []>} : vector<8x160xbf16>, vector<160x256xbf16>, vector<8x256xf32> -> vector<8x256xf32>
    %86 = arith.addf %81, %85 : vector<8x256xf32>
    %87 = arith.truncf %77 : vector<8x160xf32> to vector<8x160xbf16>
    %c2_91 = arith.constant 2 : index
    %c0_92 = arith.constant 0 : index
    %c0_93 = arith.constant 0 : index
    %88 = vector.load %arg14[%c2_91, %c0_92, %c0_93] : memref<3x160x256xbf16, #tpu.memory_space<vmem>>, vector<1x160x256xbf16>
    %89 = vector.shape_cast %88 : vector<1x160x256xbf16> to vector<160x256xbf16>
    %cst_94 = arith.constant dense<0.000000e+00> : vector<8x256xf32>
    %90 = tpu.matmul %87, %89, %cst_94 {dimension_numbers = #tpu.dot_dimension_numbers<[1], [0], [0], [1], [0, 0, 1, 1], [], []>} : vector<8x160xbf16>, vector<160x256xbf16>, vector<8x256xf32> -> vector<8x256xf32>
    %91 = arith.addf %86, %90 : vector<8x256xf32>
    %c0_95 = arith.constant 0 : index
    %c0_96 = arith.constant 0 : index
    %92 = vector.load %arg15[%c0_95, %c0_96] : memref<1x256xf32, #tpu.memory_space<vmem>>, vector<1x256xf32>
    %93 = vector.broadcast %92 : vector<1x256xf32> to vector<8x256xf32>
    %94 = arith.addf %91, %93 : vector<8x256xf32>
    %cst_97 = arith.constant 0.000000e+00 : f32
    %95 = vector.broadcast %cst_97 : f32 to vector<8x256xf32>
    %96 = arith.maximumf %94, %95 : vector<8x256xf32>
    %cst_98 = arith.constant 0.000000e+00 : f32
    %97 = vector.broadcast %cst_98 : f32 to vector<10x320xf32>
    %c0_99 = arith.constant 0 : index
    %c0_100 = arith.constant 0 : index
    %98 = vector.load %arg38[%c0_99, %c0_100] : memref<10x320xf32, #tpu.memory_space<vmem>>, vector<10x320xf32>
    tpu.vector_store %arg38[%c0_99, %c0_100], %97 {strides = array<i32>} : memref<10x320xf32, #tpu.memory_space<vmem>>, vector<10x320xf32>,
    %c1_101 = arith.constant 1 : index
    %c32 = arith.constant 32 : index
    %99 = vector.load %arg38[%c1_101, %c32] : memref<10x320xf32, #tpu.memory_space<vmem>>, vector<8x256xf32>
    tpu.vector_store %arg38[%c1_101, %c32], %96 {strides = array<i32>} : memref<10x320xf32, #tpu.memory_space<vmem>>, vector<8x256xf32>,
    %c0_102 = arith.constant 0 : index
    %c0_103 = arith.constant 0 : index
    %100 = vector.load %arg38[%c0_102, %c0_103] : memref<10x320xf32, #tpu.memory_space<vmem>>, vector<8x320xf32>
    %c1_104 = arith.constant 1 : index
    %c0_105 = arith.constant 0 : index
    %101 = vector.load %arg38[%c1_104, %c0_105] : memref<10x320xf32, #tpu.memory_space<vmem>>, vector<8x320xf32>
    %c2_106 = arith.constant 2 : index
    %c0_107 = arith.constant 0 : index
    %102 = vector.load %arg38[%c2_106, %c0_107] : memref<10x320xf32, #tpu.memory_space<vmem>>, vector<8x320xf32>
    %103 = arith.truncf %100 : vector<8x320xf32> to vector<8x320xbf16>
    %c0_108 = arith.constant 0 : index
    %c0_109 = arith.constant 0 : index
    %c0_110 = arith.constant 0 : index
    %104 = vector.load %arg16[%c0_108, %c0_109, %c0_110] : memref<3x320x256xbf16, #tpu.memory_space<vmem>>, vector<1x320x256xbf16>
    %105 = vector.shape_cast %104 : vector<1x320x256xbf16> to vector<320x256xbf16>
    %cst_111 = arith.constant dense<0.000000e+00> : vector<8x256xf32>
    %106 = tpu.matmul %103, %105, %cst_111 {dimension_numbers = #tpu.dot_dimension_numbers<[1], [0], [0], [1], [0, 0, 1, 1], [], []>} : vector<8x320xbf16>, vector<320x256xbf16>, vector<8x256xf32> -> vector<8x256xf32>
    %107 = arith.truncf %101 : vector<8x320xf32> to vector<8x320xbf16>
    %c1_112 = arith.constant 1 : index
    %c0_113 = arith.constant 0 : index
    %c0_114 = arith.constant 0 : index
    %108 = vector.load %arg16[%c1_112, %c0_113, %c0_114] : memref<3x320x256xbf16, #tpu.memory_space<vmem>>, vector<1x320x256xbf16>
    %109 = vector.shape_cast %108 : vector<1x320x256xbf16> to vector<320x256xbf16>
    %cst_115 = arith.constant dense<0.000000e+00> : vector<8x256xf32>
    %110 = tpu.matmul %107, %109, %cst_115 {dimension_numbers = #tpu.dot_dimension_numbers<[1], [0], [0], [1], [0, 0, 1, 1], [], []>} : vector<8x320xbf16>, vector<320x256xbf16>, vector<8x256xf32> -> vector<8x256xf32>
    %111 = arith.addf %106, %110 : vector<8x256xf32>
    %112 = arith.truncf %102 : vector<8x320xf32> to vector<8x320xbf16>
    %c2_116 = arith.constant 2 : index
    %c0_117 = arith.constant 0 : index
    %c0_118 = arith.constant 0 : index
    %113 = vector.load %arg16[%c2_116, %c0_117, %c0_118] : memref<3x320x256xbf16, #tpu.memory_space<vmem>>, vector<1x320x256xbf16>
    %114 = vector.shape_cast %113 : vector<1x320x256xbf16> to vector<320x256xbf16>
    %cst_119 = arith.constant dense<0.000000e+00> : vector<8x256xf32>
    %115 = tpu.matmul %112, %114, %cst_119 {dimension_numbers = #tpu.dot_dimension_numbers<[1], [0], [0], [1], [0, 0, 1, 1], [], []>} : vector<8x320xbf16>, vector<320x256xbf16>, vector<8x256xf32> -> vector<8x256xf32>
    %116 = arith.addf %111, %115 : vector<8x256xf32>
    %c0_120 = arith.constant 0 : index
    %c0_121 = arith.constant 0 : index
    %117 = vector.load %arg17[%c0_120, %c0_121] : memref<1x256xf32, #tpu.memory_space<vmem>>, vector<1x256xf32>
    %118 = vector.broadcast %117 : vector<1x256xf32> to vector<8x256xf32>
    %119 = arith.addf %116, %118 : vector<8x256xf32>
    %cst_122 = arith.constant 0.000000e+00 : f32
    %120 = vector.broadcast %cst_122 : f32 to vector<8x256xf32>
    %121 = arith.maximumf %119, %120 : vector<8x256xf32>
    %c0_123 = arith.constant 0 : index
    %c0_124 = arith.constant 0 : index
    %122 = vector.load %arg18[%c0_123, %c0_124] : memref<4x8xf32, #tpu.memory_space<vmem>>, vector<4x8xf32>
    %cst_125 = arith.constant dense<0.000000e+00> : vector<4x256xf32>
    %123 = tpu.matmul %122, %121, %cst_125 {dimension_numbers = #tpu.dot_dimension_numbers<[1], [0], [0], [1], [0, 0, 1, 1], [], []>} : vector<4x8xf32>, vector<8x256xf32>, vector<4x256xf32> -> vector<4x256xf32>
    %c0_126 = arith.constant 0 : index
    %c0_127 = arith.constant 0 : index
    %124 = vector.load %arg19[%c0_126, %c0_127] : memref<4x8xf32, #tpu.memory_space<vmem>>, vector<4x8xf32>
    %cst_128 = arith.constant dense<0.000000e+00> : vector<4x256xf32>
    %125 = tpu.matmul %124, %121, %cst_128 {dimension_numbers = #tpu.dot_dimension_numbers<[1], [0], [0], [1], [0, 0, 1, 1], [], []>} : vector<4x8xf32>, vector<8x256xf32>, vector<4x256xf32> -> vector<4x256xf32>
    %126 = arith.maximumf %123, %125 : vector<4x256xf32>
    %c0_129 = arith.constant 0 : index
    %c0_130 = arith.constant 0 : index
    %127 = vector.load %arg20[%c0_129, %c0_130] : memref<256x128xf32, #tpu.memory_space<vmem>>, vector<256x128xf32>
    %cst_131 = arith.constant dense<0.000000e+00> : vector<4x128xf32>
    %128 = tpu.matmul %126, %127, %cst_131 {dimension_numbers = #tpu.dot_dimension_numbers<[1], [0], [0], [1], [0, 0, 1, 1], [], []>} : vector<4x256xf32>, vector<256x128xf32>, vector<4x128xf32> -> vector<4x128xf32>
    %c0_132 = arith.constant 0 : index
    %c0_133 = arith.constant 0 : index
    %129 = vector.load %arg21[%c0_132, %c0_133] : memref<256x128xf32, #tpu.memory_space<vmem>>, vector<256x128xf32>
    %cst_134 = arith.constant dense<0.000000e+00> : vector<4x128xf32>
    %130 = tpu.matmul %126, %129, %cst_134 {dimension_numbers = #tpu.dot_dimension_numbers<[1], [0], [0], [1], [0, 0, 1, 1], [], []>} : vector<4x256xf32>, vector<256x128xf32>, vector<4x128xf32> -> vector<4x128xf32>
    %131 = arith.maximumf %128, %130 : vector<4x128xf32>
    %cst_135 = arith.constant 0.000000e+00 : f32
    %132 = vector.broadcast %cst_135 : f32 to vector<6x192xf32>
    %c0_136 = arith.constant 0 : index
    %c0_137 = arith.constant 0 : index
    %133 = vector.load %arg39[%c0_136, %c0_137] : memref<6x192xf32, #tpu.memory_space<vmem>>, vector<6x192xf32>
    tpu.vector_store %arg39[%c0_136, %c0_137], %132 {strides = array<i32>} : memref<6x192xf32, #tpu.memory_space<vmem>>, vector<6x192xf32>,
    %c1_138 = arith.constant 1 : index
    %c32_139 = arith.constant 32 : index
    %134 = vector.load %arg39[%c1_138, %c32_139] : memref<6x192xf32, #tpu.memory_space<vmem>>, vector<4x128xf32>
    tpu.vector_store %arg39[%c1_138, %c32_139], %131 {strides = array<i32>} : memref<6x192xf32, #tpu.memory_space<vmem>>, vector<4x128xf32>,
    %c0_140 = arith.constant 0 : index
    %c0_141 = arith.constant 0 : index
    %135 = vector.load %arg39[%c0_140, %c0_141] : memref<6x192xf32, #tpu.memory_space<vmem>>, vector<4x192xf32>
    %c1_142 = arith.constant 1 : index
    %c0_143 = arith.constant 0 : index
    %136 = vector.load %arg39[%c1_142, %c0_143] : memref<6x192xf32, #tpu.memory_space<vmem>>, vector<4x192xf32>
    %c2_144 = arith.constant 2 : index
    %c0_145 = arith.constant 0 : index
    %137 = vector.load %arg39[%c2_144, %c0_145] : memref<6x192xf32, #tpu.memory_space<vmem>>, vector<4x192xf32>
    %138 = arith.truncf %135 : vector<4x192xf32> to vector<4x192xbf16>
    %c0_146 = arith.constant 0 : index
    %c0_147 = arith.constant 0 : index
    %c0_148 = arith.constant 0 : index
    %139 = vector.load %arg22[%c0_146, %c0_147, %c0_148] : memref<3x192x256xbf16, #tpu.memory_space<vmem>>, vector<1x192x256xbf16>
    %140 = vector.shape_cast %139 : vector<1x192x256xbf16> to vector<192x256xbf16>
    %cst_149 = arith.constant dense<0.000000e+00> : vector<4x256xf32>
    %141 = tpu.matmul %138, %140, %cst_149 {dimension_numbers = #tpu.dot_dimension_numbers<[1], [0], [0], [1], [0, 0, 1, 1], [], []>} : vector<4x192xbf16>, vector<192x256xbf16>, vector<4x256xf32> -> vector<4x256xf32>
    %142 = arith.truncf %136 : vector<4x192xf32> to vector<4x192xbf16>
    %c1_150 = arith.constant 1 : index
    %c0_151 = arith.constant 0 : index
    %c0_152 = arith.constant 0 : index
    %143 = vector.load %arg22[%c1_150, %c0_151, %c0_152] : memref<3x192x256xbf16, #tpu.memory_space<vmem>>, vector<1x192x256xbf16>
    %144 = vector.shape_cast %143 : vector<1x192x256xbf16> to vector<192x256xbf16>
    %cst_153 = arith.constant dense<0.000000e+00> : vector<4x256xf32>
    %145 = tpu.matmul %142, %144, %cst_153 {dimension_numbers = #tpu.dot_dimension_numbers<[1], [0], [0], [1], [0, 0, 1, 1], [], []>} : vector<4x192xbf16>, vector<192x256xbf16>, vector<4x256xf32> -> vector<4x256xf32>
    %146 = arith.addf %141, %145 : vector<4x256xf32>
    %147 = arith.truncf %137 : vector<4x192xf32> to vector<4x192xbf16>
    %c2_154 = arith.constant 2 : index
    %c0_155 = arith.constant 0 : index
    %c0_156 = arith.constant 0 : index
    %148 = vector.load %arg22[%c2_154, %c0_155, %c0_156] : memref<3x192x256xbf16, #tpu.memory_space<vmem>>, vector<1x192x256xbf16>
    %149 = vector.shape_cast %148 : vector<1x192x256xbf16> to vector<192x256xbf16>
    %cst_157 = arith.constant dense<0.000000e+00> : vector<4x256xf32>
    %150 = tpu.matmul %147, %149, %cst_157 {dimension_numbers = #tpu.dot_dimension_numbers<[1], [0], [0], [1], [0, 0, 1, 1], [], []>} : vector<4x192xbf16>, vector<192x256xbf16>, vector<4x256xf32> -> vector<4x256xf32>
    %151 = arith.addf %146, %150 : vector<4x256xf32>
    %c0_158 = arith.constant 0 : index
    %c0_159 = arith.constant 0 : index
    %152 = vector.load %arg23[%c0_158, %c0_159] : memref<1x256xf32, #tpu.memory_space<vmem>>, vector<1x256xf32>
    %153 = vector.broadcast %152 : vector<1x256xf32> to vector<4x256xf32>
    %154 = arith.addf %151, %153 : vector<4x256xf32>
    %cst_160 = arith.constant 0.000000e+00 : f32
    %155 = vector.broadcast %cst_160 : f32 to vector<4x256xf32>
    %156 = arith.maximumf %154, %155 : vector<4x256xf32>
    %cst_161 = arith.constant 0.000000e+00 : f32
    %157 = vector.broadcast %cst_161 : f32 to vector<6x384xf32>
    %c0_162 = arith.constant 0 : index
    %c0_163 = arith.constant 0 : index
    %158 = vector.load %arg40[%c0_162, %c0_163] : memref<6x384xf32, #tpu.memory_space<vmem>>, vector<6x384xf32>
    tpu.vector_store %arg40[%c0_162, %c0_163], %157 {strides = array<i32>} : memref<6x384xf32, #tpu.memory_space<vmem>>, vector<6x384xf32>,
    %c1_164 = arith.constant 1 : index
    %c64 = arith.constant 64 : index
    %159 = vector.load %arg40[%c1_164, %c64] : memref<6x384xf32, #tpu.memory_space<vmem>>, vector<4x256xf32>
    tpu.vector_store %arg40[%c1_164, %c64], %156 {strides = array<i32>} : memref<6x384xf32, #tpu.memory_space<vmem>>, vector<4x256xf32>,
    %c0_165 = arith.constant 0 : index
    %c0_166 = arith.constant 0 : index
    %160 = vector.load %arg40[%c0_165, %c0_166] : memref<6x384xf32, #tpu.memory_space<vmem>>, vector<4x384xf32>
    %c1_167 = arith.constant 1 : index
    %c0_168 = arith.constant 0 : index
    %161 = vector.load %arg40[%c1_167, %c0_168] : memref<6x384xf32, #tpu.memory_space<vmem>>, vector<4x384xf32>
    %c2_169 = arith.constant 2 : index
    %c0_170 = arith.constant 0 : index
    %162 = vector.load %arg40[%c2_169, %c0_170] : memref<6x384xf32, #tpu.memory_space<vmem>>, vector<4x384xf32>
    %163 = arith.truncf %160 : vector<4x384xf32> to vector<4x384xbf16>
    %c0_171 = arith.constant 0 : index
    %c0_172 = arith.constant 0 : index
    %c0_173 = arith.constant 0 : index
    %164 = vector.load %arg24[%c0_171, %c0_172, %c0_173] : memref<3x384x256xbf16, #tpu.memory_space<vmem>>, vector<1x384x256xbf16>
    %165 = vector.shape_cast %164 : vector<1x384x256xbf16> to vector<384x256xbf16>
    %cst_174 = arith.constant dense<0.000000e+00> : vector<4x256xf32>
    %166 = tpu.matmul %163, %165, %cst_174 {dimension_numbers = #tpu.dot_dimension_numbers<[1], [0], [0], [1], [0, 0, 1, 1], [], []>} : vector<4x384xbf16>, vector<384x256xbf16>, vector<4x256xf32> -> vector<4x256xf32>
    %167 = arith.truncf %161 : vector<4x384xf32> to vector<4x384xbf16>
    %c1_175 = arith.constant 1 : index
    %c0_176 = arith.constant 0 : index
    %c0_177 = arith.constant 0 : index
    %168 = vector.load %arg24[%c1_175, %c0_176, %c0_177] : memref<3x384x256xbf16, #tpu.memory_space<vmem>>, vector<1x384x256xbf16>
    %169 = vector.shape_cast %168 : vector<1x384x256xbf16> to vector<384x256xbf16>
    %cst_178 = arith.constant dense<0.000000e+00> : vector<4x256xf32>
    %170 = tpu.matmul %167, %169, %cst_178 {dimension_numbers = #tpu.dot_dimension_numbers<[1], [0], [0], [1], [0, 0, 1, 1], [], []>} : vector<4x384xbf16>, vector<384x256xbf16>, vector<4x256xf32> -> vector<4x256xf32>
    %171 = arith.addf %166, %170 : vector<4x256xf32>
    %172 = arith.truncf %162 : vector<4x384xf32> to vector<4x384xbf16>
    %c2_179 = arith.constant 2 : index
    %c0_180 = arith.constant 0 : index
    %c0_181 = arith.constant 0 : index
    %173 = vector.load %arg24[%c2_179, %c0_180, %c0_181] : memref<3x384x256xbf16, #tpu.memory_space<vmem>>, vector<1x384x256xbf16>
    %174 = vector.shape_cast %173 : vector<1x384x256xbf16> to vector<384x256xbf16>
    %cst_182 = arith.constant dense<0.000000e+00> : vector<4x256xf32>
    %175 = tpu.matmul %172, %174, %cst_182 {dimension_numbers = #tpu.dot_dimension_numbers<[1], [0], [0], [1], [0, 0, 1, 1], [], []>} : vector<4x384xbf16>, vector<384x256xbf16>, vector<4x256xf32> -> vector<4x256xf32>
    %176 = arith.addf %171, %175 : vector<4x256xf32>
    %c0_183 = arith.constant 0 : index
    %c0_184 = arith.constant 0 : index
    %177 = vector.load %arg25[%c0_183, %c0_184] : memref<1x256xf32, #tpu.memory_space<vmem>>, vector<1x256xf32>
    %178 = vector.broadcast %177 : vector<1x256xf32> to vector<4x256xf32>
    %179 = arith.addf %176, %178 : vector<4x256xf32>
    %cst_185 = arith.constant 0.000000e+00 : f32
    %180 = vector.broadcast %cst_185 : f32 to vector<4x256xf32>
    %181 = arith.maximumf %179, %180 : vector<4x256xf32>
    %c0_186 = arith.constant 0 : index
    %c0_187 = arith.constant 0 : index
    %182 = vector.load %arg26[%c0_186, %c0_187] : memref<2x4xf32, #tpu.memory_space<vmem>>, vector<2x4xf32>
    %cst_188 = arith.constant dense<0.000000e+00> : vector<2x256xf32>
    %183 = tpu.matmul %182, %181, %cst_188 {dimension_numbers = #tpu.dot_dimension_numbers<[1], [0], [0], [1], [0, 0, 1, 1], [], []>} : vector<2x4xf32>, vector<4x256xf32>, vector<2x256xf32> -> vector<2x256xf32>
    %c0_189 = arith.constant 0 : index
    %c0_190 = arith.constant 0 : index
    %184 = vector.load %arg27[%c0_189, %c0_190] : memref<2x4xf32, #tpu.memory_space<vmem>>, vector<2x4xf32>
    %cst_191 = arith.constant dense<0.000000e+00> : vector<2x256xf32>
    %185 = tpu.matmul %184, %181, %cst_191 {dimension_numbers = #tpu.dot_dimension_numbers<[1], [0], [0], [1], [0, 0, 1, 1], [], []>} : vector<2x4xf32>, vector<4x256xf32>, vector<2x256xf32> -> vector<2x256xf32>
    %186 = arith.maximumf %183, %185 : vector<2x256xf32>
    %c0_192 = arith.constant 0 : index
    %c0_193 = arith.constant 0 : index
    %187 = vector.load %arg28[%c0_192, %c0_193] : memref<256x128xf32, #tpu.memory_space<vmem>>, vector<256x128xf32>
    %cst_194 = arith.constant dense<0.000000e+00> : vector<2x128xf32>
    %188 = tpu.matmul %186, %187, %cst_194 {dimension_numbers = #tpu.dot_dimension_numbers<[1], [0], [0], [1], [0, 0, 1, 1], [], []>} : vector<2x256xf32>, vector<256x128xf32>, vector<2x128xf32> -> vector<2x128xf32>
    %c0_195 = arith.constant 0 : index
    %c0_196 = arith.constant 0 : index
    %189 = vector.load %arg29[%c0_195, %c0_196] : memref<256x128xf32, #tpu.memory_space<vmem>>, vector<256x128xf32>
    %cst_197 = arith.constant dense<0.000000e+00> : vector<2x128xf32>
    %190 = tpu.matmul %186, %189, %cst_197 {dimension_numbers = #tpu.dot_dimension_numbers<[1], [0], [0], [1], [0, 0, 1, 1], [], []>} : vector<2x256xf32>, vector<256x128xf32>, vector<2x128xf32> -> vector<2x128xf32>
    %191 = arith.maximumf %188, %190 : vector<2x128xf32>
    %cst_198 = arith.constant 0.000000e+00 : f32
    %192 = vector.broadcast %cst_198 : f32 to vector<4x256xf32>
    %c0_199 = arith.constant 0 : index
    %c0_200 = arith.constant 0 : index
    %193 = vector.load %arg41[%c0_199, %c0_200] : memref<4x256xf32, #tpu.memory_space<vmem>>, vector<4x256xf32>
    tpu.vector_store %arg41[%c0_199, %c0_200], %192 {strides = array<i32>} : memref<4x256xf32, #tpu.memory_space<vmem>>, vector<4x256xf32>,
    %c1_201 = arith.constant 1 : index
    %c64_202 = arith.constant 64 : index
    %194 = vector.load %arg41[%c1_201, %c64_202] : memref<4x256xf32, #tpu.memory_space<vmem>>, vector<2x128xf32>
    tpu.vector_store %arg41[%c1_201, %c64_202], %191 {strides = array<i32>} : memref<4x256xf32, #tpu.memory_space<vmem>>, vector<2x128xf32>,
    %c0_203 = arith.constant 0 : index
    %c0_204 = arith.constant 0 : index
    %195 = vector.load %arg41[%c0_203, %c0_204] : memref<4x256xf32, #tpu.memory_space<vmem>>, vector<2x256xf32>
    %c1_205 = arith.constant 1 : index
    %c0_206 = arith.constant 0 : index
    %196 = vector.load %arg41[%c1_205, %c0_206] : memref<4x256xf32, #tpu.memory_space<vmem>>, vector<2x256xf32>
    %c2_207 = arith.constant 2 : index
    %c0_208 = arith.constant 0 : index
    %197 = vector.load %arg41[%c2_207, %c0_208] : memref<4x256xf32, #tpu.memory_space<vmem>>, vector<2x256xf32>
    %198 = arith.truncf %195 : vector<2x256xf32> to vector<2x256xbf16>
    %c0_209 = arith.constant 0 : index
    %c0_210 = arith.constant 0 : index
    %c0_211 = arith.constant 0 : index
    %199 = vector.load %arg30[%c0_209, %c0_210, %c0_211] : memref<3x256x128xbf16, #tpu.memory_space<vmem>>, vector<1x256x128xbf16>
    %200 = vector.shape_cast %199 : vector<1x256x128xbf16> to vector<256x128xbf16>
    %cst_212 = arith.constant dense<0.000000e+00> : vector<2x128xf32>
    %201 = tpu.matmul %198, %200, %cst_212 {dimension_numbers = #tpu.dot_dimension_numbers<[1], [0], [0], [1], [0, 0, 1, 1], [], []>} : vector<2x256xbf16>, vector<256x128xbf16>, vector<2x128xf32> -> vector<2x128xf32>
    %202 = arith.truncf %196 : vector<2x256xf32> to vector<2x256xbf16>
    %c1_213 = arith.constant 1 : index
    %c0_214 = arith.constant 0 : index
    %c0_215 = arith.constant 0 : index
    %203 = vector.load %arg30[%c1_213, %c0_214, %c0_215] : memref<3x256x128xbf16, #tpu.memory_space<vmem>>, vector<1x256x128xbf16>
    %204 = vector.shape_cast %203 : vector<1x256x128xbf16> to vector<256x128xbf16>
    %cst_216 = arith.constant dense<0.000000e+00> : vector<2x128xf32>
    %205 = tpu.matmul %202, %204, %cst_216 {dimension_numbers = #tpu.dot_dimension_numbers<[1], [0], [0], [1], [0, 0, 1, 1], [], []>} : vector<2x256xbf16>, vector<256x128xbf16>, vector<2x128xf32> -> vector<2x128xf32>
    %206 = arith.addf %201, %205 : vector<2x128xf32>
    %207 = arith.truncf %197 : vector<2x256xf32> to vector<2x256xbf16>
    %c2_217 = arith.constant 2 : index
    %c0_218 = arith.constant 0 : index
    %c0_219 = arith.constant 0 : index
    %208 = vector.load %arg30[%c2_217, %c0_218, %c0_219] : memref<3x256x128xbf16, #tpu.memory_space<vmem>>, vector<1x256x128xbf16>
    %209 = vector.shape_cast %208 : vector<1x256x128xbf16> to vector<256x128xbf16>
    %cst_220 = arith.constant dense<0.000000e+00> : vector<2x128xf32>
    %210 = tpu.matmul %207, %209, %cst_220 {dimension_numbers = #tpu.dot_dimension_numbers<[1], [0], [0], [1], [0, 0, 1, 1], [], []>} : vector<2x256xbf16>, vector<256x128xbf16>, vector<2x128xf32> -> vector<2x128xf32>
    %211 = arith.addf %206, %210 : vector<2x128xf32>
    %c0_221 = arith.constant 0 : index
    %c0_222 = arith.constant 0 : index
    %212 = vector.load %arg31[%c0_221, %c0_222] : memref<1x128xf32, #tpu.memory_space<vmem>>, vector<1x128xf32>
    %213 = vector.broadcast %212 : vector<1x128xf32> to vector<2x128xf32>
    %214 = arith.addf %211, %213 : vector<2x128xf32>
    %cst_223 = arith.constant 0.000000e+00 : f32
    %215 = vector.broadcast %cst_223 : f32 to vector<2x128xf32>
    %216 = arith.maximumf %214, %215 : vector<2x128xf32>
    %cst_224 = arith.constant 0.000000e+00 : f32
    %217 = vector.broadcast %cst_224 : f32 to vector<4x256xf32>
    %c0_225 = arith.constant 0 : index
    %c0_226 = arith.constant 0 : index
    %218 = vector.load %arg42[%c0_225, %c0_226] : memref<4x256xf32, #tpu.memory_space<vmem>>, vector<4x256xf32>
    tpu.vector_store %arg42[%c0_225, %c0_226], %217 {strides = array<i32>} : memref<4x256xf32, #tpu.memory_space<vmem>>, vector<4x256xf32>,
    %c1_227 = arith.constant 1 : index
    %c64_228 = arith.constant 64 : index
    %219 = vector.load %arg42[%c1_227, %c64_228] : memref<4x256xf32, #tpu.memory_space<vmem>>, vector<2x128xf32>
    tpu.vector_store %arg42[%c1_227, %c64_228], %216 {strides = array<i32>} : memref<4x256xf32, #tpu.memory_space<vmem>>, vector<2x128xf32>,
    %c0_229 = arith.constant 0 : index
    %c0_230 = arith.constant 0 : index
    %220 = vector.load %arg42[%c0_229, %c0_230] : memref<4x256xf32, #tpu.memory_space<vmem>>, vector<2x256xf32>
    %c1_231 = arith.constant 1 : index
    %c0_232 = arith.constant 0 : index
    %221 = vector.load %arg42[%c1_231, %c0_232] : memref<4x256xf32, #tpu.memory_space<vmem>>, vector<2x256xf32>
    %c2_233 = arith.constant 2 : index
    %c0_234 = arith.constant 0 : index
    %222 = vector.load %arg42[%c2_233, %c0_234] : memref<4x256xf32, #tpu.memory_space<vmem>>, vector<2x256xf32>
    %223 = arith.truncf %220 : vector<2x256xf32> to vector<2x256xbf16>
    %c0_235 = arith.constant 0 : index
    %c0_236 = arith.constant 0 : index
    %c0_237 = arith.constant 0 : index
    %224 = vector.load %arg32[%c0_235, %c0_236, %c0_237] : memref<3x256x128xbf16, #tpu.memory_space<vmem>>, vector<1x256x128xbf16>
    %225 = vector.shape_cast %224 : vector<1x256x128xbf16> to vector<256x128xbf16>
    %cst_238 = arith.constant dense<0.000000e+00> : vector<2x128xf32>
    %226 = tpu.matmul %223, %225, %cst_238 {dimension_numbers = #tpu.dot_dimension_numbers<[1], [0], [0], [1], [0, 0, 1, 1], [], []>} : vector<2x256xbf16>, vector<256x128xbf16>, vector<2x128xf32> -> vector<2x128xf32>
    %227 = arith.truncf %221 : vector<2x256xf32> to vector<2x256xbf16>
    %c1_239 = arith.constant 1 : index
    %c0_240 = arith.constant 0 : index
    %c0_241 = arith.constant 0 : index
    %228 = vector.load %arg32[%c1_239, %c0_240, %c0_241] : memref<3x256x128xbf16, #tpu.memory_space<vmem>>, vector<1x256x128xbf16>
    %229 = vector.shape_cast %228 : vector<1x256x128xbf16> to vector<256x128xbf16>
    %cst_242 = arith.constant dense<0.000000e+00> : vector<2x128xf32>
    %230 = tpu.matmul %227, %229, %cst_242 {dimension_numbers = #tpu.dot_dimension_numbers<[1], [0], [0], [1], [0, 0, 1, 1], [], []>} : vector<2x256xbf16>, vector<256x128xbf16>, vector<2x128xf32> -> vector<2x128xf32>
    %231 = arith.addf %226, %230 : vector<2x128xf32>
    %232 = arith.truncf %222 : vector<2x256xf32> to vector<2x256xbf16>
    %c2_243 = arith.constant 2 : index
    %c0_244 = arith.constant 0 : index
    %c0_245 = arith.constant 0 : index
    %233 = vector.load %arg32[%c2_243, %c0_244, %c0_245] : memref<3x256x128xbf16, #tpu.memory_space<vmem>>, vector<1x256x128xbf16>
    %234 = vector.shape_cast %233 : vector<1x256x128xbf16> to vector<256x128xbf16>
    %cst_246 = arith.constant dense<0.000000e+00> : vector<2x128xf32>
    %235 = tpu.matmul %232, %234, %cst_246 {dimension_numbers = #tpu.dot_dimension_numbers<[1], [0], [0], [1], [0, 0, 1, 1], [], []>} : vector<2x256xbf16>, vector<256x128xbf16>, vector<2x128xf32> -> vector<2x128xf32>
    %236 = arith.addf %231, %235 : vector<2x128xf32>
    %c0_247 = arith.constant 0 : index
    %c0_248 = arith.constant 0 : index
    %237 = vector.load %arg33[%c0_247, %c0_248] : memref<1x128xf32, #tpu.memory_space<vmem>>, vector<1x128xf32>
    %238 = vector.broadcast %237 : vector<1x128xf32> to vector<2x128xf32>
    %239 = arith.addf %236, %238 : vector<2x128xf32>
    %cst_249 = arith.constant 0.000000e+00 : f32
    %240 = vector.broadcast %cst_249 : f32 to vector<2x128xf32>
    %241 = arith.maximumf %239, %240 : vector<2x128xf32>
    %242 = vector.extract_strided_slice %241 {offsets = [0, 0], sizes = [1, 128], strides = [1, 1]} : vector<2x128xf32> to vector<1x128xf32>
    %243 = vector.extract_strided_slice %241 {offsets = [1, 0], sizes = [1, 128], strides = [1, 1]} : vector<2x128xf32> to vector<1x128xf32>
    %244 = arith.maximumf %242, %243 : vector<1x128xf32>
    %245 = vector.extract_strided_slice %244 {offsets = [0, 0], sizes = [1, 64], strides = [1, 1]} : vector<1x128xf32> to vector<1x64xf32>
    %246 = vector.extract_strided_slice %244 {offsets = [0, 64], sizes = [1, 64], strides = [1, 1]} : vector<1x128xf32> to vector<1x64xf32>
    %247 = arith.maximumf %245, %246 : vector<1x64xf32>
    %c0_250 = arith.constant 0 : index
    %c0_251 = arith.constant 0 : index
    %c0_252 = arith.constant 0 : index
    %248 = vector.load %arg34[%c0_250, %c0_251, %c0_252] : memref<1x1x64xf32, #tpu.memory_space<vmem>>, vector<1x1x64xf32>
    %249 = vector.shape_cast %248 : vector<1x1x64xf32> to vector<1x64xf32>
    %250 = vector.shape_cast %247 : vector<1x64xf32> to vector<1x1x64xf32>
    tpu.vector_store %arg34[%c0_250, %c0_251, %c0_252], %250 {strides = array<i32>} : memref<1x1x64xf32, #tpu.memory_space<vmem>>, vector<1x1x64xf32>,
    return
  }
  func.func @transform_0(%arg0: i32) -> (i32, i32, i32) {
    %c0_i32 = arith.constant 0 : i32
    %c0_i32_0 = arith.constant 0 : i32
    %c0_i32_1 = arith.constant 0 : i32
    return %arg0, %c0_i32, %c0_i32_0 : i32, i32, i32
  }
  func.func @transform_1(%arg0: i32) -> (i32, i32, i32) {
    %c0_i32 = arith.constant 0 : i32
    %c0_i32_0 = arith.constant 0 : i32
    %c0_i32_1 = arith.constant 0 : i32
    %c0_i32_2 = arith.constant 0 : i32
    return %c0_i32, %c0_i32_0, %c0_i32_1 : i32, i32, i32
  }
  func.func @transform_2(%arg0: i32) -> (i32, i32) {
    %c0_i32 = arith.constant 0 : i32
    %c0_i32_0 = arith.constant 0 : i32
    %c0_i32_1 = arith.constant 0 : i32
    return %c0_i32, %c0_i32_0 : i32, i32
  }
  func.func @transform_3(%arg0: i32) -> (i32, i32) {
    %c0_i32 = arith.constant 0 : i32
    %c0_i32_0 = arith.constant 0 : i32
    %c0_i32_1 = arith.constant 0 : i32
    return %c0_i32, %c0_i32_0 : i32, i32
  }
  func.func @transform_4(%arg0: i32) -> (i32, i32) {
    %c0_i32 = arith.constant 0 : i32
    %c0_i32_0 = arith.constant 0 : i32
    %c0_i32_1 = arith.constant 0 : i32
    return %c0_i32, %c0_i32_0 : i32, i32
  }
  func.func @transform_5(%arg0: i32) -> (i32, i32) {
    %c0_i32 = arith.constant 0 : i32
    %c0_i32_0 = arith.constant 0 : i32
    %c0_i32_1 = arith.constant 0 : i32
    return %c0_i32, %c0_i32_0 : i32, i32
  }
  func.func @transform_6(%arg0: i32) -> (i32, i32) {
    %c0_i32 = arith.constant 0 : i32
    %c0_i32_0 = arith.constant 0 : i32
    %c0_i32_1 = arith.constant 0 : i32
    return %c0_i32, %c0_i32_0 : i32, i32
  }
  func.func @transform_7(%arg0: i32) -> (i32, i32, i32) {
    %c0_i32 = arith.constant 0 : i32
    %c0_i32_0 = arith.constant 0 : i32
    %c0_i32_1 = arith.constant 0 : i32
    %c0_i32_2 = arith.constant 0 : i32
    return %c0_i32, %c0_i32_0, %c0_i32_1 : i32, i32, i32
  }
  func.func @transform_8(%arg0: i32) -> (i32, i32) {
    %c0_i32 = arith.constant 0 : i32
    %c0_i32_0 = arith.constant 0 : i32
    %c0_i32_1 = arith.constant 0 : i32
    return %c0_i32, %c0_i32_0 : i32, i32
  }
  func.func @transform_9(%arg0: i32) -> (i32, i32) {
    %c0_i32 = arith.constant 0 : i32
    %c0_i32_0 = arith.constant 0 : i32
    %c0_i32_1 = arith.constant 0 : i32
    return %c0_i32, %c0_i32_0 : i32, i32
  }
  func.func @transform_10(%arg0: i32) -> (i32, i32) {
    %c0_i32 = arith.constant 0 : i32
    %c0_i32_0 = arith.constant 0 : i32
    %c0_i32_1 = arith.constant 0 : i32
    return %c0_i32, %c0_i32_0 : i32, i32
  }
  func.func @transform_11(%arg0: i32) -> (i32, i32) {
    %c0_i32 = arith.constant 0 : i32
    %c0_i32_0 = arith.constant 0 : i32
    %c0_i32_1 = arith.constant 0 : i32
    return %c0_i32, %c0_i32_0 : i32, i32
  }
  func.func @transform_12(%arg0: i32) -> (i32, i32) {
    %c0_i32 = arith.constant 0 : i32
    %c0_i32_0 = arith.constant 0 : i32
    %c0_i32_1 = arith.constant 0 : i32
    return %c0_i32, %c0_i32_0 : i32, i32
  }
  func.func @transform_13(%arg0: i32) -> (i32, i32, i32) {
    %c0_i32 = arith.constant 0 : i32
    %c0_i32_0 = arith.constant 0 : i32
    %c0_i32_1 = arith.constant 0 : i32
    %c0_i32_2 = arith.constant 0 : i32
    return %c0_i32, %c0_i32_0, %c0_i32_1 : i32, i32, i32
  }
  func.func @transform_14(%arg0: i32) -> (i32, i32) {
    %c0_i32 = arith.constant 0 : i32
    %c0_i32_0 = arith.constant 0 : i32
    %c0_i32_1 = arith.constant 0 : i32
    return %c0_i32, %c0_i32_0 : i32, i32
  }
  func.func @transform_15(%arg0: i32) -> (i32, i32, i32) {
    %c0_i32 = arith.constant 0 : i32
    %c0_i32_0 = arith.constant 0 : i32
    %c0_i32_1 = arith.constant 0 : i32
    %c0_i32_2 = arith.constant 0 : i32
    return %c0_i32, %c0_i32_0, %c0_i32_1 : i32, i32, i32
  }
  func.func @transform_16(%arg0: i32) -> (i32, i32) {
    %c0_i32 = arith.constant 0 : i32
    %c0_i32_0 = arith.constant 0 : i32
    %c0_i32_1 = arith.constant 0 : i32
    return %c0_i32, %c0_i32_0 : i32, i32
  }
  func.func @transform_17(%arg0: i32) -> (i32, i32) {
    %c0_i32 = arith.constant 0 : i32
    %c0_i32_0 = arith.constant 0 : i32
    %c0_i32_1 = arith.constant 0 : i32
    return %c0_i32, %c0_i32_0 : i32, i32
  }
  func.func @transform_18(%arg0: i32) -> (i32, i32) {
    %c0_i32 = arith.constant 0 : i32
    %c0_i32_0 = arith.constant 0 : i32
    %c0_i32_1 = arith.constant 0 : i32
    return %c0_i32, %c0_i32_0 : i32, i32
  }
  func.func @transform_19(%arg0: i32) -> (i32, i32) {
    %c0_i32 = arith.constant 0 : i32
    %c0_i32_0 = arith.constant 0 : i32
    %c0_i32_1 = arith.constant 0 : i32
    return %c0_i32, %c0_i32_0 : i32, i32
  }
  func.func @transform_20(%arg0: i32) -> (i32, i32) {
    %c0_i32 = arith.constant 0 : i32
    %c0_i32_0 = arith.constant 0 : i32
    %c0_i32_1 = arith.constant 0 : i32
    return %c0_i32, %c0_i32_0 : i32, i32
  }
  func.func @transform_21(%arg0: i32) -> (i32, i32, i32) {
    %c0_i32 = arith.constant 0 : i32
    %c0_i32_0 = arith.constant 0 : i32
    %c0_i32_1 = arith.constant 0 : i32
    %c0_i32_2 = arith.constant 0 : i32
    return %c0_i32, %c0_i32_0, %c0_i32_1 : i32, i32, i32
  }
  func.func @transform_22(%arg0: i32) -> (i32, i32) {
    %c0_i32 = arith.constant 0 : i32
    %c0_i32_0 = arith.constant 0 : i32
    %c0_i32_1 = arith.constant 0 : i32
    return %c0_i32, %c0_i32_0 : i32, i32
  }
  func.func @transform_23(%arg0: i32) -> (i32, i32, i32) {
    %c0_i32 = arith.constant 0 : i32
    %c0_i32_0 = arith.constant 0 : i32
    %c0_i32_1 = arith.constant 0 : i32
    %c0_i32_2 = arith.constant 0 : i32
    return %c0_i32, %c0_i32_0, %c0_i32_1 : i32, i32, i32
  }
  func.func @transform_24(%arg0: i32) -> (i32, i32) {
    %c0_i32 = arith.constant 0 : i32
    %c0_i32_0 = arith.constant 0 : i32
    %c0_i32_1 = arith.constant 0 : i32
    return %c0_i32, %c0_i32_0 : i32, i32
  }
  func.func @transform_25(%arg0: i32) -> (i32, i32) {
    %c0_i32 = arith.constant 0 : i32
    %c0_i32_0 = arith.constant 0 : i32
    %c0_i32_1 = arith.constant 0 : i32
    return %c0_i32, %c0_i32_0 : i32, i32
  }
  func.func @transform_26(%arg0: i32) -> (i32, i32) {
    %c0_i32 = arith.constant 0 : i32
    %c0_i32_0 = arith.constant 0 : i32
    %c0_i32_1 = arith.constant 0 : i32
    return %c0_i32, %c0_i32_0 : i32, i32
  }
  func.func @transform_27(%arg0: i32) -> (i32, i32) {
    %c0_i32 = arith.constant 0 : i32
    %c0_i32_0 = arith.constant 0 : i32
    %c0_i32_1 = arith.constant 0 : i32
    return %c0_i32, %c0_i32_0 : i32, i32
  }
  func.func @transform_28(%arg0: i32) -> (i32, i32) {
    %c0_i32 = arith.constant 0 : i32
    %c0_i32_0 = arith.constant 0 : i32
    %c0_i32_1 = arith.constant 0 : i32
    return %c0_i32, %c0_i32_0 : i32, i32
  }
  func.func @transform_29(%arg0: i32) -> (i32, i32, i32) {
    %c0_i32 = arith.constant 0 : i32
    %c0_i32_0 = arith.constant 0 : i32
    %c0_i32_1 = arith.constant 0 : i32
    %c0_i32_2 = arith.constant 0 : i32
    return %c0_i32, %c0_i32_0, %c0_i32_1 : i32, i32, i32
  }
  func.func @transform_30(%arg0: i32) -> (i32, i32) {
    %c0_i32 = arith.constant 0 : i32
    %c0_i32_0 = arith.constant 0 : i32
    %c0_i32_1 = arith.constant 0 : i32
    return %c0_i32, %c0_i32_0 : i32, i32
  }
  func.func @transform_31(%arg0: i32) -> (i32, i32, i32) {
    %c0_i32 = arith.constant 0 : i32
    %c0_i32_0 = arith.constant 0 : i32
    %c0_i32_1 = arith.constant 0 : i32
    %c0_i32_2 = arith.constant 0 : i32
    return %c0_i32, %c0_i32_0, %c0_i32_1 : i32, i32, i32
  }
  func.func @transform_32(%arg0: i32) -> (i32, i32) {
    %c0_i32 = arith.constant 0 : i32
    %c0_i32_0 = arith.constant 0 : i32
    %c0_i32_1 = arith.constant 0 : i32
    return %c0_i32, %c0_i32_0 : i32, i32
  }
  func.func @transform_33(%arg0: i32) -> (i32, i32, i32) {
    %c0_i32 = arith.constant 0 : i32
    %c0_i32_0 = arith.constant 0 : i32
    %c0_i32_1 = arith.constant 0 : i32
    return %arg0, %c0_i32, %c0_i32_0 : i32, i32, i32
  }
}

module attributes {stable_mosaic.version = 11 : i64} {
  func.func @_mlp_kernel(%arg0: i32, %arg1: memref<8x64xf32, #tpu.memory_space<vmem>>, %arg2: memref<64x128xbf16, #tpu.memory_space<vmem>>, %arg3: memref<1x128xf32, #tpu.memory_space<vmem>>, %arg4: memref<128x128xbf16, #tpu.memory_space<vmem>>, %arg5: memref<1x128xf32, #tpu.memory_space<vmem>>, %arg6: memref<128x128xbf16, #tpu.memory_space<vmem>>, %arg7: memref<1x128xf32, #tpu.memory_space<vmem>>, %arg8: memref<8x128xf32, #tpu.memory_space<vmem>>) attributes {dimension_semantics = [#tpu.dimension_semantics<arbitrary>], iteration_bounds = array<i64: 1>, scalar_prefetch = 0 : i64, scratch_operands = 0 : i64, tpu.core_type = #tpu.core_type<tc>, window_params = [{pipeline_mode = #tpu.pipeline_mode<synchronous>, transform_indices = @transform_0, window_bounds = array<i64: 8, 64>}, {pipeline_mode = #tpu.pipeline_mode<synchronous>, transform_indices = @transform_1, window_bounds = array<i64: 64, 128>}, {pipeline_mode = #tpu.pipeline_mode<synchronous>, transform_indices = @transform_2, window_bounds = array<i64: 1, 128>}, {pipeline_mode = #tpu.pipeline_mode<synchronous>, transform_indices = @transform_3, window_bounds = array<i64: 128, 128>}, {pipeline_mode = #tpu.pipeline_mode<synchronous>, transform_indices = @transform_4, window_bounds = array<i64: 1, 128>}, {pipeline_mode = #tpu.pipeline_mode<synchronous>, transform_indices = @transform_5, window_bounds = array<i64: 128, 128>}, {pipeline_mode = #tpu.pipeline_mode<synchronous>, transform_indices = @transform_6, window_bounds = array<i64: 1, 128>}, {pipeline_mode = #tpu.pipeline_mode<synchronous>, transform_indices = @transform_7, window_bounds = array<i64: 8, 128>}]} {
    %c0 = arith.constant 0 : index
    %c0_0 = arith.constant 0 : index
    %0 = vector.load %arg1[%c0, %c0_0] : memref<8x64xf32, #tpu.memory_space<vmem>>, vector<8x64xf32>
    %1 = arith.truncf %0 : vector<8x64xf32> to vector<8x64xbf16>
    %c0_1 = arith.constant 0 : index
    %c0_2 = arith.constant 0 : index
    %2 = vector.load %arg2[%c0_1, %c0_2] : memref<64x128xbf16, #tpu.memory_space<vmem>>, vector<64x128xbf16>
    %cst = arith.constant dense<0.000000e+00> : vector<8x128xf32>
    %3 = tpu.matmul %1, %2, %cst {dimension_numbers = #tpu.dot_dimension_numbers<[1], [0], [0], [1], [0, 0, 1, 1], [], []>} : vector<8x64xbf16>, vector<64x128xbf16>, vector<8x128xf32> -> vector<8x128xf32>
    %c0_3 = arith.constant 0 : index
    %c0_4 = arith.constant 0 : index
    %4 = vector.load %arg3[%c0_3, %c0_4] : memref<1x128xf32, #tpu.memory_space<vmem>>, vector<1x128xf32>
    %5 = vector.broadcast %4 : vector<1x128xf32> to vector<8x128xf32>
    %6 = arith.addf %3, %5 : vector<8x128xf32>
    %cst_5 = arith.constant 0.000000e+00 : f32
    %7 = vector.broadcast %cst_5 : f32 to vector<8x128xf32>
    %8 = arith.maximumf %6, %7 : vector<8x128xf32>
    %9 = arith.truncf %8 : vector<8x128xf32> to vector<8x128xbf16>
    %c0_6 = arith.constant 0 : index
    %c0_7 = arith.constant 0 : index
    %10 = vector.load %arg4[%c0_6, %c0_7] : memref<128x128xbf16, #tpu.memory_space<vmem>>, vector<128x128xbf16>
    %cst_8 = arith.constant dense<0.000000e+00> : vector<8x128xf32>
    %11 = tpu.matmul %9, %10, %cst_8 {dimension_numbers = #tpu.dot_dimension_numbers<[1], [0], [0], [1], [0, 0, 1, 1], [], []>} : vector<8x128xbf16>, vector<128x128xbf16>, vector<8x128xf32> -> vector<8x128xf32>
    %c0_9 = arith.constant 0 : index
    %c0_10 = arith.constant 0 : index
    %12 = vector.load %arg5[%c0_9, %c0_10] : memref<1x128xf32, #tpu.memory_space<vmem>>, vector<1x128xf32>
    %13 = vector.broadcast %12 : vector<1x128xf32> to vector<8x128xf32>
    %14 = arith.addf %11, %13 : vector<8x128xf32>
    %cst_11 = arith.constant 0.000000e+00 : f32
    %15 = vector.broadcast %cst_11 : f32 to vector<8x128xf32>
    %16 = arith.maximumf %14, %15 : vector<8x128xf32>
    %17 = arith.truncf %16 : vector<8x128xf32> to vector<8x128xbf16>
    %c0_12 = arith.constant 0 : index
    %c0_13 = arith.constant 0 : index
    %18 = vector.load %arg6[%c0_12, %c0_13] : memref<128x128xbf16, #tpu.memory_space<vmem>>, vector<128x128xbf16>
    %cst_14 = arith.constant dense<0.000000e+00> : vector<8x128xf32>
    %19 = tpu.matmul %17, %18, %cst_14 {dimension_numbers = #tpu.dot_dimension_numbers<[1], [0], [0], [1], [0, 0, 1, 1], [], []>} : vector<8x128xbf16>, vector<128x128xbf16>, vector<8x128xf32> -> vector<8x128xf32>
    %c0_15 = arith.constant 0 : index
    %c0_16 = arith.constant 0 : index
    %20 = vector.load %arg7[%c0_15, %c0_16] : memref<1x128xf32, #tpu.memory_space<vmem>>, vector<1x128xf32>
    %21 = vector.broadcast %20 : vector<1x128xf32> to vector<8x128xf32>
    %22 = arith.addf %19, %21 : vector<8x128xf32>
    %c0_17 = arith.constant 0 : index
    %c0_18 = arith.constant 0 : index
    %23 = vector.load %arg8[%c0_17, %c0_18] : memref<8x128xf32, #tpu.memory_space<vmem>>, vector<8x128xf32>
    tpu.vector_store %arg8[%c0_17, %c0_18], %22 {strides = array<i32>} : memref<8x128xf32, #tpu.memory_space<vmem>>, vector<8x128xf32>,
    return
  }
  func.func @transform_0(%arg0: i32) -> (i32, i32) {
    %c0_i32 = arith.constant 0 : i32
    %c0_i32_0 = arith.constant 0 : i32
    %c0_i32_1 = arith.constant 0 : i32
    return %c0_i32, %c0_i32_0 : i32, i32
  }
  func.func @transform_1(%arg0: i32) -> (i32, i32) {
    %c0_i32 = arith.constant 0 : i32
    %c0_i32_0 = arith.constant 0 : i32
    %c0_i32_1 = arith.constant 0 : i32
    return %c0_i32, %c0_i32_0 : i32, i32
  }
  func.func @transform_2(%arg0: i32) -> (i32, i32) {
    %c0_i32 = arith.constant 0 : i32
    %c0_i32_0 = arith.constant 0 : i32
    %c0_i32_1 = arith.constant 0 : i32
    return %c0_i32, %c0_i32_0 : i32, i32
  }
  func.func @transform_3(%arg0: i32) -> (i32, i32) {
    %c0_i32 = arith.constant 0 : i32
    %c0_i32_0 = arith.constant 0 : i32
    %c0_i32_1 = arith.constant 0 : i32
    return %c0_i32, %c0_i32_0 : i32, i32
  }
  func.func @transform_4(%arg0: i32) -> (i32, i32) {
    %c0_i32 = arith.constant 0 : i32
    %c0_i32_0 = arith.constant 0 : i32
    %c0_i32_1 = arith.constant 0 : i32
    return %c0_i32, %c0_i32_0 : i32, i32
  }
  func.func @transform_5(%arg0: i32) -> (i32, i32) {
    %c0_i32 = arith.constant 0 : i32
    %c0_i32_0 = arith.constant 0 : i32
    %c0_i32_1 = arith.constant 0 : i32
    return %c0_i32, %c0_i32_0 : i32, i32
  }
  func.func @transform_6(%arg0: i32) -> (i32, i32) {
    %c0_i32 = arith.constant 0 : i32
    %c0_i32_0 = arith.constant 0 : i32
    %c0_i32_1 = arith.constant 0 : i32
    return %c0_i32, %c0_i32_0 : i32, i32
  }
  func.func @transform_7(%arg0: i32) -> (i32, i32) {
    %c0_i32 = arith.constant 0 : i32
    %c0_i32_0 = arith.constant 0 : i32
    %c0_i32_1 = arith.constant 0 : i32
    return %c0_i32, %c0_i32_0 : i32, i32
  }
}

</mosaic_0001>

<bundles_post_ra>
// kernel: tile.43
= control target key start
LH: loop header
LB: loop body
LE: loop exit
PB: predicated region body
PF: predicated region fallthrough
CT: control target
= control target key end

     0   :  { %s40_s0 = inlined_call_operand.vmem [shape: f32[8], index: 0, kind: input, shape index: {}]   ;;  %s41_s1 = inlined_call_operand.vmem [shape: f32[32,8], index: 1, kind: output, shape index: {}]  }
   0x1   :  { %v4_v0 = vld [vmem:[%s40_s0] ss:$0 sm:$0xff] }
   0x2   :  { %5 = vst [vmem:[%s41_s1] sm:$0xff] %v4_v0  ;;  %12 = vst [vmem:[%s41_s1 + $0x8] sm:$0xff] %v4_v0 }
   0x3   :  { %13 = vst [vmem:[%s41_s1 + $0x10] sm:$0xff] %v4_v0  ;;  %14 = vst [vmem:[%s41_s1 + $0x18] sm:$0xff] %v4_v0 }

// kernel: tile.44
= control target key start
LH: loop header
LB: loop body
LE: loop exit
PB: predicated region body
PF: predicated region fallthrough
CT: control target
= control target key end

     0   :  { %s7_s6 = smov 3  ;;  %s21_s9 = smov 3  ;;  %vm4_vm0 = vcmask 64512   ;;  %vm11_vm1 = vcmask 1048512   ;;  %vm18_vm2 = vcmask 982912   ;;  %vm25_vm3 = vcmask 917312   ;;  %s235_s0 = inlined_call_operand.vmem [shape: f32[32,8], index: 0, kind: input, shape index: {}]   ;;  %s236_s1 = inlined_call_operand.vmem [shape: f32[1,256], index: 1, kind: output, shape index: {}]  }
   0x1   :  { %v125_v0 = vld [vmem:[%s235_s0 + $0xf] ss:$16 sm:%s7_s6]   ;;  %s156_s10 = smov 120   ;;  %v127_v1 = vld [vmem:[%s235_s0 + $0xd] ss:$16 sm:%s21_s9]   ;;  %s14_s13 = smov 3 }
   0x2   :  { %9 = vrot.lane.b32.xlu0 %v125_v0, %s156_s10  ;;  %s157_s14 = smov 104   ;;  %v126_v2 = vld [vmem:[%s235_s0 + $0xe] ss:$16 sm:%s14_s13]   ;;  %s28_s17 = smov 3  ;;  %vm32_vm4 = vcmask 851712   ;;  %vm39_vm5 = vcmask 786112  }
   0x3   :  { %23 = vrot.lane.b32.xlu1 %v127_v1, %s157_s14  ;;  %v128_v3 = vld [vmem:[%s235_s0 + $0xc] ss:$16 sm:%s28_s17]   ;;  %s35_s20 = smov 3  ;;  %s42_s21 = smov 3  ;;  %vm46_vm6 = vcmask 720512   ;;  %vm53_vm7 = vcmask 654912  }
   0x4   :  { %s158_s22 = smov 112   ;;  %s159_s23 = smov 96   ;;  %v129_v4 = vld [vmem:[%s235_s0 + $0xb] ss:$16 sm:%s35_s20]   ;;  %v130_v5 = vld [vmem:[%s235_s0 + $0xa] ss:$16 sm:%s42_s21]  }
   0x5   :  { %s49_s28 = smov 3  ;;  %s56_s29 = smov 3  ;;  %vm60_vm8 = vcmask 589312   ;;  %vm67_vm9 = vcmask 523712   ;;  %vm74_vm10 = vcmask 458112   ;;  %vm81_vm11 = vcmask 392512  }
   0x6   :  { %16 = vrot.lane.b32.xlu0 %v126_v2, %s158_s22  ;;  %s160_s30 = smov 88   ;;  %s161_s2 = smov 80   ;;  %v131_v6 = vld [vmem:[%s235_s0 + $0x9] ss:$16 sm:%s49_s28]   ;;  %vm88_vm12 = vcmask 326912   ;;  %vm95_vm13 = vcmask 261312  }
   0x7   :  { %30 = vrot.lane.b32.xlu1 %v128_v3, %s159_s23  ;;  %v132_v7 = vld [vmem:[%s235_s0 + $0x8] ss:$16 sm:%s56_s29]   ;;  %s63_s7 = smov 3  ;;  %s70_s8 = smov 3  ;;  %vm102_vm14 = vcmask 195712   ;;  %vm109_vm15 = vcmask 130112  }
   0x8   :  { %s162_s9 = smov 72   ;;  %s163_s10 = smov 64   ;;  %v133_v8 = vld [vmem:[%s235_s0 + $0x7] ss:$16 sm:%s63_s7]   ;;  %v134_v9 = vld [vmem:[%s235_s0 + $0x6] ss:$16 sm:%s70_s8]  }
   0x9   :  { %s2_s13 = smov 3  ;;  %s77_s16 = smov 3 }
   0xa   :  { %37 = vrot.lane.b32.xlu0 %v129_v4, %s160_s30  ;;  %v3_v10 = vld [vmem:[%s235_s0] ss:$16 sm:%s2_s13]   ;;  %s84_s19 = smov 3  ;;  %s164_s20 = smov 56  }
   0xb   :  { %44 = vrot.lane.b32.xlu1 %v130_v5, %s161_s2  ;;  %5 = vst.msk [vmem:[#allocation0] ss:$8 sm:$0x3] %vm4_vm0, %v3_v10   ;;  %s165_s21 = smov 48   ;;  %v135_v11 = vld [vmem:[%s235_s0 + $0x5] ss:$16 sm:%s77_s16]  }
   0xc   :  { %v136_v12 = vld [vmem:[%s235_s0 + $0x4] ss:$16 sm:%s84_s19]   ;;  %s91_s26 = smov 3  ;;  %s98_s27 = smov 3 }
   0xd   :  { %s166_s28 = smov 40   ;;  %s167_s29 = smov 32   ;;  %v137_v13 = vld [vmem:[%s235_s0 + $0x3] ss:$16 sm:%s91_s26]   ;;  %v138_v14 = vld [vmem:[%s235_s0 + $0x2] ss:$16 sm:%s98_s27]  }
   0xe   :  { %51 = vrot.lane.b32.xlu0 %v131_v6, %s162_s9  ;;  %s105_s5 = smov 3  ;;  %s168_s6 = smov 24  }
   0xf   :  { %58 = vrot.lane.b32.xlu1 %v132_v7, %s163_s10  ;;  %s169_s7 = smov 16   ;;  %v139_v15 = vld [vmem:[%s235_s0 + $0x1] ss:$16 sm:%s105_s5]   ;;  %s170_s0 = smov 8  }
  0x12   :  { %65 = vrot.lane.b32.xlu0 %v133_v8, %s164_s20 }
  0x13   :  { %72 = vrot.lane.b32.xlu1 %v134_v9, %s165_s21 }
  0x16   :  { %79 = vrot.lane.b32.xlu0 %v135_v11, %s166_s28 }
  0x17   :  { %86 = vrot.lane.b32.xlu1 %v136_v12, %s167_s29 }
  0x1a   :  { %93 = vrot.lane.b32.xlu0 %v137_v13, %s168_s6 }
  0x1b   :  { %100 = vrot.lane.b32.xlu1 %v138_v14, %s169_s7 }
  0x1e   :  { %107 = vrot.lane.b32.xlu0 %v139_v15, %s170_s0 }
  0x74   :  { %v10_v16 = vpop.permute.xlu0 %9  }
  0x75   :  { %12 = vst.msk [vmem:[#allocation0] ss:$8 sm:$0x3] %vm11_vm1, %v10_v16   ;;  %v24_v17 = vpop.permute.xlu1 %23  }
  0x78   :  { %v17_v18 = vpop.permute.xlu0 %16  }
  0x79   :  { %19 = vst.msk [vmem:[#allocation0] ss:$8 sm:$0x3] %vm18_vm2, %v17_v18   ;;  %v31_v19 = vpop.permute.xlu1 %30  }
  0x7a   :  { %26 = vst.msk [vmem:[#allocation0] ss:$8 sm:$0x3] %vm25_vm3, %v24_v17  }
  0x7b   :  { %33 = vst.msk [vmem:[#allocation0] ss:$8 sm:$0x3] %vm32_vm4, %v31_v19  }
  0x7c   :  { %v38_v20 = vpop.permute.xlu0 %37  }
  0x7d   :  { %40 = vst.msk [vmem:[#allocation0] ss:$8 sm:$0x3] %vm39_vm5, %v38_v20   ;;  %v45_v21 = vpop.permute.xlu1 %44  }
  0x7e   :  { %47 = vst.msk [vmem:[#allocation0] ss:$8 sm:$0x3] %vm46_vm6, %v45_v21  }
  0x80   :  { %v52_v22 = vpop.permute.xlu0 %51  }
  0x81   :  { %54 = vst.msk [vmem:[#allocation0] ss:$8 sm:$0x3] %vm53_vm7, %v52_v22   ;;  %v59_v23 = vpop.permute.xlu1 %58  }
  0x82   :  { %61 = vst.msk [vmem:[#allocation0] ss:$8 sm:$0x3] %vm60_vm8, %v59_v23  }
  0x84   :  { %v66_v24 = vpop.permute.xlu0 %65  }
  0x85   :  { %68 = vst.msk [vmem:[#allocation0] ss:$8 sm:$0x3] %vm67_vm9, %v66_v24   ;;  %v73_v25 = vpop.permute.xlu1 %72  }
  0x86   :  { %75 = vst.msk [vmem:[#allocation0] ss:$8 sm:$0x3] %vm74_vm10, %v73_v25  }
  0x88   :  { %v80_v26 = vpop.permute.xlu0 %79  }
  0x89   :  { %82 = vst.msk [vmem:[#allocation0] ss:$8 sm:$0x3] %vm81_vm11, %v80_v26   ;;  %v87_v27 = vpop.permute.xlu1 %86  }
  0x8a   :  { %89 = vst.msk [vmem:[#allocation0] ss:$8 sm:$0x3] %vm88_vm12, %v87_v27  }
  0x8c   :  { %v94_v28 = vpop.permute.xlu0 %93  }
  0x8d   :  { %96 = vst.msk [vmem:[#allocation0] ss:$8 sm:$0x3] %vm95_vm13, %v94_v28   ;;  %v101_v29 = vpop.permute.xlu1 %100  }
  0x8e   :  { %103 = vst.msk [vmem:[#allocation0] ss:$8 sm:$0x3] %vm102_vm14, %v101_v29  }
  0x90   :  { %v108_v30 = vpop.permute.xlu0 %107  }
  0x91   :  { %110 = vst.msk [vmem:[#allocation0] ss:$8 sm:$0x3] %vm109_vm15, %v108_v30  }
  0x98   :  { %v115_v31 = vld [vmem:[#allocation0] sm:$0x1]  ;;  %v120_v32 = vld [vmem:[#allocation0 + $0x8] sm:$0x1] }
  0x99   :  { %118 = vst [vmem:[%s236_s1] sm:$0x1] %v115_v31  ;;  %140 = vst [vmem:[%s236_s1 + $0x1] sm:$0x1] %v120_v32 }

// kernel: tile.48
= control target key start
LH: loop header
LB: loop body
LE: loop exit
PB: predicated region body
PF: predicated region fallthrough
CT: control target
= control target key end

     0   :  { %s28_s0 = inlined_call_operand.vmem [shape: f32[16], index: 0, kind: input, shape index: {}]   ;;  %s29_s1 = inlined_call_operand.vmem [shape: f32[16,16], index: 1, kind: output, shape index: {}]  }
   0x1   :  { %v4_v0 = vld [vmem:[%s28_s0] ss:$0 sm:$0xff] }
   0x2   :  { %5 = vst [vmem:[%s29_s1] sm:$0xff] %v4_v0  ;;  %8 = vst [vmem:[%s29_s1 + $0x8] sm:$0xff] %v4_v0 }

// kernel: tile.49
= control target key start
LH: loop header
LB: loop body
LE: loop exit
PB: predicated region body
PF: predicated region fallthrough
CT: control target
= control target key end

     0   :  { %s7_s6 = smov 3  ;;  %s21_s9 = smov 3  ;;  %vm4_vm0 = vcmask 130048   ;;  %vm11_vm1 = vcmask 1048448   ;;  %vm18_vm2 = vcmask 917248   ;;  %vm25_vm3 = vcmask 786048   ;;  %s131_s0 = inlined_call_operand.vmem [shape: f32[16,16], index: 0, kind: input, shape index: {}]   ;;  %s132_s1 = inlined_call_operand.vmem [shape: f32[1,256], index: 1, kind: output, shape index: {}]  }
   0x1   :  { %v69_v0 = vld [vmem:[%s131_s0 + $0x7] ss:$8 sm:%s7_s6]   ;;  %s84_s10 = smov 112   ;;  %v71_v1 = vld [vmem:[%s131_s0 + $0x5] ss:$8 sm:%s21_s9]   ;;  %s14_s13 = smov 3 }
   0x2   :  { %9 = vrot.lane.b32.xlu0 %v69_v0, %s84_s10  ;;  %s85_s14 = smov 80   ;;  %v70_v2 = vld [vmem:[%s131_s0 + $0x6] ss:$8 sm:%s14_s13]   ;;  %s28_s17 = smov 3  ;;  %vm32_vm4 = vcmask 654848   ;;  %vm39_vm5 = vcmask 523648  }
   0x3   :  { %23 = vrot.lane.b32.xlu1 %v71_v1, %s85_s14  ;;  %v72_v3 = vld [vmem:[%s131_s0 + $0x4] ss:$8 sm:%s28_s17]   ;;  %s35_s20 = smov 3  ;;  %s42_s21 = smov 3  ;;  %vm46_vm6 = vcmask 392448   ;;  %vm53_vm7 = vcmask 261248  }
   0x4   :  { %s86_s22 = smov 96   ;;  %s87_s23 = smov 64   ;;  %v73_v4 = vld [vmem:[%s131_s0 + $0x3] ss:$8 sm:%s35_s20]   ;;  %v74_v5 = vld [vmem:[%s131_s0 + $0x2] ss:$8 sm:%s42_s21]  }
   0x5   :  { %s2_s26 = smov 3  ;;  %s49_s29 = smov 3 }
   0x6   :  { %16 = vrot.lane.b32.xlu0 %v70_v2, %s86_s22  ;;  %v3_v6 = vld [vmem:[%s131_s0] ss:$8 sm:%s2_s26]   ;;  %s88_s3 = smov 48   ;;  %s89_s4 = smov 32  }
   0x7   :  { %30 = vrot.lane.b32.xlu1 %v72_v3, %s87_s23  ;;  %5 = vst.msk [vmem:[#allocation0] ss:$8 sm:$0x3] %vm4_vm0, %v3_v6   ;;  %v75_v7 = vld [vmem:[%s131_s0 + $0x1] ss:$8 sm:%s49_s29]   ;;  %s90_s0 = smov 16  }
   0xa   :  { %37 = vrot.lane.b32.xlu0 %v73_v4, %s88_s3 }
   0xb   :  { %44 = vrot.lane.b32.xlu1 %v74_v5, %s89_s4 }
   0xe   :  { %51 = vrot.lane.b32.xlu0 %v75_v7, %s90_s0 }
  0x74   :  { %v10_v8 = vpop.permute.xlu0 %9  }
  0x75   :  { %12 = vst.msk [vmem:[#allocation0] ss:$8 sm:$0x3] %vm11_vm1, %v10_v8   ;;  %v24_v9 = vpop.permute.xlu1 %23  }
  0x78   :  { %v17_v10 = vpop.permute.xlu0 %16  }
  0x79   :  { %19 = vst.msk [vmem:[#allocation0] ss:$8 sm:$0x3] %vm18_vm2, %v17_v10   ;;  %v31_v11 = vpop.permute.xlu1 %30  }
  0x7a   :  { %26 = vst.msk [vmem:[#allocation0] ss:$8 sm:$0x3] %vm25_vm3, %v24_v9  }
  0x7b   :  { %33 = vst.msk [vmem:[#allocation0] ss:$8 sm:$0x3] %vm32_vm4, %v31_v11  }
  0x7c   :  { %v38_v12 = vpop.permute.xlu0 %37  }
  0x7d   :  { %40 = vst.msk [vmem:[#allocation0] ss:$8 sm:$0x3] %vm39_vm5, %v38_v12   ;;  %v45_v13 = vpop.permute.xlu1 %44  }
  0x7e   :  { %47 = vst.msk [vmem:[#allocation0] ss:$8 sm:$0x3] %vm46_vm6, %v45_v13  }
  0x80   :  { %v52_v14 = vpop.permute.xlu0 %51  }
  0x81   :  { %54 = vst.msk [vmem:[#allocation0] ss:$8 sm:$0x3] %vm53_vm7, %v52_v14  }
  0x88   :  { %v59_v15 = vld [vmem:[#allocation0] sm:$0x1]  ;;  %v64_v16 = vld [vmem:[#allocation0 + $0x8] sm:$0x1] }
  0x89   :  { %62 = vst [vmem:[%s132_s1] sm:$0x1] %v59_v15  ;;  %76 = vst [vmem:[%s132_s1 + $0x1] sm:$0x1] %v64_v16 }

// kernel: tile.53
= control target key start
LH: loop header
LB: loop body
LE: loop exit
PB: predicated region body
PF: predicated region fallthrough
CT: control target
= control target key end

     0   :  { %s22_s0 = inlined_call_operand.vmem [shape: f32[32], index: 0, kind: input, shape index: {}]   ;;  %s23_s1 = inlined_call_operand.vmem [shape: f32[8,32], index: 1, kind: output, shape index: {}]  }
   0x1   :  { %v4_v0 = vld [vmem:[%s22_s0] ss:$0 sm:$0xff] }
   0x2   :  { %5 = vst [vmem:[%s23_s1] sm:$0xff] %v4_v0 }

// kernel: tile.54
= control target key start
LH: loop header
LB: loop body
LE: loop exit
PB: predicated region body
PF: predicated region fallthrough
CT: control target
= control target key end

     0   :  { %s7_s6 = smov 3  ;;  %s14_s9 = smov 3  ;;  %vm4_vm0 = vcmask 261120   ;;  %vm11_vm1 = vcmask 1048320   ;;  %vm18_vm2 = vcmask 785920   ;;  %vm25_vm3 = vcmask 523520   ;;  %s79_s0 = inlined_call_operand.vmem [shape: f32[8,32], index: 0, kind: input, shape index: {}]   ;;  %s80_s1 = inlined_call_operand.vmem [shape: f32[1,256], index: 1, kind: output, shape index: {}]  }
   0x1   :  { %v41_v0 = vld [vmem:[%s79_s0 + $0x3] ss:$4 sm:%s7_s6]   ;;  %s48_s10 = smov 96   ;;  %s21_s11 = smov 3  ;;  %v42_v1 = vld [vmem:[%s79_s0 + $0x2] ss:$4 sm:%s14_s9]  }
   0x2   :  { %9 = vrot.lane.b32.xlu0 %v41_v0, %s48_s10  ;;  %v43_v2 = vld [vmem:[%s79_s0 + $0x1] ss:$4 sm:%s21_s11]   ;;  %s2_s16 = smov 3  ;;  %s49_s17 = smov 32  }
   0x3   :  { %23 = vrot.lane.b32.xlu1 %v43_v2, %s49_s17  ;;  %v3_v3 = vld [vmem:[%s79_s0] ss:$4 sm:%s2_s16]   ;;  %s50_s0 = smov 64  }
   0x4   :  { %5 = vst.msk [vmem:[#allocation0] ss:$8 sm:$0x3] %vm4_vm0, %v3_v3  }
   0x6   :  { %16 = vrot.lane.b32.xlu0 %v42_v1, %s50_s0 }
  0x74   :  { %v10_v4 = vpop.permute.xlu0 %9  }
  0x75   :  { %12 = vst.msk [vmem:[#allocation0] ss:$8 sm:$0x3] %vm11_vm1, %v10_v4   ;;  %v24_v5 = vpop.permute.xlu1 %23  }
  0x78   :  { %v17_v6 = vpop.permute.xlu0 %16  }
  0x79   :  { %19 = vst.msk [vmem:[#allocation0] ss:$8 sm:$0x3] %vm18_vm2, %v17_v6  }
  0x7a   :  { %26 = vst.msk [vmem:[#allocation0] ss:$8 sm:$0x3] %vm25_vm3, %v24_v5  }
  0x81   :  { %v31_v7 = vld [vmem:[#allocation0] sm:$0x1]  ;;  %v36_v8 = vld [vmem:[#allocation0 + $0x8] sm:$0x1] }
  0x82   :  { %34 = vst [vmem:[%s80_s1] sm:$0x1] %v31_v7  ;;  %44 = vst [vmem:[%s80_s1 + $0x1] sm:$0x1] %v36_v8 }

// kernel: tile.63
= control target key start
LH: loop header
LB: loop body
LE: loop exit
PB: predicated region body
PF: predicated region fallthrough
CT: control target
= control target key end

     0   :  { %s22_s0 = inlined_call_operand.vmem [shape: f32[64], index: 0, kind: input, shape index: {}]   ;;  %s23_s1 = inlined_call_operand.vmem [shape: f32[4,64], index: 1, kind: output, shape index: {}]  }
   0x1   :  { %v4_v0 = vld [vmem:[%s22_s0] ss:$0 sm:$0xff] }
   0x2   :  { %5 = vst [vmem:[%s23_s1] sm:$0xf] %v4_v0 }

// kernel: tile.64
= control target key start
LH: loop header
LB: loop body
LE: loop exit
PB: predicated region body
PF: predicated region fallthrough
CT: control target
= control target key end

     0   :  { %s7_s8 = smov 3  ;;  %vm9_vm0 = vcmask 523264   ;;  %s34_s9 = smov 64   ;;  %vm16_vm1 = vcmask 1048064   ;;  %s54_s0 = inlined_call_operand.vmem [shape: f32[4,64], index: 0, kind: input, shape index: {}]   ;;  %s55_s1 = inlined_call_operand.vmem [shape: f32[1,256], index: 1, kind: output, shape index: {}]  }
   0x1   :  { %v5_v0 = vld [vmem:[%s54_s0] sm:$0xf]  ;;  %s12_s0 = smov 3 }
   0x2   :  { %6 = vst [vmem:[#allocation1] sm:$0xf] %v5_v0 }
   0x9   :  { %v13_v1 = vld [vmem:[#allocation1 + $0x1] ss:$2 sm:%s12_s0]   ;;  %v8_v2 = vld [vmem:[#allocation1] ss:$2 sm:%s7_s8]  }
   0xa   :  { %14 = vrot.lane.b32.xlu0 %v13_v1, %s34_s9  ;;  %10 = vst.msk [vmem:[#allocation0] ss:$8 sm:$0x3] %vm9_vm0, %v8_v2  }
  0x7c   :  { %v15_v3 = vpop.permute.xlu0 %14  }
  0x7d   :  { %17 = vst.msk [vmem:[#allocation0] ss:$8 sm:$0x3] %vm16_vm1, %v15_v3  }
  0x84   :  { %v22_v4 = vld [vmem:[#allocation0] sm:$0x1]  ;;  %v27_v5 = vld [vmem:[#allocation0 + $0x8] sm:$0x1] }
  0x85   :  { %25 = vst [vmem:[%s55_s1] sm:$0x1] %v22_v4  ;;  %32 = vst [vmem:[%s55_s1 + $0x1] sm:$0x1] %v27_v5 }

// kernel: tile.73
= control target key start
LH: loop header
LB: loop body
LE: loop exit
PB: predicated region body
PF: predicated region fallthrough
CT: control target
= control target key end

     0   :  { %s22_s0 = inlined_call_operand.vmem [shape: f32[64], index: 0, kind: input, shape index: {}]   ;;  %s23_s1 = inlined_call_operand.vmem [shape: f32[2,64], index: 1, kind: output, shape index: {}]  }
   0x1   :  { %v4_v0 = vld [vmem:[%s22_s0] ss:$0 sm:$0xff] }
   0x2   :  { %5 = vst [vmem:[%s23_s1] sm:$0x3] %v4_v0 }

// kernel: tile.74
= control target key start
LH: loop header
LB: loop body
LE: loop exit
PB: predicated region body
PF: predicated region fallthrough
CT: control target
= control target key end

     0   :  { %vm8_vm0 = vcmask 523264   ;;  %vm14_vm1 = vcmask 1048064   ;;  %s42_s0 = inlined_call_operand.vmem [shape: f32[2,64], index: 0, kind: input, shape index: {}]   ;;  %s43_s1 = inlined_call_operand.vmem [shape: f32[1,128], index: 1, kind: output, shape index: {}]  }
   0x1   :  { %v5_v0 = vld [vmem:[%s42_s0] sm:$0x3]  ;;  %s25_s0 = smov 64  }
   0x2   :  { %6 = vst [vmem:[#allocation1] sm:$0x3] %v5_v0 }
   0x9   :  { %v11_v1 = vld [vmem:[#allocation1 + $0x1] sm:$0x1]   ;;  %v7_v2 = vld [vmem:[#allocation1] sm:$0x1]  }
   0xa   :  { %12 = vrot.lane.b32.xlu0 %v11_v1, %s25_s0  ;;  %9 = vst.msk [vmem:[#allocation0] sm:$0x1] %vm8_vm0, %v7_v2  }
  0x7c   :  { %v13_v3 = vpop.permute.xlu0 %12  }
  0x7d   :  { %15 = vst.msk [vmem:[#allocation0] sm:$0x1] %vm14_vm1, %v13_v3  }
  0x84   :  { %v20_v4 = vld [vmem:[#allocation0] sm:$0x1] }
  0x85   :  { %23 = vst [vmem:[%s43_s1] sm:$0x1] %v20_v4 }

// kernel: slimnet_forward.3
= control target key start
LH: loop header
LB: loop body
LE: loop exit
PB: predicated region body
PF: predicated region fallthrough
CT: control target
= control target key end

     0   :  { %v464_v0 = vmov 0.0   ;;  %vm465_vm0 = vmmov 0   ;;  %vm68_vm1 = vcmask 523264   ;;  %s607_s1 = inlined_call_operand.vmem [shape: bf16[64,128], index: 1, kind: input, shape index: {}]   ;;  %s608_s3 = inlined_call_operand.vmem [shape: bf16[128,128], index: 3, kind: input, shape index: {}]   ;;  %s609_s0 = inlined_call_operand.vmem [shape: f32[8,64], index: 0, kind: input, shape index: {}]   ;;  %s610_s5 = inlined_call_operand.vmem [shape: bf16[128,128], index: 5, kind: input, shape index: {}]   ;;  %s611_s2 = inlined_call_operand.vmem [shape: f32[1,128], index: 2, kind: input, shape index: {}]   ;;  %s612_s4 = inlined_call_operand.vmem [shape: f32[1,128], index: 4, kind: input, shape index: {}]   ;;  %s613_s6 = inlined_call_operand.vmem [shape: f32[1,128], index: 6, kind: input, shape index: {}]   ;;  %s614_s7 = inlined_call_operand.vmem [shape: f32[8,128], index: 7, kind: output, shape index: {}]  }
   0x1   :  { %390 = vmatprep.subr.bf16.mxu0 %v464_v0  ;;  %v444_v1 = vld [vmem:[%s607_s1 + $0x18] sm:$0xff]   ;;  %398 = vmatprep.mubr.msk.bf16.mxu0 %vm465_vm0, %v464_v0  ;;  %v445_v2 = vld [vmem:[%s607_s1 + $0x10] sm:$0xff]   ;;  %v446_v4 = vld [vmem:[%s607_s1 + $0x8] sm:$0xff]  }
   0x2   :  { %402 = vmatprep.subr.bf16.mxu1 %v464_v0  ;;  %418 = vmatprep.mubr.msk.bf16.mxu1 %vm465_vm0, %v464_v0  ;;  %v448_v3 = vld [vmem:[%s608_s3 + $0x38] sm:$0xff]   ;;  %v449_v5 = vld [vmem:[%s608_s3 + $0x30] sm:$0xff]   ;;  %v447_v6 = vld [vmem:[%s607_s1] sm:$0xff]  }
   0x3   :  { %391 = vmatpush3.bf16.msra.mxu0 %v444_v1  ;;  %403 = vmatpush3.bf16.msra.mxu1 %v448_v3  ;;  %v27_v7 = vld [vmem:[%s609_s0] sm:$0xff]  ;;  %v450_v8 = vld [vmem:[%s608_s3 + $0x28] sm:$0xff]   ;;  %v452_v11 = vld [vmem:[%s608_s3 + $0x18] sm:$0xff]  }
   0x4   :  { %392 = vmatprep.subr.bf16.mxu0 %v464_v0  ;;  %404 = vmatprep.subr.bf16.mxu1 %v464_v0  ;;  %v28_v9 = vpack.c.bf16 %v27_v7, %v27_v7  ;;  %v451_v10 = vld [vmem:[%s608_s3 + $0x20] sm:$0xff]   ;;  %v453_v12 = vld [vmem:[%s608_s3 + $0x10] sm:$0xff]   ;;  %v454_v13 = vld [vmem:[%s608_s3 + $0x8] sm:$0xff]  }
   0x5   :  { %v455_v14 = vld [vmem:[%s608_s3] sm:$0xff]   ;;  %v456_v15 = vld [vmem:[%s610_s5 + $0x38] sm:$0xff]   ;;  %v457_v16 = vld [vmem:[%s610_s5 + $0x30] sm:$0xff]  }
   0x6   :  { %v458_v17 = vld [vmem:[%s610_s5 + $0x28] sm:$0xff]   ;;  %v459_v18 = vld [vmem:[%s610_s5 + $0x20] sm:$0xff]   ;;  %v460_v19 = vld [vmem:[%s610_s5 + $0x18] sm:$0xff]  }
   0x7   :  { %393 = vmatpush3.bf16.msra.mxu0 %v445_v2  ;;  %405 = vmatpush3.bf16.msra.mxu1 %v449_v5  ;;  %v461_v20 = vld [vmem:[%s610_s5 + $0x10] sm:$0xff]   ;;  %v343_v21 = vld [vmem:[%s611_s2] ss:$0 sm:$0xff]  ;;  %v462_v29 = vld [vmem:[%s610_s5 + $0x8] sm:$0xff]  }
   0x8   :  { %394 = vmatprep.subr.bf16.mxu0 %v464_v0  ;;  %406 = vmatprep.subr.bf16.mxu1 %v464_v0  ;;  %v463_v30 = vld [vmem:[%s610_s5] sm:$0xff]  }
   0x9   :  { %v349_v31 = vld [vmem:[%s612_s4] ss:$0 sm:$0xff] }
   0xa   :  { %v358_v39 = vld [vmem:[%s613_s6] ss:$0 sm:$0xff] }
   0xb   :  { %395 = vmatpush3.bf16.msra.mxu0 %v446_v4  ;;  %407 = vmatpush3.bf16.msra.mxu1 %v450_v8 }
   0xc   :  { %396 = vmatprep.subr.bf16.mxu0 %v464_v0  ;;  %408 = vmatprep.subr.bf16.mxu1 %v464_v0 }
   0xf   :  { %397 = vmatpush3.bf16.msra.mxu0 %v447_v6  ;;  %409 = vmatpush3.bf16.msra.mxu1 %v451_v10 }
  0x10   :  { %422 = vmatprep.subr.bf16.mxu0 %v464_v0  ;;  %410 = vmatprep.subr.bf16.mxu1 %v464_v0 }
  0x12   :  { %399 = vmatmul.mubr.msk.bf16.vlgmr.msra.gmra.mxu0 %vm68_vm1, %v28_v9 }
  0x13   :  { %438 = vmatprep.mubr.msk.bf16.mxu0 %vm465_vm0, %v464_v0  ;;  %411 = vmatpush3.bf16.msra.mxu1 %v452_v11 }
  0x14   :  { %412 = vmatprep.subr.bf16.mxu1 %v464_v0  ;;  %423 = vmatpush3.bf16.msra.mxu0 %v456_v15 }
  0x15   :  { %424 = vmatprep.subr.bf16.mxu0 %v464_v0 }
  0x17   :  { %413 = vmatpush3.bf16.msra.mxu1 %v453_v12 }
  0x18   :  { %414 = vmatprep.subr.bf16.mxu1 %v464_v0  ;;  %425 = vmatpush3.bf16.msra.mxu0 %v457_v16 }
  0x19   :  { %426 = vmatprep.subr.bf16.mxu0 %v464_v0 }
  0x1b   :  { %415 = vmatpush3.bf16.msra.mxu1 %v454_v13 }
  0x1c   :  { %416 = vmatprep.subr.bf16.mxu1 %v464_v0  ;;  %427 = vmatpush3.bf16.msra.mxu0 %v458_v17 }
  0x1d   :  { %428 = vmatprep.subr.bf16.mxu0 %v464_v0 }
  0x1f   :  { %417 = vmatpush3.bf16.msra.mxu1 %v455_v14 }
  0x20   :  { %429 = vmatpush3.bf16.msra.mxu0 %v459_v18 }
  0x21   :  { %430 = vmatprep.subr.bf16.mxu0 %v464_v0 }
  0x24   :  { %431 = vmatpush3.bf16.msra.mxu0 %v460_v19 }
  0x25   :  { %432 = vmatprep.subr.bf16.mxu0 %v464_v0 }
  0x28   :  { %433 = vmatpush3.bf16.msra.mxu0 %v461_v20 }
  0x29   :  { %434 = vmatprep.subr.bf16.mxu0 %v464_v0 }
  0x2c   :  { %435 = vmatpush3.bf16.msra.mxu0 %v462_v29 }
  0x2d   :  { %436 = vmatprep.subr.bf16.mxu0 %v464_v0 }
  0x30   :  { %437 = vmatpush3.bf16.msra.mxu0 %v463_v30 }
  0xd2   :  { %v106_v22 = vpop.f32.mrf.mxu0 }
  0xd3   :  { %v107_v23 = vadd.f32 %v343_v21, %v106_v22 }
  0xd4   :  { %v400_v24 = vpop.f32.mrf.mxu0 }
  0xd5   :  { %v112_v25 = vmax.f32 %v107_v23, 0.0 }
  0xd6   :  { %v109_v26 = vpop.f32.mrf.mxu0 }
  0xd7   :  { %v113_v27 = vpack.c.bf16 %v112_v25, %v112_v25 }
  0xd8   :  { %v401_v28 = vpop.f32.mrf.mxu0 }
  0xd9   :  { %419 = vmatmul.mubr.bf16.vlgmr.msra.gmra.mxu1 %v113_v27 }
 0x199   :  { %v219_v32 = vpop.f32.mrf.mxu1 }
 0x19a   :  { %v220_v33 = vadd.f32 %v349_v31, %v219_v32 }
 0x19b   :  { %v420_v34 = vpop.f32.mrf.mxu1 }
 0x19c   :  { %v225_v35 = vmax.f32 %v220_v33, 0.0 }
 0x19d   :  { %v222_v36 = vpop.f32.mrf.mxu1 }
 0x19e   :  { %v226_v37 = vpack.c.bf16 %v225_v35, %v225_v35 }
 0x19f   :  { %v421_v38 = vpop.f32.mrf.mxu1 }
 0x1a0   :  { %439 = vmatmul.mubr.bf16.vlgmr.msra.gmra.mxu0 %v226_v37 }
 0x260   :  { %v332_v40 = vpop.f32.mrf.mxu0 }
 0x261   :  { %v333_v41 = vadd.f32 %v358_v39, %v332_v40 }
 0x262   :  { %v440_v42 = vpop.f32.mrf.mxu0 }
 0x263   :  { %338 = vst [vmem:[%s614_s7] sm:$0xff] %v333_v41 }
 0x264   :  { %v335_v43 = vpop.f32.mrf.mxu0 }
 0x266   :  { %v441_v44 = vpop.f32.mrf.mxu0 }

// kernel: slimnet_forward.2
= control target key start
LH: loop header
LB: loop body
LE: loop exit
PB: predicated region body
PF: predicated region fallthrough
CT: control target
= control target key end

     0   :  { %s10686_s6 = smov 1   ;;  %s10687_s10 = smov 2   ;;  %s11915_s0 = inlined_call_operand.smem [shape: u32[34], index: -1, kind: input, shape index: {}] }
   0x1   :  { %s10734_s5 = sld [smem:[%s11915_s0]]   ;;  %s10688_s14 = smov 3  }
   0x2   :  { %s10739_s9 = sld [smem:[%s11915_s0 + %s10686_s6]]   ;;  %s10689_s18 = smov 4  }
   0x3   :  { %s10744_s13 = sld [smem:[%s11915_s0 + %s10687_s10]]   ;;  %s10690_s22 = smov 5  }
   0x4   :  { %s10749_s17 = sld [smem:[%s11915_s0 + %s10688_s14]]   ;;  %s10691_s26 = smov 6  }
   0x5   :  { %s10754_s21 = sld [smem:[%s11915_s0 + %s10689_s18]]   ;;  %s10692_s30 = smov 7  }
   0x6   :  { %s10759_s25 = sld [smem:[%s11915_s0 + %s10690_s22]]   ;;  %s10693_s4 = smov 8  }
   0x7   :  { %s10764_s29 = sld [smem:[%s11915_s0 + %s10691_s26]]   ;;  %s10694_s10 = smov 9  }
   0x8   :  { %s10769_s3 = sld [smem:[%s11915_s0 + %s10692_s30]]   ;;  %s10695_s15 = smov 10  }
   0x9   :  { %s10774_s8 = sld [smem:[%s11915_s0 + %s10693_s4]]   ;;  %s10696_s20 = smov 11  }
   0xa   :  { %s10779_s14 = sld [smem:[%s11915_s0 + %s10694_s10]]   ;;  %s10697_s26 = smov 12  }
   0xb   :  { %s10784_s19 = sld [smem:[%s11915_s0 + %s10695_s15]]   ;;  %s10698_s1 = smov 13  }
   0xc   :  { %s10789_s24 = sld [smem:[%s11915_s0 + %s10696_s20]]   ;;  %s10699_s7 = smov 14  }
   0xd   :  { %s10794_s30 = sld [smem:[%s11915_s0 + %s10697_s26]]   ;;  %s10700_s15 = smov 15  }
   0xe   :  { %s10799_s6 = sld [smem:[%s11915_s0 + %s10698_s1]]   ;;  %s10701_s22 = smov 16  }
   0xf   :  { %s10804_s12 = sld [smem:[%s11915_s0 + %s10699_s7]]   ;;  %s10702_s28 = smov 17  }
  0x10   :  { %s10809_s20 = sld [smem:[%s11915_s0 + %s10700_s15]]   ;;  %s10703_s7 = smov 18  }
  0x11   :  { %s10814_s27 = sld [smem:[%s11915_s0 + %s10701_s22]]   ;;  %s10704_s15 = smov 19  }
  0x12   :  { %s10819_s4 = sld [smem:[%s11915_s0 + %s10702_s28]]   ;;  %s10705_s22 = smov 20  }
  0x13   :  { %s10706_s28 = smov 21  }
  0x15   :  { %11924 = sst [smem:[#allocation10_spill]] %s10804_s12 }
  0x16   :  { %11925 = sst [smem:[#allocation11_spill]] %s10809_s20 }
  0x17   :  { %11926 = sst [smem:[#allocation12_spill]] %s10814_s27 }
  0x18   :  { %11927 = sst [smem:[#allocation13_spill]] %s10819_s4 }
  0x19   :  { %s10824_s12 = sld [smem:[%s11915_s0 + %s10703_s7]]   ;;  %s10707_s7 = smov 22  }
  0x1a   :  { %s10829_s20 = sld [smem:[%s11915_s0 + %s10704_s15]]   ;;  %s10708_s15 = smov 23  }
  0x1b   :  { %s10834_s27 = sld [smem:[%s11915_s0 + %s10705_s22]]   ;;  %s10709_s22 = smov 24  }
  0x1c   :  { %s10839_s4 = sld [smem:[%s11915_s0 + %s10706_s28]]   ;;  %s10710_s28 = smov 25  }
  0x1f   :  { %11928 = sst [smem:[#allocation14_spill]] %s10824_s12 }
  0x20   :  { %11929 = sst [smem:[#allocation15_spill]] %s10829_s20 }
  0x21   :  { %11930 = sst [smem:[#allocation16_spill]] %s10834_s27 }
  0x22   :  { %11931 = sst [smem:[#allocation17_spill]] %s10839_s4 }
  0x23   :  { %s10844_s12 = sld [smem:[%s11915_s0 + %s10707_s7]]   ;;  %s10711_s7 = smov 26  }
  0x24   :  { %s10849_s20 = sld [smem:[%s11915_s0 + %s10708_s15]]   ;;  %s10712_s15 = smov 27  }
  0x25   :  { %s10854_s27 = sld [smem:[%s11915_s0 + %s10709_s22]]   ;;  %s10713_s22 = smov 28  }
  0x26   :  { %s10859_s4 = sld [smem:[%s11915_s0 + %s10710_s28]]   ;;  %s10714_s28 = smov 29  }
  0x29   :  { %11932 = sst [smem:[#allocation18_spill]] %s10844_s12 }
  0x2a   :  { %11933 = sst [smem:[#allocation19_spill]] %s10849_s20 }
  0x2b   :  { %11934 = sst [smem:[#allocation20_spill]] %s10854_s27 }
  0x2c   :  { %11935 = sst [smem:[#allocation21_spill]] %s10859_s4 }
  0x2d   :  { %s10864_s12 = sld [smem:[%s11915_s0 + %s10711_s7]]   ;;  %s10715_s7 = smov 30  }
  0x2e   :  { %s10869_s20 = sld [smem:[%s11915_s0 + %s10712_s15]]   ;;  %s10716_s15 = smov 31  }
  0x2f   :  { %s10874_s27 = sld [smem:[%s11915_s0 + %s10713_s22]]   ;;  %s10717_s22 = smov 32  }
  0x30   :  { %s10879_s4 = sld [smem:[%s11915_s0 + %s10714_s28]]   ;;  %s10718_s28 = smov 33  }
  0x33   :  { %11936 = sst [smem:[#allocation22_spill]] %s10864_s12 }
  0x34   :  { %11937 = sst [smem:[#allocation23_spill]] %s10869_s20 }
  0x35   :  { %11938 = sst [smem:[#allocation24_spill]] %s10874_s27 }
  0x36   :  { %11939 = sst [smem:[#allocation25_spill]] %s10879_s4 }
  0x37   :  { %s10884_s12 = sld [smem:[%s11915_s0 + %s10715_s7]]   ;;  %s10901_s7 = smov 0  }
  0x38   :  { %s10889_s20 = sld [smem:[%s11915_s0 + %s10716_s15]]  }
  0x39   :  { %s10894_s27 = sld [smem:[%s11915_s0 + %s10717_s22]]  }
  0x3a   :  { %s10899_s4 = sld [smem:[%s11915_s0 + %s10718_s28]]  }
  0x3b LB: > { %s8282_s10 = sadd.s32 4294967295, %s10684_s7   ;;  %p8286_p0 = scmp.ge.s32.totalorder %s10684_s7, 1  ;;  %s10684_s7 = sphi %s10901_s7, %s77_s7  }
  0x3c   : > { %p921_p1 = scmp.lt.s32.totalorder %s10684_s7, 3 }
  0x3e   : > { %p922_p2 = pnand %p8286_p0, %p921_p1 }
  0x3f   : > { %p1003_p3 = scmp.lt.s32.totalorder (!%p922_p2), %s8282_s10, 1  ;;  %s10720_s15 = smov (!%p922_p2), 3  }
  0x40   : > { %925 = sbr.rel (%p922_p2) target bundleno = 4936 (0x1348), region = 152  ;;  %s10722_s16 = smov (!%p922_p2), 8  }
  0x41   : > { %s10723_s18 = smov (!%p922_p2), 16   ;;  %s11940_s22 = sld [smem:[#allocation11_spill]] (!%p922_p2) }
  0x42   : > { %s11941_s23 = sld [smem:[#allocation10_spill]] (!%p922_p2)  ;;  %s10724_s26 = smov (!%p922_p2), 32  }
  0x43   : > { %s11942_s28 = sld [smem:[#allocation16_spill]] (!%p922_p2) }
  0x44   : > { %s11943_s1 = sld [smem:[#allocation12_spill]] (!%p922_p2) }
  0x45   : > { %v8301_v0 = vld [vmem:[%s10739_s9 + $0xc8] sm:$0x77]  ;;  %vm1158_vm0 = vcmask 1042432   ;;  %v1070_v3 = vld [vmem:[%s10739_s9 + $0x60] sm:$0x77]  ;;  %vm1012_vm1 = vcmask 834560  }
  0x46   : > { %v8315_v1 = vcombine.high %v8301_v0, %v8301_v0  ;;  %v8314_v2 = vcombine.low %v8301_v0, %v8301_v0  ;;  %v9841_v4 = vld [vmem:[%s10739_s9 + $0xbc] ss:$8 sps:$4 sm:$0xff]   ;;  %s11959_s10 = smov (!%p1003_p3, %s8282_s10), 1  ;;  %v8332_v5 = vcombine.high %v1070_v3, %v1070_v3  ;;  %v8331_v6 = vcombine.low %v1070_v3, %v1070_v3  ;;  %v9843_v11 = vld [vmem:[%s10739_s9 + $0xb8] ss:$8 sps:$4 sm:$0xff]   ;;  %s11944_s2 = sld [smem:[#allocation13_spill]] }
  0x47   : > { %v9844_v8 = vld [vmem:[%s10739_s9 + $0x54] ss:$8 sps:$4 sm:$0xff]   ;;  %v10719_v9 = vmov 0.0   ;;  %s9370_s0 = sshll.u32 %s11959_s10, 5  ;;  %v9846_v12 = vld [vmem:[%s10739_s9 + $0x50] ss:$8 sps:$4 sm:$0xff]  }
  0x48   : > { %8316 = vmatprep.subr.msk.bf16.mxu0 %vm1158_vm0, %v8315_v1  ;;  %v1160_v7 = vsel %vm1158_vm0, %v8314_v2, 0  ;;  %1015 = vst.msk [vmem:[#allocation2 + $0x10] sm:$0xff] %vm1012_vm1, %v10719_v9  ;;  %1016 = vst.msk [vmem:[#allocation2 + $0x18] sm:$0xff] %vm1012_vm1, %v10719_v9  ;;  %8333 = vmatprep.subr.msk.bf16.mxu1 %vm1158_vm0, %v8332_v5  ;;  %v1290_v10 = vsel %vm1158_vm0, %v8331_v6, 0  ;;  %s1007_s11 = scalar_lea.vmem %s10734_s5, %s9370_s0  ;;  %v9847_v13 = vld [vmem:[%s10739_s9 + $0xac] ss:$8 sps:$4 sm:$0xff]  }
  0x49   : > { %1013 = vst.msk [vmem:[#allocation2] sm:$0xff] %vm1012_vm1, %v10719_v9  ;;  %1014 = vst.msk [vmem:[#allocation2 + $0x8] sm:$0xff] %vm1012_vm1, %v10719_v9  ;;  %1168 = vmatpush1.bf16.msra.mxu0 %v1160_v7  ;;  %1298 = vmatpush1.bf16.msra.mxu1 %v1290_v10  ;;  %v1021_v14 = vld [vmem:[%s1007_s11 + $0x10] sm:$0xff]  ;;  %v1019_v15 = vld [vmem:[%s1007_s11] sm:$0xff]  ;;  %vm1017_vm2 = vcmask 828416   ;;  %v10721_v21 = vmov 0  }
  0x4a   : > { %1921 = vst [vmem:[#allocation3] sm:$0xff] %v10719_v9  ;;  %1924 = vst [vmem:[#allocation3 + $0x10] sm:$0xff] %v10719_v9  ;;  %1169 = vmatprep.subr.bf16.mxu0 %v9841_v4  ;;  %1299 = vmatprep.subr.bf16.mxu1 %v9844_v8  ;;  %v9849_v16 = vld [vmem:[%s10739_s9 + $0xa8] ss:$8 sps:$4 sm:$0xff]   ;;  %v9850_v17 = vld [vmem:[%s10739_s9 + $0x44] ss:$8 sps:$4 sm:$0xff]  }
  0x4b   : > { %1926 = vst [vmem:[#allocation3 + $0x20] sm:$0x3] %v10719_v9  ;;  %2861 = vst [vmem:[#allocation4] sm:$0xff] %v10719_v9  ;;  %1031 = vrot.lane.b32.xlu1 %v1021_v14, %s10720_s15  ;;  %1027 = vrot.lane.b32.xlu0 %v1019_v15, %s10720_s15  ;;  %v1022_v18 = vld [vmem:[%s1007_s11 + $0x18] sm:$0xff]  ;;  %v1020_v19 = vld [vmem:[%s1007_s11 + $0x8] sm:$0xff]  ;;  %vm1039_vm3 = vcmask 810008  }
  0x4c   : > { %2863 = vst [vmem:[#allocation4 + $0x10] sm:$0x3] %v10719_v9  ;;  %3427 = vst [vmem:[#allocation5] sm:$0xff] %v10719_v9  ;;  %v9852_v20 = vld [vmem:[%s10739_s9 + $0x40] ss:$8 sps:$4 sm:$0xff]   ;;  %1197 = vmatprep.mubr.bf16.mxu0 %v10721_v21  ;;  %1327 = vmatprep.mubr.bf16.mxu1 %v10721_v21  ;;  %vm1532_vm4 = vcmask 261120  }
  0x4d   : > { %3428 = vst [vmem:[#allocation5 + $0x8] sm:$0xff] %v10719_v9  ;;  %3431 = vst [vmem:[#allocation5 + $0x18] sm:$0x3] %v10719_v9  ;;  %1170 = vmatpush1.bf16.msra.mxu0 %v9843_v11  ;;  %1300 = vmatpush1.bf16.msra.mxu1 %v9846_v12  ;;  %v9853_v22 = vld [vmem:[%s10739_s9 + $0x9c] ss:$8 sps:$4 sm:$0xff]   ;;  %v1842_v15 = vld [vmem:[%s10764_s29 + $0xf0] sm:$0xff] }
  0x4e   : > { %3432 = vst [vmem:[#allocation5 + $0x20] sm:$0x3] %v10719_v9  ;;  %4864 = vst [vmem:[#allocation6] sm:$0x3f] %v10719_v9  ;;  %1171 = vmatprep.subr.bf16.mxu0 %v9847_v13  ;;  %1301 = vmatprep.subr.bf16.mxu1 %v9850_v17  ;;  %v9856_v23 = vld [vmem:[%s10739_s9 + $0x34] ss:$8 sps:$4 sm:$0xff]  }
  0x4f   : > { %5492 = vst [vmem:[#allocation7] sm:$0x3f] %v10719_v9  ;;  %5493 = vst [vmem:[#allocation7 + $0x8] sm:$0x3f] %v10719_v9  ;;  %1033 = vrot.lane.b32.xlu1 %v1022_v18, %s10720_s15  ;;  %1029 = vrot.lane.b32.xlu0 %v1020_v19, %s10720_s15  ;;  %v9855_v24 = vld [vmem:[%s10739_s9 + $0x98] ss:$8 sps:$4 sm:$0xff]  }
  0x50   : > { %5494 = vst [vmem:[#allocation7 + $0x10] sm:$0x3f] %v10719_v9  ;;  %7058 = vst [vmem:[#allocation8] sm:$0xff] %v10719_v9  ;;  %v9858_v25 = vld [vmem:[%s10739_s9 + $0x30] ss:$8 sps:$4 sm:$0xff]   ;;  %v1841_v17 = vld [vmem:[%s10764_s29 + $0xe8] sm:$0xff] }
  0x51   : > { %7626 = vst [vmem:[#allocation9] sm:$0xff] %v10719_v9  ;;  %1018 = vst.msk [vmem:[#allocation2 + $0x20] sm:$0x3] %vm1017_vm2, %v10719_v9  ;;  %1172 = vmatpush1.bf16.msra.mxu0 %v9849_v16  ;;  %1302 = vmatpush1.bf16.msra.mxu1 %v9852_v20  ;;  %v9859_v26 = vld [vmem:[%s10739_s9 + $0x8c] ss:$8 sps:$4 sm:$0xff]   ;;  %v1843_v13 = vld [vmem:[%s10764_s29 + $0xf8] sm:$0xff] }
  0x52   : > { %1173 = vmatprep.subr.bf16.mxu0 %v9853_v22  ;;  %1303 = vmatprep.subr.bf16.mxu1 %v9856_v23  ;;  %v9862_v27 = vld [vmem:[%s10739_s9 + $0x24] ss:$8 sps:$4 sm:$0xff]   ;;  %v9861_v28 = vld [vmem:[%s10739_s9 + $0x88] ss:$8 sps:$4 sm:$0xff]   ;;  %v9868_v31 = vld [vmem:[%s10739_s9 + $0x14] ss:$8 sps:$4 sm:$0xff]  }
  0x53   : > { %v9864_v29 = vld [vmem:[%s10739_s9 + $0x20] ss:$8 sps:$4 sm:$0xff]   ;;  %v9865_v30 = vld [vmem:[%s10739_s9 + $0x7c] ss:$8 sps:$4 sm:$0xff]   ;;  %v8348_v32 = vld [vmem:[%s10739_s9 + $0x130] sm:$0x77] }
  0x54   : > { %v9867_v33 = vld [vmem:[%s10739_s9 + $0x78] ss:$8 sps:$4 sm:$0xff]   ;;  %v8361_v34 = vcombine.low %v8348_v32, %v8348_v32  ;;  %v9871_v36 = vld [vmem:[%s10739_s9 + $0x6c] ss:$8 sps:$4 sm:$0xff]   ;;  %v9873_v39 = vld [vmem:[%s10739_s9 + $0x68] ss:$8 sps:$4 sm:$0xff]   ;;  %v8362_v41 = vcombine.high %v8348_v32, %v8348_v32 }
  0x55   : > { %1174 = vmatpush1.bf16.msra.mxu0 %v9855_v24  ;;  %1304 = vmatpush1.bf16.msra.mxu1 %v9858_v25  ;;  %v9870_v35 = vld [vmem:[%s10739_s9 + $0x10] ss:$8 sps:$4 sm:$0xff]   ;;  %v9874_v37 = vld [vmem:[%s10739_s9 + $0x4] ss:$8 sps:$4 sm:$0xff]   ;;  %v9876_v40 = vld [vmem:[%s10739_s9] ss:$8 sps:$4 sm:$0xff]  }
  0x56   : > { %1175 = vmatprep.subr.bf16.mxu0 %v9859_v26  ;;  %1305 = vmatprep.subr.bf16.mxu1 %v9862_v27  ;;  %v1436_v38 = vsel %vm1158_vm0, %v8361_v34, 0  ;;  %v9881_v52 = vld [vmem:[%s10739_s9 + $0x124] ss:$8 sps:$4 sm:$0xff]   ;;  %v9879_v53 = vld [vmem:[%s10739_s9 + $0x120] ss:$8 sps:$4 sm:$0xff]   ;;  %v1827_v14 = vld [vmem:[%s10764_s29 + $0x78] sm:$0xff] }
  0x57   : > { %v9884_v56 = vld [vmem:[%s10739_s9 + $0x114] ss:$8 sps:$4 sm:$0xff]   ;;  %v9882_v59 = vld [vmem:[%s10739_s9 + $0x110] ss:$8 sps:$4 sm:$0xff]   ;;  %v9887_v61 = vld [vmem:[%s10739_s9 + $0x104] ss:$8 sps:$4 sm:$0xff]  }
  0x58   : > { %v9885_v63 = vld [vmem:[%s10739_s9 + $0x100] ss:$8 sps:$4 sm:$0xff]   ;;  %v9890_v0 = vld [vmem:[%s10739_s9 + $0xf4] ss:$8 sps:$4 sm:$0xff]   ;;  %v9888_v1 = vld [vmem:[%s10739_s9 + $0xf0] ss:$8 sps:$4 sm:$0xff]  }
  0x59   : > { %1176 = vmatpush1.bf16.msra.mxu0 %v9861_v28  ;;  %1306 = vmatpush1.bf16.msra.mxu1 %v9864_v29  ;;  %v9893_v2 = vld [vmem:[%s10739_s9 + $0xe4] ss:$8 sps:$4 sm:$0xff]   ;;  %v9891_v3 = vld [vmem:[%s10739_s9 + $0xe0] ss:$8 sps:$4 sm:$0xff]   ;;  %v9896_v4 = vld [vmem:[%s10739_s9 + $0xd4] ss:$8 sps:$4 sm:$0xff]  }
  0x5a   : > { %1177 = vmatprep.subr.bf16.mxu0 %v9865_v30  ;;  %1307 = vmatprep.subr.bf16.mxu1 %v9868_v31  ;;  %v9894_v5 = vld [vmem:[%s10739_s9 + $0xd0] ss:$8 sps:$4 sm:$0xff]   ;;  %v10995_v12 = vld [vmem:[#allocation3] sm:$0xff]  ;;  %v1840_v19 = vld [vmem:[%s10764_s29 + $0xe0] sm:$0xff]  ;;  %vm1922_vm5 = vcmask 130048   ;;  %vm1927_vm6 = vcmask 123904  }
  0x5b   : > { %2862 = vst.msk [vmem:[#allocation4 + $0x8] sm:$0xff] %vm1532_vm4, %v10995_v12  ;;  %v1826_v16 = vld [vmem:[%s10764_s29 + $0x70] sm:$0xff]  ;;  %v1825_v18 = vld [vmem:[%s10764_s29 + $0x68] sm:$0xff]  ;;  %v1824_v20 = vld [vmem:[%s10764_s29 + $0x60] sm:$0xff]  ;;  %vm1931_vm7 = vcmask 1040384   ;;  %vm1944_vm8 = vcmask 1047617  }
  0x5c   : > { %v1839_v22 = vld [vmem:[%s10764_s29 + $0xd8] sm:$0xff]  ;;  %v1838_v24 = vld [vmem:[%s10764_s29 + $0xd0] sm:$0xff]  ;;  %v1837_v26 = vld [vmem:[%s10764_s29 + $0xc8] sm:$0xff]  ;;  %1923 = vst.msk [vmem:[#allocation3 + $0x8] sm:$0xff] %vm1922_vm5, %v10995_v12  ;;  %vm1946_vm9 = vcmask 64513   ;;  %vm1952_vm10 = vcmask 1040448  }
  0x5d   : > { %1178 = vmatpush1.bf16.msra.mxu0 %v9867_v33  ;;  %1308 = vmatpush1.bf16.msra.mxu1 %v9870_v35  ;;  %v1823_v23 = vld [vmem:[%s10764_s29 + $0x58] sm:$0xff]  ;;  %v1822_v25 = vld [vmem:[%s10764_s29 + $0x50] sm:$0xff]  ;;  %v1821_v27 = vld [vmem:[%s10764_s29 + $0x48] sm:$0xff]  ;;  %1925 = vst.msk [vmem:[#allocation3 + $0x18] sm:$0xff] %vm1922_vm5, %v10995_v12  ;;  %vm1954_vm11 = vcmask 57344   ;;  %vm1948_vm12 = vcmask 1047616  }
  0x5e   : > { %1179 = vmatprep.subr.bf16.mxu0 %v9871_v36  ;;  %1309 = vmatprep.subr.bf16.mxu1 %v9874_v37  ;;  %v1836_v28 = vld [vmem:[%s10764_s29 + $0xc0] sm:$0xff]  ;;  %v1835_v30 = vld [vmem:[%s10764_s29 + $0xb8] sm:$0xff]  ;;  %1928 = vst.msk [vmem:[#allocation3 + $0x28] sm:$0x3] %vm1927_vm6, %v10995_v12  ;;  %vm1950_vm13 = vcmask 64512   ;;  %vm2336_vm15 = vcmask 1046528  }
  0x5f   : > { %v1820_v29 = vld [vmem:[%s10764_s29 + $0x40] sm:$0xff]  ;;  %v1819_v31 = vld [vmem:[%s10764_s29 + $0x38] sm:$0xff]  ;;  %vm2011_vm14 = vsmask.f32 7424  ;;  %vm2873_vm2 = vcmask 130049   ;;  %vm3429_vm6 = vcmask 523264  }
  0x60   : > { %s11945_s0 = sld [smem:[#allocation15_spill]] }
  0x61   : > { %1180 = vmatpush1.bf16.msra.mxu0 %v9873_v39  ;;  %1310 = vmatpush1.bf16.msra.mxu1 %v9876_v40  ;;  %s11946_s11 = sld [smem:[#allocation14_spill]] }
  0x62   : > { %8363 = vmatprep.subr.msk.bf16.mxu0 %vm1158_vm0, %v8362_v41  ;;  %vm2864_vm0 = vcmask 254976   ;;  %s11947_s15 = sld [smem:[#allocation17_spill]] }
  0xbd   : > { %v1032_v42 = vpop.permute.xlu1 %1031  ;;  %v1028_v43 = vpop.permute.xlu0 %1027 }
  0xbe   : > { %1042 = vst.msk [vmem:[#allocation2 + $0x11] sm:$0xff] %vm1039_vm3, %v1032_v42  ;;  %1040 = vst.msk [vmem:[#allocation2 + $0x1] sm:$0xff] %vm1039_vm3, %v1028_v43 }
  0xc1   : > { %v1034_v44 = vpop.permute.xlu1 %1033  ;;  %v1030_v45 = vpop.permute.xlu0 %1029 }
  0xc2   : > { %1043 = vst.msk [vmem:[#allocation2 + $0x19] sm:$0xff] %vm1039_vm3, %v1034_v44  ;;  %1041 = vst.msk [vmem:[#allocation2 + $0x9] sm:$0xff] %vm1039_vm3, %v1030_v45  ;;  %vm2875_vm3 = vcmask 1040512  }
  0xc5   : > { %v1048_v46 = vld [vmem:[#allocation2 + $0x1] sm:$0xff]  ;;  %v1050_v54 = vld [vmem:[#allocation2 + $0x11] sm:$0xff] }
  0xc6   : > { %v1044_v48 = vld [vmem:[#allocation2] sm:$0xff] }
  0xc9   : > { %v1049_v47 = vld [vmem:[#allocation2 + $0x9] sm:$0xff]  ;;  %v1051_v55 = vld [vmem:[#allocation2 + $0x19] sm:$0xff] }
  0xca   : > { %v1045_v49 = vld [vmem:[#allocation2 + $0x8] sm:$0xff]  ;;  %v1071_v50 = vpack.c.bf16 %v1049_v47, %v1048_v46  ;;  %v1046_v57 = vld [vmem:[#allocation2 + $0x10] sm:$0xff]  ;;  %v1047_v58 = vld [vmem:[#allocation2 + $0x18] sm:$0xff]  ;;  %v1072_v60 = vpack.c.bf16 %v1051_v55, %v1050_v54  ;;  %v1504_v47 = vlaneseq }
  0xcb   : > { %v1056_v51 = vpack.c.bf16 %v1045_v49, %v1044_v48  ;;  %v1057_v62 = vpack.c.bf16 %v1047_v58, %v1046_v57  ;;  %v1052_v6 = vld [vmem:[#allocation2 + $0x2] sm:$0xff]  ;;  %v1053_v7 = vld [vmem:[#allocation2 + $0xa] sm:$0xff]  ;;  %v1055_v10 = vld [vmem:[#allocation2 + $0x1a] sm:$0xff] }
  0xcc   : > { %8317 = vmatmul.mubr.msk.bf16.vlgmr.msra.gmra.mxu0 %vm1012_vm1, %v1071_v50  ;;  %v1348_v8 = vpack.c.bf16 %v1053_v7, %v1052_v6 }
  0xcd   : > { %8334 = vmatmul.mubr.msk.bf16.vlgmr.msra.gmra.mxu1 %vm1012_vm1, %v1056_v51  ;;  %1444 = vmatpush1.bf16.msra.mxu0 %v1436_v38  ;;  %v1505_v51 = vshrl.u32 %v1504_v47, 7  ;;  %v1731_v47 = vld [vmem:[%s10759_s25 + $0xd0] sm:$0xff] }
  0xce   : > { %1207 = vmatprep.mubr.bf16.mxu0 %v10721_v21  ;;  %1445 = vmatprep.subr.bf16.mxu0 %v9881_v52 }
  0xcf   : > { %1337 = vmatprep.mubr.bf16.mxu1 %v10721_v21  ;;  %v11017_v55 = vsub.s32 0, %v1505_v51 }
  0xd1   : > { %1446 = vmatpush1.bf16.msra.mxu0 %v9879_v53 }
  0xd2   : > { %1447 = vmatprep.subr.bf16.mxu0 %v9884_v56 }
  0xd4   : > { %8318 = vmatmul.mubr.msk.bf16.gmra.mxu0 %vm1012_vm1, %v1072_v60  ;;  %v11020_v60 = vsub.s32 1, %v1505_v51  ;;  %v1729_v51 = vld [vmem:[%s10759_s25 + $0xc0] sm:$0xff] }
  0xd5   : > { %8335 = vmatmul.mubr.msk.bf16.gmra.mxu1 %vm1012_vm1, %v1057_v62  ;;  %1448 = vmatpush1.bf16.msra.mxu0 %v9882_v59  ;;  %v1502_v59 = vld [vmem:[%s10744_s13] sm:$0x3] }
  0xd6   : > { %1473 = vmatprep.mubr.bf16.mxu0 %v10721_v21  ;;  %1449 = vmatprep.subr.bf16.mxu0 %v9887_v61 }
  0xd7   : > { %1603 = vmatprep.mubr.f32.mxu1 %v10719_v9  ;;  %v1054_v9 = vld [vmem:[#allocation2 + $0x12] sm:$0xff] }
  0xd8   : > { %v1349_v11 = vpack.c.bf16 %v1055_v10, %v1054_v9 }
  0xd9   : > { %1450 = vmatpush1.bf16.msra.mxu0 %v9885_v63 }
  0xda   : > { %1451 = vmatprep.subr.bf16.mxu0 %v9890_v0 }
  0xdd   : > { %1452 = vmatpush1.bf16.msra.mxu0 %v9888_v1 }
  0xde   : > { %1453 = vmatprep.subr.bf16.mxu0 %v9893_v2 }
  0xe1   : > { %1454 = vmatpush1.bf16.msra.mxu0 %v9891_v3 }
  0xe2   : > { %1455 = vmatprep.subr.bf16.mxu0 %v9896_v4  ;;  %v1507_v4 = vrot.slane %v1502_v59, %v11017_v55 }
  0xe5   : > { %1456 = vmatpush1.bf16.msra.mxu0 %v9894_v5 }
  0xe6   : > { %9409 = vmatprep.subr.mxu0 %v1843_v13 }
  0xe8   : > { %8364 = vmatmul.mubr.msk.bf16.vlgmr.msra.gmra.mxu0 %vm1012_vm1, %v1348_v8  ;;  %v1511_v8 = vrot.slane %v1502_v59, %v11020_v60  ;;  %v1818_v59 = vld [vmem:[%s10764_s29 + $0x30] sm:$0xff] }
  0xe9   : > { %1483 = vmatprep.mubr.bf16.mxu0 %v10721_v21  ;;  %9410 = vmatpush3.msra.mxu0 %v1827_v14 }
  0xea   : > { %9411 = vmatprep.subr.mxu0 %v1842_v15 }
  0xeb   : > { %9412 = vmatpush3.msra.mxu0 %v1826_v16 }
  0xec   : > { %9413 = vmatprep.subr.mxu0 %v1841_v17 }
  0xed   : > { %9414 = vmatpush3.msra.mxu0 %v1825_v18 }
  0xee   : > { %9415 = vmatprep.subr.mxu0 %v1840_v19 }
  0xef   : > { %9416 = vmatpush3.msra.mxu0 %v1824_v20 }
  0xf0   : > { %8365 = vmatmul.mubr.msk.bf16.gmra.mxu0 %vm1012_vm1, %v1349_v11  ;;  %9417 = vmatprep.subr.mxu0 %v1839_v22  ;;  %vm2871_vm1 = vcmask 1047681  }
  0xf1   : > { %9418 = vmatpush3.msra.mxu0 %v1823_v23 }
  0xf2   : > { %9419 = vmatprep.subr.mxu0 %v1838_v24 }
  0xf3   : > { %9420 = vmatpush3.msra.mxu0 %v1822_v25 }
  0xf4   : > { %9421 = vmatprep.subr.mxu0 %v1837_v26 }
  0xf5   : > { %9422 = vmatpush3.msra.mxu0 %v1821_v27 }
  0xf6   : > { %9423 = vmatprep.subr.mxu0 %v1836_v28 }
  0xf7   : > { %9424 = vmatpush3.msra.mxu0 %v1820_v29 }
  0xf8   : > { %9425 = vmatprep.subr.mxu0 %v1835_v30 }
  0xf9   : > { %9426 = vmatpush3.msra.mxu0 %v1819_v31 }
 0x18c   : > { %v1199_v32 = vpop.f32.mrf.mxu0 }
 0x18d   : > { %v1329_v35 = vpop.f32.mrf.mxu1 }
 0x18e   : > { %v1201_v33 = vpop.f32.mrf.mxu0  ;;  %v1330_v11 = vadd.f32 %v1329_v35, %v1199_v32  ;;  %v1616_v35 = vld [vmem:[%s10754_s21] sm:$0xff] }
 0x18f   : > { %v1331_v37 = vpop.f32.mrf.mxu1 }
 0x190   : > { %v1203_v34 = vpop.f32.mrf.mxu0  ;;  %v1332_v7 = vadd.f32 %v1331_v37, %v1201_v33  ;;  %v1530_v33 = vld [vmem:[%s10749_s17] sm:$0xff]  ;;  %v1720_v37 = vld [vmem:[%s10759_s25 + $0x78] sm:$0xff] }
 0x191   : > { %v1333_v39 = vpop.f32.mrf.mxu1 }
 0x192   : > { %v1205_v36 = vpop.f32.mrf.mxu0  ;;  %v1334_v3 = vadd.f32 %v1333_v39, %v1203_v34  ;;  %v1531_v34 = vld [vmem:[%s10749_s17 + $0x8] sm:$0xff]  ;;  %v1719_v39 = vld [vmem:[%s10759_s25 + $0x70] sm:$0xff] }
 0x193   : > { %v1335_v41 = vpop.f32.mrf.mxu1 }
 0x194   : > { %v1209_v38 = vpop.f32.mrf.mxu0  ;;  %v1336_v63 = vadd.f32 %v1335_v41, %v1205_v36  ;;  %v1736_v36 = vld [vmem:[%s10759_s25 + $0xf8] sm:$0xff]  ;;  %v1734_v41 = vld [vmem:[%s10759_s25 + $0xe8] sm:$0xff] }
 0x195   : > { %v1339_v43 = vpop.f32.mrf.mxu1 }
 0x196   : > { %v1211_v40 = vpop.f32.mrf.mxu0  ;;  %v1340_v61 = vadd.f32 %v1339_v43, %v1209_v38  ;;  %v1735_v38 = vld [vmem:[%s10759_s25 + $0xf0] sm:$0xff]  ;;  %v1733_v43 = vld [vmem:[%s10759_s25 + $0xe0] sm:$0xff] }
 0x197   : > { %v1341_v46 = vpop.f32.mrf.mxu1 }
 0x198   : > { %v1213_v42 = vpop.f32.mrf.mxu0  ;;  %v1342_v57 = vadd.f32 %v1341_v46, %v1211_v40  ;;  %v1617_v40 = vld [vmem:[%s10754_s21 + $0x8] sm:$0xff]  ;;  %v1716_v46 = vld [vmem:[%s10759_s25 + $0x58] sm:$0xff] }
 0x199   : > { %v1343_v50 = vpop.f32.mrf.mxu1 }
 0x19a   : > { %v1215_v44 = vpop.f32.mrf.mxu0  ;;  %v1344_v58 = vadd.f32 %v1343_v50, %v1213_v42  ;;  %v1718_v42 = vld [vmem:[%s10759_s25 + $0x68] sm:$0xff] }
 0x19b   : > { %v1345_v54 = vpop.f32.mrf.mxu1  ;;  %v1714_v50 = vld [vmem:[%s10759_s25 + $0x48] sm:$0xff] }
 0x19c   : > { %v1346_v0 = vadd.f32 %v1345_v54, %v1215_v44  ;;  %v1717_v44 = vld [vmem:[%s10759_s25 + $0x60] sm:$0xff]  ;;  %v1712_v54 = vld [vmem:[%s10759_s25 + $0x38] sm:$0xff] }
 0x1a8   : > { %v1475_v45 = vpop.f32.mrf.mxu0 }
 0x1a9   : > { %v1494_v18 = vadd.f32 %v1475_v45, %v1330_v11  ;;  %v1732_v45 = vld [vmem:[%s10759_s25 + $0xd8] sm:$0xff]  ;;  %v1707_v11 = vld [vmem:[%s10759_s25 + $0x10] sm:$0xff] }
 0x1aa   : > { %v1477_v48 = vpop.f32.mrf.mxu0 }
 0x1ab   : > { %v1495_v15 = vadd.f32 %v1477_v48, %v1332_v7  ;;  %v1514_v27 = vadd.f32 %v1507_v4, %v1494_v18  ;;  %v1715_v48 = vld [vmem:[%s10759_s25 + $0x50] sm:$0xff]  ;;  %v1708_v7 = vld [vmem:[%s10759_s25 + $0x18] sm:$0xff]  ;;  %v1721_v18 = vld [vmem:[%s10759_s25 + $0x80] sm:$0xff] }
 0x1ac   : > { %v1479_v49 = vpop.f32.mrf.mxu0 }
 0x1ad   : > { %v1496_v13 = vadd.f32 %v1479_v49, %v1334_v3  ;;  %v1515_v25 = vadd.f32 %v1511_v8, %v1495_v15  ;;  %v1522_v32 = vmax.f32 %v1514_v27, 0.0  ;;  %v1730_v49 = vld [vmem:[%s10759_s25 + $0xc8] sm:$0xff]  ;;  %v1709_v3 = vld [vmem:[%s10759_s25 + $0x20] sm:$0xff] }
 0x1ae   : > { %v1481_v52 = vpop.f32.mrf.mxu0  ;;  %v1829_v15 = vld [vmem:[%s10764_s29 + $0x88] sm:$0xff] }
 0x1af   : > { %v1497_v9 = vadd.f32 %v1481_v52, %v1336_v63  ;;  %v1516_v23 = vadd.f32 %v1507_v4, %v1496_v13  ;;  %v1523_v31 = vmax.f32 %v1515_v25, 0.0  ;;  %v1713_v52 = vld [vmem:[%s10759_s25 + $0x40] sm:$0xff]  ;;  %v1710_v63 = vld [vmem:[%s10759_s25 + $0x28] sm:$0xff]  ;;  %v1814_v13 = vld [vmem:[%s10764_s29 + $0x10] sm:$0xff] }
 0x1b0   : > { %v1485_v53 = vpop.f32.mrf.mxu0 }
 0x1b1   : > { %v1498_v5 = vadd.f32 %v1485_v53, %v1340_v61  ;;  %v1517_v20 = vadd.f32 %v1511_v8, %v1497_v9  ;;  %v1524_v30 = vmax.f32 %v1516_v23, 0.0  ;;  %v1728_v53 = vld [vmem:[%s10759_s25 + $0xb8] sm:$0xff]  ;;  %v1726_v61 = vld [vmem:[%s10759_s25 + $0xa8] sm:$0xff]  ;;  %v1723_v9 = vld [vmem:[%s10759_s25 + $0x90] sm:$0xff] }
 0x1b2   : > { %v1487_v56 = vpop.f32.mrf.mxu0 }
 0x1b3   : > { %v1499_v1 = vadd.f32 %v1487_v56, %v1342_v57  ;;  %v1518_v19 = vadd.f32 %v1507_v4, %v1498_v5  ;;  %v1525_v29 = vmax.f32 %v1517_v20, 0.0  ;;  %v1727_v56 = vld [vmem:[%s10759_s25 + $0xb0] sm:$0xff]  ;;  %v1724_v5 = vld [vmem:[%s10759_s25 + $0x98] sm:$0xff]  ;;  %v1705_v20 = vld [vmem:[%s10759_s25] sm:$0xff] }
 0x1b4   : > { %v1489_v62 = vpop.f32.mrf.mxu0  ;;  %v1834_v57 = vld [vmem:[%s10764_s29 + $0xb0] sm:$0xff] }
 0x1b5   : > { %v1500_v2 = vadd.f32 %v1489_v62, %v1344_v58  ;;  %v1519_v16 = vadd.f32 %v1511_v8, %v1499_v1  ;;  %v1526_v28 = vmax.f32 %v1518_v19, 0.0  ;;  %v1711_v58 = vld [vmem:[%s10759_s25 + $0x30] sm:$0xff]  ;;  %9427 = vmatprep.subr.mxu0 %v1834_v57  ;;  %v1833_v62 = vld [vmem:[%s10764_s29 + $0xa8] sm:$0xff]  ;;  %v1725_v1 = vld [vmem:[%s10759_s25 + $0xa0] sm:$0xff] }
 0x1b6   : > { %v1491_v6 = vpop.f32.mrf.mxu0  ;;  %9428 = vmatpush3.msra.mxu0 %v1818_v59  ;;  %v1828_v19 = vld [vmem:[%s10764_s29 + $0x80] sm:$0xff] }
 0x1b7   : > { %v1501_v10 = vadd.f32 %v1491_v6, %v1346_v0  ;;  %v1520_v14 = vadd.f32 %v1507_v4, %v1500_v2  ;;  %v1527_v26 = vmax.f32 %v1519_v16, 0.0  ;;  %9429 = vmatprep.subr.mxu0 %v1833_v62  ;;  %v1817_v0 = vld [vmem:[%s10764_s29 + $0x28] sm:$0xff]  ;;  %v1832_v2 = vld [vmem:[%s10764_s29 + $0xa0] sm:$0xff]  ;;  %v1831_v6 = vld [vmem:[%s10764_s29 + $0x98] sm:$0xff] }
 0x1b8   : > { %9430 = vmatpush3.msra.mxu0 %v1817_v0  ;;  %v1816_v4 = vld [vmem:[%s10764_s29 + $0x20] sm:$0xff]  ;;  %v1706_v16 = vld [vmem:[%s10759_s25 + $0x8] sm:$0xff]  ;;  %v9930_v62 = vld [vmem:[%s10769_s3 + $0x10] ss:$8 sps:$4 sm:$0xff]  }
 0x1b9   : > { %v1521_v17 = vadd.f32 %v1511_v8, %v1501_v10  ;;  %v1528_v24 = vmax.f32 %v1520_v14, 0.0  ;;  %9431 = vmatprep.subr.mxu0 %v1832_v2  ;;  %v1815_v8 = vld [vmem:[%s10764_s29 + $0x18] sm:$0xff]  ;;  %v1830_v10 = vld [vmem:[%s10764_s29 + $0x90] sm:$0xff]  ;;  %v1722_v14 = vld [vmem:[%s10759_s25 + $0x88] sm:$0xff] }
 0x1ba   : > { %9432 = vmatpush3.msra.mxu0 %v1816_v4  ;;  %v9929_v57 = vld [vmem:[%s10769_s3 + $0xc4] ss:$8 sps:$4 sm:$0xff]   ;;  %v9935_v0 = vld [vmem:[%s10769_s3 + $0xb4] ss:$8 sps:$4 sm:$0xff]  }
 0x1bb   : > { %v1529_v22 = vmax.f32 %v1521_v17, 0.0  ;;  %9433 = vmatprep.subr.mxu0 %v1831_v6  ;;  %v1813_v17 = vld [vmem:[%s10764_s29 + $0x8] sm:$0xff] }
 0x1bc   : > { %9434 = vmatpush3.msra.mxu0 %v1815_v8  ;;  %v9938_v4 = vld [vmem:[%s10769_s3 + $0x4] ss:$8 sps:$4 sm:$0xff]  }
 0x1bd   : > { %1563 = vmatprep.subr.mxu1 %v1529_v22  ;;  %9435 = vmatprep.subr.mxu0 %v1830_v10  ;;  %v9944_v8 = vld [vmem:[%s10769_s3 + $0x84] ss:$8 sps:$4 sm:$0xff]  }
 0x1be   : > { %1564 = vmatpush1.msra.mxu1 %v1528_v24  ;;  %9436 = vmatpush3.msra.mxu0 %v1814_v13 }
 0x1bf   : > { %1565 = vmatprep.subr.mxu1 %v1527_v26  ;;  %9437 = vmatprep.subr.mxu0 %v1829_v15 }
 0x1c0   : > { %1566 = vmatpush1.msra.mxu1 %v1526_v28  ;;  %9438 = vmatpush3.msra.mxu0 %v1813_v17  ;;  %v9942_v17 = vld [vmem:[%s10769_s3 + $0x80] ss:$8 sps:$4 sm:$0xff]  }
 0x1c1   : > { %1567 = vmatprep.subr.mxu1 %v1525_v29  ;;  %9439 = vmatprep.subr.mxu0 %v1828_v19 }
 0x1c2   : > { %1568 = vmatpush1.msra.mxu1 %v1524_v30 }
 0x1c3   : > { %1569 = vmatprep.subr.mxu1 %v1523_v31 }
 0x1c4   : > { %1570 = vmatpush1.msra.mxu1 %v1522_v32 }
 0x1c5   : > { %8366 = vmatmul.mubr.msk.f32.vlgmr.msra.gmra.mxu1 %vm1532_vm4, %v1530_v33  ;;  %1648 = vmatprep.subr.mxu1 %v1529_v22  ;;  %v1812_v22 = vld [vmem:[%s10764_s29] sm:$0xff] }
 0x1c6   : > { %1649 = vmatpush1.msra.mxu1 %v1528_v24  ;;  %1609 = vmatprep.mubr.f32.mxu1 %v10995_v12 }
 0x1c7   : > { %1650 = vmatprep.subr.mxu1 %v1527_v26  ;;  %9440 = vmatpush3.msra.mxu0 %v1812_v22  ;;  %v9945_v22 = vld [vmem:[%s10769_s3 + $0x90] ss:$8 sps:$4 sm:$0xff]  }
 0x1c8   : > { %1651 = vmatpush1.msra.mxu1 %v1526_v28 }
 0x1c9   : > { %8367 = vmatmul.mubr.msk.f32.gmra.mxu1 %vm1532_vm4, %v1531_v34  ;;  %1652 = vmatprep.subr.mxu1 %v1525_v29 }
 0x1ca   : > { %1653 = vmatpush1.msra.mxu1 %v1524_v30  ;;  %1688 = vmatprep.mubr.f32.mxu1 %v10995_v12 }
 0x1cb   : > { %1654 = vmatprep.subr.mxu1 %v1523_v31 }
 0x1cc   : > { %1655 = vmatpush1.msra.mxu1 %v1522_v32 }
 0x1cd   : > { %8368 = vmatmul.mubr.msk.f32.vlgmr.msra.gmra.mxu1 %vm1532_vm4, %v1616_v35  ;;  %9371 = vmatprep.subr.mxu1 %v1736_v36  ;;  %v9897_v35 = vld [vmem:[%s10769_s3 + $0x70] ss:$8 sps:$4 sm:$0xff]   ;;  %v9899_v36 = vld [vmem:[%s10769_s3 + $0x74] ss:$8 sps:$4 sm:$0xff]  }
 0x1ce   : > { %1694 = vmatprep.mubr.f32.mxu1 %v10995_v12  ;;  %9372 = vmatpush3.msra.mxu1 %v1720_v37  ;;  %v9902_v37 = vld [vmem:[%s10769_s3 + $0x64] ss:$8 sps:$4 sm:$0xff]  }
 0x1cf   : > { %9373 = vmatprep.subr.mxu1 %v1735_v38  ;;  %v9903_v38 = vld [vmem:[%s10769_s3 + $0x100] ss:$8 sps:$4 sm:$0xff]   ;;  %2266 = vmatprep.subr.bf16.mxu0 %v9899_v36 }
 0x1d0   : > { %9374 = vmatpush3.msra.mxu1 %v1719_v39  ;;  %v9905_v39 = vld [vmem:[%s10769_s3 + $0x104] ss:$8 sps:$4 sm:$0xff]  }
 0x1d1   : > { %8369 = vmatmul.mubr.msk.f32.gmra.mxu1 %vm1532_vm4, %v1617_v40  ;;  %9375 = vmatprep.subr.mxu1 %v1734_v41  ;;  %v9900_v40 = vld [vmem:[%s10769_s3 + $0x60] ss:$8 sps:$4 sm:$0xff]   ;;  %v9911_v41 = vld [vmem:[%s10769_s3 + $0xf4] ss:$8 sps:$4 sm:$0xff]  }
 0x1d2   : > { %9376 = vmatpush3.msra.mxu1 %v1718_v42  ;;  %v9908_v42 = vld [vmem:[%s10769_s3 + $0x54] ss:$8 sps:$4 sm:$0xff]  }
 0x1d3   : > { %9377 = vmatprep.subr.mxu1 %v1733_v43  ;;  %v9909_v43 = vld [vmem:[%s10769_s3 + $0xf0] ss:$8 sps:$4 sm:$0xff]  }
 0x1d4   : > { %9378 = vmatpush3.msra.mxu1 %v1717_v44  ;;  %v9917_v44 = vld [vmem:[%s10769_s3 + $0xe4] ss:$8 sps:$4 sm:$0xff]  }
 0x1d5   : > { %9379 = vmatprep.subr.mxu1 %v1732_v45  ;;  %v9906_v45 = vld [vmem:[%s10769_s3 + $0x50] ss:$8 sps:$4 sm:$0xff]  }
 0x1d6   : > { %9380 = vmatpush3.msra.mxu1 %v1716_v46  ;;  %v9914_v46 = vld [vmem:[%s10769_s3 + $0x44] ss:$8 sps:$4 sm:$0xff]  }
 0x1d7   : > { %9381 = vmatprep.subr.mxu1 %v1731_v47  ;;  %v9915_v47 = vld [vmem:[%s10769_s3 + $0xe0] ss:$8 sps:$4 sm:$0xff]  }
 0x1d8   : > { %9382 = vmatpush3.msra.mxu1 %v1715_v48  ;;  %v9923_v48 = vld [vmem:[%s10769_s3 + $0xd4] ss:$8 sps:$4 sm:$0xff]  }
 0x1d9   : > { %9383 = vmatprep.subr.mxu1 %v1730_v49  ;;  %v9912_v49 = vld [vmem:[%s10769_s3 + $0x40] ss:$8 sps:$4 sm:$0xff]  }
 0x1da   : > { %9384 = vmatpush3.msra.mxu1 %v1714_v50  ;;  %v9920_v50 = vld [vmem:[%s10769_s3 + $0x34] ss:$8 sps:$4 sm:$0xff]  }
 0x1db   : > { %9385 = vmatprep.subr.mxu1 %v1729_v51  ;;  %v9921_v51 = vld [vmem:[%s10769_s3 + $0xd0] ss:$8 sps:$4 sm:$0xff]  }
 0x1dc   : > { %9386 = vmatpush3.msra.mxu1 %v1713_v52  ;;  %v9918_v52 = vld [vmem:[%s10769_s3 + $0x30] ss:$8 sps:$4 sm:$0xff]  }
 0x1dd   : > { %9387 = vmatprep.subr.mxu1 %v1728_v53  ;;  %v9926_v53 = vld [vmem:[%s10769_s3 + $0x24] ss:$8 sps:$4 sm:$0xff]  }
 0x1de   : > { %9388 = vmatpush3.msra.mxu1 %v1712_v54  ;;  %v9924_v54 = vld [vmem:[%s10769_s3 + $0x20] ss:$8 sps:$4 sm:$0xff]  }
 0x1df   : > { %9389 = vmatprep.subr.mxu1 %v1727_v56  ;;  %v9927_v56 = vld [vmem:[%s10769_s3 + $0xc0] ss:$8 sps:$4 sm:$0xff]  }
 0x1e0   : > { %9390 = vmatpush3.msra.mxu1 %v1711_v58  ;;  %v9932_v58 = vld [vmem:[%s10769_s3 + $0x14] ss:$8 sps:$4 sm:$0xff]  }
 0x1e1   : > { %9391 = vmatprep.subr.mxu1 %v1726_v61 }
 0x1e2   : > { %9392 = vmatpush3.msra.mxu1 %v1710_v63  ;;  %v9933_v63 = vld [vmem:[%s10769_s3 + $0xb0] ss:$8 sps:$4 sm:$0xff]  }
 0x1e3   : > { %9393 = vmatprep.subr.mxu1 %v1725_v1 }
 0x1e4   : > { %9394 = vmatpush3.msra.mxu1 %v1709_v3  ;;  %v9936_v3 = vld [vmem:[%s10769_s3] ss:$8 sps:$4 sm:$0xff]  }
 0x1e5   : > { %9395 = vmatprep.subr.mxu1 %v1724_v5  ;;  %v9941_v5 = vld [vmem:[%s10769_s3 + $0xa4] ss:$8 sps:$4 sm:$0xff]  }
 0x1e6   : > { %9396 = vmatpush3.msra.mxu1 %v1708_v7 }
 0x1e7   : > { %9397 = vmatprep.subr.mxu1 %v1723_v9 }
 0x1e8   : > { %9398 = vmatpush3.msra.mxu1 %v1707_v11  ;;  %v9939_v11 = vld [vmem:[%s10769_s3 + $0xa0] ss:$8 sps:$4 sm:$0xff]  }
 0x1e9   : > { %9399 = vmatprep.subr.mxu1 %v1722_v14  ;;  %v9947_v14 = vld [vmem:[%s10769_s3 + $0x94] ss:$8 sps:$4 sm:$0xff]  }
 0x1ea   : > { %9400 = vmatpush3.msra.mxu1 %v1706_v16 }
 0x1eb   : > { %9401 = vmatprep.subr.mxu1 %v1721_v18 }
 0x1ec   : > { %9402 = vmatpush3.msra.mxu1 %v1705_v20 }
 0x1ed   : > { %2130 = vmatprep.subr.bf16.mxu1 %v9905_v39 }
 0x285   : > { %v1605_v23 = vpop.f32.mrf.mxu1 }
 0x287   : > { %v1607_v24 = vpop.f32.mrf.mxu1 }
 0x289   : > { %v1611_v25 = vpop.f32.mrf.mxu1 }
 0x28b   : > { %v1613_v26 = vpop.f32.mrf.mxu1 }
 0x28d   : > { %v1690_v27 = vpop.f32.mrf.mxu1 }
 0x28e   : > { %v1701_v30 = vmax.f32 %v1605_v23, %v1690_v27 }
 0x28f   : > { %v1692_v28 = vpop.f32.mrf.mxu1 }
 0x290   : > { %v1702_v29 = vmax.f32 %v1607_v24, %v1692_v28  ;;  %v9953_v28 = vld [vmem:[%s10769_s3 + $0x194] ss:$8 sps:$4 sm:$0xff]  }
 0x291   : > { %v1696_v31 = vpop.f32.mrf.mxu1 }
 0x292   : > { %1801 = vmatprep.mubr.f32.mxu1 %v1702_v29  ;;  %1908 = vmatprep.mubr.f32.mxu0 %v1702_v29  ;;  %v1703_v34 = vmax.f32 %v1611_v25, %v1696_v31  ;;  %v9948_v25 = vld [vmem:[%s10769_s3 + $0x110] ss:$8 sps:$4 sm:$0xff]  }
 0x293   : > { %v1698_v32 = vpop.f32.mrf.mxu1  ;;  %1802 = vmatmul.mubr.f32.vlgmr.msra.gmra.mxu1 %v1701_v30  ;;  %1909 = vmatmul.mubr.f32.vlgmr.msra.gmra.mxu0 %v1701_v30 }
 0x294   : > { %v1704_v33 = vmax.f32 %v1613_v26, %v1698_v32  ;;  %2267 = vmatpush1.bf16.msra.mxu0 %v9897_v35  ;;  %2131 = vmatpush1.bf16.msra.mxu1 %v9903_v38  ;;  %v9950_v26 = vld [vmem:[%s10769_s3 + $0x114] ss:$8 sps:$4 sm:$0xff]  }
 0x295   : > { %2268 = vmatprep.subr.bf16.mxu0 %v9902_v37  ;;  %2132 = vmatprep.subr.bf16.mxu1 %v9911_v41 }
 0x296   : > { %1806 = vmatprep.mubr.f32.mxu1 %v1704_v33  ;;  %1913 = vmatprep.mubr.f32.mxu0 %v1704_v33 }
 0x297   : > { %1807 = vmatmul.mubr.f32.gmra.mxu1 %v1703_v34  ;;  %1914 = vmatmul.mubr.f32.gmra.mxu0 %v1703_v34 }
 0x298   : > { %2269 = vmatpush1.bf16.msra.mxu0 %v9900_v40  ;;  %2133 = vmatpush1.bf16.msra.mxu1 %v9909_v43 }
 0x299   : > { %2270 = vmatprep.subr.bf16.mxu0 %v9908_v42  ;;  %2134 = vmatprep.subr.bf16.mxu1 %v9917_v44 }
 0x29c   : > { %2271 = vmatpush1.bf16.msra.mxu0 %v9906_v45  ;;  %2135 = vmatpush1.bf16.msra.mxu1 %v9915_v47 }
 0x29d   : > { %2272 = vmatprep.subr.bf16.mxu0 %v9914_v46  ;;  %2136 = vmatprep.subr.bf16.mxu1 %v9923_v48 }
 0x2a0   : > { %2273 = vmatpush1.bf16.msra.mxu0 %v9912_v49  ;;  %2137 = vmatpush1.bf16.msra.mxu1 %v9921_v51 }
 0x2a1   : > { %2274 = vmatprep.subr.bf16.mxu0 %v9920_v50  ;;  %2138 = vmatprep.subr.bf16.mxu1 %v9929_v57 }
 0x2a4   : > { %2275 = vmatpush1.bf16.msra.mxu0 %v9918_v52  ;;  %2139 = vmatpush1.bf16.msra.mxu1 %v9927_v56 }
 0x2a5   : > { %2276 = vmatprep.subr.bf16.mxu0 %v9926_v53  ;;  %2140 = vmatprep.subr.bf16.mxu1 %v9935_v0 }
 0x2a8   : > { %2277 = vmatpush1.bf16.msra.mxu0 %v9924_v54  ;;  %2141 = vmatpush1.bf16.msra.mxu1 %v9933_v63 }
 0x2a9   : > { %2278 = vmatprep.subr.bf16.mxu0 %v9932_v58  ;;  %2142 = vmatprep.subr.bf16.mxu1 %v9941_v5  ;;  %v9956_v5 = vld [vmem:[%s10769_s3 + $0x184] ss:$8 sps:$4 sm:$0xff]  }
 0x2ac   : > { %2279 = vmatpush1.bf16.msra.mxu0 %v9930_v62  ;;  %2143 = vmatpush1.bf16.msra.mxu1 %v9939_v11  ;;  %v9965_v11 = vld [vmem:[%s10769_s3 + $0x154] ss:$8 sps:$4 sm:$0xff]  }
 0x2ad   : > { %2280 = vmatprep.subr.bf16.mxu0 %v9938_v4  ;;  %2144 = vmatprep.subr.bf16.mxu1 %v9947_v14  ;;  %v9968_v14 = vld [vmem:[%s10769_s3 + $0x144] ss:$8 sps:$4 sm:$0xff]  }
 0x2b0   : > { %2281 = vmatpush1.bf16.msra.mxu0 %v9936_v3  ;;  %2145 = vmatpush1.bf16.msra.mxu1 %v9945_v22  ;;  %v9977_v22 = vld [vmem:[%s10769_s3 + $0x1a4] ss:$8 sps:$4 sm:$0xff]  }
 0x2b1   : > { %2296 = vmatprep.subr.bf16.mxu0 %v9944_v8  ;;  %2160 = vmatprep.subr.bf16.mxu1 %v9950_v26  ;;  %v9957_v8 = vld [vmem:[%s10769_s3 + $0x170] ss:$8 sps:$4 sm:$0xff]   ;;  %v9975_v26 = vld [vmem:[%s10769_s3 + $0x1a0] ss:$8 sps:$4 sm:$0xff]  }
 0x2b4   : > { %2297 = vmatpush2.bf16.msra.mxu0 %v9942_v17  ;;  %2161 = vmatpush2.bf16.msra.mxu1 %v9948_v25  ;;  %v9969_v17 = vld [vmem:[%s10769_s3 + $0x130] ss:$8 sps:$4 sm:$0xff]  }
 0x2b5   : > { %2437 = vmatprep.subr.bf16.mxu1 %v9953_v28 }
 0x353   : > { %v9403_v59 = vpop.f32.mrf.mxu1  ;;  %v9441_v61 = vpop.f32.mrf.mxu0 }
 0x355   : > { %v9404_v1 = vpop.f32.mrf.mxu1  ;;  %v9442_v2 = vpop.f32.mrf.mxu0 }
 0x356   : > { %v9405_v6 = vadd.f32 %v9404_v1, %v9403_v59  ;;  %v9443_v7 = vadd.f32 %v9442_v2, %v9441_v61  ;;  %v9951_v2 = vld [vmem:[%s10769_s3 + $0x190] ss:$8 sps:$4 sm:$0xff]  }
 0x357   : > { %v9406_v9 = vpop.f32.mrf.mxu1  ;;  %v9444_v10 = vpop.f32.mrf.mxu0 }
 0x358   : > { %v1919_v13 = vmax.f32 %v9405_v6, %v9443_v7  ;;  %v9954_v6 = vld [vmem:[%s10769_s3 + $0x180] ss:$8 sps:$4 sm:$0xff]   ;;  %v9959_v7 = vld [vmem:[%s10769_s3 + $0x174] ss:$8 sps:$4 sm:$0xff]  }
 0x359   : > { %v9407_v15 = vpop.f32.mrf.mxu1  ;;  %v9445_v16 = vpop.f32.mrf.mxu0 }
 0x35a   : > { %v1932_v18 = vrot.slane %v1919_v13, 7  ;;  %v9408_v19 = vadd.f32 %v9407_v15, %v9406_v9  ;;  %v9446_v20 = vadd.f32 %v9445_v16, %v9444_v10  ;;  %v9962_v9 = vld [vmem:[%s10769_s3 + $0x164] ss:$8 sps:$4 sm:$0xff]   ;;  %v9960_v10 = vld [vmem:[%s10769_s3 + $0x160] ss:$8 sps:$4 sm:$0xff]  }
 0x35b   : > { %v9963_v13 = vld [vmem:[%s10769_s3 + $0x150] ss:$8 sps:$4 sm:$0xff]   ;;  %v9966_v15 = vld [vmem:[%s10769_s3 + $0x140] ss:$8 sps:$4 sm:$0xff]   ;;  %v9971_v16 = vld [vmem:[%s10769_s3 + $0x134] ss:$8 sps:$4 sm:$0xff]  }
 0x35c   : > { %v1920_v23 = vmax.f32 %v9408_v19, %v9446_v20  ;;  %1935 = vrot.lane.b32.xlu0 %v1932_v18, %s10722_s16  ;;  %v9972_v20 = vld [vmem:[%s10769_s3 + $0x120] ss:$8 sps:$4 sm:$0xff]  }
 0x35e   : > { %v1933_v24 = vrot.slane %v1920_v23, 7 }
 0x360   : > { %1939 = vrot.lane.b32.xlu0 %v1933_v24, %s10722_s16  ;;  %v1934_v27 = vsel %vm1931_vm7, %v1932_v18, %v1933_v24  ;;  %v9974_v18 = vld [vmem:[%s10769_s3 + $0x124] ss:$8 sps:$4 sm:$0xff]   ;;  %vm3433_vm7 = vcmask 517120  }
 0x361   : > { %1937 = vrot.lane.b32.xlu1 %v1934_v27, %s10722_s16  ;;  %s11948_s16 = sld [smem:[#allocation19_spill]] }
 0x3ce   : > { %v1936_v29 = vpop.permute.xlu0 %1935 }
 0x3cf   : > { %1945 = vst.msk [vmem:[#allocation3] sm:$0xfe] %vm1944_vm8, %v1936_v29  ;;  %vm3447_vm8 = vcmask 1047809  }
 0x3d0   : > { %1947 = vst.msk [vmem:[#allocation3 + $0x8] sm:$0xfe] %vm1946_vm9, %v1936_v29  ;;  %vm3452_vm9 = vcmask 1040640  }
 0x3d2   : > { %v1940_v30 = vpop.permute.xlu0 %1939 }
 0x3d3   : > { %1953 = vst.msk [vmem:[#allocation3 + $0x20] sm:$0x1] %vm1952_vm10, %v1940_v30  ;;  %v1938_v31 = vpop.permute.xlu1 %1937  ;;  %vm3450_vm10 = vcmask 261121  }
 0x3d4   : > { %1955 = vst.msk [vmem:[#allocation3 + $0x28] sm:$0x1] %vm1954_vm11, %v1940_v30  ;;  %v2789_v30 = vld [vmem:[%s10794_s30 + $0xf8] sm:$0xff]  ;;  %vm3455_vm11 = vcmask 253952  }
 0x3d5   : > { %1949 = vst.msk [vmem:[#allocation3 + $0x10] sm:$0xff] %vm1948_vm12, %v1938_v31  ;;  %vm4872_vm12 = vcmask 1044737  }
 0x3d6   : > { %1951 = vst.msk [vmem:[#allocation3 + $0x18] sm:$0xff] %vm1950_vm13, %v1938_v31  ;;  %v1956_v33 = vld [vmem:[#allocation3] sm:$0xff]  ;;  %v2773_v31 = vld [vmem:[%s10794_s30 + $0x78] sm:$0xff] }
 0x3d7   : > { %v1957_v32 = vld [vmem:[#allocation3 + $0x8] sm:$0xff]  ;;  %v1960_v41 = vld [vmem:[#allocation3] sm:$0xfe] }
 0x3d8   : > { %v1961_v34 = vld [vmem:[#allocation3 + $0x8] sm:$0xfe]  ;;  %v1964_v23 = vld [vmem:[#allocation3] sm:$0xfc] }
 0x3d9   : > { %v1965_v48 = vld [vmem:[#allocation3 + $0x8] sm:$0xfc] }
 0x3da   : > { %v1962_v36 = vld [vmem:[#allocation3 + $0x20] sm:$0x1] }
 0x3db   : > { %v1963_v35 = vld [vmem:[#allocation3 + $0x28] sm:$0x1]  ;;  %v1990_v42 = vpack.c.bf16 %v1962_v36, %v1962_v36  ;;  %v1966_v19 = vld [vmem:[#allocation3 + $0x20] sm:$0x3]  ;;  %v2786_v36 = vld [vmem:[%s10794_s30 + $0xe0] sm:$0xff] }
 0x3dc   : > { %v1967_v37 = vld [vmem:[#allocation3 + $0x28] sm:$0x3]  ;;  %v11124_v39 = vld [vmem:[#allocation3 + $0x10] sm:$0xff]  ;;  %v1991_v40 = vpack.c.bf16 %v1963_v35, %v1963_v35  ;;  %v2311_v25 = vpack.c.bf16 %v1966_v19, %v1966_v19  ;;  %v2771_v35 = vld [vmem:[%s10794_s30 + $0x68] sm:$0xff] }
 0x3dd   : > { %v1959_v38 = vld [vmem:[#allocation3 + $0x18] sm:$0xff]  ;;  %v1968_v44 = vpack.c.bf16 %v11124_v39, %v1956_v33  ;;  %v1988_v46 = vpack.c.bf16 %v11124_v39, %v1960_v41  ;;  %v2312_v49 = vpack.c.bf16 %v1967_v37, %v1967_v37  ;;  %v2020_v52 = vshll.u32 %v1990_v42, 16  ;;  %v2772_v33 = vld [vmem:[%s10794_s30 + $0x70] sm:$0xff]  ;;  %v2783_v42 = vld [vmem:[%s10794_s30 + $0xc8] sm:$0xff] }
 0x3de   : > { %v1969_v43 = vpack.c.bf16 %v1959_v38, %v1957_v32  ;;  %v1989_v45 = vpack.c.bf16 %v1959_v38, %v1961_v34  ;;  %v2032_v47 = vshll.u32 %v1991_v40, 16  ;;  %v2310_v53 = vpack.c.bf16 %v1959_v38, %v1965_v48  ;;  %v2788_v32 = vld [vmem:[%s10794_s30 + $0xf0] sm:$0xff]  ;;  %v2787_v34 = vld [vmem:[%s10794_s30 + $0xe8] sm:$0xff]  ;;  %v2770_v37 = vld [vmem:[%s10794_s30 + $0x60] sm:$0xff] }
 0x3df   : > { %v2015_v51 = vshll.u32 %v1988_v46, 16  ;;  %v2013_v57 = vshrl.u32 %v1988_v46, 16  ;;  %v2341_v61 = vrot.slane %v2312_v49, 1  ;;  %v2022_v0 = vrot.slane %v2020_v52, 1  ;;  %v2785_v38 = vld [vmem:[%s10794_s30 + $0xd8] sm:$0xff]  ;;  %v2784_v40 = vld [vmem:[%s10794_s30 + $0xd0] sm:$0xff] }
 0x3e0   : > { %8425 = vmatprep.mubr.msk.bf16.mxu0 %vm1922_vm5, %v1969_v43  ;;  %v2027_v50 = vshll.u32 %v1989_v45, 16  ;;  %v2025_v54 = vshrl.u32 %v1989_v45, 16  ;;  %v2034_v59 = vrot.slane %v2032_v47, 1  ;;  %v2340_v1 = vrot.slane %v2310_v53, 1  ;;  %v2768_v41 = vld [vmem:[%s10794_s30 + $0x50] sm:$0xff]  ;;  %v2767_v43 = vld [vmem:[%s10794_s30 + $0x48] sm:$0xff] }
 0x3e1   : > { %2299 = vmatmul.mubr.bf16.vlgmr.msra.gmra.mxu0 %v1968_v44  ;;  %v2017_v58 = vrot.slane %v2015_v51, 1  ;;  %v2309_v24 = vpack.c.bf16 %v11124_v39, %v1964_v23  ;;  %v2338_v28 = vrot.slane %v2311_v25, 1  ;;  %v2769_v39 = vld [vmem:[%s10794_s30 + $0x58] sm:$0xff]  ;;  %v2782_v44 = vld [vmem:[%s10794_s30 + $0xc0] sm:$0xff]  ;;  %v2780_v48 = vld [vmem:[%s10794_s30 + $0xb0] sm:$0xff] }
 0x3e2   : > { %v2029_v56 = vrot.slane %v2027_v50, 1  ;;  %2572 = vmatprep.mubr.f32.mxu0 %v10995_v12  ;;  %v2342_v12 = vsel %vm2336_vm15, %v2340_v1, %v2341_v61  ;;  %v2766_v45 = vld [vmem:[%s10794_s30 + $0x40] sm:$0xff]  ;;  %v2781_v46 = vld [vmem:[%s10794_s30 + $0xb8] sm:$0xff]  ;;  %v2764_v49 = vld [vmem:[%s10794_s30 + $0x30] sm:$0xff] }
 0x3e3   : > { %v2018_v63 = vor.u32 %v2017_v58, %v2013_v57  ;;  %v2337_v27 = vrot.slane %v2309_v24, 1  ;;  %v2765_v47 = vld [vmem:[%s10794_s30 + $0x38] sm:$0xff]  ;;  %v2779_v50 = vld [vmem:[%s10794_s30 + $0xa8] sm:$0xff]  ;;  %v2484_v1 = vld [vmem:[%s10774_s8] sm:$0x3] }
 0x3e4   : > { %v2030_v62 = vor.u32 %v2029_v56, %v2025_v54  ;;  %v2763_v51 = vld [vmem:[%s10794_s30 + $0x28] sm:$0xff]  ;;  %v11179_v23 = vld [vmem:[#allocation4] sm:$0xff]  ;;  %v2579_v24 = vld [vmem:[%s10784_s19] sm:$0xff] }
 0x3e5   : > { %v2023_v4 = vsel %vm2011_vm14, %v2018_v63, %v2022_v0  ;;  %v2339_v29 = vsel %vm2336_vm15, %v2337_v27, %v2338_v28  ;;  %v2687_v25 = vld [vmem:[%s10789_s24 + $0xf8] sm:$0xff]  ;;  %v2686_v27 = vld [vmem:[%s10789_s24 + $0xf0] sm:$0xff]  ;;  %2865 = vst.msk [vmem:[#allocation4 + $0x18] sm:$0x3] %vm2864_vm0, %v11179_v23  ;;  %vm5510_vm15 = vcmask 520193   ;;  %vm6698_vm0 = vcmask 1043456  }
 0x3e6   : > { %v2035_v3 = vsel %vm2011_vm14, %v2030_v62, %v2034_v59  ;;  %v2670_v28 = vld [vmem:[%s10789_s24 + $0x70] sm:$0xff]  ;;  %3430 = vst.msk [vmem:[#allocation5 + $0x10] sm:$0xff] %vm3429_vm6, %v11179_v23  ;;  %vm5507_vm14 = vcmask 1044993  }
 0x3e7   : > { %8406 = vmatprep.mubr.msk.bf16.mxu1 %vm1922_vm5, %v2035_v3  ;;  %3434 = vst.msk [vmem:[#allocation5 + $0x28] sm:$0x3] %vm3433_vm7, %v11179_v23 }
 0x3e8   : > { %2163 = vmatmul.mubr.bf16.vlgmr.msra.gmra.mxu1 %v2023_v4 }
 0x3e9   : > { %2438 = vmatpush1.bf16.msra.mxu1 %v9951_v2  ;;  %8462 = vmatprep.mubr.msk.bf16.mxu1 %vm1922_vm5, %v2342_v12 }
 0x3ea   : > { %2439 = vmatprep.subr.bf16.mxu1 %v9956_v5 }
 0x3ed   : > { %2440 = vmatpush1.bf16.msra.mxu1 %v9954_v6  ;;  %v2493_v6 = vrot.slane %v2484_v1, %v11020_v60 }
 0x3ee   : > { %2441 = vmatprep.subr.bf16.mxu1 %v9959_v7 }
 0x3f1   : > { %2442 = vmatpush1.bf16.msra.mxu1 %v9957_v8 }
 0x3f2   : > { %2443 = vmatprep.subr.bf16.mxu1 %v9962_v9  ;;  %v2489_v9 = vrot.slane %v2484_v1, %v11017_v55  ;;  %v2672_v1 = vld [vmem:[%s10789_s24 + $0x80] sm:$0xff] }
 0x3f5   : > { %2444 = vmatpush1.bf16.msra.mxu1 %v9960_v10 }
 0x3f6   : > { %2445 = vmatprep.subr.bf16.mxu1 %v9965_v11 }
 0x3f9   : > { %2446 = vmatpush1.bf16.msra.mxu1 %v9963_v13 }
 0x3fa   : > { %2447 = vmatprep.subr.bf16.mxu1 %v9968_v14 }
 0x3fd   : > { %2448 = vmatpush1.bf16.msra.mxu1 %v9966_v15 }
 0x3fe   : > { %2449 = vmatprep.subr.bf16.mxu1 %v9971_v16 }
 0x401   : > { %2450 = vmatpush1.bf16.msra.mxu1 %v9969_v17 }
 0x402   : > { %2451 = vmatprep.subr.bf16.mxu1 %v9974_v18 }
 0x405   : > { %2452 = vmatpush1.bf16.msra.mxu1 %v9972_v20 }
 0x406   : > { %2467 = vmatprep.subr.bf16.mxu1 %v9977_v22  ;;  %v2504_v22 = vld [vmem:[%s10779_s14] sm:$0xff] }
 0x409   : > { %2468 = vmatpush2.bf16.msra.mxu1 %v9975_v26  ;;  %v2671_v26 = vld [vmem:[%s10789_s24 + $0x78] sm:$0xff] }
 0x40a   : > { %9482 = vmatprep.subr.mxu1 %v2789_v30  ;;  %v2669_v30 = vld [vmem:[%s10789_s24 + $0x68] sm:$0xff] }
 0x40c   : > { %2470 = vmatmul.mubr.bf16.vlgmr.msra.gmra.mxu1 %v2339_v29  ;;  %v2685_v29 = vld [vmem:[%s10789_s24 + $0xe8] sm:$0xff] }
 0x40d   : > { %9483 = vmatpush3.msra.mxu1 %v2773_v31  ;;  %v2684_v31 = vld [vmem:[%s10789_s24 + $0xe0] sm:$0xff] }
 0x40e   : > { %9484 = vmatprep.subr.mxu1 %v2788_v32  ;;  %v2668_v32 = vld [vmem:[%s10789_s24 + $0x60] sm:$0xff] }
 0x40f   : > { %9485 = vmatpush3.msra.mxu1 %v2772_v33  ;;  %v2683_v33 = vld [vmem:[%s10789_s24 + $0xd8] sm:$0xff] }
 0x410   : > { %9486 = vmatprep.subr.mxu1 %v2787_v34  ;;  %v2667_v34 = vld [vmem:[%s10789_s24 + $0x58] sm:$0xff] }
 0x411   : > { %9487 = vmatpush3.msra.mxu1 %v2771_v35  ;;  %v2682_v35 = vld [vmem:[%s10789_s24 + $0xd0] sm:$0xff] }
 0x412   : > { %9488 = vmatprep.subr.mxu1 %v2786_v36  ;;  %v2666_v36 = vld [vmem:[%s10789_s24 + $0x50] sm:$0xff] }
 0x413   : > { %9489 = vmatpush3.msra.mxu1 %v2770_v37  ;;  %v2681_v37 = vld [vmem:[%s10789_s24 + $0xc8] sm:$0xff] }
 0x414   : > { %9490 = vmatprep.subr.mxu1 %v2785_v38  ;;  %v2665_v38 = vld [vmem:[%s10789_s24 + $0x48] sm:$0xff] }
 0x415   : > { %9491 = vmatpush3.msra.mxu1 %v2769_v39  ;;  %v2680_v39 = vld [vmem:[%s10789_s24 + $0xc0] sm:$0xff] }
 0x416   : > { %9492 = vmatprep.subr.mxu1 %v2784_v40  ;;  %v2664_v40 = vld [vmem:[%s10789_s24 + $0x40] sm:$0xff] }
 0x417   : > { %9493 = vmatpush3.msra.mxu1 %v2768_v41  ;;  %v2679_v41 = vld [vmem:[%s10789_s24 + $0xb8] sm:$0xff] }
 0x418   : > { %9494 = vmatprep.subr.mxu1 %v2783_v42  ;;  %v2663_v42 = vld [vmem:[%s10789_s24 + $0x38] sm:$0xff] }
 0x419   : > { %9495 = vmatpush3.msra.mxu1 %v2767_v43  ;;  %v2678_v43 = vld [vmem:[%s10789_s24 + $0xb0] sm:$0xff] }
 0x41a   : > { %9496 = vmatprep.subr.mxu1 %v2782_v44  ;;  %v2662_v44 = vld [vmem:[%s10789_s24 + $0x30] sm:$0xff] }
 0x41b   : > { %9497 = vmatpush3.msra.mxu1 %v2766_v45  ;;  %v2677_v45 = vld [vmem:[%s10789_s24 + $0xa8] sm:$0xff] }
 0x41c   : > { %9498 = vmatprep.subr.mxu1 %v2781_v46  ;;  %v2661_v46 = vld [vmem:[%s10789_s24 + $0x28] sm:$0xff] }
 0x41d   : > { %9499 = vmatpush3.msra.mxu1 %v2765_v47  ;;  %v2676_v47 = vld [vmem:[%s10789_s24 + $0xa0] sm:$0xff] }
 0x41e   : > { %9500 = vmatprep.subr.mxu1 %v2780_v48  ;;  %v2778_v48 = vld [vmem:[%s10794_s30 + $0xa0] sm:$0xff] }
 0x41f   : > { %9501 = vmatpush3.msra.mxu1 %v2764_v49  ;;  %v2660_v49 = vld [vmem:[%s10789_s24 + $0x20] sm:$0xff] }
 0x420   : > { %9502 = vmatprep.subr.mxu1 %v2779_v50  ;;  %v2762_v50 = vld [vmem:[%s10794_s30 + $0x20] sm:$0xff] }
 0x421   : > { %9503 = vmatpush3.msra.mxu1 %v2763_v51  ;;  %v2675_v51 = vld [vmem:[%s10789_s24 + $0x98] sm:$0xff] }
 0x422   : > { %9504 = vmatprep.subr.mxu1 %v2778_v48 }
 0x423   : > { %9505 = vmatpush3.msra.mxu1 %v2762_v50  ;;  %v10029_v50 = vld [vmem:[%s10799_s6 + $0x80] ss:$8 sps:$4 sm:$0xff]  }
 0x4a1   : > { %v2300_v54 = vpop.f32.mrf.mxu0 }
 0x4a3   : > { %v2302_v57 = vpop.f32.mrf.mxu0 }
 0x4a5   : > { %v2304_v59 = vpop.f32.mrf.mxu0 }
 0x4a7   : > { %v2306_v2 = vpop.f32.mrf.mxu0 }
 0x4a8   : > { %v2164_v52 = vpop.f32.mrf.mxu1 }
 0x4a9   : > { %v2301_v3 = vadd.f32 %v2300_v54, %v2164_v52  ;;  %v2777_v52 = vld [vmem:[%s10794_s30 + $0x98] sm:$0xff] }
 0x4aa   : > { %v2166_v53 = vpop.f32.mrf.mxu1  ;;  %9506 = vmatprep.subr.mxu1 %v2777_v52  ;;  %v2761_v54 = vld [vmem:[%s10794_s30 + $0x18] sm:$0xff] }
 0x4ab   : > { %v2303_v63 = vadd.f32 %v2302_v57, %v2166_v53  ;;  %v2659_v53 = vld [vmem:[%s10789_s24 + $0x18] sm:$0xff]  ;;  %9507 = vmatpush3.msra.mxu1 %v2761_v54  ;;  %v2776_v57 = vld [vmem:[%s10794_s30 + $0x90] sm:$0xff] }
 0x4ac   : > { %v2168_v56 = vpop.f32.mrf.mxu1  ;;  %9508 = vmatprep.subr.mxu1 %v2776_v57  ;;  %v10032_v57 = vld [vmem:[%s10799_s6 + $0x130] ss:$8 sps:$4 sm:$0xff]  }
 0x4ad   : > { %v2305_v0 = vadd.f32 %v2304_v59, %v2168_v56  ;;  %v2674_v56 = vld [vmem:[%s10789_s24 + $0x90] sm:$0xff] }
 0x4ae   : > { %v2170_v58 = vpop.f32.mrf.mxu1  ;;  %v2760_v59 = vld [vmem:[%s10794_s30 + $0x10] sm:$0xff] }
 0x4af   : > { %v2307_v5 = vadd.f32 %v2306_v2, %v2170_v58  ;;  %v2658_v58 = vld [vmem:[%s10789_s24 + $0x10] sm:$0xff]  ;;  %9509 = vmatpush3.msra.mxu1 %v2760_v59  ;;  %v2774_v2 = vld [vmem:[%s10794_s30 + $0x80] sm:$0xff] }
 0x4cc   : > { %v2471_v61 = vpop.f32.mrf.mxu1 }
 0x4cd   : > { %v2480_v8 = vadd.f32 %v2471_v61, %v2301_v3  ;;  %v2673_v61 = vld [vmem:[%s10789_s24 + $0x88] sm:$0xff]  ;;  %v2656_v3 = vld [vmem:[%s10789_s24] sm:$0xff] }
 0x4ce   : > { %v2473_v62 = vpop.f32.mrf.mxu1 }
 0x4cf   : > { %v2481_v12 = vadd.f32 %v2473_v62, %v2303_v63  ;;  %v2496_v16 = vadd.f32 %v2489_v9, %v2480_v8  ;;  %v2775_v62 = vld [vmem:[%s10794_s30 + $0x88] sm:$0xff] }
 0x4d0   : > { %v2475_v4 = vpop.f32.mrf.mxu1  ;;  %v2657_v63 = vld [vmem:[%s10789_s24 + $0x8] sm:$0xff]  ;;  %9510 = vmatprep.subr.mxu1 %v2775_v62 }
 0x4d1   : > { %v2482_v7 = vadd.f32 %v2475_v4, %v2305_v0  ;;  %v2497_v14 = vadd.f32 %v2493_v6, %v2481_v12  ;;  %v2500_v20 = vmax.f32 %v2496_v16, 0.0  ;;  %v2759_v0 = vld [vmem:[%s10794_s30 + $0x8] sm:$0xff]  ;;  %v2758_v4 = vld [vmem:[%s10794_s30] sm:$0xff] }
 0x4d2   : > { %v2477_v10 = vpop.f32.mrf.mxu1  ;;  %9511 = vmatpush3.msra.mxu1 %v2759_v0  ;;  %v9981_v16 = vld [vmem:[%s10799_s6 + $0x60] ss:$8 sps:$4 sm:$0xff]   ;;  %v10037_v62 = vld [vmem:[%s10799_s6 + $0x124] ss:$8 sps:$4 sm:$0xff]  }
 0x4d3   : > { %v2483_v11 = vadd.f32 %v2477_v10, %v2307_v5  ;;  %v2498_v13 = vadd.f32 %v2489_v9, %v2482_v7  ;;  %v2501_v19 = vmax.f32 %v2497_v14, 0.0  ;;  %9512 = vmatprep.subr.mxu1 %v2774_v2  ;;  %v9978_v10 = vld [vmem:[%s10799_s6 + $0x70] ss:$8 sps:$4 sm:$0xff]  }
 0x4d4   : > { %9513 = vmatpush3.msra.mxu1 %v2758_v4  ;;  %v9984_v14 = vld [vmem:[%s10799_s6 + $0x110] ss:$8 sps:$4 sm:$0xff]  }
 0x4d5   : > { %v2499_v15 = vadd.f32 %v2493_v6, %v2483_v11  ;;  %v2502_v18 = vmax.f32 %v2498_v13, 0.0  ;;  %v9980_v11 = vld [vmem:[%s10799_s6 + $0x74] ss:$8 sps:$4 sm:$0xff]   ;;  %v9983_v13 = vld [vmem:[%s10799_s6 + $0x64] ss:$8 sps:$4 sm:$0xff]  }
 0x4d6   : > { %3196 = vmatprep.subr.bf16.mxu1 %v9980_v11 }
 0x4d7   : > { %v2503_v17 = vmax.f32 %v2499_v15, 0.0  ;;  %v9986_v15 = vld [vmem:[%s10799_s6 + $0x114] ss:$8 sps:$4 sm:$0xff]  }
 0x4d9   : > { %2536 = vmatprep.subr.mxu0 %v2503_v17 }
 0x4da   : > { %2537 = vmatpush1.msra.mxu0 %v2502_v18 }
 0x4db   : > { %2538 = vmatprep.subr.mxu0 %v2501_v19 }
 0x4dc   : > { %2539 = vmatpush1.msra.mxu0 %v2500_v20 }
 0x4dd   : > { %8463 = vmatmul.mubr.msk.f32.vlgmr.msra.gmra.mxu0 %vm1922_vm5, %v2504_v22  ;;  %2611 = vmatprep.subr.mxu0 %v2503_v17  ;;  %v9992_v17 = vld [vmem:[%s10799_s6 + $0x104] ss:$8 sps:$4 sm:$0xff]   ;;  %v9987_v22 = vld [vmem:[%s10799_s6 + $0x50] ss:$8 sps:$4 sm:$0xff]  }
 0x4de   : > { %2612 = vmatpush1.msra.mxu0 %v2502_v18  ;;  %2647 = vmatprep.mubr.f32.mxu0 %v11179_v23  ;;  %v9989_v18 = vld [vmem:[%s10799_s6 + $0x54] ss:$8 sps:$4 sm:$0xff]  }
 0x4df   : > { %2613 = vmatprep.subr.mxu0 %v2501_v19  ;;  %v9990_v19 = vld [vmem:[%s10799_s6 + $0x100] ss:$8 sps:$4 sm:$0xff]   ;;  %v10118_v23 = vld [vmem:[%s11940_s22 + $0x254] ss:$8 sps:$4 sm:$0xff]  }
 0x4e0   : > { %2614 = vmatpush1.msra.mxu0 %v2500_v20  ;;  %v9998_v20 = vld [vmem:[%s10799_s6 + $0xf4] ss:$8 sps:$4 sm:$0xff]  }
 0x4e1   : > { %8464 = vmatmul.mubr.msk.f32.vlgmr.msra.gmra.mxu0 %vm1922_vm5, %v2579_v24  ;;  %9447 = vmatprep.subr.mxu0 %v2687_v25  ;;  %v9995_v24 = vld [vmem:[%s10799_s6 + $0x44] ss:$8 sps:$4 sm:$0xff]   ;;  %v9996_v25 = vld [vmem:[%s10799_s6 + $0xf0] ss:$8 sps:$4 sm:$0xff]   ;;  %vm2877_vm5 = vcmask 122880  }
 0x4e2   : > { %9448 = vmatpush3.msra.mxu0 %v2671_v26  ;;  %v10004_v26 = vld [vmem:[%s10799_s6 + $0xe4] ss:$8 sps:$4 sm:$0xff]  }
 0x4e3   : > { %9449 = vmatprep.subr.mxu0 %v2686_v27  ;;  %v9993_v27 = vld [vmem:[%s10799_s6 + $0x40] ss:$8 sps:$4 sm:$0xff]  }
 0x4e4   : > { %9450 = vmatpush3.msra.mxu0 %v2670_v28  ;;  %v10001_v28 = vld [vmem:[%s10799_s6 + $0x34] ss:$8 sps:$4 sm:$0xff]  }
 0x4e5   : > { %9451 = vmatprep.subr.mxu0 %v2685_v29  ;;  %v10002_v29 = vld [vmem:[%s10799_s6 + $0xe0] ss:$8 sps:$4 sm:$0xff]  }
 0x4e6   : > { %9452 = vmatpush3.msra.mxu0 %v2669_v30  ;;  %v10010_v30 = vld [vmem:[%s10799_s6 + $0xd4] ss:$8 sps:$4 sm:$0xff]  }
 0x4e7   : > { %9453 = vmatprep.subr.mxu0 %v2684_v31  ;;  %v9999_v31 = vld [vmem:[%s10799_s6 + $0x30] ss:$8 sps:$4 sm:$0xff]  }
 0x4e8   : > { %9454 = vmatpush3.msra.mxu0 %v2668_v32  ;;  %v10007_v32 = vld [vmem:[%s10799_s6 + $0x24] ss:$8 sps:$4 sm:$0xff]  }
 0x4e9   : > { %9455 = vmatprep.subr.mxu0 %v2683_v33  ;;  %v10008_v33 = vld [vmem:[%s10799_s6 + $0xd0] ss:$8 sps:$4 sm:$0xff]  }
 0x4ea   : > { %9456 = vmatpush3.msra.mxu0 %v2667_v34  ;;  %v10016_v34 = vld [vmem:[%s10799_s6 + $0xc4] ss:$8 sps:$4 sm:$0xff]  }
 0x4eb   : > { %9457 = vmatprep.subr.mxu0 %v2682_v35  ;;  %v10005_v35 = vld [vmem:[%s10799_s6 + $0x20] ss:$8 sps:$4 sm:$0xff]  }
 0x4ec   : > { %9458 = vmatpush3.msra.mxu0 %v2666_v36  ;;  %v10013_v36 = vld [vmem:[%s10799_s6 + $0x14] ss:$8 sps:$4 sm:$0xff]  }
 0x4ed   : > { %9459 = vmatprep.subr.mxu0 %v2681_v37  ;;  %v10014_v37 = vld [vmem:[%s10799_s6 + $0xc0] ss:$8 sps:$4 sm:$0xff]  }
 0x4ee   : > { %9460 = vmatpush3.msra.mxu0 %v2665_v38  ;;  %v10011_v38 = vld [vmem:[%s10799_s6 + $0x10] ss:$8 sps:$4 sm:$0xff]  }
 0x4ef   : > { %9461 = vmatprep.subr.mxu0 %v2680_v39  ;;  %v10019_v39 = vld [vmem:[%s10799_s6 + $0x4] ss:$8 sps:$4 sm:$0xff]  }
 0x4f0   : > { %9462 = vmatpush3.msra.mxu0 %v2664_v40  ;;  %v10017_v40 = vld [vmem:[%s10799_s6] ss:$8 sps:$4 sm:$0xff]  }
 0x4f1   : > { %9463 = vmatprep.subr.mxu0 %v2679_v41  ;;  %v10020_v41 = vld [vmem:[%s10799_s6 + $0xb0] ss:$8 sps:$4 sm:$0xff]  }
 0x4f2   : > { %9464 = vmatpush3.msra.mxu0 %v2663_v42  ;;  %v10022_v42 = vld [vmem:[%s10799_s6 + $0xb4] ss:$8 sps:$4 sm:$0xff]  }
 0x4f3   : > { %9465 = vmatprep.subr.mxu0 %v2678_v43  ;;  %v10023_v43 = vld [vmem:[%s10799_s6 + $0x90] ss:$8 sps:$4 sm:$0xff]  }
 0x4f4   : > { %9466 = vmatpush3.msra.mxu0 %v2662_v44  ;;  %v10025_v44 = vld [vmem:[%s10799_s6 + $0x94] ss:$8 sps:$4 sm:$0xff]  }
 0x4f5   : > { %9467 = vmatprep.subr.mxu0 %v2677_v45  ;;  %v10028_v45 = vld [vmem:[%s10799_s6 + $0xa4] ss:$8 sps:$4 sm:$0xff]  }
 0x4f6   : > { %9468 = vmatpush3.msra.mxu0 %v2661_v46  ;;  %v10031_v46 = vld [vmem:[%s10799_s6 + $0x84] ss:$8 sps:$4 sm:$0xff]  }
 0x4f7   : > { %9469 = vmatprep.subr.mxu0 %v2676_v47  ;;  %v10026_v47 = vld [vmem:[%s10799_s6 + $0xa0] ss:$8 sps:$4 sm:$0xff]  }
 0x4f8   : > { %9470 = vmatpush3.msra.mxu0 %v2660_v49 }
 0x4f9   : > { %9471 = vmatprep.subr.mxu0 %v2675_v51  ;;  %v10034_v51 = vld [vmem:[%s10799_s6 + $0x134] ss:$8 sps:$4 sm:$0xff]  }
 0x4fa   : > { %9472 = vmatpush3.msra.mxu0 %v2659_v53 }
 0x4fb   : > { %9473 = vmatprep.subr.mxu0 %v2674_v56 }
 0x4fc   : > { %9474 = vmatpush3.msra.mxu0 %v2658_v58 }
 0x4fd   : > { %9475 = vmatprep.subr.mxu0 %v2673_v61  ;;  %v10035_v61 = vld [vmem:[%s10799_s6 + $0x120] ss:$8 sps:$4 sm:$0xff]  }
 0x4fe   : > { %9476 = vmatpush3.msra.mxu0 %v2657_v63  ;;  %v10040_v63 = vld [vmem:[%s10799_s6 + $0x1b4] ss:$8 sps:$4 sm:$0xff]  }
 0x4ff   : > { %9477 = vmatprep.subr.mxu0 %v2672_v1 }
 0x500   : > { %9478 = vmatpush3.msra.mxu0 %v2656_v3 }
 0x501   : > { %3052 = vmatprep.subr.bf16.mxu0 %v9986_v15 }
 0x59d   : > { %v2574_v5 = vpop.f32.mrf.mxu0 }
 0x59f   : > { %v2576_v12 = vpop.f32.mrf.mxu0 }
 0x5a1   : > { %v2649_v6 = vpop.f32.mrf.mxu0 }
 0x5a2   : > { %v2654_v9 = vmax.f32 %v2574_v5, %v2649_v6 }
 0x5a3   : > { %v2651_v7 = vpop.f32.mrf.mxu0 }
 0x5a4   : > { %v2655_v8 = vmax.f32 %v2576_v12, %v2651_v7 }
 0x5a6   : > { %2752 = vmatprep.mubr.f32.mxu0 %v2655_v8  ;;  %2854 = vmatprep.mubr.f32.mxu1 %v2655_v8 }
 0x5a7   : > { %2753 = vmatmul.mubr.f32.vlgmr.msra.gmra.mxu0 %v2654_v9  ;;  %2855 = vmatmul.mubr.f32.vlgmr.msra.gmra.mxu1 %v2654_v9 }
 0x5a8   : > { %3197 = vmatpush1.bf16.msra.mxu1 %v9978_v10  ;;  %3053 = vmatpush1.bf16.msra.mxu0 %v9984_v14 }
 0x5a9   : > { %3198 = vmatprep.subr.bf16.mxu1 %v9983_v13  ;;  %3054 = vmatprep.subr.bf16.mxu0 %v9992_v17 }
 0x5ac   : > { %3199 = vmatpush1.bf16.msra.mxu1 %v9981_v16  ;;  %3055 = vmatpush1.bf16.msra.mxu0 %v9990_v19 }
 0x5ad   : > { %3200 = vmatprep.subr.bf16.mxu1 %v9989_v18  ;;  %3056 = vmatprep.subr.bf16.mxu0 %v9998_v20 }
 0x5b0   : > { %3201 = vmatpush1.bf16.msra.mxu1 %v9987_v22  ;;  %3057 = vmatpush1.bf16.msra.mxu0 %v9996_v25  ;;  %v10038_v22 = vld [vmem:[%s10799_s6 + $0x1b0] ss:$8 sps:$4 sm:$0xff]   ;;  %v10043_v25 = vld [vmem:[%s10799_s6 + $0x1a4] ss:$8 sps:$4 sm:$0xff]  }
 0x5b1   : > { %3202 = vmatprep.subr.bf16.mxu1 %v9995_v24  ;;  %3058 = vmatprep.subr.bf16.mxu0 %v10004_v26 }
 0x5b4   : > { %3203 = vmatpush1.bf16.msra.mxu1 %v9993_v27  ;;  %3059 = vmatpush1.bf16.msra.mxu0 %v10002_v29  ;;  %v10041_v27 = vld [vmem:[%s10799_s6 + $0x1a0] ss:$8 sps:$4 sm:$0xff]   ;;  %v10044_v29 = vld [vmem:[%s10799_s6 + $0x190] ss:$8 sps:$4 sm:$0xff]  }
 0x5b5   : > { %3204 = vmatprep.subr.bf16.mxu1 %v10001_v28  ;;  %3060 = vmatprep.subr.bf16.mxu0 %v10010_v30  ;;  %v10046_v28 = vld [vmem:[%s10799_s6 + $0x194] ss:$8 sps:$4 sm:$0xff]   ;;  %v10049_v30 = vld [vmem:[%s10799_s6 + $0x184] ss:$8 sps:$4 sm:$0xff]  }
 0x5b8   : > { %3205 = vmatpush1.bf16.msra.mxu1 %v9999_v31  ;;  %3061 = vmatpush1.bf16.msra.mxu0 %v10008_v33  ;;  %v10047_v31 = vld [vmem:[%s10799_s6 + $0x180] ss:$8 sps:$4 sm:$0xff]   ;;  %v10050_v33 = vld [vmem:[%s10799_s6 + $0x170] ss:$8 sps:$4 sm:$0xff]  }
 0x5b9   : > { %3206 = vmatprep.subr.bf16.mxu1 %v10007_v32  ;;  %3062 = vmatprep.subr.bf16.mxu0 %v10016_v34  ;;  %v10052_v32 = vld [vmem:[%s10799_s6 + $0x174] ss:$8 sps:$4 sm:$0xff]   ;;  %v10055_v34 = vld [vmem:[%s10799_s6 + $0x164] ss:$8 sps:$4 sm:$0xff]  }
 0x5bc   : > { %3207 = vmatpush1.bf16.msra.mxu1 %v10005_v35  ;;  %3063 = vmatpush1.bf16.msra.mxu0 %v10014_v37  ;;  %v10053_v35 = vld [vmem:[%s10799_s6 + $0x160] ss:$8 sps:$4 sm:$0xff]   ;;  %v10056_v37 = vld [vmem:[%s10799_s6 + $0x150] ss:$8 sps:$4 sm:$0xff]  }
 0x5bd   : > { %3208 = vmatprep.subr.bf16.mxu1 %v10013_v36  ;;  %3064 = vmatprep.subr.bf16.mxu0 %v10022_v42  ;;  %v10058_v36 = vld [vmem:[%s10799_s6 + $0x154] ss:$8 sps:$4 sm:$0xff]   ;;  %v10067_v42 = vld [vmem:[%s10799_s6 + $0x1c4] ss:$8 sps:$4 sm:$0xff]  }
 0x5c0   : > { %3209 = vmatpush1.bf16.msra.mxu1 %v10011_v38  ;;  %3065 = vmatpush1.bf16.msra.mxu0 %v10020_v41  ;;  %v10061_v38 = vld [vmem:[%s10799_s6 + $0x144] ss:$8 sps:$4 sm:$0xff]   ;;  %v10062_v41 = vld [vmem:[%s10799_s6 + $0x1d0] ss:$8 sps:$4 sm:$0xff]  }
 0x5c1   : > { %3210 = vmatprep.subr.bf16.mxu1 %v10019_v39  ;;  %3066 = vmatprep.subr.bf16.mxu0 %v10028_v45  ;;  %v10059_v39 = vld [vmem:[%s10799_s6 + $0x140] ss:$8 sps:$4 sm:$0xff]  }
 0x5c2   : > { %v10065_v45 = vld [vmem:[%s10799_s6 + $0x1c0] ss:$8 sps:$4 sm:$0xff]  }
 0x5c4   : > { %3211 = vmatpush1.bf16.msra.mxu1 %v10017_v40  ;;  %3067 = vmatpush1.bf16.msra.mxu0 %v10026_v47  ;;  %v10064_v40 = vld [vmem:[%s10799_s6 + $0x1d4] ss:$8 sps:$4 sm:$0xff]  }
 0x5c5   : > { %3224 = vmatprep.subr.bf16.mxu1 %v10025_v44  ;;  %3080 = vmatprep.subr.bf16.mxu0 %v10034_v51  ;;  %v10071_v51 = vld [vmem:[%s11940_s22 + $0x1a0] ss:$8 sps:$4 sm:$0xff]  }
 0x5c8   : > { %3225 = vmatpush2.bf16.msra.mxu1 %v10023_v43  ;;  %3081 = vmatpush2.bf16.msra.mxu0 %v10032_v57  ;;  %v10082_v57 = vld [vmem:[%s11940_s22 + $0x174] ss:$8 sps:$4 sm:$0xff]  }
 0x5c9   : > { %3226 = vmatprep.subr.bf16.mxu1 %v10031_v46  ;;  %3082 = vmatprep.subr.bf16.mxu0 %v10037_v62  ;;  %v10088_v62 = vld [vmem:[%s11940_s22 + $0x154] ss:$8 sps:$4 sm:$0xff]  }
 0x5cc   : > { %3227 = vmatpush2.bf16.msra.mxu1 %v10029_v50  ;;  %3083 = vmatpush2.bf16.msra.mxu0 %v10035_v61  ;;  %v10073_v50 = vld [vmem:[%s11940_s22 + $0x1a4] ss:$8 sps:$4 sm:$0xff]   ;;  %v10083_v61 = vld [vmem:[%s11940_s22 + $0x160] ss:$8 sps:$4 sm:$0xff]  }
 0x5cd   : > { %3368 = vmatprep.subr.bf16.mxu0 %v10040_v63  ;;  %v10086_v63 = vld [vmem:[%s11940_s22 + $0x150] ss:$8 sps:$4 sm:$0xff]  }
 0x667   : > { %v9479_v48 = vpop.f32.mrf.mxu0  ;;  %v9514_v49 = vpop.f32.mrf.mxu1 }
 0x669   : > { %v9480_v52 = vpop.f32.mrf.mxu0  ;;  %v9515_v53 = vpop.f32.mrf.mxu1 }
 0x66a   : > { %v9481_v54 = vadd.f32 %v9480_v52, %v9479_v48  ;;  %v9516_v56 = vadd.f32 %v9515_v53, %v9514_v49  ;;  %v10068_v48 = vld [vmem:[%s11940_s22 + $0x1b0] ss:$8 sps:$4 sm:$0xff]   ;;  %v10070_v49 = vld [vmem:[%s11940_s22 + $0x1b4] ss:$8 sps:$4 sm:$0xff]  }
 0x66b   : > { %3785 = vmatprep.subr.bf16.mxu1 %v10070_v49  ;;  %v10076_v52 = vld [vmem:[%s11940_s22 + $0x194] ss:$8 sps:$4 sm:$0xff]   ;;  %v10074_v53 = vld [vmem:[%s11940_s22 + $0x190] ss:$8 sps:$4 sm:$0xff]   ;;  %v10127_v49 = vld [vmem:[%s11940_s22 + $0x1c4] ss:$8 sps:$4 sm:$0xff]  }
 0x66c   : > { %v2860_v58 = vmax.f32 %v9481_v54, %v9516_v56  ;;  %v10079_v54 = vld [vmem:[%s11940_s22 + $0x184] ss:$8 sps:$4 sm:$0xff]   ;;  %v10077_v56 = vld [vmem:[%s11940_s22 + $0x180] ss:$8 sps:$4 sm:$0xff]  }
 0x66e   : > { %v2867_v59 = vrot.slane %v2860_v58, 7  ;;  %v10080_v58 = vld [vmem:[%s11940_s22 + $0x170] ss:$8 sps:$4 sm:$0xff]  }
 0x670   : > { %2868 = vrot.lane.b32.xlu1 %v2867_v59, %s10723_s18  ;;  %v10085_v59 = vld [vmem:[%s11940_s22 + $0x164] ss:$8 sps:$4 sm:$0xff]   ;;  %s11949_s18 = sld [smem:[#allocation18_spill]] }
 0x6e2   : > { %v2869_v0 = vpop.permute.xlu1 %2868 }
 0x6e3   : > { %2872 = vst.msk [vmem:[#allocation4] sm:$0xfe] %vm2871_vm1, %v2869_v0  ;;  %vm6694_vm1 = vcmask 31744  }
 0x6e4   : > { %2874 = vst.msk [vmem:[#allocation4 + $0x8] sm:$0xfe] %vm2873_vm2, %v2869_v0  ;;  %vm7066_vm2 = vcmask 1042945  }
 0x6e5   : > { %2876 = vst.msk [vmem:[#allocation4 + $0x10] sm:$0x1] %vm2875_vm3, %v2869_v0  ;;  %vm7067_vm3 = vcmask 522245  }
 0x6e6   : > { %2878 = vst.msk [vmem:[#allocation4 + $0x18] sm:$0x1] %vm2877_vm5, %v2869_v0  ;;  %v10091_v0 = vld [vmem:[%s11940_s22 + $0x144] ss:$8 sps:$4 sm:$0xff]   ;;  %vm11833_vm5 = vmor %vm7067_vm3, %vm7066_vm2 }
 0x6ea   : > { %v2879_v2 = vld [vmem:[#allocation4] sm:$0xff] }
 0x6eb   : > { %v2880_v1 = vld [vmem:[#allocation4 + $0x8] sm:$0xff]  ;;  %v2889_v5 = vpack.c.bf16 %v2879_v2, %v2879_v2  ;;  %v2881_v6 = vld [vmem:[#allocation4] sm:$0xfe] }
 0x6ec   : > { %v2882_v3 = vld [vmem:[#allocation4 + $0x8] sm:$0xfe]  ;;  %v2890_v4 = vpack.c.bf16 %v2880_v1, %v2880_v1  ;;  %v2883_v7 = vld [vmem:[#allocation4 + $0x10] sm:$0x1]  ;;  %v2885_v43 = vld [vmem:[#allocation4] sm:$0xfc] }
 0x6ed   : > { %v2884_v12 = vld [vmem:[#allocation4 + $0x18] sm:$0x1]  ;;  %v2911_v9 = vpack.c.bf16 %v2883_v7, %v2881_v6  ;;  %v2886_v10 = vld [vmem:[#allocation4 + $0x8] sm:$0xfc]  ;;  %v2887_v44 = vld [vmem:[#allocation4 + $0x10] sm:$0x3] }
 0x6ee   : > { %v2912_v8 = vpack.c.bf16 %v2884_v12, %v2882_v3  ;;  %v2888_v11 = vld [vmem:[#allocation4 + $0x18] sm:$0x3]  ;;  %8526 = vmatprep.mubr.msk.bf16.mxu1 %vm1532_vm4, %v2890_v4  ;;  %v3237_v46 = vpack.c.bf16 %v2887_v44, %v2885_v43  ;;  %v10089_v1 = vld [vmem:[%s11940_s22 + $0x140] ss:$8 sps:$4 sm:$0xff]   ;;  %v10094_v2 = vld [vmem:[%s11940_s22 + $0x234] ss:$8 sps:$4 sm:$0xff]  }
 0x6ef   : > { %3229 = vmatmul.mubr.bf16.vlgmr.msra.gmra.mxu1 %v2889_v5  ;;  %v2937_v14 = vshll.u32 %v2911_v9, 16  ;;  %v3238_v15 = vpack.c.bf16 %v2888_v11, %v2886_v10  ;;  %v2935_v18 = vshrl.u32 %v2911_v9, 16  ;;  %v10092_v3 = vld [vmem:[%s11940_s22 + $0x230] ss:$8 sps:$4 sm:$0xff]   ;;  %v10097_v4 = vld [vmem:[%s11940_s22 + $0x224] ss:$8 sps:$4 sm:$0xff]  }
 0x6f0   : > { %v2944_v13 = vshll.u32 %v2912_v8, 16  ;;  %v2942_v16 = vshrl.u32 %v2912_v8, 16  ;;  %v3262_v47 = vrot.slane %v3237_v46, 1  ;;  %3786 = vmatpush1.bf16.msra.mxu1 %v10068_v48  ;;  %v10095_v5 = vld [vmem:[%s11940_s22 + $0x220] ss:$8 sps:$4 sm:$0xff]  }
 0x6f1   : > { %v2939_v19 = vrot.slane %v2937_v14, 1  ;;  %v3263_v26 = vrot.slane %v3238_v15, 1  ;;  %3787 = vmatprep.subr.bf16.mxu1 %v10073_v50  ;;  %v10100_v12 = vld [vmem:[%s11940_s22 + $0x214] ss:$8 sps:$4 sm:$0xff]   ;;  %v10098_v6 = vld [vmem:[%s11940_s22 + $0x210] ss:$8 sps:$4 sm:$0xff]  }
 0x6f2   : > { %v2946_v17 = vrot.slane %v2944_v13, 1  ;;  %v10103_v7 = vld [vmem:[%s11940_s22 + $0x204] ss:$8 sps:$4 sm:$0xff]   ;;  %v10101_v8 = vld [vmem:[%s11940_s22 + $0x200] ss:$8 sps:$4 sm:$0xff]  }
 0x6f3   : > { %v2940_v24 = vor.u32 %v2939_v19, %v2935_v18  ;;  %v3411_v18 = vld [vmem:[%s11941_s23] sm:$0x3]  ;;  %v10104_v19 = vld [vmem:[%s11940_s22 + $0x270] ss:$8 sps:$4 sm:$0xff]   ;;  %v10130_v50 = vld [vmem:[%s11940_s22 + $0x74] ss:$8 sps:$4 sm:$0xff]  }
 0x6f4   : > { %v2947_v20 = vor.u32 %v2946_v17, %v2942_v16  ;;  %3788 = vmatpush1.bf16.msra.mxu1 %v10071_v51  ;;  %v10122_v48 = vld [vmem:[%s11940_s22 + $0x240] ss:$8 sps:$4 sm:$0xff]   ;;  %s10725_s23 = smov 64  }
 0x6f5   : > { %3789 = vmatprep.subr.bf16.mxu1 %v10076_v52  ;;  %v10125_v52 = vld [vmem:[%s11940_s22 + $0x1c0] ss:$8 sps:$4 sm:$0xff]  }
 0x6f6   : > { %8505 = vmatprep.mubr.msk.bf16.mxu0 %vm1532_vm4, %v2947_v20  ;;  %v10106_v20 = vld [vmem:[%s11940_s22 + $0x274] ss:$8 sps:$4 sm:$0xff]  }
 0x6f7   : > { %3085 = vmatmul.mubr.bf16.vlgmr.msra.gmra.mxu0 %v2940_v24  ;;  %v3416_v24 = vrot.slane %v3411_v18, %v11017_v55 }
 0x6f8   : > { %3369 = vmatpush1.bf16.msra.mxu0 %v10038_v22  ;;  %8567 = vmatprep.mubr.msk.bf16.mxu0 %vm1532_vm4, %v3263_v26  ;;  %v10109_v26 = vld [vmem:[%s11940_s22 + $0x1f4] ss:$8 sps:$4 sm:$0xff]  }
 0x6f9   : > { %3370 = vmatprep.subr.bf16.mxu0 %v10043_v25  ;;  %3790 = vmatpush1.bf16.msra.mxu1 %v10074_v53  ;;  %v10107_v25 = vld [vmem:[%s11940_s22 + $0x1f0] ss:$8 sps:$4 sm:$0xff]   ;;  %v10133_v53 = vld [vmem:[%s11940_s22 + $0x134] ss:$8 sps:$4 sm:$0xff]  }
 0x6fa   : > { %3791 = vmatprep.subr.bf16.mxu1 %v10079_v54 }
 0x6fc   : > { %3371 = vmatpush1.bf16.msra.mxu0 %v10041_v27  ;;  %v10110_v27 = vld [vmem:[%s11940_s22 + $0x260] ss:$8 sps:$4 sm:$0xff]  }
 0x6fd   : > { %3372 = vmatprep.subr.bf16.mxu0 %v10046_v28  ;;  %3792 = vmatpush1.bf16.msra.mxu1 %v10077_v56 }
 0x6fe   : > { %3793 = vmatprep.subr.bf16.mxu1 %v10082_v57 }
 0x700   : > { %3373 = vmatpush1.bf16.msra.mxu0 %v10044_v29  ;;  %v10112_v29 = vld [vmem:[%s11940_s22 + $0x264] ss:$8 sps:$4 sm:$0xff]  }
 0x701   : > { %3374 = vmatprep.subr.bf16.mxu0 %v10049_v30  ;;  %3794 = vmatpush1.bf16.msra.mxu1 %v10080_v58  ;;  %v10115_v30 = vld [vmem:[%s11940_s22 + $0x1e4] ss:$8 sps:$4 sm:$0xff]  }
 0x702   : > { %3795 = vmatprep.subr.bf16.mxu1 %v10085_v59 }
 0x704   : > { %3375 = vmatpush1.bf16.msra.mxu0 %v10047_v31 }
 0x705   : > { %3376 = vmatprep.subr.bf16.mxu0 %v10052_v32  ;;  %3796 = vmatpush1.bf16.msra.mxu1 %v10083_v61 }
 0x706   : > { %3797 = vmatprep.subr.bf16.mxu1 %v10088_v62 }
 0x708   : > { %3377 = vmatpush1.bf16.msra.mxu0 %v10050_v33  ;;  %v3420_v33 = vrot.slane %v3411_v18, %v11020_v60  ;;  %v10136_v18 = vld [vmem:[%s11940_s22 + $0x64] ss:$8 sps:$4 sm:$0xff]  }
 0x709   : > { %3378 = vmatprep.subr.bf16.mxu0 %v10055_v34  ;;  %3798 = vmatpush1.bf16.msra.mxu1 %v10086_v63 }
 0x70a   : > { %3799 = vmatprep.subr.bf16.mxu1 %v10091_v0 }
 0x70c   : > { %3379 = vmatpush1.bf16.msra.mxu0 %v10053_v35  ;;  %v10113_v35 = vld [vmem:[%s11940_s22 + $0x1e0] ss:$8 sps:$4 sm:$0xff]  }
 0x70d   : > { %3380 = vmatprep.subr.bf16.mxu0 %v10058_v36  ;;  %3800 = vmatpush1.bf16.msra.mxu1 %v10089_v1 }
 0x70e   : > { %3801 = vmatprep.subr.bf16.mxu1 %v10094_v2 }
 0x710   : > { %3381 = vmatpush1.bf16.msra.mxu0 %v10056_v37 }
 0x711   : > { %3382 = vmatprep.subr.bf16.mxu0 %v10061_v38  ;;  %3802 = vmatpush2.bf16.msra.mxu1 %v10092_v3  ;;  %v10116_v38 = vld [vmem:[%s11940_s22 + $0x250] ss:$8 sps:$4 sm:$0xff]  }
 0x712   : > { %3803 = vmatprep.subr.bf16.mxu1 %v10097_v4 }
 0x714   : > { %3383 = vmatpush1.bf16.msra.mxu0 %v10059_v39  ;;  %v10121_v39 = vld [vmem:[%s11940_s22 + $0x1d4] ss:$8 sps:$4 sm:$0xff]  }
 0x715   : > { %3396 = vmatprep.subr.bf16.mxu0 %v10064_v40  ;;  %3804 = vmatpush2.bf16.msra.mxu1 %v10095_v5 }
 0x716   : > { %3805 = vmatprep.subr.bf16.mxu1 %v10100_v12 }
 0x718   : > { %3397 = vmatpush2.bf16.msra.mxu0 %v10062_v41  ;;  %v10124_v41 = vld [vmem:[%s11940_s22 + $0x244] ss:$8 sps:$4 sm:$0xff]  }
 0x719   : > { %3398 = vmatprep.subr.bf16.mxu0 %v10067_v42  ;;  %3806 = vmatpush2.bf16.msra.mxu1 %v10098_v6 }
 0x71a   : > { %3807 = vmatprep.subr.bf16.mxu1 %v10103_v7 }
 0x71c   : > { %3399 = vmatpush2.bf16.msra.mxu0 %v10065_v45  ;;  %v10119_v45 = vld [vmem:[%s11940_s22 + $0x1d0] ss:$8 sps:$4 sm:$0xff]  }
 0x71d   : > { %3808 = vmatpush2.bf16.msra.mxu1 %v10101_v8  ;;  %3834 = vmatprep.subr.bf16.mxu0 %v10106_v20 }
 0x71e   : > { %3809 = vmatprep.subr.bf16.mxu1 %v10109_v26  ;;  %v10137_v26 = vld [vmem:[%s11940_s22 + $0x120] ss:$8 sps:$4 sm:$0xff]  }
 0x71f   : > { %3401 = vmatmul.mubr.bf16.vlgmr.msra.gmra.mxu0 %v3262_v47 }
 0x720   : > { %3858 = vmatprep.mubr.bf16.mxu0 %v10721_v21  ;;  %3835 = vmatpush1.bf16.msra.mxu0 %v10104_v19 }
 0x721   : > { %3810 = vmatpush2.bf16.msra.mxu1 %v10107_v25  ;;  %3836 = vmatprep.subr.bf16.mxu0 %v10112_v29  ;;  %v10142_v25 = vld [vmem:[%s11940_s22 + $0x54] ss:$8 sps:$4 sm:$0xff]   ;;  %v10148_v29 = vld [vmem:[%s11940_s22 + $0x44] ss:$8 sps:$4 sm:$0xff]  }
 0x722   : > { %3811 = vmatprep.subr.bf16.mxu1 %v10115_v30  ;;  %v10143_v30 = vld [vmem:[%s11940_s22 + $0x110] ss:$8 sps:$4 sm:$0xff]  }
 0x724   : > { %3837 = vmatpush1.bf16.msra.mxu0 %v10110_v27  ;;  %v10145_v27 = vld [vmem:[%s11940_s22 + $0x114] ss:$8 sps:$4 sm:$0xff]  }
 0x725   : > { %3838 = vmatprep.subr.bf16.mxu0 %v10118_v23  ;;  %3812 = vmatpush2.bf16.msra.mxu1 %v10113_v35  ;;  %v10149_v35 = vld [vmem:[%s11940_s22 + $0x100] ss:$8 sps:$4 sm:$0xff]  }
 0x726   : > { %3813 = vmatprep.subr.bf16.mxu1 %v10121_v39 }
 0x728   : > { %3839 = vmatpush1.bf16.msra.mxu0 %v10116_v38 }
 0x729   : > { %3840 = vmatprep.subr.bf16.mxu0 %v10124_v41  ;;  %3814 = vmatpush2.bf16.msra.mxu1 %v10119_v45  ;;  %v10155_v41 = vld [vmem:[%s11940_s22 + $0x2f0] ss:$8 sps:$4 sm:$0xff]   ;;  %v10158_v45 = vld [vmem:[%s11940_s22 + $0x20] ss:$8 sps:$4 sm:$0xff]  }
 0x72a   : > { %3815 = vmatprep.subr.bf16.mxu1 %v10127_v49  ;;  %v10164_v49 = vld [vmem:[%s11940_s22 + $0x10] ss:$8 sps:$4 sm:$0xff]  }
 0x72c   : > { %3841 = vmatpush1.bf16.msra.mxu0 %v10122_v48  ;;  %v10169_v48 = vld [vmem:[%s11940_s22 + $0x2d4] ss:$8 sps:$4 sm:$0xff]  }
 0x72d   : > { %4070 = vmatprep.subr.bf16.mxu0 %v10130_v50  ;;  %3816 = vmatpush2.bf16.msra.mxu1 %v10125_v52  ;;  %v10172_v50 = vld [vmem:[%s11940_s22 + $0x4] ss:$8 sps:$4 sm:$0xff]  }
 0x72e   : > { %4119 = vmatprep.subr.bf16.mxu1 %v10133_v53  ;;  %v10175_v52 = vld [vmem:[%s11940_s22 + $0x2c4] ss:$8 sps:$4 sm:$0xff]   ;;  %v10170_v53 = vld [vmem:[%s11940_s22] ss:$8 sps:$4 sm:$0xff]  }
 0x7af   : > { %v3230_v9 = vpop.f32.mrf.mxu1 }
 0x7b1   : > { %v3232_v10 = vpop.f32.mrf.mxu1 }
 0x7b3   : > { %v3234_v11 = vpop.f32.mrf.mxu1 }
 0x7b5   : > { %v3235_v13 = vpop.f32.mrf.mxu1 }
 0x7b7   : > { %v3086_v14 = vpop.f32.mrf.mxu0 }
 0x7b8   : > { %v3231_v22 = vadd.f32 %v3230_v9, %v3086_v14  ;;  %v10128_v9 = vld [vmem:[%s11940_s22 + $0x70] ss:$8 sps:$4 sm:$0xff]  }
 0x7b9   : > { %v3088_v15 = vpop.f32.mrf.mxu0 }
 0x7ba   : > { %v3233_v31 = vadd.f32 %v3232_v10, %v3088_v15 }
 0x7bb   : > { %v3090_v16 = vpop.f32.mrf.mxu0 }
 0x7bd   : > { %v3091_v17 = vpop.f32.mrf.mxu0 }
 0x7be   : > { %v10131_v17 = vld [vmem:[%s11940_s22 + $0x130] ss:$8 sps:$4 sm:$0xff]  }
 0x7df   : > { %v3402_v28 = vpop.f32.mrf.mxu0 }
 0x7e0   : > { %v3409_v32 = vadd.f32 %v3402_v28, %v3231_v22  ;;  %v10139_v22 = vld [vmem:[%s11940_s22 + $0x124] ss:$8 sps:$4 sm:$0xff]   ;;  %v10140_v28 = vld [vmem:[%s11940_s22 + $0x50] ss:$8 sps:$4 sm:$0xff]  }
 0x7e1   : > { %v3404_v34 = vpop.f32.mrf.mxu0 }
 0x7e2   : > { %v3423_v36 = vadd.f32 %v3416_v24, %v3409_v32  ;;  %v3410_v37 = vadd.f32 %v3404_v34, %v3233_v31  ;;  %v10134_v24 = vld [vmem:[%s11940_s22 + $0x60] ss:$8 sps:$4 sm:$0xff]   ;;  %v10151_v31 = vld [vmem:[%s11940_s22 + $0x104] ss:$8 sps:$4 sm:$0xff]  }
 0x7e3   : > { %v3406_v40 = vpop.f32.mrf.mxu0  ;;  %v10146_v32 = vld [vmem:[%s11940_s22 + $0x40] ss:$8 sps:$4 sm:$0xff]  }
 0x7e4   : > { %v3425_v42 = vmax.f32 %v3423_v36, 0.0  ;;  %v3424_v43 = vadd.f32 %v3420_v33, %v3410_v37  ;;  %v10154_v33 = vld [vmem:[%s11940_s22 + $0x34] ss:$8 sps:$4 sm:$0xff]   ;;  %v10152_v37 = vld [vmem:[%s11940_s22 + $0x30] ss:$8 sps:$4 sm:$0xff]  }
 0x7e5   : > { %v3407_v44 = vpop.f32.mrf.mxu0  ;;  %v10157_v36 = vld [vmem:[%s11940_s22 + $0x2f4] ss:$8 sps:$4 sm:$0xff]   ;;  %v10160_v40 = vld [vmem:[%s11940_s22 + $0x24] ss:$8 sps:$4 sm:$0xff]  }
 0x7e6   : > { %v3437_v46 = vrot.slane %v3425_v42, 7  ;;  %v3426_v47 = vmax.f32 %v3424_v43, 0.0  ;;  %v10163_v43 = vld [vmem:[%s11940_s22 + $0x2e4] ss:$8 sps:$4 sm:$0xff]  }
 0x7e8   : > { %v3438_v51 = vrot.slane %v3426_v47, 7  ;;  %3439 = vrot.lane.b32.xlu0 %v3437_v46, %s10724_s26  ;;  %v10166_v46 = vld [vmem:[%s11940_s22 + $0x14] ss:$8 sps:$4 sm:$0xff]   ;;  %v10161_v47 = vld [vmem:[%s11940_s22 + $0x2e0] ss:$8 sps:$4 sm:$0xff]  }
 0x7ea   : > { %3441 = vrot.lane.b32.xlu1 %v3438_v51, %s10724_s26  ;;  %v10167_v51 = vld [vmem:[%s11940_s22 + $0x2d0] ss:$8 sps:$4 sm:$0xff]  }
 0x85a   : > { %v3440_v54 = vpop.permute.xlu0 %3439 }
 0x85b   : > { %3448 = vst.msk [vmem:[#allocation5] sm:$0xfe] %vm3447_vm8, %v3440_v54 }
 0x85c   : > { %3453 = vst.msk [vmem:[#allocation5 + $0x18] sm:$0x1] %vm3452_vm9, %v3440_v54  ;;  %v3442_v56 = vpop.permute.xlu1 %3441 }
 0x85d   : > { %v3443_v57 = vsel %vm1532_vm4, %v3440_v54, %v3442_v56  ;;  %3451 = vst.msk [vmem:[#allocation5 + $0x10] sm:$0xfe] %vm3450_vm10, %v3442_v56  ;;  %v10178_v54 = vld [vmem:[%s11940_s22 + $0xf4] ss:$8 sps:$4 sm:$0xff]   ;;  %vm4865_vm4 = vcmask 521216  }
 0x85e   : > { %3456 = vst.msk [vmem:[#allocation5 + $0x28] sm:$0x1] %vm3455_vm11, %v3442_v56  ;;  %3449 = vst [vmem:[#allocation5 + $0x8] sm:$0xfe] %v3443_v57  ;;  %v10173_v56 = vld [vmem:[%s11940_s22 + $0x2c0] ss:$8 sps:$4 sm:$0xff]  }
 0x85f   : > { %3454 = vst [vmem:[#allocation5 + $0x20] sm:$0x1] %v3443_v57  ;;  %v10181_v57 = vld [vmem:[%s11940_s22 + $0x2b4] ss:$8 sps:$4 sm:$0xff]  }
 0x862   : > { %v3460_v58 = vld [vmem:[#allocation5] sm:$0xfe] }
 0x863   : > { %v3463_v59 = vld [vmem:[#allocation5 + $0x18] sm:$0x1] }
 0x864   : > { %v3515_v61 = vpack.c.bf16 %v3463_v59, %v3460_v58  ;;  %v3462_v62 = vld [vmem:[#allocation5 + $0x10] sm:$0xfe]  ;;  %v10176_v58 = vld [vmem:[%s11940_s22 + $0xf0] ss:$8 sps:$4 sm:$0xff]  }
 0x865   : > { %v3465_v63 = vld [vmem:[#allocation5 + $0x28] sm:$0x1]  ;;  %v3461_v1 = vld [vmem:[#allocation5 + $0x8] sm:$0xfe]  ;;  %v3459_v38 = vld [vmem:[#allocation5 + $0x10] sm:$0xff] }
 0x866   : > { %v3517_v0 = vpack.c.bf16 %v3465_v63, %v3462_v62  ;;  %v3464_v2 = vld [vmem:[#allocation5 + $0x20] sm:$0x1]  ;;  %v3562_v4 = vshll.u32 %v3515_v61, 16  ;;  %v3458_v13 = vld [vmem:[#allocation5 + $0x8] sm:$0xff]  ;;  %v3560_v15 = vshrl.u32 %v3515_v61, 16  ;;  %v3474_v42 = vpack.c.bf16 %v3459_v38, %v3459_v38 }
 0x867   : > { %v3516_v3 = vpack.c.bf16 %v3464_v2, %v3461_v1  ;;  %v3473_v19 = vpack.c.bf16 %v3458_v13, %v3458_v13  ;;  %v3467_v23 = vld [vmem:[#allocation5 + $0x8] sm:$0xfc]  ;;  %v3470_v34 = vld [vmem:[#allocation5 + $0x20] sm:$0x3]  ;;  %v10193_v2 = vld [vmem:[%s11940_s22 + $0x294] ss:$8 sps:$4 sm:$0xff]  }
 0x868   : > { %v3576_v5 = vshll.u32 %v3517_v0, 16  ;;  %v3574_v6 = vshrl.u32 %v3517_v0, 16  ;;  %v3564_v8 = vrot.slane %v3562_v4, 1  ;;  %v4153_v39 = vpack.c.bf16 %v3470_v34, %v3467_v23  ;;  %v10184_v59 = vld [vmem:[%s11940_s22 + $0xe4] ss:$8 sps:$4 sm:$0xff]  }
 0x869   : > { %v3569_v12 = vshll.u32 %v3516_v3, 16  ;;  %v3567_v10 = vshrl.u32 %v3516_v3, 16  ;;  %v10179_v61 = vld [vmem:[%s11940_s22 + $0x2b0] ss:$8 sps:$4 sm:$0xff]   ;;  %v10187_v62 = vld [vmem:[%s11940_s22 + $0x2a4] ss:$8 sps:$4 sm:$0xff]  }
 0x86a   : > { %v3578_v7 = vrot.slane %v3576_v5, 1  ;;  %v3565_v20 = vor.u32 %v3564_v8, %v3560_v15  ;;  %v4200_v44 = vrot.slane %v4153_v39, 1  ;;  %v10182_v63 = vld [vmem:[%s11940_s22 + $0xe0] ss:$8 sps:$4 sm:$0xff]   ;;  %v10190_v0 = vld [vmem:[%s11940_s22 + $0xd4] ss:$8 sps:$4 sm:$0xff]  }
 0x86b   : > { %v3571_v11 = vrot.slane %v3569_v12, 1  ;;  %v10185_v1 = vld [vmem:[%s11940_s22 + $0x2a0] ss:$8 sps:$4 sm:$0xff]   ;;  %v10188_v3 = vld [vmem:[%s11940_s22 + $0xd0] ss:$8 sps:$4 sm:$0xff]  }
 0x86c   : > { %v3579_v14 = vor.u32 %v3578_v7, %v3574_v6  ;;  %v10196_v4 = vld [vmem:[%s11940_s22 + $0xc4] ss:$8 sps:$4 sm:$0xff]   ;;  %v10191_v5 = vld [vmem:[%s11940_s22 + $0x290] ss:$8 sps:$4 sm:$0xff]   ;;  %v10194_v6 = vld [vmem:[%s11940_s22 + $0xc0] ss:$8 sps:$4 sm:$0xff]  }
 0x86d   : > { %v3572_v16 = vor.u32 %v3571_v11, %v3567_v10  ;;  %v10199_v12 = vld [vmem:[%s11940_s22 + $0x284] ss:$8 sps:$4 sm:$0xff]   ;;  %v10202_v7 = vld [vmem:[%s11940_s22 + $0xb4] ss:$8 sps:$4 sm:$0xff]   ;;  %v10197_v8 = vld [vmem:[%s11940_s22 + $0x280] ss:$8 sps:$4 sm:$0xff]  }
 0x86e   : > { %8648 = vmatmul.mubr.msk.bf16.vlgmr.msra.gmra.mxu0 %vm3429_vm6, %v3579_v14  ;;  %v10200_v10 = vld [vmem:[%s11940_s22 + $0xb0] ss:$8 sps:$4 sm:$0xff]   ;;  %v10208_v11 = vld [vmem:[%s11940_s22 + $0xa4] ss:$8 sps:$4 sm:$0xff]   ;;  %v10206_v15 = vld [vmem:[%s11940_s22 + $0xa0] ss:$8 sps:$4 sm:$0xff]  }
 0x86f   : > { %4071 = vmatpush1.bf16.msra.mxu0 %v10128_v9  ;;  %3817 = vmatprep.mubr.bf16.mxu1 %v3572_v16  ;;  %v10205_v9 = vld [vmem:[%s11940_s22 + $0x374] ss:$8 sps:$4 sm:$0xff]   ;;  %v10203_v13 = vld [vmem:[%s11940_s22 + $0x370] ss:$8 sps:$4 sm:$0xff]   ;;  %v10211_v14 = vld [vmem:[%s11940_s22 + $0x364] ss:$8 sps:$4 sm:$0xff]  }
 0x870   : > { %4102 = vmatprep.mubr.bf16.mxu0 %v3473_v19  ;;  %3818 = vmatmul.mubr.bf16.vlgmr.msra.gmra.mxu1 %v3565_v20  ;;  %v10214_v16 = vld [vmem:[%s11940_s22 + $0x94] ss:$8 sps:$4 sm:$0xff]   ;;  %v10212_v19 = vld [vmem:[%s11940_s22 + $0x90] ss:$8 sps:$4 sm:$0xff]   ;;  %v10220_v20 = vld [vmem:[%s11940_s22 + $0x84] ss:$8 sps:$4 sm:$0xff]  }
 0x871   : > { %4120 = vmatpush1.bf16.msra.mxu1 %v10131_v17  ;;  %4072 = vmatprep.subr.bf16.mxu0 %v10136_v18  ;;  %v10209_v17 = vld [vmem:[%s11940_s22 + $0x360] ss:$8 sps:$4 sm:$0xff]   ;;  %v10217_v18 = vld [vmem:[%s11940_s22 + $0x354] ss:$8 sps:$4 sm:$0xff]   ;;  %v10235_v23 = vld [vmem:[%s11940_s22 + $0x324] ss:$8 sps:$4 sm:$0xff]  }
 0x872   : > { %4121 = vmatprep.subr.bf16.mxu1 %v10139_v22  ;;  %4143 = vmatprep.mubr.bf16.mxu1 %v10721_v21  ;;  %v10215_v22 = vld [vmem:[%s11940_s22 + $0x350] ss:$8 sps:$4 sm:$0xff]   ;;  %v10230_v34 = vld [vmem:[%s11940_s22 + $0x3a0] ss:$8 sps:$4 sm:$0xff]   ;;  %v10244_v39 = vld [vmem:[%s11940_s22 + $0x384] ss:$8 sps:$4 sm:$0xff]  }
 0x873   : > { %4073 = vmatpush1.bf16.msra.mxu0 %v10134_v24  ;;  %v10223_v24 = vld [vmem:[%s11940_s22 + $0x344] ss:$8 sps:$4 sm:$0xff]   ;;  %v10236_v38 = vld [vmem:[%s11940_s22 + $0x390] ss:$8 sps:$4 sm:$0xff]  }
 0x874   : > { %4074 = vmatprep.subr.bf16.mxu0 %v10142_v25  ;;  %v10218_v25 = vld [vmem:[%s11940_s22 + $0x80] ss:$8 sps:$4 sm:$0xff]  }
 0x875   : > { %4122 = vmatpush1.bf16.msra.mxu1 %v10137_v26  ;;  %v10226_v26 = vld [vmem:[%s11940_s22 + $0x3b4] ss:$8 sps:$4 sm:$0xff]  }
 0x876   : > { %4123 = vmatprep.subr.bf16.mxu1 %v10145_v27  ;;  %v10221_v27 = vld [vmem:[%s11940_s22 + $0x340] ss:$8 sps:$4 sm:$0xff]  }
 0x877   : > { %4075 = vmatpush1.bf16.msra.mxu0 %v10140_v28  ;;  %v3457_v28 = vld [vmem:[#allocation5] sm:$0xff] }
 0x878   : > { %4076 = vmatprep.subr.bf16.mxu0 %v10148_v29  ;;  %v10229_v29 = vld [vmem:[%s11940_s22 + $0x334] ss:$8 sps:$4 sm:$0xff]  }
 0x879   : > { %4124 = vmatpush1.bf16.msra.mxu1 %v10143_v30  ;;  %v10224_v30 = vld [vmem:[%s11940_s22 + $0x3b0] ss:$8 sps:$4 sm:$0xff]  }
 0x87a   : > { %4125 = vmatprep.subr.bf16.mxu1 %v10151_v31  ;;  %v3472_v31 = vpack.c.bf16 %v3457_v28, %v3457_v28 }
 0x87b   : > { %4077 = vmatpush1.bf16.msra.mxu0 %v10146_v32  ;;  %v10232_v32 = vld [vmem:[%s11940_s22 + $0x3a4] ss:$8 sps:$4 sm:$0xff]  }
 0x87c   : > { %4078 = vmatprep.subr.bf16.mxu0 %v10154_v33  ;;  %v10227_v33 = vld [vmem:[%s11940_s22 + $0x330] ss:$8 sps:$4 sm:$0xff]  }
 0x87d   : > { %4126 = vmatpush1.bf16.msra.mxu1 %v10149_v35  ;;  %v10238_v35 = vld [vmem:[%s11940_s22 + $0x394] ss:$8 sps:$4 sm:$0xff]  }
 0x87e   : > { %4407 = vmatprep.subr.bf16.mxu1 %v10157_v36  ;;  %v10233_v36 = vld [vmem:[%s11940_s22 + $0x320] ss:$8 sps:$4 sm:$0xff]  }
 0x87f   : > { %4079 = vmatpush1.bf16.msra.mxu0 %v10152_v37  ;;  %v10241_v37 = vld [vmem:[%s11940_s22 + $0x314] ss:$8 sps:$4 sm:$0xff]  }
 0x880   : > { %8689 = vmatmul.mubr.msk.bf16.vlgmr.msra.gmra.mxu1 %vm3429_vm6, %v3474_v42  ;;  %4080 = vmatprep.subr.bf16.mxu0 %v10160_v40  ;;  %v10239_v40 = vld [vmem:[%s11940_s22 + $0x310] ss:$8 sps:$4 sm:$0xff]   ;;  %v3471_v42 = vld [vmem:[#allocation5 + $0x28] sm:$0x3] }
 0x881   : > { %4408 = vmatpush1.bf16.msra.mxu1 %v10155_v41  ;;  %4439 = vmatprep.mubr.bf16.mxu1 %v4200_v44  ;;  %v3468_v41 = vld [vmem:[#allocation5 + $0x10] sm:$0xfc] }
 0x882   : > { %4409 = vmatprep.subr.bf16.mxu1 %v10163_v43  ;;  %v10247_v43 = vld [vmem:[%s11940_s22 + $0x304] ss:$8 sps:$4 sm:$0xff]   ;;  %v10242_v44 = vld [vmem:[%s11940_s22 + $0x380] ss:$8 sps:$4 sm:$0xff]  }
 0x883   : > { %4081 = vmatpush1.bf16.msra.mxu0 %v10158_v45  ;;  %v3466_v45 = vld [vmem:[#allocation5] sm:$0xfc] }
 0x884   : > { %4082 = vmatprep.subr.bf16.mxu0 %v10166_v46  ;;  %v3469_v46 = vld [vmem:[#allocation5 + $0x18] sm:$0x3] }
 0x885   : > { %4410 = vmatpush1.bf16.msra.mxu1 %v10161_v47  ;;  %v4154_v47 = vpack.c.bf16 %v3471_v42, %v3468_v41 }
 0x886   : > { %4411 = vmatprep.subr.bf16.mxu1 %v10169_v48  ;;  %v10245_v48 = vld [vmem:[%s11940_s22 + $0x300] ss:$8 sps:$4 sm:$0xff]  }
 0x887   : > { %4083 = vmatpush1.bf16.msra.mxu0 %v10164_v49  ;;  %v4152_v49 = vpack.c.bf16 %v3469_v46, %v3466_v45 }
 0x888   : > { %4084 = vmatprep.subr.bf16.mxu0 %v10172_v50  ;;  %v4201_v50 = vrot.slane %v4154_v47, 1 }
 0x889   : > { %4412 = vmatpush1.bf16.msra.mxu1 %v10167_v51  ;;  %v4199_v51 = vrot.slane %v4152_v49, 1 }
 0x88a   : > { %4413 = vmatprep.subr.bf16.mxu1 %v10175_v52  ;;  %v11425_v52 = vld [vmem:[#allocation8] sm:$0xff] }
 0x88b   : > { %4085 = vmatpush1.bf16.msra.mxu0 %v10170_v53  ;;  %v4792_v53 = vld [vmem:[%s11942_s28 + $0xf8] sm:$0xff]  ;;  %4866 = vst.msk [vmem:[#allocation6 + $0x8] sm:$0x3f] %vm4865_vm4, %v11425_v52 }
 0x88c   : > { %4086 = vmatprep.subr.bf16.mxu0 %v10178_v54  ;;  %v4776_v54 = vld [vmem:[%s11942_s28 + $0x78] sm:$0xff] }
 0x88d   : > { %4414 = vmatpush1.bf16.msra.mxu1 %v10173_v56  ;;  %v4791_v56 = vld [vmem:[%s11942_s28 + $0xf0] sm:$0xff] }
 0x88e   : > { %4415 = vmatprep.subr.bf16.mxu1 %v10181_v57  ;;  %v4775_v57 = vld [vmem:[%s11942_s28 + $0x70] sm:$0xff] }
 0x88f   : > { %4087 = vmatpush2.bf16.msra.mxu0 %v10176_v58  ;;  %v4790_v58 = vld [vmem:[%s11942_s28 + $0xe8] sm:$0xff] }
 0x890   : > { %4088 = vmatprep.subr.bf16.mxu0 %v10184_v59  ;;  %v4774_v59 = vld [vmem:[%s11942_s28 + $0x68] sm:$0xff] }
 0x891   : > { %4416 = vmatpush1.bf16.msra.mxu1 %v10179_v61  ;;  %v4789_v61 = vld [vmem:[%s11942_s28 + $0xe0] sm:$0xff] }
 0x892   : > { %4417 = vmatprep.subr.bf16.mxu1 %v10187_v62  ;;  %v4773_v62 = vld [vmem:[%s11942_s28 + $0x60] sm:$0xff] }
 0x893   : > { %4089 = vmatpush2.bf16.msra.mxu0 %v10182_v63  ;;  %v4788_v63 = vld [vmem:[%s11942_s28 + $0xd8] sm:$0xff] }
 0x894   : > { %4090 = vmatprep.subr.bf16.mxu0 %v10190_v0  ;;  %v4772_v0 = vld [vmem:[%s11942_s28 + $0x58] sm:$0xff] }
 0x895   : > { %4418 = vmatpush1.bf16.msra.mxu1 %v10185_v1  ;;  %v4787_v1 = vld [vmem:[%s11942_s28 + $0xd0] sm:$0xff] }
 0x896   : > { %4419 = vmatprep.subr.bf16.mxu1 %v10193_v2  ;;  %v4771_v2 = vld [vmem:[%s11942_s28 + $0x50] sm:$0xff] }
 0x897   : > { %4091 = vmatpush2.bf16.msra.mxu0 %v10188_v3  ;;  %v4786_v3 = vld [vmem:[%s11942_s28 + $0xc8] sm:$0xff] }
 0x898   : > { %4092 = vmatprep.subr.bf16.mxu0 %v10196_v4  ;;  %v4770_v4 = vld [vmem:[%s11942_s28 + $0x48] sm:$0xff] }
 0x899   : > { %4420 = vmatpush1.bf16.msra.mxu1 %v10191_v5  ;;  %v4785_v5 = vld [vmem:[%s11942_s28 + $0xc0] sm:$0xff] }
 0x89a   : > { %4421 = vmatprep.subr.bf16.mxu1 %v10199_v12  ;;  %v4769_v12 = vld [vmem:[%s11942_s28 + $0x40] sm:$0xff] }
 0x89b   : > { %4093 = vmatpush2.bf16.msra.mxu0 %v10194_v6  ;;  %v4784_v6 = vld [vmem:[%s11942_s28 + $0xb8] sm:$0xff] }
 0x89c   : > { %4094 = vmatprep.subr.bf16.mxu0 %v10202_v7  ;;  %v4768_v7 = vld [vmem:[%s11942_s28 + $0x38] sm:$0xff] }
 0x89d   : > { %4422 = vmatpush1.bf16.msra.mxu1 %v10197_v8  ;;  %v4783_v8 = vld [vmem:[%s11942_s28 + $0xb0] sm:$0xff] }
 0x89e   : > { %4423 = vmatprep.subr.bf16.mxu1 %v10205_v9  ;;  %v4767_v9 = vld [vmem:[%s11942_s28 + $0x30] sm:$0xff] }
 0x89f   : > { %4095 = vmatpush2.bf16.msra.mxu0 %v10200_v10  ;;  %v4782_v10 = vld [vmem:[%s11942_s28 + $0xa8] sm:$0xff] }
 0x8a0   : > { %4096 = vmatprep.subr.bf16.mxu0 %v10208_v11  ;;  %v4766_v11 = vld [vmem:[%s11942_s28 + $0x28] sm:$0xff] }
 0x8a1   : > { %4424 = vmatpush2.bf16.msra.mxu1 %v10203_v13 }
 0x8a2   : > { %4425 = vmatprep.subr.bf16.mxu1 %v10211_v14 }
 0x8a3   : > { %4097 = vmatpush2.bf16.msra.mxu0 %v10206_v15 }
 0x8a4   : > { %4098 = vmatprep.subr.bf16.mxu0 %v10214_v16 }
 0x8a5   : > { %4426 = vmatpush2.bf16.msra.mxu1 %v10209_v17 }
 0x8a6   : > { %4427 = vmatprep.subr.bf16.mxu1 %v10217_v18 }
 0x8a7   : > { %4099 = vmatpush2.bf16.msra.mxu0 %v10212_v19 }
 0x8a8   : > { %4100 = vmatprep.subr.bf16.mxu0 %v10220_v20 }
 0x8a9   : > { %4428 = vmatpush2.bf16.msra.mxu1 %v10215_v22 }
 0x8aa   : > { %4429 = vmatprep.subr.bf16.mxu1 %v10223_v24 }
 0x8ab   : > { %4101 = vmatpush2.bf16.msra.mxu0 %v10218_v25 }
 0x8ac   : > { %4456 = vmatprep.subr.bf16.mxu0 %v10226_v26 }
 0x8ad   : > { %4430 = vmatpush2.bf16.msra.mxu1 %v10221_v27 }
 0x8ae   : > { %4103 = vmatmul.mubr.bf16.vlgmr.msra.gmra.mxu0 %v3472_v31  ;;  %4431 = vmatprep.subr.bf16.mxu1 %v10229_v29 }
 0x8af   : > { %4457 = vmatpush1.bf16.msra.mxu0 %v10224_v30  ;;  %4480 = vmatprep.mubr.bf16.mxu0 %v10721_v21 }
 0x8b0   : > { %4458 = vmatprep.subr.bf16.mxu0 %v10232_v32 }
 0x8b1   : > { %4432 = vmatpush2.bf16.msra.mxu1 %v10227_v33 }
 0x8b2   : > { %4433 = vmatprep.subr.bf16.mxu1 %v10235_v23 }
 0x8b3   : > { %4459 = vmatpush1.bf16.msra.mxu0 %v10230_v34 }
 0x8b4   : > { %4460 = vmatprep.subr.bf16.mxu0 %v10238_v35 }
 0x8b5   : > { %4434 = vmatpush2.bf16.msra.mxu1 %v10233_v36 }
 0x8b6   : > { %4435 = vmatprep.subr.bf16.mxu1 %v10241_v37  ;;  %v4491_v37 = vld [vmem:[%s11943_s1] sm:$0x3]  ;;  %s11951_s1 = sld [smem:[#allocation21_spill]] }
 0x8b7   : > { %4461 = vmatpush1.bf16.msra.mxu0 %v10236_v38  ;;  %v4496_v41 = vrot.slane %v4491_v37, %v11017_v55  ;;  %v4500_v46 = vrot.slane %v4491_v37, %v11020_v60  ;;  %v4659_v37 = vld [vmem:[%s11945_s0] sm:$0xff] }
 0x8b8   : > { %4462 = vmatprep.subr.bf16.mxu0 %v10244_v39 }
 0x8b9   : > { %4436 = vmatpush2.bf16.msra.mxu1 %v10239_v40 }
 0x8ba   : > { %4437 = vmatprep.subr.bf16.mxu1 %v10247_v43 }
 0x8bb   : > { %4463 = vmatpush1.bf16.msra.mxu0 %v10242_v44 }
 0x8bd   : > { %4438 = vmatpush2.bf16.msra.mxu1 %v10245_v48 }
 0x8be   : > { %8770 = vmatmul.mubr.msk.bf16.vlgmr.msra.gmra.mxu0 %vm3429_vm6, %v4201_v50  ;;  %9552 = vmatprep.subr.mxu1 %v4792_v53 }
 0x8bf   : > { %4575 = vmatprep.mubr.f32.mxu0 %v11425_v52 }
 0x8c0   : > { %4440 = vmatmul.mubr.bf16.vlgmr.msra.gmra.mxu1 %v4199_v51 }
 0x8c1   : > { %9553 = vmatpush3.msra.mxu1 %v4776_v54 }
 0x8c2   : > { %9554 = vmatprep.subr.mxu1 %v4791_v56 }
 0x8c3   : > { %9555 = vmatpush3.msra.mxu1 %v4775_v57  ;;  %v4507_v57 = vld [vmem:[%s11944_s2] sm:$0xf]  ;;  %s11952_s2 = sld [smem:[#allocation22_spill]] }
 0x8c4   : > { %9556 = vmatprep.subr.mxu1 %v4790_v58  ;;  %v4690_v58 = vld [vmem:[%s11945_s0 + $0xf8] sm:$0xff] }
 0x8c5   : > { %9557 = vmatpush3.msra.mxu1 %v4774_v59  ;;  %v4582_v59 = vld [vmem:[%s11946_s11] sm:$0xf]  ;;  %s11953_s11 = sld [smem:[#allocation23_spill]] }
 0x8c6   : > { %9558 = vmatprep.subr.mxu1 %v4789_v61  ;;  %v4674_v61 = vld [vmem:[%s11945_s0 + $0x78] sm:$0xff] }
 0x8c7   : > { %9559 = vmatpush3.msra.mxu1 %v4773_v62  ;;  %v4689_v62 = vld [vmem:[%s11945_s0 + $0xf0] sm:$0xff] }
 0x8c8   : > { %9560 = vmatprep.subr.mxu1 %v4788_v63  ;;  %v4673_v63 = vld [vmem:[%s11945_s0 + $0x70] sm:$0xff] }
 0x8c9   : > { %9561 = vmatpush3.msra.mxu1 %v4772_v0  ;;  %v4688_v0 = vld [vmem:[%s11945_s0 + $0xe8] sm:$0xff] }
 0x8ca   : > { %9562 = vmatprep.subr.mxu1 %v4787_v1  ;;  %v4672_v1 = vld [vmem:[%s11945_s0 + $0x68] sm:$0xff] }
 0x8cb   : > { %9563 = vmatpush3.msra.mxu1 %v4771_v2  ;;  %v4687_v2 = vld [vmem:[%s11945_s0 + $0xe0] sm:$0xff] }
 0x8cc   : > { %9564 = vmatprep.subr.mxu1 %v4786_v3  ;;  %v4671_v3 = vld [vmem:[%s11945_s0 + $0x60] sm:$0xff] }
 0x8cd   : > { %9565 = vmatpush3.msra.mxu1 %v4770_v4  ;;  %v4686_v4 = vld [vmem:[%s11945_s0 + $0xd8] sm:$0xff] }
 0x8ce   : > { %9566 = vmatprep.subr.mxu1 %v4785_v5  ;;  %v4670_v5 = vld [vmem:[%s11945_s0 + $0x58] sm:$0xff] }
 0x8cf   : > { %9567 = vmatpush3.msra.mxu1 %v4769_v12  ;;  %v4685_v12 = vld [vmem:[%s11945_s0 + $0xd0] sm:$0xff] }
 0x8d0   : > { %9568 = vmatprep.subr.mxu1 %v4784_v6  ;;  %v4669_v6 = vld [vmem:[%s11945_s0 + $0x50] sm:$0xff] }
 0x8d1   : > { %9569 = vmatpush3.msra.mxu1 %v4768_v7  ;;  %v4684_v7 = vld [vmem:[%s11945_s0 + $0xc8] sm:$0xff] }
 0x8d2   : > { %9570 = vmatprep.subr.mxu1 %v4783_v8  ;;  %v4668_v8 = vld [vmem:[%s11945_s0 + $0x48] sm:$0xff] }
 0x8d3   : > { %9571 = vmatpush3.msra.mxu1 %v4767_v9  ;;  %v4683_v9 = vld [vmem:[%s11945_s0 + $0xc0] sm:$0xff] }
 0x8d4   : > { %9572 = vmatprep.subr.mxu1 %v4782_v10  ;;  %v4667_v10 = vld [vmem:[%s11945_s0 + $0x40] sm:$0xff] }
 0x8d5   : > { %9573 = vmatpush3.msra.mxu1 %v4766_v11  ;;  %v4682_v11 = vld [vmem:[%s11945_s0 + $0xb8] sm:$0xff] }
 0x92e   : > { %v3860_v13 = vpop.f32.mrf.mxu0 }
 0x930   : > { %v3819_v14 = vpop.f32.mrf.mxu1  ;;  %v3862_v15 = vpop.f32.mrf.mxu0 }
 0x931   : > { %v3861_v16 = vadd.f32 %v3860_v13, %v3819_v14  ;;  %v4666_v13 = vld [vmem:[%s11945_s0 + $0x38] sm:$0xff]  ;;  %v4681_v14 = vld [vmem:[%s11945_s0 + $0xb0] sm:$0xff] }
 0x932   : > { %v3821_v17 = vpop.f32.mrf.mxu1  ;;  %v3864_v18 = vpop.f32.mrf.mxu0 }
 0x933   : > { %v3863_v19 = vadd.f32 %v3862_v15, %v3821_v17  ;;  %v4665_v15 = vld [vmem:[%s11945_s0 + $0x30] sm:$0xff]  ;;  %v4664_v17 = vld [vmem:[%s11945_s0 + $0x28] sm:$0xff]  ;;  %v4679_v18 = vld [vmem:[%s11945_s0 + $0xa0] sm:$0xff] }
 0x934   : > { %v3823_v20 = vpop.f32.mrf.mxu1  ;;  %v3865_v22 = vpop.f32.mrf.mxu0 }
 0x935   : > { %v4663_v20 = vld [vmem:[%s11945_s0 + $0x20] sm:$0xff] }
 0x936   : > { %v3824_v24 = vpop.f32.mrf.mxu1  ;;  %v4765_v22 = vld [vmem:[%s11942_s28 + $0x20] sm:$0xff] }
 0x937   : > { %v4678_v24 = vld [vmem:[%s11945_s0 + $0x98] sm:$0xff] }
 0x940   : > { %v4145_v25 = vpop.f32.mrf.mxu1 }
 0x942   : > { %v4147_v26 = vpop.f32.mrf.mxu1 }
 0x944   : > { %v4149_v27 = vpop.f32.mrf.mxu1 }
 0x945   : > { %v4764_v27 = vld [vmem:[%s11942_s28 + $0x18] sm:$0xff] }
 0x946   : > { %v4150_v28 = vpop.f32.mrf.mxu1 }
 0x947   : > { %v4677_v28 = vld [vmem:[%s11945_s0 + $0x90] sm:$0xff] }
 0x96e   : > { %v4104_v29 = vpop.f32.mrf.mxu0 }
 0x96f   : > { %v4105_v30 = vadd.f32 %v4104_v29, %v3861_v16  ;;  %v4680_v16 = vld [vmem:[%s11945_s0 + $0xa8] sm:$0xff]  ;;  %v4779_v29 = vld [vmem:[%s11942_s28 + $0x90] sm:$0xff] }
 0x970   : > { %v4106_v31 = vpop.f32.mrf.mxu0 }
 0x971   : > { %v4146_v32 = vadd.f32 %v4145_v25, %v4105_v30  ;;  %v4107_v33 = vadd.f32 %v4106_v31, %v3863_v19  ;;  %v4781_v19 = vld [vmem:[%s11942_s28 + $0xa0] sm:$0xff]  ;;  %v4780_v25 = vld [vmem:[%s11942_s28 + $0x98] sm:$0xff]  ;;  %v4661_v30 = vld [vmem:[%s11945_s0 + $0x10] sm:$0xff] }
 0x972   : > { %v4108_v23 = vpop.f32.mrf.mxu0  ;;  %9574 = vmatprep.subr.mxu1 %v4781_v19  ;;  %v4763_v31 = vld [vmem:[%s11942_s28 + $0x10] sm:$0xff] }
 0x973   : > { %v4148_v34 = vadd.f32 %v4147_v26, %v4107_v33  ;;  %9575 = vmatpush3.msra.mxu1 %v4765_v22  ;;  %v4662_v26 = vld [vmem:[%s11945_s0 + $0x18] sm:$0xff]  ;;  %v4778_v33 = vld [vmem:[%s11942_s28 + $0x88] sm:$0xff] }
 0x974   : > { %v4109_v35 = vpop.f32.mrf.mxu0  ;;  %9576 = vmatprep.subr.mxu1 %v4780_v25  ;;  %v4660_v23 = vld [vmem:[%s11945_s0 + $0x8] sm:$0xff]  ;;  %v10302_v19 = vld [vmem:[%s11947_s15 + $0x170] ss:$8 sps:$4 sm:$0xff]  }
 0x975   : > { %9577 = vmatpush3.msra.mxu1 %v4764_v27  ;;  %v4675_v35 = vld [vmem:[%s11945_s0 + $0x80] sm:$0xff]  ;;  %v10305_v22 = vld [vmem:[%s11947_s15 + $0x90] ss:$8 sps:$4 sm:$0xff]  }
 0x976   : > { %9578 = vmatprep.subr.mxu1 %v4779_v29  ;;  %v10310_v25 = vld [vmem:[%s11947_s15 + $0x164] ss:$8 sps:$4 sm:$0xff]   ;;  %v10308_v27 = vld [vmem:[%s11947_s15 + $0x160] ss:$8 sps:$4 sm:$0xff]  }
 0x977   : > { %9579 = vmatpush3.msra.mxu1 %v4763_v31  ;;  %v10316_v31 = vld [vmem:[%s11947_s15 + $0x154] ss:$8 sps:$4 sm:$0xff]  }
 0x978   : > { %9580 = vmatprep.subr.mxu1 %v4778_v33 }
 0x97e   : > { %v4482_v36 = vpop.f32.mrf.mxu0 }
 0x980   : > { %v4441_v38 = vpop.f32.mrf.mxu1  ;;  %v4484_v39 = vpop.f32.mrf.mxu0 }
 0x981   : > { %v4483_v40 = vadd.f32 %v4482_v36, %v4441_v38  ;;  %v4777_v36 = vld [vmem:[%s11942_s28 + $0x80] sm:$0xff] }
 0x982   : > { %v4443_v42 = vpop.f32.mrf.mxu1  ;;  %v4486_v43 = vpop.f32.mrf.mxu0  ;;  %v4761_v38 = vld [vmem:[%s11942_s28] sm:$0xff] }
 0x983   : > { %v4489_v44 = vadd.f32 %v4483_v40, %v4146_v32  ;;  %v4485_v45 = vadd.f32 %v4484_v39, %v4443_v42  ;;  %v4676_v32 = vld [vmem:[%s11945_s0 + $0x88] sm:$0xff] }
 0x984   : > { %v4445_v47 = vpop.f32.mrf.mxu1  ;;  %v4487_v48 = vpop.f32.mrf.mxu0 }
 0x985   : > { %v4490_v49 = vadd.f32 %v4485_v45, %v4148_v34  ;;  %v4503_v50 = vadd.f32 %v4496_v41, %v4489_v44  ;;  %v4762_v34 = vld [vmem:[%s11942_s28 + $0x8] sm:$0xff]  ;;  %v10248_v45 = vld [vmem:[%s11947_s15 + $0x70] ss:$8 sps:$4 sm:$0xff]  }
 0x986   : > { %v4446_v51 = vpop.f32.mrf.mxu1  ;;  %9581 = vmatpush3.msra.mxu1 %v4762_v34  ;;  %v10253_v47 = vld [vmem:[%s11947_s15 + $0x64] ss:$8 sps:$4 sm:$0xff]   ;;  %v10254_v48 = vld [vmem:[%s11947_s15 + $0x130] ss:$8 sps:$4 sm:$0xff]  }
 0x987   : > { %v4504_v53 = vadd.f32 %v4500_v46, %v4490_v49  ;;  %v4505_v56 = vmax.f32 %v4503_v50, 0.0  ;;  %9582 = vmatprep.subr.mxu1 %v4777_v36  ;;  %v10250_v46 = vld [vmem:[%s11947_s15 + $0x74] ss:$8 sps:$4 sm:$0xff]   ;;  %v10251_v50 = vld [vmem:[%s11947_s15 + $0x60] ss:$8 sps:$4 sm:$0xff]  }
 0x988   : > { %9583 = vmatpush3.msra.mxu1 %v4761_v38  ;;  %v10256_v49 = vld [vmem:[%s11947_s15 + $0x134] ss:$8 sps:$4 sm:$0xff]   ;;  %v10262_v51 = vld [vmem:[%s11947_s15 + $0x124] ss:$8 sps:$4 sm:$0xff]   ;;  %v10317_v38 = vld [vmem:[%s11947_s15 + $0x140] ss:$8 sps:$4 sm:$0xff]  }
 0x989   : > { %v4506_v54 = vmax.f32 %v4504_v53, 0.0  ;;  %5237 = vmatprep.subr.bf16.mxu1 %v10250_v46  ;;  %v10259_v53 = vld [vmem:[%s11947_s15 + $0x54] ss:$8 sps:$4 sm:$0xff]  }
 0x98b   : > { %4541 = vmatprep.subr.mxu0 %v4506_v54 }
 0x98c   : > { %4542 = vmatpush1.msra.mxu0 %v4505_v56 }
 0x98d   : > { %8771 = vmatmul.mubr.msk.f32.vlgmr.msra.gmra.mxu0 %vm1950_vm13, %v4507_v57  ;;  %4616 = vmatprep.subr.mxu0 %v4506_v54  ;;  %v10260_v54 = vld [vmem:[%s11947_s15 + $0x120] ss:$8 sps:$4 sm:$0xff]   ;;  %v10257_v57 = vld [vmem:[%s11947_s15 + $0x50] ss:$8 sps:$4 sm:$0xff]  }
 0x98e   : > { %4617 = vmatpush1.msra.mxu0 %v4505_v56  ;;  %4650 = vmatprep.mubr.f32.mxu0 %v11425_v52  ;;  %v10268_v56 = vld [vmem:[%s11947_s15 + $0x114] ss:$8 sps:$4 sm:$0xff]   ;;  %v10284_v52 = vld [vmem:[%s11947_s15 + $0xe0] ss:$8 sps:$4 sm:$0xff]  }
 0x98f   : > { %9517 = vmatprep.subr.mxu0 %v4690_v58  ;;  %v10265_v58 = vld [vmem:[%s11947_s15 + $0x44] ss:$8 sps:$4 sm:$0xff]  }
 0x991   : > { %8772 = vmatmul.mubr.msk.f32.vlgmr.msra.gmra.mxu0 %vm1950_vm13, %v4582_v59  ;;  %v10266_v59 = vld [vmem:[%s11947_s15 + $0x110] ss:$8 sps:$4 sm:$0xff]   ;;  %vm4874_vm13 = vcmask 258049  }
 0x992   : > { %9518 = vmatpush3.msra.mxu0 %v4674_v61  ;;  %v10274_v61 = vld [vmem:[%s11947_s15 + $0x104] ss:$8 sps:$4 sm:$0xff]  }
 0x993   : > { %9519 = vmatprep.subr.mxu0 %v4689_v62  ;;  %v10263_v62 = vld [vmem:[%s11947_s15 + $0x40] ss:$8 sps:$4 sm:$0xff]  }
 0x994   : > { %9520 = vmatpush3.msra.mxu0 %v4673_v63  ;;  %v10271_v63 = vld [vmem:[%s11947_s15 + $0x34] ss:$8 sps:$4 sm:$0xff]  }
 0x995   : > { %9521 = vmatprep.subr.mxu0 %v4688_v0  ;;  %v10272_v0 = vld [vmem:[%s11947_s15 + $0x100] ss:$8 sps:$4 sm:$0xff]  }
 0x996   : > { %9522 = vmatpush3.msra.mxu0 %v4672_v1  ;;  %v10280_v1 = vld [vmem:[%s11947_s15 + $0xf4] ss:$8 sps:$4 sm:$0xff]  }
 0x997   : > { %9523 = vmatprep.subr.mxu0 %v4687_v2  ;;  %v10269_v2 = vld [vmem:[%s11947_s15 + $0x30] ss:$8 sps:$4 sm:$0xff]  }
 0x998   : > { %9524 = vmatpush3.msra.mxu0 %v4671_v3  ;;  %v10277_v3 = vld [vmem:[%s11947_s15 + $0x24] ss:$8 sps:$4 sm:$0xff]  }
 0x999   : > { %9525 = vmatprep.subr.mxu0 %v4686_v4  ;;  %v10278_v4 = vld [vmem:[%s11947_s15 + $0xf0] ss:$8 sps:$4 sm:$0xff]  }
 0x99a   : > { %9526 = vmatpush3.msra.mxu0 %v4670_v5  ;;  %v10286_v5 = vld [vmem:[%s11947_s15 + $0xe4] ss:$8 sps:$4 sm:$0xff]  }
 0x99b   : > { %9527 = vmatprep.subr.mxu0 %v4685_v12  ;;  %v10275_v12 = vld [vmem:[%s11947_s15 + $0x20] ss:$8 sps:$4 sm:$0xff]  }
 0x99c   : > { %9528 = vmatpush3.msra.mxu0 %v4669_v6  ;;  %v10283_v6 = vld [vmem:[%s11947_s15 + $0x14] ss:$8 sps:$4 sm:$0xff]  }
 0x99d   : > { %9529 = vmatprep.subr.mxu0 %v4684_v7  ;;  %v10292_v7 = vld [vmem:[%s11947_s15 + $0xd4] ss:$8 sps:$4 sm:$0xff]  }
 0x99e   : > { %9530 = vmatpush3.msra.mxu0 %v4668_v8  ;;  %v10281_v8 = vld [vmem:[%s11947_s15 + $0x10] ss:$8 sps:$4 sm:$0xff]  }
 0x99f   : > { %9531 = vmatprep.subr.mxu0 %v4683_v9  ;;  %v10289_v9 = vld [vmem:[%s11947_s15 + $0x4] ss:$8 sps:$4 sm:$0xff]  }
 0x9a0   : > { %9532 = vmatpush3.msra.mxu0 %v4667_v10  ;;  %v10290_v10 = vld [vmem:[%s11947_s15 + $0xd0] ss:$8 sps:$4 sm:$0xff]  }
 0x9a1   : > { %9533 = vmatprep.subr.mxu0 %v4682_v11  ;;  %v10298_v11 = vld [vmem:[%s11947_s15 + $0xc4] ss:$8 sps:$4 sm:$0xff]  }
 0x9a2   : > { %9534 = vmatpush3.msra.mxu0 %v4666_v13  ;;  %v10287_v13 = vld [vmem:[%s11947_s15] ss:$8 sps:$4 sm:$0xff]  }
 0x9a3   : > { %9535 = vmatprep.subr.mxu0 %v4681_v14  ;;  %v10295_v14 = vld [vmem:[%s11947_s15 + $0xb4] ss:$8 sps:$4 sm:$0xff]  }
 0x9a4   : > { %9536 = vmatpush3.msra.mxu0 %v4665_v15  ;;  %v10296_v15 = vld [vmem:[%s11947_s15 + $0xc0] ss:$8 sps:$4 sm:$0xff]  }
 0x9a5   : > { %9537 = vmatprep.subr.mxu0 %v4680_v16  ;;  %v10293_v16 = vld [vmem:[%s11947_s15 + $0xb0] ss:$8 sps:$4 sm:$0xff]  }
 0x9a6   : > { %9538 = vmatpush3.msra.mxu0 %v4664_v17  ;;  %v10301_v17 = vld [vmem:[%s11947_s15 + $0xa4] ss:$8 sps:$4 sm:$0xff]  }
 0x9a7   : > { %9539 = vmatprep.subr.mxu0 %v4679_v18  ;;  %v10299_v18 = vld [vmem:[%s11947_s15 + $0xa0] ss:$8 sps:$4 sm:$0xff]  }
 0x9a8   : > { %9540 = vmatpush3.msra.mxu0 %v4663_v20  ;;  %v10304_v20 = vld [vmem:[%s11947_s15 + $0x174] ss:$8 sps:$4 sm:$0xff]  }
 0x9a9   : > { %9541 = vmatprep.subr.mxu0 %v4678_v24  ;;  %v10307_v24 = vld [vmem:[%s11947_s15 + $0x94] ss:$8 sps:$4 sm:$0xff]  }
 0x9aa   : > { %9542 = vmatpush3.msra.mxu0 %v4662_v26  ;;  %v10313_v26 = vld [vmem:[%s11947_s15 + $0x84] ss:$8 sps:$4 sm:$0xff]  }
 0x9ab   : > { %9543 = vmatprep.subr.mxu0 %v4677_v28 }
 0x9ac   : > { %9544 = vmatpush3.msra.mxu0 %v4661_v30  ;;  %v10311_v30 = vld [vmem:[%s11947_s15 + $0x80] ss:$8 sps:$4 sm:$0xff]  }
 0x9ad   : > { %9545 = vmatprep.subr.mxu0 %v4676_v32 }
 0x9ae   : > { %9546 = vmatpush3.msra.mxu0 %v4660_v23 }
 0x9af   : > { %9547 = vmatprep.subr.mxu0 %v4675_v35  ;;  %v10314_v35 = vld [vmem:[%s11947_s15 + $0x150] ss:$8 sps:$4 sm:$0xff]  }
 0x9b0   : > { %9548 = vmatpush3.msra.mxu0 %v4659_v37 }
 0x9b1   : > { %5073 = vmatprep.subr.bf16.mxu0 %v10256_v49 }
 0xa4d   : > { %v4577_v39 = vpop.f32.mrf.mxu0 }
 0xa4f   : > { %v4579_v40 = vpop.f32.mrf.mxu0 }
 0xa51   : > { %v4652_v41 = vpop.f32.mrf.mxu0 }
 0xa52   : > { %v4657_v44 = vmax.f32 %v4577_v39, %v4652_v41  ;;  %v10319_v39 = vld [vmem:[%s11947_s15 + $0x144] ss:$8 sps:$4 sm:$0xff]  }
 0xa53   : > { %v4654_v42 = vpop.f32.mrf.mxu0 }
 0xa54   : > { %v4658_v43 = vmax.f32 %v4579_v40, %v4654_v42  ;;  %v10322_v40 = vld [vmem:[%s11947_s15 + $0x1f4] ss:$8 sps:$4 sm:$0xff]  }
 0xa56   : > { %4755 = vmatprep.mubr.f32.mxu0 %v4658_v43  ;;  %4857 = vmatprep.mubr.f32.mxu1 %v4658_v43 }
 0xa57   : > { %4756 = vmatmul.mubr.f32.vlgmr.msra.gmra.mxu0 %v4657_v44  ;;  %4858 = vmatmul.mubr.f32.vlgmr.msra.gmra.mxu1 %v4657_v44 }
 0xa58   : > { %5238 = vmatpush1.bf16.msra.mxu1 %v10248_v45  ;;  %5074 = vmatpush1.bf16.msra.mxu0 %v10254_v48 }
 0xa59   : > { %5239 = vmatprep.subr.bf16.mxu1 %v10253_v47  ;;  %5075 = vmatprep.subr.bf16.mxu0 %v10262_v51 }
 0xa5c   : > { %5240 = vmatpush1.bf16.msra.mxu1 %v10251_v50  ;;  %5076 = vmatpush1.bf16.msra.mxu0 %v10260_v54 }
 0xa5d   : > { %5241 = vmatprep.subr.bf16.mxu1 %v10259_v53  ;;  %5077 = vmatprep.subr.bf16.mxu0 %v10268_v56 }
 0xa60   : > { %5242 = vmatpush1.bf16.msra.mxu1 %v10257_v57  ;;  %5078 = vmatpush1.bf16.msra.mxu0 %v10266_v59 }
 0xa61   : > { %5243 = vmatprep.subr.bf16.mxu1 %v10265_v58  ;;  %5079 = vmatprep.subr.bf16.mxu0 %v10274_v61 }
 0xa64   : > { %5244 = vmatpush1.bf16.msra.mxu1 %v10263_v62  ;;  %5080 = vmatpush1.bf16.msra.mxu0 %v10272_v0  ;;  %v10320_v62 = vld [vmem:[%s11947_s15 + $0x1f0] ss:$8 sps:$4 sm:$0xff]   ;;  %v10325_v0 = vld [vmem:[%s11947_s15 + $0x1e4] ss:$8 sps:$4 sm:$0xff]  }
 0xa65   : > { %5245 = vmatprep.subr.bf16.mxu1 %v10271_v63  ;;  %5081 = vmatprep.subr.bf16.mxu0 %v10280_v1 }
 0xa68   : > { %5246 = vmatpush1.bf16.msra.mxu1 %v10269_v2  ;;  %5082 = vmatpush1.bf16.msra.mxu0 %v10278_v4  ;;  %v10323_v2 = vld [vmem:[%s11947_s15 + $0x1e0] ss:$8 sps:$4 sm:$0xff]   ;;  %v10326_v4 = vld [vmem:[%s11947_s15 + $0x1d0] ss:$8 sps:$4 sm:$0xff]  }
 0xa69   : > { %5247 = vmatprep.subr.bf16.mxu1 %v10277_v3  ;;  %5083 = vmatprep.subr.bf16.mxu0 %v10286_v5  ;;  %v10328_v3 = vld [vmem:[%s11947_s15 + $0x1d4] ss:$8 sps:$4 sm:$0xff]   ;;  %v10331_v5 = vld [vmem:[%s11947_s15 + $0x1c4] ss:$8 sps:$4 sm:$0xff]  }
 0xa6c   : > { %5248 = vmatpush1.bf16.msra.mxu1 %v10275_v12  ;;  %5084 = vmatpush1.bf16.msra.mxu0 %v10284_v52  ;;  %v10329_v12 = vld [vmem:[%s11947_s15 + $0x1c0] ss:$8 sps:$4 sm:$0xff]   ;;  %v10332_v52 = vld [vmem:[%s11947_s15 + $0x1b0] ss:$8 sps:$4 sm:$0xff]  }
 0xa6d   : > { %5249 = vmatprep.subr.bf16.mxu1 %v10283_v6  ;;  %5085 = vmatprep.subr.bf16.mxu0 %v10292_v7  ;;  %v10334_v6 = vld [vmem:[%s11947_s15 + $0x1b4] ss:$8 sps:$4 sm:$0xff]   ;;  %v10337_v7 = vld [vmem:[%s11947_s15 + $0x1a4] ss:$8 sps:$4 sm:$0xff]  }
 0xa70   : > { %5250 = vmatpush1.bf16.msra.mxu1 %v10281_v8  ;;  %5086 = vmatpush1.bf16.msra.mxu0 %v10290_v10  ;;  %v10335_v8 = vld [vmem:[%s11947_s15 + $0x1a0] ss:$8 sps:$4 sm:$0xff]   ;;  %v10338_v10 = vld [vmem:[%s11947_s15 + $0x190] ss:$8 sps:$4 sm:$0xff]  }
 0xa71   : > { %5251 = vmatprep.subr.bf16.mxu1 %v10289_v9  ;;  %5087 = vmatprep.subr.bf16.mxu0 %v10298_v11  ;;  %v10340_v9 = vld [vmem:[%s11947_s15 + $0x194] ss:$8 sps:$4 sm:$0xff]   ;;  %v10343_v11 = vld [vmem:[%s11947_s15 + $0x184] ss:$8 sps:$4 sm:$0xff]  }
 0xa74   : > { %5252 = vmatpush1.bf16.msra.mxu1 %v10287_v13  ;;  %5088 = vmatpush1.bf16.msra.mxu0 %v10296_v15  ;;  %v10341_v13 = vld [vmem:[%s11947_s15 + $0x180] ss:$8 sps:$4 sm:$0xff]   ;;  %v10344_v15 = vld [vmem:[%s11947_s15 + $0x230] ss:$8 sps:$4 sm:$0xff]  }
 0xa75   : > { %5261 = vmatprep.subr.bf16.mxu1 %v10295_v14  ;;  %5097 = vmatprep.subr.bf16.mxu0 %v10304_v20  ;;  %v10346_v14 = vld [vmem:[%s11947_s15 + $0x234] ss:$8 sps:$4 sm:$0xff]   ;;  %v10355_v20 = vld [vmem:[%s11947_s15 + $0x204] ss:$8 sps:$4 sm:$0xff]  }
 0xa78   : > { %5262 = vmatpush2.bf16.msra.mxu1 %v10293_v16  ;;  %5098 = vmatpush2.bf16.msra.mxu0 %v10302_v19  ;;  %v10349_v16 = vld [vmem:[%s11947_s15 + $0x224] ss:$8 sps:$4 sm:$0xff]   ;;  %v10350_v19 = vld [vmem:[%s11947_s15 + $0x210] ss:$8 sps:$4 sm:$0xff]  }
 0xa79   : > { %5263 = vmatprep.subr.bf16.mxu1 %v10301_v17  ;;  %5099 = vmatprep.subr.bf16.mxu0 %v10310_v25  ;;  %v10347_v17 = vld [vmem:[%s11947_s15 + $0x220] ss:$8 sps:$4 sm:$0xff]  }
 0xa7c   : > { %5264 = vmatpush2.bf16.msra.mxu1 %v10299_v18  ;;  %5100 = vmatpush2.bf16.msra.mxu0 %v10308_v27  ;;  %v10352_v18 = vld [vmem:[%s11947_s15 + $0x214] ss:$8 sps:$4 sm:$0xff]   ;;  %v10356_v27 = vld [vmem:[%s11948_s16 + $0x1f0] ss:$8 sps:$4 sm:$0xff]  }
 0xa7d   : > { %5265 = vmatprep.subr.bf16.mxu1 %v10307_v24  ;;  %5101 = vmatprep.subr.bf16.mxu0 %v10316_v31  ;;  %v10353_v24 = vld [vmem:[%s11947_s15 + $0x200] ss:$8 sps:$4 sm:$0xff]   ;;  %v10364_v31 = vld [vmem:[%s11948_s16 + $0x1d4] ss:$8 sps:$4 sm:$0xff]  }
 0xa80   : > { %5266 = vmatpush2.bf16.msra.mxu1 %v10305_v22  ;;  %5102 = vmatpush2.bf16.msra.mxu0 %v10314_v35  ;;  %v10367_v35 = vld [vmem:[%s11948_s16 + $0x1c4] ss:$8 sps:$4 sm:$0xff]  }
 0xa81   : > { %5267 = vmatprep.subr.bf16.mxu1 %v10313_v26  ;;  %5103 = vmatprep.subr.bf16.mxu0 %v10319_v39  ;;  %v10370_v39 = vld [vmem:[%s11948_s16 + $0x1b4] ss:$8 sps:$4 sm:$0xff]  }
 0xa84   : > { %5268 = vmatpush2.bf16.msra.mxu1 %v10311_v30  ;;  %5104 = vmatpush2.bf16.msra.mxu0 %v10317_v38  ;;  %v10359_v30 = vld [vmem:[%s11948_s16 + $0x1e0] ss:$8 sps:$4 sm:$0xff]  }
 0xa85   : > { %5433 = vmatprep.subr.bf16.mxu0 %v10322_v40  ;;  %v10365_v38 = vld [vmem:[%s11948_s16 + $0x1c0] ss:$8 sps:$4 sm:$0xff]   ;;  %v10392_v40 = vld [vmem:[%s11948_s16 + $0x2d0] ss:$8 sps:$4 sm:$0xff]  }
 0xb17   : > { %v9549_v28 = vpop.f32.mrf.mxu0  ;;  %v9584_v29 = vpop.f32.mrf.mxu1 }
 0xb19   : > { %v9550_v32 = vpop.f32.mrf.mxu0  ;;  %v9585_v33 = vpop.f32.mrf.mxu1 }
 0xb1a   : > { %v9551_v23 = vadd.f32 %v9550_v32, %v9549_v28  ;;  %v9586_v34 = vadd.f32 %v9585_v33, %v9584_v29  ;;  %v10358_v28 = vld [vmem:[%s11948_s16 + $0x1f4] ss:$8 sps:$4 sm:$0xff]   ;;  %v10361_v29 = vld [vmem:[%s11948_s16 + $0x1e4] ss:$8 sps:$4 sm:$0xff]   ;;  %v10380_v32 = vld [vmem:[%s11948_s16 + $0x2f0] ss:$8 sps:$4 sm:$0xff]  }
 0xb1b   : > { %5888 = vmatprep.subr.bf16.mxu1 %v10358_v28  ;;  %v10382_v33 = vld [vmem:[%s11948_s16 + $0x2f4] ss:$8 sps:$4 sm:$0xff]   ;;  %v10424_v28 = vld [vmem:[%s11948_s16 + $0x284] ss:$8 sps:$4 sm:$0xff]  }
 0xb1c   : > { %v4863_v36 = vmax.f32 %v9551_v23, %v9586_v34  ;;  %v10362_v23 = vld [vmem:[%s11948_s16 + $0x1d0] ss:$8 sps:$4 sm:$0xff]   ;;  %v10388_v34 = vld [vmem:[%s11948_s16 + $0x2e4] ss:$8 sps:$4 sm:$0xff]  }
 0xb1e   : > { %v4868_v37 = vrot.slane %v4863_v36, 7  ;;  %v10386_v36 = vld [vmem:[%s11948_s16 + $0x2e0] ss:$8 sps:$4 sm:$0xff]  }
 0xb20   : > { %4869 = vrot.lane.b32.xlu0 %v4868_v37, %s10724_s26  ;;  %v10394_v37 = vld [vmem:[%s11948_s16 + $0x2d4] ss:$8 sps:$4 sm:$0xff]   ;;  %s11950_s26 = sld [smem:[#allocation20_spill]] }
 0xb92   : > { %v4870_v41 = vpop.permute.xlu0 %4869 }
 0xb93   : > { %4873 = vst.msk [vmem:[#allocation6] sm:$0x1e] %vm4872_vm12, %v4870_v41 }
 0xb94   : > { %4875 = vst.msk [vmem:[#allocation6 + $0x8] sm:$0x1e] %vm4874_vm13, %v4870_v41  ;;  %v10400_v41 = vld [vmem:[%s11948_s16 + $0x2c4] ss:$8 sps:$4 sm:$0xff]  }
 0xb9a   : > { %v4876_v43 = vld [vmem:[#allocation6] sm:$0xf] }
 0xb9b   : > { %v4877_v42 = vld [vmem:[#allocation6 + $0x8] sm:$0xf]  ;;  %v4882_v46 = vpack.c.bf16 %v4876_v43, %v4876_v43  ;;  %v4878_v48 = vld [vmem:[#allocation6] sm:$0x1e] }
 0xb9c   : > { %v4879_v44 = vld [vmem:[#allocation6 + $0x8] sm:$0x1e]  ;;  %v4883_v45 = vpack.c.bf16 %v4877_v42, %v4877_v42  ;;  %v4908_v49 = vpack.c.bf16 %v4878_v48, %v4878_v48  ;;  %v4880_v22 = vld [vmem:[#allocation6] sm:$0x3c] }
 0xb9d   : > { %v4909_v47 = vpack.c.bf16 %v4879_v44, %v4879_v44  ;;  %v4881_v50 = vld [vmem:[#allocation6 + $0x8] sm:$0x3c]  ;;  %v5278_v25 = vpack.c.bf16 %v4880_v22, %v4880_v22  ;;  %v10373_v43 = vld [vmem:[%s11948_s16 + $0x1a4] ss:$8 sps:$4 sm:$0xff]   ;;  %v10398_v44 = vld [vmem:[%s11948_s16 + $0x2c0] ss:$8 sps:$4 sm:$0xff]  }
 0xb9e   : > { %8846 = vmatprep.mubr.msk.bf16.mxu1 %vm3429_vm6, %v4883_v45  ;;  %v4938_v53 = vshll.u32 %v4908_v49, 16  ;;  %v5279_v57 = vpack.c.bf16 %v4881_v50, %v4881_v50  ;;  %v4936_v58 = vshrl.u32 %v4908_v49, 16  ;;  %v10368_v42 = vld [vmem:[%s11948_s16 + $0x1b0] ss:$8 sps:$4 sm:$0xff]   ;;  %v10371_v45 = vld [vmem:[%s11948_s16 + $0x1a0] ss:$8 sps:$4 sm:$0xff]  }
 0xb9f   : > { %v4945_v51 = vshll.u32 %v4909_v47, 16  ;;  %5270 = vmatmul.mubr.bf16.vlgmr.msra.gmra.mxu1 %v4882_v46  ;;  %v4943_v54 = vshrl.u32 %v4909_v47, 16  ;;  %v5307_v26 = vrot.slane %v5278_v25, 1  ;;  %v10376_v46 = vld [vmem:[%s11948_s16 + $0x194] ss:$8 sps:$4 sm:$0xff]  }
 0xba0   : > { %v4940_v59 = vrot.slane %v4938_v53, 1  ;;  %v5308_v1 = vrot.slane %v5279_v57, 1  ;;  %5889 = vmatpush1.bf16.msra.mxu1 %v10356_v27  ;;  %v10374_v47 = vld [vmem:[%s11948_s16 + $0x190] ss:$8 sps:$4 sm:$0xff]   ;;  %v10379_v48 = vld [vmem:[%s11948_s16 + $0x184] ss:$8 sps:$4 sm:$0xff]  }
 0xba1   : > { %v4947_v56 = vrot.slane %v4945_v51, 1  ;;  %5890 = vmatprep.subr.bf16.mxu1 %v10361_v29  ;;  %v10377_v49 = vld [vmem:[%s11948_s16 + $0x180] ss:$8 sps:$4 sm:$0xff]   ;;  %v10385_v50 = vld [vmem:[%s11948_s16 + $0x274] ss:$8 sps:$4 sm:$0xff]  }
 0xba2   : > { %v4941_v63 = vor.u32 %v4940_v59, %v4936_v58  ;;  %v10383_v51 = vld [vmem:[%s11948_s16 + $0x270] ss:$8 sps:$4 sm:$0xff]   ;;  %v10391_v53 = vld [vmem:[%s11948_s16 + $0x264] ss:$8 sps:$4 sm:$0xff]   ;;  %v10401_v59 = vld [vmem:[%s11948_s16 + $0x240] ss:$8 sps:$4 sm:$0xff]  }
 0xba3   : > { %v4948_v61 = vor.u32 %v4947_v56, %v4943_v54  ;;  %v10389_v54 = vld [vmem:[%s11948_s16 + $0x260] ss:$8 sps:$4 sm:$0xff]   ;;  %v10397_v56 = vld [vmem:[%s11948_s16 + $0x254] ss:$8 sps:$4 sm:$0xff]   ;;  %v10395_v57 = vld [vmem:[%s11948_s16 + $0x250] ss:$8 sps:$4 sm:$0xff]  }
 0xba4   : > { %5891 = vmatpush1.bf16.msra.mxu1 %v10359_v30  ;;  %v10403_v58 = vld [vmem:[%s11948_s16 + $0x244] ss:$8 sps:$4 sm:$0xff]   ;;  %v10421_v22 = vld [vmem:[%s11948_s16 + $0x214] ss:$8 sps:$4 sm:$0xff]  }
 0xba5   : > { %8821 = vmatprep.mubr.msk.bf16.mxu0 %vm3429_vm6, %v4948_v61  ;;  %5892 = vmatprep.subr.bf16.mxu1 %v10364_v31  ;;  %v10419_v31 = vld [vmem:[%s11948_s16 + $0x210] ss:$8 sps:$4 sm:$0xff]  }
 0xba6   : > { %5106 = vmatmul.mubr.bf16.vlgmr.msra.gmra.mxu0 %v4941_v63 }
 0xba7   : > { %5434 = vmatpush1.bf16.msra.mxu0 %v10320_v62  ;;  %8895 = vmatprep.mubr.msk.bf16.mxu0 %vm3429_vm6, %v5308_v1 }
 0xba8   : > { %5435 = vmatprep.subr.bf16.mxu0 %v10325_v0  ;;  %5893 = vmatpush1.bf16.msra.mxu1 %v10362_v23 }
 0xba9   : > { %5894 = vmatprep.subr.bf16.mxu1 %v10367_v35  ;;  %v10422_v35 = vld [vmem:[%s11948_s16 + $0x280] ss:$8 sps:$4 sm:$0xff]  }
 0xbab   : > { %5436 = vmatpush1.bf16.msra.mxu0 %v10323_v2 }
 0xbac   : > { %5437 = vmatprep.subr.bf16.mxu0 %v10328_v3  ;;  %5895 = vmatpush1.bf16.msra.mxu1 %v10365_v38  ;;  %v10425_v38 = vld [vmem:[%s11948_s16 + $0x200] ss:$8 sps:$4 sm:$0xff]  }
 0xbad   : > { %5896 = vmatprep.subr.bf16.mxu1 %v10370_v39  ;;  %v10433_v39 = vld [vmem:[%s11948_s16 + $0x174] ss:$8 sps:$4 sm:$0xff]  }
 0xbaf   : > { %5438 = vmatpush1.bf16.msra.mxu0 %v10326_v4 }
 0xbb0   : > { %5439 = vmatprep.subr.bf16.mxu0 %v10331_v5  ;;  %5897 = vmatpush1.bf16.msra.mxu1 %v10368_v42  ;;  %v5476_v5 = vld [vmem:[%s11949_s18] sm:$0x3]  ;;  %s11954_s18 = sld [smem:[#allocation24_spill]] }
 0xbb1   : > { %5898 = vmatprep.subr.bf16.mxu1 %v10373_v43 }
 0xbb3   : > { %5440 = vmatpush1.bf16.msra.mxu0 %v10329_v12  ;;  %v10404_v12 = vld [vmem:[%s11948_s16 + $0x2b0] ss:$8 sps:$4 sm:$0xff]  }
 0xbb4   : > { %5441 = vmatprep.subr.bf16.mxu0 %v10334_v6  ;;  %5899 = vmatpush1.bf16.msra.mxu1 %v10371_v45  ;;  %v10406_v6 = vld [vmem:[%s11948_s16 + $0x2b4] ss:$8 sps:$4 sm:$0xff]  }
 0xbb5   : > { %5900 = vmatprep.subr.bf16.mxu1 %v10376_v46 }
 0xbb7   : > { %5442 = vmatpush1.bf16.msra.mxu0 %v10332_v52  ;;  %v10409_v52 = vld [vmem:[%s11948_s16 + $0x234] ss:$8 sps:$4 sm:$0xff]  }
 0xbb8   : > { %5443 = vmatprep.subr.bf16.mxu0 %v10337_v7  ;;  %5901 = vmatpush1.bf16.msra.mxu1 %v10374_v47 }
 0xbb9   : > { %5902 = vmatprep.subr.bf16.mxu1 %v10379_v48 }
 0xbbb   : > { %5444 = vmatpush1.bf16.msra.mxu0 %v10335_v8  ;;  %v5481_v8 = vrot.slane %v5476_v5, %v11017_v55 }
 0xbbc   : > { %5445 = vmatprep.subr.bf16.mxu0 %v10340_v9  ;;  %5903 = vmatpush1.bf16.msra.mxu1 %v10377_v49  ;;  %v10407_v9 = vld [vmem:[%s11948_s16 + $0x230] ss:$8 sps:$4 sm:$0xff]  }
 0xbbd   : > { %5904 = vmatprep.subr.bf16.mxu1 %v10385_v50 }
 0xbbf   : > { %5446 = vmatpush1.bf16.msra.mxu0 %v10338_v10  ;;  %v10410_v10 = vld [vmem:[%s11948_s16 + $0x2a0] ss:$8 sps:$4 sm:$0xff]  }
 0xbc0   : > { %5447 = vmatprep.subr.bf16.mxu0 %v10343_v11  ;;  %5905 = vmatpush2.bf16.msra.mxu1 %v10383_v51  ;;  %v10412_v11 = vld [vmem:[%s11948_s16 + $0x2a4] ss:$8 sps:$4 sm:$0xff]  }
 0xbc1   : > { %5906 = vmatprep.subr.bf16.mxu1 %v10391_v53 }
 0xbc3   : > { %5448 = vmatpush1.bf16.msra.mxu0 %v10341_v13 }
 0xbc4   : > { %5457 = vmatprep.subr.bf16.mxu0 %v10346_v14  ;;  %5907 = vmatpush2.bf16.msra.mxu1 %v10389_v54  ;;  %v10415_v14 = vld [vmem:[%s11948_s16 + $0x224] ss:$8 sps:$4 sm:$0xff]  }
 0xbc5   : > { %5908 = vmatprep.subr.bf16.mxu1 %v10397_v56 }
 0xbc7   : > { %5458 = vmatpush2.bf16.msra.mxu0 %v10344_v15 }
 0xbc8   : > { %5459 = vmatprep.subr.bf16.mxu0 %v10349_v16  ;;  %5909 = vmatpush2.bf16.msra.mxu1 %v10395_v57  ;;  %v10428_v57 = vld [vmem:[%s11948_s16 + $0x70] ss:$8 sps:$4 sm:$0xff]  }
 0xbc9   : > { %5910 = vmatprep.subr.bf16.mxu1 %v10403_v58 }
 0xbcb   : > { %5460 = vmatpush2.bf16.msra.mxu0 %v10347_v17  ;;  %v5485_v17 = vrot.slane %v5476_v5, %v11020_v60  ;;  %v10439_v5 = vld [vmem:[%s11948_s16 + $0x164] ss:$8 sps:$4 sm:$0xff]  }
 0xbcc   : > { %5461 = vmatprep.subr.bf16.mxu0 %v10352_v18  ;;  %5911 = vmatpush2.bf16.msra.mxu1 %v10401_v59  ;;  %v10413_v18 = vld [vmem:[%s11948_s16 + $0x220] ss:$8 sps:$4 sm:$0xff]  }
 0xbcd   : > { %5912 = vmatprep.subr.bf16.mxu1 %v10409_v52  ;;  %v10437_v52 = vld [vmem:[%s11948_s16 + $0x160] ss:$8 sps:$4 sm:$0xff]  }
 0xbcf   : > { %5462 = vmatpush2.bf16.msra.mxu0 %v10350_v19  ;;  %v10418_v19 = vld [vmem:[%s11948_s16 + $0x294] ss:$8 sps:$4 sm:$0xff]  }
 0xbd0   : > { %5463 = vmatprep.subr.bf16.mxu0 %v10355_v20  ;;  %5913 = vmatpush2.bf16.msra.mxu1 %v10407_v9  ;;  %v10448_v9 = vld [vmem:[%s11948_s16 + $0x44] ss:$8 sps:$4 sm:$0xff]  }
 0xbd1   : > { %5914 = vmatprep.subr.bf16.mxu1 %v10415_v14  ;;  %v10454_v14 = vld [vmem:[%s11948_s16 + $0x34] ss:$8 sps:$4 sm:$0xff]  }
 0xbd3   : > { %5464 = vmatpush2.bf16.msra.mxu0 %v10353_v24 }
 0xbd4   : > { %5929 = vmatprep.subr.bf16.mxu0 %v10382_v33  ;;  %5915 = vmatpush2.bf16.msra.mxu1 %v10413_v18  ;;  %v10427_v33 = vld [vmem:[%s11948_s16 + $0x204] ss:$8 sps:$4 sm:$0xff]  }
 0xbd5   : > { %5916 = vmatprep.subr.bf16.mxu1 %v10421_v22  ;;  %v10460_v18 = vld [vmem:[%s11948_s16 + $0x24] ss:$8 sps:$4 sm:$0xff]   ;;  %v10458_v22 = vld [vmem:[%s11948_s16 + $0x20] ss:$8 sps:$4 sm:$0xff]  }
 0xbd6   : > { %5466 = vmatmul.mubr.bf16.vlgmr.msra.gmra.mxu0 %v5307_v26  ;;  %v10416_v26 = vld [vmem:[%s11948_s16 + $0x290] ss:$8 sps:$4 sm:$0xff]  }
 0xbd7   : > { %5961 = vmatprep.mubr.bf16.mxu0 %v10721_v21  ;;  %5930 = vmatpush1.bf16.msra.mxu0 %v10380_v32 }
 0xbd8   : > { %5931 = vmatprep.subr.bf16.mxu0 %v10388_v34  ;;  %5917 = vmatpush2.bf16.msra.mxu1 %v10419_v31  ;;  %v10470_v31 = vld [vmem:[%s11948_s16] ss:$8 sps:$4 sm:$0xff]  }
 0xbd9   : > { %5918 = vmatprep.subr.bf16.mxu1 %v10427_v33 }
 0xbdb   : > { %5932 = vmatpush1.bf16.msra.mxu0 %v10386_v36  ;;  %v10430_v36 = vld [vmem:[%s11948_s16 + $0x74] ss:$8 sps:$4 sm:$0xff]  }
 0xbdc   : > { %5933 = vmatprep.subr.bf16.mxu0 %v10394_v37  ;;  %5919 = vmatpush2.bf16.msra.mxu1 %v10425_v38  ;;  %v10484_v38 = vld [vmem:[%s11948_s16 + $0xe4] ss:$8 sps:$4 sm:$0xff]  }
 0xbdd   : > { %6251 = vmatprep.subr.bf16.mxu1 %v10433_v39  ;;  %v10479_v39 = vld [vmem:[%s11948_s16 + $0x370] ss:$8 sps:$4 sm:$0xff]  }
 0xbdf   : > { %5934 = vmatpush1.bf16.msra.mxu0 %v10392_v40 }
 0xbe0   : > { %5935 = vmatprep.subr.bf16.mxu0 %v10400_v41 }
 0xbe3   : > { %5936 = vmatpush1.bf16.msra.mxu0 %v10398_v44 }
 0xbe4   : > { %5937 = vmatprep.subr.bf16.mxu0 %v10406_v6  ;;  %v10442_v6 = vld [vmem:[%s11948_s16 + $0x54] ss:$8 sps:$4 sm:$0xff]  }
 0xbe7   : > { %5938 = vmatpush1.bf16.msra.mxu0 %v10404_v12  ;;  %v10434_v12 = vld [vmem:[%s11948_s16 + $0x60] ss:$8 sps:$4 sm:$0xff]  }
 0xbe8   : > { %5939 = vmatprep.subr.bf16.mxu0 %v10412_v11  ;;  %v10451_v11 = vld [vmem:[%s11948_s16 + $0x144] ss:$8 sps:$4 sm:$0xff]  }
 0xbeb   : > { %5940 = vmatpush1.bf16.msra.mxu0 %v10410_v10  ;;  %v10443_v10 = vld [vmem:[%s11948_s16 + $0x150] ss:$8 sps:$4 sm:$0xff]  }
 0xbec   : > { %5941 = vmatprep.subr.bf16.mxu0 %v10418_v19  ;;  %v10455_v19 = vld [vmem:[%s11948_s16 + $0x130] ss:$8 sps:$4 sm:$0xff]  }
 0xbef   : > { %5942 = vmatpush1.bf16.msra.mxu0 %v10416_v26  ;;  %v10469_v26 = vld [vmem:[%s11948_s16 + $0x114] ss:$8 sps:$4 sm:$0xff]  }
 0xbf0   : > { %5943 = vmatprep.subr.bf16.mxu0 %v10424_v28  ;;  %v10472_v28 = vld [vmem:[%s11948_s16 + $0x4] ss:$8 sps:$4 sm:$0xff]  }
 0xbf3   : > { %5944 = vmatpush1.bf16.msra.mxu0 %v10422_v35  ;;  %v10476_v35 = vld [vmem:[%s11948_s16 + $0xf0] ss:$8 sps:$4 sm:$0xff]  }
 0xbf4   : > { %6210 = vmatprep.subr.bf16.mxu0 %v10430_v36 }
 0xc5f   : > { %v5271_v61 = vpop.f32.mrf.mxu1 }
 0xc61   : > { %v5273_v62 = vpop.f32.mrf.mxu1 }
 0xc63   : > { %v5275_v63 = vpop.f32.mrf.mxu1 }
 0xc65   : > { %v5276_v1 = vpop.f32.mrf.mxu1 }
 0xc66   : > { %v5107_v0 = vpop.f32.mrf.mxu0  ;;  %v10431_v1 = vld [vmem:[%s11948_s16 + $0x170] ss:$8 sps:$4 sm:$0xff]  }
 0xc67   : > { %v5272_v7 = vadd.f32 %v5271_v61, %v5107_v0 }
 0xc68   : > { %v5109_v2 = vpop.f32.mrf.mxu0 }
 0xc69   : > { %v5274_v15 = vadd.f32 %v5273_v62, %v5109_v2  ;;  %v10436_v2 = vld [vmem:[%s11948_s16 + $0x64] ss:$8 sps:$4 sm:$0xff]  }
 0xc6a   : > { %v5111_v3 = vpop.f32.mrf.mxu0 }
 0xc6c   : > { %v5112_v4 = vpop.f32.mrf.mxu0 }
 0xc96   : > { %v5467_v13 = vpop.f32.mrf.mxu0 }
 0xc97   : > { %v5474_v16 = vadd.f32 %v5467_v13, %v5272_v7  ;;  %v10445_v7 = vld [vmem:[%s11948_s16 + $0x154] ss:$8 sps:$4 sm:$0xff]   ;;  %v10446_v13 = vld [vmem:[%s11948_s16 + $0x40] ss:$8 sps:$4 sm:$0xff]  }
 0xc98   : > { %v5469_v20 = vpop.f32.mrf.mxu0 }
 0xc99   : > { %v5488_v24 = vadd.f32 %v5481_v8, %v5474_v16  ;;  %v5475_v25 = vadd.f32 %v5469_v20, %v5274_v15  ;;  %v10440_v8 = vld [vmem:[%s11948_s16 + $0x50] ss:$8 sps:$4 sm:$0xff]   ;;  %v10449_v15 = vld [vmem:[%s11948_s16 + $0x140] ss:$8 sps:$4 sm:$0xff]   ;;  %v10457_v16 = vld [vmem:[%s11948_s16 + $0x134] ss:$8 sps:$4 sm:$0xff]  }
 0xc9a   : > { %v5471_v27 = vpop.f32.mrf.mxu0  ;;  %v10463_v20 = vld [vmem:[%s11948_s16 + $0x124] ss:$8 sps:$4 sm:$0xff]  }
 0xc9b   : > { %v5490_v29 = vmax.f32 %v5488_v24, 0.0  ;;  %v5489_v30 = vadd.f32 %v5485_v17, %v5475_v25  ;;  %v10452_v17 = vld [vmem:[%s11948_s16 + $0x30] ss:$8 sps:$4 sm:$0xff]   ;;  %v10466_v24 = vld [vmem:[%s11948_s16 + $0x14] ss:$8 sps:$4 sm:$0xff]  }
 0xc9c   : > { %v5472_v32 = vpop.f32.mrf.mxu0  ;;  %v10461_v25 = vld [vmem:[%s11948_s16 + $0x120] ss:$8 sps:$4 sm:$0xff]   ;;  %v10464_v27 = vld [vmem:[%s11948_s16 + $0x10] ss:$8 sps:$4 sm:$0xff]  }
 0xc9d   : > { %v5497_v23 = vrot.slane %v5490_v29, 7  ;;  %v5491_v34 = vmax.f32 %v5489_v30, 0.0  ;;  %v10467_v29 = vld [vmem:[%s11948_s16 + $0x110] ss:$8 sps:$4 sm:$0xff]   ;;  %v10475_v30 = vld [vmem:[%s11948_s16 + $0x104] ss:$8 sps:$4 sm:$0xff]  }
 0xc9e   : > { %v10478_v32 = vld [vmem:[%s11948_s16 + $0xf4] ss:$8 sps:$4 sm:$0xff]  }
 0xc9f   : > { %v5498_v37 = vrot.slane %v5491_v34, 7  ;;  %5499 = vrot.lane.b32.xlu1 %v5497_v23, %s10725_s23  ;;  %v10473_v23 = vld [vmem:[%s11948_s16 + $0x100] ss:$8 sps:$4 sm:$0xff]   ;;  %v10481_v34 = vld [vmem:[%s11948_s16 + $0x374] ss:$8 sps:$4 sm:$0xff]  }
 0xca1   : > { %5501 = vrot.lane.b32.xlu0 %v5498_v37, %s10725_s23 }
 0xd11   : > { %v5500_v40 = vpop.permute.xlu1 %5499 }
 0xd12   : > { %5508 = vst.msk [vmem:[#allocation7] sm:$0x1e] %vm5507_vm14, %v5500_v40 }
 0xd13   : > { %v5502_v41 = vpop.permute.xlu0 %5501 }
 0xd14   : > { %v5503_v42 = vsel %vm3429_vm6, %v5500_v40, %v5502_v41  ;;  %5511 = vst.msk [vmem:[#allocation7 + $0x10] sm:$0x1e] %vm5510_vm15, %v5502_v41  ;;  %v10487_v41 = vld [vmem:[%s11948_s16 + $0x364] ss:$8 sps:$4 sm:$0xff]  }
 0xd15   : > { %5509 = vst [vmem:[#allocation7 + $0x8] sm:$0x1e] %v5503_v42 }
 0xd19   : > { %v5515_v43 = vld [vmem:[#allocation7] sm:$0x1e] }
 0xd1a   : > { %v5572_v44 = vpack.c.bf16 %v5515_v43, %v5515_v43  ;;  %v10482_v43 = vld [vmem:[%s11948_s16 + $0xe0] ss:$8 sps:$4 sm:$0xff]  }
 0xd1b   : > { %v5517_v45 = vld [vmem:[#allocation7 + $0x10] sm:$0x1e] }
 0xd1c   : > { %v5574_v46 = vpack.c.bf16 %v5517_v45, %v5517_v45  ;;  %v5516_v47 = vld [vmem:[#allocation7 + $0x8] sm:$0x1e]  ;;  %v5627_v48 = vshll.u32 %v5572_v44, 16  ;;  %v5625_v63 = vshrl.u32 %v5572_v44, 16  ;;  %v5514_v36 = vld [vmem:[#allocation7 + $0x10] sm:$0xf] }
 0xd1d   : > { %v5573_v49 = vpack.c.bf16 %v5516_v47, %v5516_v47  ;;  %v5513_v61 = vld [vmem:[#allocation7 + $0x8] sm:$0xf]  ;;  %v5523_v40 = vpack.c.bf16 %v5514_v36, %v5514_v36  ;;  %v10490_v44 = vld [vmem:[%s11948_s16 + $0xd4] ss:$8 sps:$4 sm:$0xff]   ;;  %v10488_v47 = vld [vmem:[%s11948_s16 + $0xd0] ss:$8 sps:$4 sm:$0xff]  }
 0xd1e   : > { %v5641_v50 = vshll.u32 %v5574_v46, 16  ;;  %v5639_v53 = vshrl.u32 %v5574_v46, 16  ;;  %v5629_v56 = vrot.slane %v5627_v48, 1  ;;  %v5522_v3 = vpack.c.bf16 %v5513_v61, %v5513_v61  ;;  %v5519_v33 = vld [vmem:[#allocation7 + $0x8] sm:$0x3c] }
 0xd1f   : > { %v5634_v51 = vshll.u32 %v5573_v49, 16  ;;  %v5632_v58 = vshrl.u32 %v5573_v49, 16  ;;  %v6293_v37 = vpack.c.bf16 %v5519_v33, %v5519_v33  ;;  %v10485_v45 = vld [vmem:[%s11948_s16 + $0x360] ss:$8 sps:$4 sm:$0xff]   ;;  %v10493_v46 = vld [vmem:[%s11948_s16 + $0x354] ss:$8 sps:$4 sm:$0xff]  }
 0xd20   : > { %v5643_v54 = vrot.slane %v5641_v50, 1  ;;  %v5630_v4 = vor.u32 %v5629_v56, %v5625_v63  ;;  %v10496_v48 = vld [vmem:[%s11948_s16 + $0xc4] ss:$8 sps:$4 sm:$0xff]   ;;  %v10491_v49 = vld [vmem:[%s11948_s16 + $0x350] ss:$8 sps:$4 sm:$0xff]  }
 0xd21   : > { %v5636_v59 = vrot.slane %v5634_v51, 1  ;;  %v6348_v42 = vrot.slane %v6293_v37, 1  ;;  %v10499_v50 = vld [vmem:[%s11948_s16 + $0x344] ss:$8 sps:$4 sm:$0xff]   ;;  %v10494_v51 = vld [vmem:[%s11948_s16 + $0xc0] ss:$8 sps:$4 sm:$0xff]  }
 0xd22   : > { %v5644_v62 = vor.u32 %v5643_v54, %v5639_v53  ;;  %v10502_v53 = vld [vmem:[%s11948_s16 + $0xb4] ss:$8 sps:$4 sm:$0xff]   ;;  %v10497_v54 = vld [vmem:[%s11948_s16 + $0x340] ss:$8 sps:$4 sm:$0xff]   ;;  %v10511_v61 = vld [vmem:[%s11948_s16 + $0x324] ss:$8 sps:$4 sm:$0xff]  }
 0xd23   : > { %v5637_v0 = vor.u32 %v5636_v59, %v5632_v58  ;;  %v10505_v56 = vld [vmem:[%s11948_s16 + $0x334] ss:$8 sps:$4 sm:$0xff]   ;;  %v10508_v58 = vld [vmem:[%s11948_s16 + $0xa4] ss:$8 sps:$4 sm:$0xff]   ;;  %v10503_v59 = vld [vmem:[%s11948_s16 + $0x330] ss:$8 sps:$4 sm:$0xff]  }
 0xd24   : > { %5962 = vmatmul.mubr.bf16.vlgmr.msra.gmra.mxu0 %v5644_v62  ;;  %v10506_v62 = vld [vmem:[%s11948_s16 + $0xa0] ss:$8 sps:$4 sm:$0xff]   ;;  %v10514_v63 = vld [vmem:[%s11948_s16 + $0x94] ss:$8 sps:$4 sm:$0xff]   ;;  %v10568_v36 = vld [vmem:[%s11948_s16 + $0x404] ss:$8 sps:$4 sm:$0xff]  }
 0xd25   : > { %6211 = vmatpush1.bf16.msra.mxu0 %v10428_v57  ;;  %5920 = vmatprep.mubr.bf16.mxu1 %v5637_v0  ;;  %v10500_v57 = vld [vmem:[%s11948_s16 + $0xb0] ss:$8 sps:$4 sm:$0xff]   ;;  %v10509_v0 = vld [vmem:[%s11948_s16 + $0x320] ss:$8 sps:$4 sm:$0xff]   ;;  %v10562_v33 = vld [vmem:[%s11948_s16 + $0x414] ss:$8 sps:$4 sm:$0xff]  }
 0xd26   : > { %6242 = vmatprep.mubr.bf16.mxu0 %v5522_v3  ;;  %5921 = vmatmul.mubr.bf16.vlgmr.msra.gmra.mxu1 %v5630_v4  ;;  %v10520_v3 = vld [vmem:[%s11948_s16 + $0x84] ss:$8 sps:$4 sm:$0xff]   ;;  %v10515_v4 = vld [vmem:[%s11948_s16 + $0x310] ss:$8 sps:$4 sm:$0xff]  }
 0xd27   : > { %6252 = vmatpush1.bf16.msra.mxu1 %v10431_v1  ;;  %6212 = vmatprep.subr.bf16.mxu0 %v10436_v2  ;;  %v10517_v1 = vld [vmem:[%s11948_s16 + $0x314] ss:$8 sps:$4 sm:$0xff]   ;;  %v10512_v2 = vld [vmem:[%s11948_s16 + $0x90] ss:$8 sps:$4 sm:$0xff]  }
 0xd28   : > { %6253 = vmatprep.subr.bf16.mxu1 %v10439_v5  ;;  %6283 = vmatprep.mubr.bf16.mxu1 %v10721_v21  ;;  %v10523_v5 = vld [vmem:[%s11948_s16 + $0x304] ss:$8 sps:$4 sm:$0xff]   ;;  %v10563_v37 = vld [vmem:[%s11948_s16 + $0x390] ss:$8 sps:$4 sm:$0xff]  }
 0xd29   : > { %6213 = vmatpush1.bf16.msra.mxu0 %v10434_v12  ;;  %v10518_v12 = vld [vmem:[%s11948_s16 + $0x80] ss:$8 sps:$4 sm:$0xff]  }
 0xd2a   : > { %6214 = vmatprep.subr.bf16.mxu0 %v10442_v6  ;;  %v10526_v6 = vld [vmem:[%s11948_s16 + $0x474] ss:$8 sps:$4 sm:$0xff]  }
 0xd2b   : > { %6254 = vmatpush1.bf16.msra.mxu1 %v10437_v52  ;;  %v10521_v52 = vld [vmem:[%s11948_s16 + $0x300] ss:$8 sps:$4 sm:$0xff]  }
 0xd2c   : > { %6255 = vmatprep.subr.bf16.mxu1 %v10445_v7  ;;  %v5512_v7 = vld [vmem:[#allocation7] sm:$0xf] }
 0xd2d   : > { %6215 = vmatpush1.bf16.msra.mxu0 %v10440_v8  ;;  %v10529_v8 = vld [vmem:[%s11948_s16 + $0x3f4] ss:$8 sps:$4 sm:$0xff]  }
 0xd2e   : > { %6216 = vmatprep.subr.bf16.mxu0 %v10448_v9  ;;  %v10524_v9 = vld [vmem:[%s11948_s16 + $0x470] ss:$8 sps:$4 sm:$0xff]  }
 0xd2f   : > { %6256 = vmatpush1.bf16.msra.mxu1 %v10443_v10  ;;  %v5521_v10 = vpack.c.bf16 %v5512_v7, %v5512_v7 }
 0xd30   : > { %6257 = vmatprep.subr.bf16.mxu1 %v10451_v11  ;;  %v10532_v11 = vld [vmem:[%s11948_s16 + $0x464] ss:$8 sps:$4 sm:$0xff]  }
 0xd31   : > { %6217 = vmatpush1.bf16.msra.mxu0 %v10446_v13  ;;  %v10527_v13 = vld [vmem:[%s11948_s16 + $0x3f0] ss:$8 sps:$4 sm:$0xff]  }
 0xd32   : > { %6218 = vmatprep.subr.bf16.mxu0 %v10454_v14  ;;  %v10535_v14 = vld [vmem:[%s11948_s16 + $0x3e4] ss:$8 sps:$4 sm:$0xff]  }
 0xd33   : > { %6258 = vmatpush1.bf16.msra.mxu1 %v10449_v15  ;;  %v10530_v15 = vld [vmem:[%s11948_s16 + $0x460] ss:$8 sps:$4 sm:$0xff]  }
 0xd34   : > { %6259 = vmatprep.subr.bf16.mxu1 %v10457_v16  ;;  %v10538_v16 = vld [vmem:[%s11948_s16 + $0x454] ss:$8 sps:$4 sm:$0xff]  }
 0xd35   : > { %6219 = vmatpush1.bf16.msra.mxu0 %v10452_v17  ;;  %v10533_v17 = vld [vmem:[%s11948_s16 + $0x3e0] ss:$8 sps:$4 sm:$0xff]  }
 0xd36   : > { %6220 = vmatprep.subr.bf16.mxu0 %v10460_v18  ;;  %v10541_v18 = vld [vmem:[%s11948_s16 + $0x3d4] ss:$8 sps:$4 sm:$0xff]  }
 0xd37   : > { %6260 = vmatpush1.bf16.msra.mxu1 %v10455_v19  ;;  %v10536_v19 = vld [vmem:[%s11948_s16 + $0x450] ss:$8 sps:$4 sm:$0xff]  }
 0xd38   : > { %6261 = vmatprep.subr.bf16.mxu1 %v10463_v20  ;;  %v10544_v20 = vld [vmem:[%s11948_s16 + $0x444] ss:$8 sps:$4 sm:$0xff]  }
 0xd39   : > { %6221 = vmatpush1.bf16.msra.mxu0 %v10458_v22  ;;  %v10539_v22 = vld [vmem:[%s11948_s16 + $0x3d0] ss:$8 sps:$4 sm:$0xff]  }
 0xd3a   : > { %6222 = vmatprep.subr.bf16.mxu0 %v10466_v24  ;;  %v10542_v24 = vld [vmem:[%s11948_s16 + $0x440] ss:$8 sps:$4 sm:$0xff]  }
 0xd3b   : > { %6262 = vmatpush1.bf16.msra.mxu1 %v10461_v25  ;;  %v10550_v25 = vld [vmem:[%s11948_s16 + $0x434] ss:$8 sps:$4 sm:$0xff]  }
 0xd3c   : > { %6263 = vmatprep.subr.bf16.mxu1 %v10469_v26  ;;  %v10545_v26 = vld [vmem:[%s11948_s16 + $0x3c0] ss:$8 sps:$4 sm:$0xff]  }
 0xd3d   : > { %6223 = vmatpush1.bf16.msra.mxu0 %v10464_v27  ;;  %v10553_v27 = vld [vmem:[%s11948_s16 + $0x3b4] ss:$8 sps:$4 sm:$0xff]  }
 0xd3e   : > { %6224 = vmatprep.subr.bf16.mxu0 %v10472_v28  ;;  %v10548_v28 = vld [vmem:[%s11948_s16 + $0x430] ss:$8 sps:$4 sm:$0xff]  }
 0xd3f   : > { %6264 = vmatpush1.bf16.msra.mxu1 %v10467_v29  ;;  %v10556_v29 = vld [vmem:[%s11948_s16 + $0x424] ss:$8 sps:$4 sm:$0xff]  }
 0xd40   : > { %6265 = vmatprep.subr.bf16.mxu1 %v10475_v30  ;;  %v10551_v30 = vld [vmem:[%s11948_s16 + $0x3b0] ss:$8 sps:$4 sm:$0xff]  }
 0xd41   : > { %6225 = vmatpush1.bf16.msra.mxu0 %v10470_v31  ;;  %v10559_v31 = vld [vmem:[%s11948_s16 + $0x3a4] ss:$8 sps:$4 sm:$0xff]  }
 0xd42   : > { %6226 = vmatprep.subr.bf16.mxu0 %v10478_v32  ;;  %v10554_v32 = vld [vmem:[%s11948_s16 + $0x420] ss:$8 sps:$4 sm:$0xff]  }
 0xd43   : > { %6266 = vmatpush1.bf16.msra.mxu1 %v10473_v23  ;;  %v10557_v23 = vld [vmem:[%s11948_s16 + $0x3a0] ss:$8 sps:$4 sm:$0xff]  }
 0xd44   : > { %6593 = vmatprep.subr.bf16.mxu1 %v10481_v34  ;;  %v10565_v34 = vld [vmem:[%s11948_s16 + $0x394] ss:$8 sps:$4 sm:$0xff]  }
 0xd45   : > { %6227 = vmatpush2.bf16.msra.mxu0 %v10476_v35  ;;  %v10560_v35 = vld [vmem:[%s11948_s16 + $0x410] ss:$8 sps:$4 sm:$0xff]  }
 0xd46   : > { %6284 = vmatmul.mubr.bf16.vlgmr.msra.gmra.mxu1 %v5523_v40  ;;  %6228 = vmatprep.subr.bf16.mxu0 %v10484_v38  ;;  %v5520_v38 = vld [vmem:[#allocation7 + $0x10] sm:$0x3c] }
 0xd47   : > { %6594 = vmatpush1.bf16.msra.mxu1 %v10479_v39  ;;  %6625 = vmatprep.mubr.bf16.mxu1 %v6348_v42  ;;  %v10571_v39 = vld [vmem:[%s11948_s16 + $0x384] ss:$8 sps:$4 sm:$0xff]   ;;  %v10566_v40 = vld [vmem:[%s11948_s16 + $0x400] ss:$8 sps:$4 sm:$0xff]   ;;  %v6294_v42 = vpack.c.bf16 %v5520_v38, %v5520_v38 }
 0xd48   : > { %6595 = vmatprep.subr.bf16.mxu1 %v10487_v41  ;;  %v5518_v41 = vld [vmem:[#allocation7] sm:$0x3c]  ;;  %v6968_v38 = vld [vmem:[%s11954_s18 + $0x68] sm:$0xff] }
 0xd49   : > { %6229 = vmatpush2.bf16.msra.mxu0 %v10482_v43  ;;  %v10569_v43 = vld [vmem:[%s11948_s16 + $0x380] ss:$8 sps:$4 sm:$0xff]  }
 0xd4a   : > { %6230 = vmatprep.subr.bf16.mxu0 %v10490_v44  ;;  %v6292_v44 = vpack.c.bf16 %v5518_v41, %v5518_v41  ;;  %v6865_v41 = vld [vmem:[%s11953_s11 + $0x60] sm:$0xff] }
 0xd4b   : > { %6596 = vmatpush1.bf16.msra.mxu1 %v10485_v45  ;;  %v6349_v45 = vrot.slane %v6294_v42, 1  ;;  %v6967_v42 = vld [vmem:[%s11954_s18 + $0x60] sm:$0xff] }
 0xd4c   : > { %6597 = vmatprep.subr.bf16.mxu1 %v10493_v46  ;;  %v6347_v46 = vrot.slane %v6292_v44, 1  ;;  %v6982_v44 = vld [vmem:[%s11954_s18 + $0xd8] sm:$0xff] }
 0xd4d   : > { %6231 = vmatpush2.bf16.msra.mxu0 %v10488_v47  ;;  %v10677_v47 = vld [vmem:[#allocation8] sm:$0xff] }
 0xd4e   : > { %6232 = vmatprep.subr.bf16.mxu0 %v10496_v48 }
 0xd4f   : > { %6598 = vmatpush1.bf16.msra.mxu1 %v10491_v49 }
 0xd50   : > { %6599 = vmatprep.subr.bf16.mxu1 %v10499_v50 }
 0xd51   : > { %6233 = vmatpush2.bf16.msra.mxu0 %v10494_v51 }
 0xd52   : > { %6234 = vmatprep.subr.bf16.mxu0 %v10502_v53 }
 0xd53   : > { %6600 = vmatpush1.bf16.msra.mxu1 %v10497_v54 }
 0xd54   : > { %6601 = vmatprep.subr.bf16.mxu1 %v10505_v56 }
 0xd55   : > { %6235 = vmatpush2.bf16.msra.mxu0 %v10500_v57 }
 0xd56   : > { %6236 = vmatprep.subr.bf16.mxu0 %v10508_v58 }
 0xd57   : > { %6602 = vmatpush1.bf16.msra.mxu1 %v10503_v59 }
 0xd58   : > { %6603 = vmatprep.subr.bf16.mxu1 %v10511_v61 }
 0xd59   : > { %6237 = vmatpush2.bf16.msra.mxu0 %v10506_v62 }
 0xd5a   : > { %6238 = vmatprep.subr.bf16.mxu0 %v10514_v63 }
 0xd5b   : > { %6604 = vmatpush1.bf16.msra.mxu1 %v10509_v0 }
 0xd5c   : > { %6605 = vmatprep.subr.bf16.mxu1 %v10517_v1 }
 0xd5d   : > { %6239 = vmatpush2.bf16.msra.mxu0 %v10512_v2 }
 0xd5e   : > { %6240 = vmatprep.subr.bf16.mxu0 %v10520_v3 }
 0xd5f   : > { %6606 = vmatpush1.bf16.msra.mxu1 %v10515_v4 }
 0xd60   : > { %6607 = vmatprep.subr.bf16.mxu1 %v10523_v5 }
 0xd61   : > { %6241 = vmatpush2.bf16.msra.mxu0 %v10518_v12 }
 0xd62   : > { %6634 = vmatprep.subr.bf16.mxu0 %v10526_v6 }
 0xd63   : > { %6608 = vmatpush1.bf16.msra.mxu1 %v10521_v52 }
 0xd64   : > { %6243 = vmatmul.mubr.bf16.vlgmr.msra.gmra.mxu0 %v5521_v10  ;;  %6609 = vmatprep.subr.bf16.mxu1 %v10529_v8  ;;  %v6677_v8 = vld [vmem:[%s11950_s26] sm:$0x3]  ;;  %s11955_s26 = sld [smem:[#allocation25_spill]] }
 0xd65   : > { %6635 = vmatpush1.bf16.msra.mxu0 %v10524_v9  ;;  %6666 = vmatprep.mubr.bf16.mxu0 %v10721_v21  ;;  %v10547_v21 = vld [vmem:[%s11948_s16 + $0x3c4] ss:$8 sps:$4 sm:$0xff]  }
 0xd66   : > { %6636 = vmatprep.subr.bf16.mxu0 %v10532_v11 }
 0xd67   : > { %6610 = vmatpush2.bf16.msra.mxu1 %v10527_v13  ;;  %v6682_v13 = vrot.slane %v6677_v8, %v11017_v55 }
 0xd68   : > { %6611 = vmatprep.subr.bf16.mxu1 %v10535_v14 }
 0xd69   : > { %6637 = vmatpush1.bf16.msra.mxu0 %v10530_v15 }
 0xd6a   : > { %6638 = vmatprep.subr.bf16.mxu0 %v10538_v16 }
 0xd6b   : > { %6612 = vmatpush2.bf16.msra.mxu1 %v10533_v17 }
 0xd6c   : > { %6613 = vmatprep.subr.bf16.mxu1 %v10541_v18  ;;  %v6686_v18 = vrot.slane %v6677_v8, %v11020_v60  ;;  %v6884_v60 = vld [vmem:[%s11953_s11 + $0xf8] sm:$0xff]  ;;  %v6873_v8 = vld [vmem:[%s11953_s11 + $0xa0] sm:$0xff] }
 0xd6d   : > { %6639 = vmatpush1.bf16.msra.mxu0 %v10536_v19 }
 0xd6e   : > { %6640 = vmatprep.subr.bf16.mxu0 %v10544_v20 }
 0xd6f   : > { %6614 = vmatpush2.bf16.msra.mxu1 %v10539_v22 }
 0xd70   : > { %6615 = vmatprep.subr.bf16.mxu1 %v10547_v21 }
 0xd71   : > { %6641 = vmatpush1.bf16.msra.mxu0 %v10542_v24 }
 0xd72   : > { %6642 = vmatprep.subr.bf16.mxu0 %v10550_v25 }
 0xd73   : > { %6616 = vmatpush2.bf16.msra.mxu1 %v10545_v26 }
 0xd74   : > { %6617 = vmatprep.subr.bf16.mxu1 %v10553_v27  ;;  %v6693_v27 = vld [vmem:[%s11951_s1] sm:$0x3]  ;;  %s1010_s1 = scalar_lea.vmem %s10899_s4, %s11959_s10 }
 0xd75   : > { %6643 = vmatpush1.bf16.msra.mxu0 %v10548_v28  ;;  %v6776_v28 = vld [vmem:[%s11952_s2] sm:$0x3] }
 0xd76   : > { %6644 = vmatprep.subr.bf16.mxu0 %v10556_v29  ;;  %v6986_v29 = vld [vmem:[%s11954_s18 + $0xf8] sm:$0xff] }
 0xd77   : > { %6618 = vmatpush2.bf16.msra.mxu1 %v10551_v30  ;;  %v6868_v30 = vld [vmem:[%s11953_s11 + $0x78] sm:$0xff] }
 0xd78   : > { %6619 = vmatprep.subr.bf16.mxu1 %v10559_v31  ;;  %v6970_v31 = vld [vmem:[%s11954_s18 + $0x78] sm:$0xff] }
 0xd79   : > { %6645 = vmatpush1.bf16.msra.mxu0 %v10554_v32  ;;  %v6883_v32 = vld [vmem:[%s11953_s11 + $0xf0] sm:$0xff] }
 0xd7a   : > { %6646 = vmatprep.subr.bf16.mxu0 %v10562_v33  ;;  %v6985_v33 = vld [vmem:[%s11954_s18 + $0xf0] sm:$0xff] }
 0xd7b   : > { %6620 = vmatpush2.bf16.msra.mxu1 %v10557_v23  ;;  %v6867_v23 = vld [vmem:[%s11953_s11 + $0x70] sm:$0xff] }
 0xd7c   : > { %6621 = vmatprep.subr.bf16.mxu1 %v10565_v34  ;;  %v6969_v34 = vld [vmem:[%s11954_s18 + $0x70] sm:$0xff] }
 0xd7d   : > { %6647 = vmatpush1.bf16.msra.mxu0 %v10560_v35  ;;  %v6882_v35 = vld [vmem:[%s11953_s11 + $0xe8] sm:$0xff] }
 0xd7e   : > { %6648 = vmatprep.subr.bf16.mxu0 %v10568_v36  ;;  %v6984_v36 = vld [vmem:[%s11954_s18 + $0xe8] sm:$0xff] }
 0xd7f   : > { %6622 = vmatpush2.bf16.msra.mxu1 %v10563_v37  ;;  %v6866_v37 = vld [vmem:[%s11953_s11 + $0x68] sm:$0xff] }
 0xd80   : > { %6623 = vmatprep.subr.bf16.mxu1 %v10571_v39  ;;  %v6881_v39 = vld [vmem:[%s11953_s11 + $0xe0] sm:$0xff] }
 0xd81   : > { %6649 = vmatpush1.bf16.msra.mxu0 %v10566_v40  ;;  %v6983_v40 = vld [vmem:[%s11954_s18 + $0xe0] sm:$0xff] }
 0xd83   : > { %6624 = vmatpush2.bf16.msra.mxu1 %v10569_v43  ;;  %v6880_v43 = vld [vmem:[%s11953_s11 + $0xd8] sm:$0xff] }
 0xd84   : > { %6667 = vmatmul.mubr.bf16.vlgmr.msra.gmra.mxu0 %v6349_v45  ;;  %v6864_v45 = vld [vmem:[%s11953_s11 + $0x58] sm:$0xff] }
 0xd85   : > { %6769 = vmatprep.mubr.f32.mxu0 %v10677_v47 }
 0xd86   : > { %6626 = vmatmul.mubr.bf16.vlgmr.msra.gmra.mxu1 %v6347_v46  ;;  %v6966_v46 = vld [vmem:[%s11954_s18 + $0x58] sm:$0xff] }
 0xd87   : > { %6844 = vmatprep.mubr.f32.mxu1 %v10677_v47  ;;  %v6879_v47 = vld [vmem:[%s11953_s11 + $0xd0] sm:$0xff] }
 0xde4   : > { %v5963_v48 = vpop.f32.mrf.mxu0 }
 0xde6   : > { %v5922_v49 = vpop.f32.mrf.mxu1  ;;  %v5965_v50 = vpop.f32.mrf.mxu0 }
 0xde7   : > { %v5964_v51 = vadd.f32 %v5963_v48, %v5922_v49  ;;  %v6981_v48 = vld [vmem:[%s11954_s18 + $0xd0] sm:$0xff] }
 0xde8   : > { %v5924_v53 = vpop.f32.mrf.mxu1  ;;  %v5967_v54 = vpop.f32.mrf.mxu0  ;;  %v6863_v49 = vld [vmem:[%s11953_s11 + $0x50] sm:$0xff] }
 0xde9   : > { %v5966_v56 = vadd.f32 %v5965_v50, %v5924_v53  ;;  %v6965_v50 = vld [vmem:[%s11954_s18 + $0x50] sm:$0xff]  ;;  %v6980_v53 = vld [vmem:[%s11954_s18 + $0xc8] sm:$0xff] }
 0xdea   : > { %v5926_v57 = vpop.f32.mrf.mxu1  ;;  %v5968_v58 = vpop.f32.mrf.mxu0  ;;  %v6862_v54 = vld [vmem:[%s11953_s11 + $0x48] sm:$0xff] }
 0xdeb   : > { %v6877_v57 = vld [vmem:[%s11953_s11 + $0xc0] sm:$0xff] }
 0xdec   : > { %v5927_v59 = vpop.f32.mrf.mxu1  ;;  %v6979_v58 = vld [vmem:[%s11954_s18 + $0xc0] sm:$0xff] }
 0xded   : > { %v6861_v59 = vld [vmem:[%s11953_s11 + $0x40] sm:$0xff] }
 0xe06   : > { %v6285_v61 = vpop.f32.mrf.mxu1 }
 0xe08   : > { %v6287_v62 = vpop.f32.mrf.mxu1 }
 0xe0a   : > { %v6289_v63 = vpop.f32.mrf.mxu1 }
 0xe0b   : > { %v6978_v63 = vld [vmem:[%s11954_s18 + $0xb8] sm:$0xff] }
 0xe0c   : > { %v6290_v0 = vpop.f32.mrf.mxu1 }
 0xe0d   : > { %v6860_v0 = vld [vmem:[%s11953_s11 + $0x38] sm:$0xff] }
 0xe24   : > { %v6244_v1 = vpop.f32.mrf.mxu0 }
 0xe25   : > { %v6245_v2 = vadd.f32 %v6244_v1, %v5964_v51  ;;  %v6878_v51 = vld [vmem:[%s11953_s11 + $0xc8] sm:$0xff]  ;;  %v6962_v1 = vld [vmem:[%s11954_s18 + $0x38] sm:$0xff] }
 0xe26   : > { %v6246_v3 = vpop.f32.mrf.mxu0 }
 0xe27   : > { %v6286_v4 = vadd.f32 %v6285_v61, %v6245_v2  ;;  %v6247_v5 = vadd.f32 %v6246_v3, %v5966_v56  ;;  %v6964_v56 = vld [vmem:[%s11954_s18 + $0x48] sm:$0xff]  ;;  %v6963_v61 = vld [vmem:[%s11954_s18 + $0x40] sm:$0xff]  ;;  %v6875_v2 = vld [vmem:[%s11953_s11 + $0xb0] sm:$0xff] }
 0xe28   : > { %v6248_v12 = vpop.f32.mrf.mxu0  ;;  %v6977_v3 = vld [vmem:[%s11954_s18 + $0xb0] sm:$0xff] }
 0xe29   : > { %v6288_v6 = vadd.f32 %v6287_v62, %v6247_v5  ;;  %v6876_v62 = vld [vmem:[%s11953_s11 + $0xb8] sm:$0xff]  ;;  %v6961_v5 = vld [vmem:[%s11954_s18 + $0x30] sm:$0xff]  ;;  %v6874_v12 = vld [vmem:[%s11953_s11 + $0xa8] sm:$0xff] }
 0xe2a   : > { %v6249_v52 = vpop.f32.mrf.mxu0 }
 0xe2b   : > { %v6858_v52 = vld [vmem:[%s11953_s11 + $0x28] sm:$0xff] }
 0xe44   : > { %v6668_v7 = vpop.f32.mrf.mxu0 }
 0xe46   : > { %v6627_v9 = vpop.f32.mrf.mxu1  ;;  %v6670_v10 = vpop.f32.mrf.mxu0 }
 0xe47   : > { %v6669_v11 = vadd.f32 %v6668_v7, %v6627_v9  ;;  %v6960_v7 = vld [vmem:[%s11954_s18 + $0x28] sm:$0xff]  ;;  %v6975_v9 = vld [vmem:[%s11954_s18 + $0xa0] sm:$0xff] }
 0xe48   : > { %v6629_v14 = vpop.f32.mrf.mxu1  ;;  %v6672_v15 = vpop.f32.mrf.mxu0 }
 0xe49   : > { %v6675_v16 = vadd.f32 %v6669_v11, %v6286_v4  ;;  %v6671_v17 = vadd.f32 %v6670_v10, %v6629_v14  ;;  %v6859_v4 = vld [vmem:[%s11953_s11 + $0x30] sm:$0xff]  ;;  %v6857_v10 = vld [vmem:[%s11953_s11 + $0x20] sm:$0xff]  ;;  %v6974_v14 = vld [vmem:[%s11954_s18 + $0x98] sm:$0xff] }
 0xe4a   : > { %v6631_v19 = vpop.f32.mrf.mxu1  ;;  %v6673_v20 = vpop.f32.mrf.mxu0  ;;  %v6959_v11 = vld [vmem:[%s11954_s18 + $0x20] sm:$0xff]  ;;  %v6856_v15 = vld [vmem:[%s11953_s11 + $0x18] sm:$0xff] }
 0xe4b   : > { %v6676_v22 = vadd.f32 %v6671_v17, %v6288_v6  ;;  %v6689_v21 = vadd.f32 %v6682_v13, %v6675_v16  ;;  %v6976_v6 = vld [vmem:[%s11954_s18 + $0xa8] sm:$0xff]  ;;  %v6872_v13 = vld [vmem:[%s11953_s11 + $0x98] sm:$0xff]  ;;  %v6871_v17 = vld [vmem:[%s11953_s11 + $0x90] sm:$0xff] }
 0xe4c   : > { %v6632_v24 = vpop.f32.mrf.mxu1  ;;  %v6958_v16 = vld [vmem:[%s11954_s18 + $0x18] sm:$0xff]  ;;  %v6855_v19 = vld [vmem:[%s11953_s11 + $0x10] sm:$0xff] }
 0xe4d   : > { %v6690_v25 = vadd.f32 %v6686_v18, %v6676_v22  ;;  %v6691_v26 = vmax.f32 %v6689_v21, 0.0  ;;  %v6973_v18 = vld [vmem:[%s11954_s18 + $0x90] sm:$0xff]  ;;  %v6870_v22 = vld [vmem:[%s11953_s11 + $0x88] sm:$0xff] }
 0xe4e   : > { %v6957_v20 = vld [vmem:[%s11954_s18 + $0x10] sm:$0xff]  ;;  %v6972_v21 = vld [vmem:[%s11954_s18 + $0x88] sm:$0xff] }
 0xe4f   : > { %v6692_v55 = vmax.f32 %v6690_v25, 0.0  ;;  %v6854_v24 = vld [vmem:[%s11953_s11 + $0x8] sm:$0xff] }
 0xe50   : > { %v6956_v25 = vld [vmem:[%s11954_s18 + $0x8] sm:$0xff] }
 0xe51   : > { %9136 = vmatprep.subr.msk.mxu0 %vm6698_vm0, %v6692_v55  ;;  %9139 = vmatprep.subr.msk.mxu1 %vm6698_vm0, %v6692_v55  ;;  %v6869_v55 = vld [vmem:[%s11953_s11 + $0x80] sm:$0xff] }
 0xe52   : > { %9137 = vmatpush1.msk.msra.mxu0 %vm6698_vm0, %v6691_v26  ;;  %9140 = vmatpush1.msk.msra.mxu1 %vm6698_vm0, %v6691_v26  ;;  %v6971_v26 = vld [vmem:[%s11954_s18 + $0x80] sm:$0xff] }
 0xe53   : > { %9138 = vmatmul.mubr.msk.f32.vlgmr.msra.gmra.mxu0 %vm6694_vm1, %v6693_v27  ;;  %9141 = vmatmul.mubr.msk.f32.vlgmr.msra.gmra.mxu1 %vm6694_vm1, %v6776_v28  ;;  %v6853_v27 = vld [vmem:[%s11953_s11] sm:$0xff] }
 0xe54   : > { %9587 = vmatprep.subr.mxu0 %v6884_v60  ;;  %9622 = vmatprep.subr.mxu1 %v6986_v29  ;;  %v6955_v28 = vld [vmem:[%s11954_s18] sm:$0xff] }
 0xe55   : > { %9588 = vmatpush3.msra.mxu0 %v6868_v30  ;;  %9623 = vmatpush3.msra.mxu1 %v6970_v31 }
 0xe56   : > { %9589 = vmatprep.subr.mxu0 %v6883_v32  ;;  %9624 = vmatprep.subr.mxu1 %v6985_v33 }
 0xe57   : > { %9590 = vmatpush3.msra.mxu0 %v6867_v23  ;;  %9625 = vmatpush3.msra.mxu1 %v6969_v34  ;;  %v10572_v23 = vld [vmem:[%s11955_s26 + $0x78] sm:$0xff]  }
 0xe58   : > { %9591 = vmatprep.subr.mxu0 %v6882_v35  ;;  %9626 = vmatprep.subr.mxu1 %v6984_v36  ;;  %v10573_v34 = vld [vmem:[%s11955_s26 + $0x38] sm:$0xff]   ;;  %v10574_v35 = vld [vmem:[%s11955_s26 + $0x70] sm:$0xff]  }
 0xe59   : > { %9592 = vmatpush3.msra.mxu0 %v6866_v37  ;;  %9627 = vmatpush3.msra.mxu1 %v6968_v38  ;;  %v10575_v36 = vld [vmem:[%s11955_s26 + $0xf8] sm:$0xff]   ;;  %v10579_v38 = vld [vmem:[%s11955_s26 + $0xf0] sm:$0xff]  }
 0xe5a   : > { %9593 = vmatprep.subr.mxu0 %v6881_v39  ;;  %9628 = vmatprep.subr.mxu1 %v6983_v40  ;;  %v10577_v37 = vld [vmem:[%s11955_s26 + $0xb8] sm:$0xff]   ;;  %v10576_v39 = vld [vmem:[%s11955_s26 + $0x30] sm:$0xff]   ;;  %v10578_v40 = vld [vmem:[%s11955_s26 + $0x68] sm:$0xff]  }
 0xe5b   : > { %9594 = vmatpush3.msra.mxu0 %v6865_v41  ;;  %9629 = vmatpush3.msra.mxu1 %v6967_v42  ;;  %v10581_v41 = vld [vmem:[%s11955_s26 + $0xb0] sm:$0xff]   ;;  %v10583_v42 = vld [vmem:[%s11955_s26 + $0xe8] sm:$0xff]  }
 0xe5c   : > { %9595 = vmatprep.subr.mxu0 %v6880_v43  ;;  %9630 = vmatprep.subr.mxu1 %v6982_v44  ;;  %v10580_v43 = vld [vmem:[%s11955_s26 + $0x28] sm:$0xff]   ;;  %v10582_v44 = vld [vmem:[%s11955_s26 + $0x60] sm:$0xff]  }
 0xe5d   : > { %9596 = vmatpush3.msra.mxu0 %v6864_v45  ;;  %9631 = vmatpush3.msra.mxu1 %v6966_v46  ;;  %v10585_v45 = vld [vmem:[%s11955_s26 + $0xa8] sm:$0xff]   ;;  %v10584_v46 = vld [vmem:[%s11955_s26 + $0x20] sm:$0xff]  }
 0xe5e   : > { %9597 = vmatprep.subr.mxu0 %v6879_v47  ;;  %9632 = vmatprep.subr.mxu1 %v6981_v48  ;;  %v10586_v47 = vld [vmem:[%s11955_s26 + $0x58] sm:$0xff]   ;;  %v10587_v48 = vld [vmem:[%s11955_s26 + $0xe0] sm:$0xff]  }
 0xe5f   : > { %9598 = vmatpush3.msra.mxu0 %v6863_v49  ;;  %9633 = vmatpush3.msra.mxu1 %v6965_v50  ;;  %v10588_v49 = vld [vmem:[%s11955_s26 + $0x18] sm:$0xff]   ;;  %v10589_v50 = vld [vmem:[%s11955_s26 + $0xa0] sm:$0xff]  }
 0xe60   : > { %9599 = vmatprep.subr.mxu0 %v6878_v51  ;;  %9634 = vmatprep.subr.mxu1 %v6980_v53  ;;  %v10590_v51 = vld [vmem:[%s11955_s26 + $0x50] sm:$0xff]   ;;  %v10591_v53 = vld [vmem:[%s11955_s26 + $0xd8] sm:$0xff]  }
 0xe61   : > { %9600 = vmatpush3.msra.mxu0 %v6862_v54  ;;  %9635 = vmatpush3.msra.mxu1 %v6964_v56  ;;  %v10592_v54 = vld [vmem:[%s11955_s26 + $0x10] sm:$0xff]   ;;  %v10593_v56 = vld [vmem:[%s11955_s26 + $0x98] sm:$0xff]  }
 0xe62   : > { %9601 = vmatprep.subr.mxu0 %v6877_v57  ;;  %9636 = vmatprep.subr.mxu1 %v6979_v58 }
 0xe63   : > { %9602 = vmatpush3.msra.mxu0 %v6861_v59  ;;  %9637 = vmatpush3.msra.mxu1 %v6963_v61  ;;  %v10594_v59 = vld [vmem:[%s11955_s26 + $0x48] sm:$0xff]   ;;  %v10595_v61 = vld [vmem:[%s11955_s26 + $0xd0] sm:$0xff]  }
 0xe64   : > { %9603 = vmatprep.subr.mxu0 %v6876_v62  ;;  %9638 = vmatprep.subr.mxu1 %v6978_v63  ;;  %v10596_v62 = vld [vmem:[%s11955_s26 + $0x8] sm:$0xff]  }
 0xe65   : > { %9604 = vmatpush3.msra.mxu0 %v6860_v0  ;;  %9639 = vmatpush3.msra.mxu1 %v6962_v1  ;;  %v10597_v1 = vld [vmem:[%s11955_s26 + $0x90] sm:$0xff]  }
 0xe66   : > { %9605 = vmatprep.subr.mxu0 %v6875_v2  ;;  %9640 = vmatprep.subr.mxu1 %v6977_v3  ;;  %v10598_v2 = vld [vmem:[%s11955_s26 + $0x40] sm:$0xff]  }
 0xe67   : > { %9606 = vmatpush3.msra.mxu0 %v6859_v4  ;;  %9641 = vmatpush3.msra.mxu1 %v6961_v5  ;;  %v10599_v5 = vld [vmem:[%s11955_s26 + $0xc8] sm:$0xff]  }
 0xe68   : > { %9607 = vmatprep.subr.mxu0 %v6874_v12  ;;  %9642 = vmatprep.subr.mxu1 %v6976_v6  ;;  %v10600_v6 = vld [vmem:[%s11955_s26] sm:$0xff]  }
 0xe69   : > { %9608 = vmatpush3.msra.mxu0 %v6858_v52  ;;  %9643 = vmatpush3.msra.mxu1 %v6960_v7  ;;  %v10601_v52 = vld [vmem:[%s11955_s26 + $0x88] sm:$0xff]  }
 0xe6a   : > { %9609 = vmatprep.subr.mxu0 %v6873_v8  ;;  %9644 = vmatprep.subr.mxu1 %v6975_v9  ;;  %v10603_v8 = vld [vmem:[%s11955_s26 + $0xc0] sm:$0xff]  }
 0xe6b   : > { %9610 = vmatpush3.msra.mxu0 %v6857_v10  ;;  %9645 = vmatpush3.msra.mxu1 %v6959_v11  ;;  %v10604_v9 = vld [vmem:[%s11955_s26 + $0x80] sm:$0xff]   ;;  %v10606_v10 = vld [vmem:[%s11955_s26 + $0x178] sm:$0xff]  }
 0xe6c   : > { %9611 = vmatprep.subr.mxu0 %v6872_v13  ;;  %9646 = vmatprep.subr.mxu1 %v6974_v14 }
 0xe6d   : > { %9612 = vmatpush3.msra.mxu0 %v6856_v15  ;;  %9647 = vmatpush3.msra.mxu1 %v6958_v16 }
 0xe6e   : > { %9613 = vmatprep.subr.mxu0 %v6871_v17  ;;  %9648 = vmatprep.subr.mxu1 %v6973_v18 }
 0xe6f   : > { %9614 = vmatpush3.msra.mxu0 %v6855_v19  ;;  %9649 = vmatpush3.msra.mxu1 %v6957_v20 }
 0xe70   : > { %9615 = vmatprep.subr.mxu0 %v6870_v22  ;;  %9650 = vmatprep.subr.mxu1 %v6972_v21 }
 0xe71   : > { %9616 = vmatpush3.msra.mxu0 %v6854_v24  ;;  %9651 = vmatpush3.msra.mxu1 %v6956_v25 }
 0xe72   : > { %9617 = vmatprep.subr.mxu0 %v6869_v55  ;;  %9652 = vmatprep.subr.mxu1 %v6971_v26 }
 0xe73   : > { %9618 = vmatpush3.msra.mxu0 %v6853_v27  ;;  %9653 = vmatpush3.msra.mxu1 %v6955_v28 }
 0xe74   : > { %9679 = vmatprep.subr.bf16.mxu1 %v10572_v23  ;;  %9657 = vmatprep.subr.bf16.mxu0 %v10575_v36  ;;  %v10610_v36 = vld [vmem:[%s11955_s26 + $0x130] sm:$0xff]  }
 0xf13   : > { %v6771_v60 = vpop.f32.mrf.mxu0  ;;  %v6846_v29 = vpop.f32.mrf.mxu1 }
 0xf14   : > { %v6851_v33 = vmax.f32 %v6771_v60, %v6846_v29 }
 0xf15   : > { %v6773_v30 = vpop.f32.mrf.mxu0  ;;  %v6848_v31 = vpop.f32.mrf.mxu1 }
 0xf16   : > { %v6852_v32 = vmax.f32 %v6773_v30, %v6848_v31 }
 0xf18   : > { %6949 = vmatprep.mubr.f32.mxu0 %v6852_v32  ;;  %7051 = vmatprep.mubr.f32.mxu1 %v6852_v32 }
 0xf19   : > { %6950 = vmatmul.mubr.f32.vlgmr.msra.gmra.mxu0 %v6851_v33  ;;  %7052 = vmatmul.mubr.f32.vlgmr.msra.gmra.mxu1 %v6851_v33  ;;  %v10607_v33 = vld [vmem:[%s11955_s26 + $0x138] sm:$0xff]  }
 0xf1a   : > { %9680 = vmatpush3.bf16.msra.mxu1 %v10573_v34  ;;  %9658 = vmatpush3.bf16.msra.mxu0 %v10577_v37  ;;  %v10609_v34 = vld [vmem:[%s11955_s26 + $0x170] sm:$0xff]   ;;  %v10611_v37 = vld [vmem:[%s11955_s26 + $0x168] sm:$0xff]  }
 0xf1b   : > { %9681 = vmatprep.subr.bf16.mxu1 %v10574_v35  ;;  %9659 = vmatprep.subr.bf16.mxu0 %v10579_v38  ;;  %v10612_v38 = vld [vmem:[%s11955_s26 + $0x128] sm:$0xff]  }
 0xf1e   : > { %9682 = vmatpush3.bf16.msra.mxu1 %v10576_v39  ;;  %9660 = vmatpush3.bf16.msra.mxu0 %v10581_v41  ;;  %v10613_v39 = vld [vmem:[%s11955_s26 + $0x160] sm:$0xff]   ;;  %v10615_v41 = vld [vmem:[%s11955_s26 + $0x158] sm:$0xff]  }
 0xf1f   : > { %9683 = vmatprep.subr.bf16.mxu1 %v10578_v40  ;;  %9661 = vmatprep.subr.bf16.mxu0 %v10583_v42  ;;  %v10614_v40 = vld [vmem:[%s11955_s26 + $0x120] sm:$0xff]   ;;  %v10616_v42 = vld [vmem:[%s11955_s26 + $0x118] sm:$0xff]  }
 0xf22   : > { %9684 = vmatpush3.bf16.msra.mxu1 %v10580_v43  ;;  %9662 = vmatpush3.bf16.msra.mxu0 %v10585_v45  ;;  %v10617_v43 = vld [vmem:[%s11955_s26 + $0x150] sm:$0xff]   ;;  %v10619_v45 = vld [vmem:[%s11955_s26 + $0x148] sm:$0xff]  }
 0xf23   : > { %9685 = vmatprep.subr.bf16.mxu1 %v10582_v44  ;;  %9663 = vmatprep.subr.bf16.mxu0 %v10587_v48  ;;  %v10618_v44 = vld [vmem:[%s11955_s26 + $0x110] sm:$0xff]   ;;  %v10622_v48 = vld [vmem:[%s11955_s26 + $0x100] sm:$0xff]  }
 0xf26   : > { %9686 = vmatpush3.bf16.msra.mxu1 %v10584_v46  ;;  %9664 = vmatpush3.bf16.msra.mxu0 %v10589_v50  ;;  %v10620_v46 = vld [vmem:[%s11955_s26 + $0x108] sm:$0xff]  }
 0xf27   : > { %9687 = vmatprep.subr.bf16.mxu1 %v10586_v47  ;;  %9665 = vmatprep.subr.bf16.mxu0 %v10591_v53  ;;  %v10621_v47 = vld [vmem:[%s11955_s26 + $0x140] sm:$0xff]   ;;  %v10624_v53 = vld [vmem:[%s10889_s20 + $0x38] sm:$0xff]  }
 0xf2a   : > { %9688 = vmatpush3.bf16.msra.mxu1 %v10588_v49  ;;  %9666 = vmatpush3.bf16.msra.mxu0 %v10593_v56  ;;  %v10626_v56 = vld [vmem:[%s10889_s20 + $0xf8] sm:$0xff]  }
 0xf2b   : > { %9689 = vmatprep.subr.bf16.mxu1 %v10590_v51  ;;  %9667 = vmatprep.subr.bf16.mxu0 %v10595_v61  ;;  %v10623_v51 = vld [vmem:[%s10889_s20 + $0x78] sm:$0xff]   ;;  %v10629_v61 = vld [vmem:[%s10889_s20 + $0x68] sm:$0xff]  }
 0xf2e   : > { %9690 = vmatpush3.bf16.msra.mxu1 %v10592_v54  ;;  %9668 = vmatpush3.bf16.msra.mxu0 %v10597_v1  ;;  %v10625_v54 = vld [vmem:[%s10889_s20 + $0x70] sm:$0xff]   ;;  %v10633_v1 = vld [vmem:[%s10889_s20 + $0x60] sm:$0xff]  }
 0xf2f   : > { %9691 = vmatprep.subr.bf16.mxu1 %v10594_v59  ;;  %9669 = vmatprep.subr.bf16.mxu0 %v10599_v5  ;;  %v10627_v59 = vld [vmem:[%s10889_s20 + $0x30] sm:$0xff]  }
 0xf32   : > { %9692 = vmatpush3.bf16.msra.mxu1 %v10596_v62  ;;  %9670 = vmatpush3.bf16.msra.mxu0 %v10601_v52  ;;  %v10632_v62 = vld [vmem:[%s10889_s20 + $0xb0] sm:$0xff]  }
 0xf33   : > { %9693 = vmatprep.subr.bf16.mxu1 %v10598_v2  ;;  %9671 = vmatprep.subr.bf16.mxu0 %v10603_v8  ;;  %v10636_v2 = vld [vmem:[%s10889_s20 + $0xa8] sm:$0xff]  }
 0xf36   : > { %9694 = vmatpush3.bf16.msra.mxu1 %v10600_v6  ;;  %9672 = vmatpush3.bf16.msra.mxu0 %v10604_v9 }
 0xf37   : > { %9701 = vmatprep.subr.bf16.mxu0 %v10606_v10  ;;  %9723 = vmatprep.subr.bf16.mxu1 %v10626_v56  ;;  %v10637_v10 = vld [vmem:[%s10889_s20 + $0x58] sm:$0xff]  }
 0xfd9   : > { %v9619_v57 = vpop.f32.mrf.mxu0  ;;  %v9654_v58 = vpop.f32.mrf.mxu1 }
 0xfdb   : > { %v9620_v63 = vpop.f32.mrf.mxu0  ;;  %v9655_v0 = vpop.f32.mrf.mxu1 }
 0xfdc   : > { %v9621_v3 = vadd.f32 %v9620_v63, %v9619_v57  ;;  %v9656_v4 = vadd.f32 %v9655_v0, %v9654_v58  ;;  %v10628_v57 = vld [vmem:[%s10889_s20 + $0xb8] sm:$0xff]   ;;  %v10630_v58 = vld [vmem:[%s10889_s20 + $0xf0] sm:$0xff]   ;;  %v10634_v63 = vld [vmem:[%s10889_s20 + $0xe8] sm:$0xff]  }
 0xfdd   : > { %v10631_v0 = vld [vmem:[%s10889_s20 + $0x28] sm:$0xff]  }
 0xfde   : > { %v7057_v12 = vmax.f32 %v9621_v3, %v9656_v4  ;;  %v10635_v3 = vld [vmem:[%s10889_s20 + $0x20] sm:$0xff]  }
 0xfe0   : > { %v7060_v7 = vrot.slane %v7057_v12, 7 }
 0xfe2   : > { %7061 = vrot.lane.b32.xlu1 %v7060_v7, %s10725_s23 }
0x1054   : > { %v7062_v11 = vpop.permute.xlu1 %7061 }
0x1055   : > { %v7063_v14 = vrot.slane %v7062_v11, 4 }
0x1057   : > { %v7064_v15 = vsel %vm3429_vm6, %v7063_v14, %v7062_v11  ;;  %v10638_v14 = vld [vmem:[%s10889_s20 + $0xe0] sm:$0xff]  }
0x1058   : > { %7069 = vst.msk [vmem:[#allocation8] sm:$0x66] %vm11833_vm5, %v7064_v15  ;;  %v10639_v15 = vld [vmem:[%s10889_s20 + $0x18] sm:$0xff]  }
0x105f   : > { %v7070_v16 = vld [vmem:[#allocation8] sm:$0x33]  ;;  %v7072_v18 = vld [vmem:[#allocation8] sm:$0xcc] }
0x1060   : > { %v7071_v17 = vld [vmem:[#allocation8] sm:$0x66]  ;;  %v7074_v19 = vcombine.high %v7070_v16, %v7070_v16  ;;  %v7437_v55 = vcombine.high %v7072_v18, %v7072_v18  ;;  %v7076_v26 = vpack.c.bf16 %v7070_v16, %v7070_v16  ;;  %v7439_v49 = vpack.c.bf16 %v7072_v18, %v7072_v18 }
0x1061   : > { %v7111_v20 = vcombine.high %v7071_v17, %v7071_v17  ;;  %v7113_v22 = vpack.c.bf16 %v7071_v17, %v7071_v17  ;;  %v10640_v17 = vld [vmem:[%s10889_s20 + $0xa0] sm:$0xff]  }
0x1062   : > { %v7077_v21 = vpack.c.bf16 %v7074_v19, %v7074_v19  ;;  %v7440_v30 = vpack.c.bf16 %v7437_v55, %v7437_v55  ;;  %v7476_v50 = vrot.slane %v7439_v49, 1  ;;  %v10644_v55 = vld [vmem:[%s10889_s20 + $0x98] sm:$0xff]  }
0x1063   : > { %v7114_v24 = vpack.c.bf16 %v7111_v20, %v7111_v20  ;;  %v7151_v25 = vshll.u32 %v7113_v22, 16  ;;  %v7149_v31 = vshrl.u32 %v7113_v22, 16  ;;  %v10641_v20 = vld [vmem:[%s10889_s20 + $0x50] sm:$0xff]  }
0x1064   : > { %7428 = vmatprep.mubr.bf16.mxu1 %v7077_v21  ;;  %v7477_v35 = vrot.slane %v7440_v30, 1  ;;  %v10647_v30 = vld [vmem:[%s10889_s20 + $0x8] sm:$0xff]  }
0x1065   : > { %v7158_v27 = vshll.u32 %v7114_v24, 16  ;;  %7429 = vmatmul.mubr.bf16.vlgmr.msra.gmra.mxu1 %v7076_v26  ;;  %v7153_v28 = vrot.slane %v7151_v25, 1  ;;  %v7156_v60 = vshrl.u32 %v7114_v24, 16  ;;  %v10642_v24 = vld [vmem:[%s10889_s20 + $0xd8] sm:$0xff]   ;;  %v10643_v25 = vld [vmem:[%s10889_s20 + $0x10] sm:$0xff]  }
0x1066   : > { %9724 = vmatpush3.bf16.msra.mxu1 %v10628_v57  ;;  %v9254_v26 = vld [vmem:[%s10884_s12] ss:$0 sm:$0xff] }
0x1067   : > { %v7160_v29 = vrot.slane %v7158_v27, 1  ;;  %v7154_v23 = vor.u32 %v7153_v28, %v7149_v31  ;;  %9725 = vmatprep.subr.bf16.mxu1 %v10630_v58  ;;  %v10645_v28 = vld [vmem:[%s10889_s20 + $0x48] sm:$0xff]  }
0x1069   : > { %v7161_v32 = vor.u32 %v7160_v29, %v7156_v60  ;;  %v10646_v60 = vld [vmem:[%s10889_s20 + $0xd0] sm:$0xff]  }
0x106a   : > { %9726 = vmatpush3.bf16.msra.mxu1 %v10632_v62 }
0x106b   : > { %7292 = vmatprep.mubr.bf16.mxu0 %v7161_v32  ;;  %9727 = vmatprep.subr.bf16.mxu1 %v10634_v63  ;;  %v10648_v32 = vld [vmem:[%s10889_s20 + $0x90] sm:$0xff]  }
0x106c   : > { %7293 = vmatmul.mubr.bf16.vlgmr.msra.gmra.mxu0 %v7154_v23 }
0x106d   : > { %9702 = vmatpush3.bf16.msra.mxu0 %v10607_v33  ;;  %7608 = vmatprep.mubr.bf16.mxu0 %v7477_v35  ;;  %v10649_v33 = vld [vmem:[%s10889_s20 + $0x40] sm:$0xff]  }
0x106e   : > { %9703 = vmatprep.subr.bf16.mxu0 %v10609_v34  ;;  %9728 = vmatpush3.bf16.msra.mxu1 %v10636_v2  ;;  %v10650_v34 = vld [vmem:[%s10889_s20 + $0xc8] sm:$0xff]  }
0x106f   : > { %9729 = vmatprep.subr.bf16.mxu1 %v10638_v14  ;;  %v10670_v14 = vld [vmem:[%s10889_s20 + $0x148] sm:$0xff]  }
0x1071   : > { %9704 = vmatpush3.bf16.msra.mxu0 %v10610_v36  ;;  %v10651_v36 = vld [vmem:[%s10889_s20] sm:$0xff]  }
0x1072   : > { %9705 = vmatprep.subr.bf16.mxu0 %v10611_v37  ;;  %9730 = vmatpush3.bf16.msra.mxu1 %v10640_v17  ;;  %v10652_v37 = vld [vmem:[%s10889_s20 + $0x88] sm:$0xff]   ;;  %v10673_v17 = vld [vmem:[%s10889_s20 + $0x100] sm:$0xff]  }
0x1073   : > { %9731 = vmatprep.subr.bf16.mxu1 %v10642_v24 }
0x1075   : > { %9706 = vmatpush3.bf16.msra.mxu0 %v10612_v38 }
0x1076   : > { %9707 = vmatprep.subr.bf16.mxu0 %v10613_v39  ;;  %9732 = vmatpush3.bf16.msra.mxu1 %v10644_v55  ;;  %v10654_v39 = vld [vmem:[%s10889_s20 + $0xc0] sm:$0xff]  }
0x1077   : > { %9733 = vmatprep.subr.bf16.mxu1 %v10646_v60 }
0x1079   : > { %9708 = vmatpush3.bf16.msra.mxu0 %v10614_v40  ;;  %v10655_v40 = vld [vmem:[%s10889_s20 + $0x80] sm:$0xff]  }
0x107a   : > { %9709 = vmatprep.subr.bf16.mxu0 %v10615_v41  ;;  %9734 = vmatpush3.bf16.msra.mxu1 %v10648_v32  ;;  %v10657_v41 = vld [vmem:[%s10889_s20 + $0x178] sm:$0xff]  }
0x107b   : > { %9735 = vmatprep.subr.bf16.mxu1 %v10650_v34 }
0x107d   : > { %9710 = vmatpush3.bf16.msra.mxu0 %v10616_v42 }
0x107e   : > { %9711 = vmatprep.subr.bf16.mxu0 %v10617_v43  ;;  %9736 = vmatpush3.bf16.msra.mxu1 %v10652_v37 }
0x107f   : > { %9737 = vmatprep.subr.bf16.mxu1 %v10654_v39 }
0x1081   : > { %9712 = vmatpush3.bf16.msra.mxu0 %v10618_v44 }
0x1082   : > { %9713 = vmatprep.subr.bf16.mxu0 %v10619_v45  ;;  %9738 = vmatpush3.bf16.msra.mxu1 %v10655_v40 }
0x1083   : > { %9767 = vmatprep.subr.bf16.mxu1 %v10657_v41 }
0x1085   : > { %9714 = vmatpush3.bf16.msra.mxu0 %v10620_v46 }
0x1086   : > { %9715 = vmatprep.subr.bf16.mxu0 %v10621_v47 }
0x1089   : > { %9716 = vmatpush3.bf16.msra.mxu0 %v10622_v48 }
0x108a   : > { %9745 = vmatprep.subr.bf16.mxu0 %v10623_v51 }
0x108c   : > { %7609 = vmatmul.mubr.bf16.vlgmr.msra.gmra.mxu0 %v7476_v50 }
0x108d   : > { %9746 = vmatpush3.bf16.msra.mxu0 %v10624_v53 }
0x108e   : > { %9747 = vmatprep.subr.bf16.mxu0 %v10625_v54 }
0x1091   : > { %9748 = vmatpush3.bf16.msra.mxu0 %v10627_v59 }
0x1092   : > { %9749 = vmatprep.subr.bf16.mxu0 %v10629_v61 }
0x1095   : > { %9750 = vmatpush3.bf16.msra.mxu0 %v10631_v0 }
0x1096   : > { %9751 = vmatprep.subr.bf16.mxu0 %v10633_v1  ;;  %v10658_v1 = vld [vmem:[%s10889_s20 + $0x138] sm:$0xff]  }
0x1099   : > { %9752 = vmatpush3.bf16.msra.mxu0 %v10635_v3  ;;  %v10660_v3 = vld [vmem:[%s10889_s20 + $0x170] sm:$0xff]  }
0x109a   : > { %9753 = vmatprep.subr.bf16.mxu0 %v10637_v10  ;;  %v10668_v10 = vld [vmem:[%s10889_s20 + $0x150] sm:$0xff]  }
0x109d   : > { %9754 = vmatpush3.bf16.msra.mxu0 %v10639_v15  ;;  %v10671_v15 = vld [vmem:[%s10889_s20 + $0x108] sm:$0xff]  }
0x109e   : > { %9755 = vmatprep.subr.bf16.mxu0 %v10641_v20 }
0x10a1   : > { %9756 = vmatpush3.bf16.msra.mxu0 %v10643_v25 }
0x10a2   : > { %9757 = vmatprep.subr.bf16.mxu0 %v10645_v28 }
0x10a5   : > { %9758 = vmatpush3.bf16.msra.mxu0 %v10647_v30 }
0x10a6   : > { %9759 = vmatprep.subr.bf16.mxu0 %v10649_v33  ;;  %v9367_v33 = vld [vmem:[%s10894_s27] ss:$0 sm:$0xff] }
0x10a9   : > { %9760 = vmatpush3.bf16.msra.mxu0 %v10651_v36 }
0x1125   : > { %v9695_v4 = vpop.f32.mrf.mxu1 }
0x1127   : > { %v9696_v5 = vpop.f32.mrf.mxu1 }
0x1128   : > { %v9697_v18 = vadd.f32 %v9696_v5, %v9695_v4  ;;  %v10661_v5 = vld [vmem:[%s10889_s20 + $0x130] sm:$0xff]  }
0x1129   : > { %v9698_v12 = vpop.f32.mrf.mxu1 }
0x112a   : > { %v10662_v12 = vld [vmem:[%s10889_s20 + $0x168] sm:$0xff]  }
0x112b   : > { %v9699_v52 = vpop.f32.mrf.mxu1 }
0x112c   : > { %v9673_v6 = vpop.f32.mrf.mxu0  ;;  %v10664_v52 = vld [vmem:[%s10889_s20 + $0x160] sm:$0xff]  }
0x112e   : > { %v9674_v7 = vpop.f32.mrf.mxu0 }
0x112f   : > { %v9675_v11 = vadd.f32 %v9674_v7, %v9673_v6  ;;  %v10663_v6 = vld [vmem:[%s10889_s20 + $0x128] sm:$0xff]   ;;  %v10665_v7 = vld [vmem:[%s10889_s20 + $0x120] sm:$0xff]  }
0x1130   : > { %v9676_v8 = vpop.f32.mrf.mxu0 }
0x1131   : > { %v7431_v22 = vadd.f32 %v9697_v18, %v9675_v11  ;;  %v10666_v8 = vld [vmem:[%s10889_s20 + $0x158] sm:$0xff]   ;;  %v10669_v11 = vld [vmem:[%s10889_s20 + $0x110] sm:$0xff]  }
0x1132   : > { %v9677_v9 = vpop.f32.mrf.mxu0 }
0x1133   : > { %v10667_v9 = vld [vmem:[%s10889_s20 + $0x118] sm:$0xff]  }
0x114c   : > { %v9717_v16 = vpop.f32.mrf.mxu0 }
0x114e   : > { %v9718_v19 = vpop.f32.mrf.mxu0 }
0x114f   : > { %v9719_v21 = vadd.f32 %v9718_v19, %v9717_v16  ;;  %v10672_v16 = vld [vmem:[%s10889_s20 + $0x140] sm:$0xff]  }
0x1150   : > { %v9720_v27 = vpop.f32.mrf.mxu0 }
0x1151   : > { %v7616_v29 = vadd.f32 %v9719_v21, %v7431_v22 }
0x1152   : > { %v9721_v31 = vpop.f32.mrf.mxu0 }
0x1153   : > { %v7624_v23 = vadd.f32 %v9254_v26, %v7616_v29 }
0x1155   : > { %v7625_v35 = vmax.f32 %v7624_v23, 0.0 }
0x1157   : > { %v7628_v38 = vrot.slane %v7625_v35, 7 }
0x1159   : > { %7629 = vrot.lane.b32.xlu0 %v7628_v38, %s10725_s23 }
0x11cb   : > { %v7630_v42 = vpop.permute.xlu0 %7629 }
0x11cc   : > { %v7631_v43 = vrot.slane %v7630_v42, 4 }
0x11ce   : > { %v7632_v44 = vsel %vm3429_vm6, %v7631_v43, %v7630_v42  ;;  %vm8200_vm6 = vcmask 516096  }
0x11cf   : > { %7634 = vst.msk [vmem:[#allocation9] sm:$0x66] %vm11833_vm5, %v7632_v44 }
0x11d6   : > { %v7635_v45 = vld [vmem:[#allocation9] sm:$0x33]  ;;  %v7637_v47 = vld [vmem:[#allocation9] sm:$0xcc] }
0x11d7   : > { %v7636_v46 = vld [vmem:[#allocation9] sm:$0x66]  ;;  %v7639_v48 = vcombine.high %v7635_v45, %v7635_v45  ;;  %v8002_v56 = vcombine.high %v7637_v47, %v7637_v47  ;;  %v7641_v57 = vpack.c.bf16 %v7635_v45, %v7635_v45  ;;  %v8004_v18 = vpack.c.bf16 %v7637_v47, %v7637_v47 }
0x11d8   : > { %v7676_v49 = vcombine.high %v7636_v46, %v7636_v46  ;;  %v7678_v50 = vpack.c.bf16 %v7636_v46, %v7636_v46 }
0x11d9   : > { %v7642_v51 = vpack.c.bf16 %v7639_v48, %v7639_v48  ;;  %v8005_v62 = vpack.c.bf16 %v8002_v56, %v8002_v56  ;;  %v8041_v19 = vrot.slane %v8004_v18, 1 }
0x11da   : > { %v7679_v53 = vpack.c.bf16 %v7676_v49, %v7676_v49  ;;  %v7716_v54 = vshll.u32 %v7678_v50, 16  ;;  %v7714_v63 = vshrl.u32 %v7678_v50, 16 }
0x11db   : > { %7993 = vmatprep.mubr.bf16.mxu0 %v7642_v51  ;;  %v8042_v4 = vrot.slane %v8005_v62, 1 }
0x11dc   : > { %v7723_v58 = vshll.u32 %v7679_v53, 16  ;;  %7994 = vmatmul.mubr.bf16.vlgmr.msra.gmra.mxu0 %v7641_v57  ;;  %v7718_v59 = vrot.slane %v7716_v54, 1  ;;  %v7721_v13 = vshrl.u32 %v7679_v53, 16 }
0x11de   : > { %v7725_v61 = vrot.slane %v7723_v58, 1  ;;  %v7719_v2 = vor.u32 %v7718_v59, %v7714_v63 }
0x11e0   : > { %v7726_v0 = vor.u32 %v7725_v61, %v7721_v13 }
0x11e2   : > { %7857 = vmatprep.mubr.bf16.mxu1 %v7726_v0 }
0x11e3   : > { %7858 = vmatmul.mubr.bf16.vlgmr.msra.gmra.mxu1 %v7719_v2 }
0x11e4   : > { %9768 = vmatpush3.bf16.msra.mxu1 %v10658_v1  ;;  %8173 = vmatprep.mubr.bf16.mxu1 %v8042_v4 }
0x11e5   : > { %9769 = vmatprep.subr.bf16.mxu1 %v10660_v3 }
0x11e8   : > { %9770 = vmatpush3.bf16.msra.mxu1 %v10661_v5 }
0x11e9   : > { %9771 = vmatprep.subr.bf16.mxu1 %v10662_v12 }
0x11ec   : > { %9772 = vmatpush3.bf16.msra.mxu1 %v10663_v6 }
0x11ed   : > { %9773 = vmatprep.subr.bf16.mxu1 %v10664_v52 }
0x11f0   : > { %9774 = vmatpush3.bf16.msra.mxu1 %v10665_v7 }
0x11f1   : > { %9775 = vmatprep.subr.bf16.mxu1 %v10666_v8 }
0x11f4   : > { %9776 = vmatpush3.bf16.msra.mxu1 %v10667_v9 }
0x11f5   : > { %9777 = vmatprep.subr.bf16.mxu1 %v10668_v10 }
0x11f8   : > { %9778 = vmatpush3.bf16.msra.mxu1 %v10669_v11 }
0x11f9   : > { %9779 = vmatprep.subr.bf16.mxu1 %v10670_v14 }
0x11fc   : > { %9780 = vmatpush3.bf16.msra.mxu1 %v10671_v15 }
0x11fd   : > { %9781 = vmatprep.subr.bf16.mxu1 %v10672_v16 }
0x1200   : > { %9782 = vmatpush3.bf16.msra.mxu1 %v10673_v17 }
0x1203   : > { %8174 = vmatmul.mubr.bf16.vlgmr.msra.gmra.mxu1 %v8041_v19 }
0x129c   : > { %v9761_v20 = vpop.f32.mrf.mxu0 }
0x129e   : > { %v9762_v22 = vpop.f32.mrf.mxu0 }
0x129f   : > { %v9763_v29 = vadd.f32 %v9762_v22, %v9761_v20 }
0x12a0   : > { %v9764_v21 = vpop.f32.mrf.mxu0 }
0x12a2   : > { %v9765_v25 = vpop.f32.mrf.mxu0 }
0x12a3   : > { %v9739_v24 = vpop.f32.mrf.mxu1 }
0x12a5   : > { %v9740_v55 = vpop.f32.mrf.mxu1 }
0x12a6   : > { %v9741_v28 = vadd.f32 %v9740_v55, %v9739_v24 }
0x12a7   : > { %v9742_v26 = vpop.f32.mrf.mxu1 }
0x12a8   : > { %v7996_v31 = vadd.f32 %v9763_v29, %v9741_v28 }
0x12a9   : > { %v9743_v27 = vpop.f32.mrf.mxu1 }
0x12c3   : > { %v9783_v60 = vpop.f32.mrf.mxu1 }
0x12c5   : > { %v9784_v30 = vpop.f32.mrf.mxu1 }
0x12c6   : > { %v9785_v32 = vadd.f32 %v9784_v30, %v9783_v60 }
0x12c7   : > { %v9786_v23 = vpop.f32.mrf.mxu1 }
0x12c8   : > { %v8181_v34 = vadd.f32 %v9785_v32, %v7996_v31 }
0x12c9   : > { %v9787_v35 = vpop.f32.mrf.mxu1 }
0x12ca   : > { %v8189_v36 = vadd.f32 %v9367_v33, %v8181_v34 }
0x12cc   : > { %v8190_v37 = vmax.f32 %v8189_v36, 0.0 }
0x12ce   : > { %v8192_v38 = vrot.slane %v8190_v37, 1 }
0x12d0   : > { %v8194_v39 = vmax.f32 %v8190_v37, %v8192_v38 }
0x12d2   : > { %8196 = vrot.lane.b32.xlu1 %v8194_v39, %s10725_s23 }
0x1344   : > { %v8197_v40 = vpop.permute.xlu1 %8196 }
0x1345   : > { %v8199_v41 = vmax.f32 %v8194_v39, %v8197_v40 }
0x1347   : > { %8201 = vst.msk [vmem:[%s1010_s1] sm:$0x1] %vm8200_vm6, %v8199_v41 }
0x1348 PF: > { %s77_s7 = sadd.s32 1, %s10684_s7  }
0x1349   : > { %p74_p4 = scmp.ge.s32.totalorder %s77_s7, 4  }
0x134b   :  { %76 = sbr.rel (!%p74_p4) target bundleno = 59 (0x3b), region = 231 }

</bundles_post_ra>
